<compile_context>
chip_gen: v7x
topology: tpu7x:2x2x1
jax: 0.10.0
libtpu: 0.0.40
codegen_flags: <defaults>
</compile_context>

<pallas_src>
import functools

import jax
import jax.numpy as jnp
from jax.experimental import pallas as pl
from jax.experimental.pallas import tpu as pltpu


_VMEM_LIMIT = 32 * 1024 * 1024          # actual usage is ~2 MB; plenty of headroom

# Real / padded channel counts (padded to lane-dense multiples of 128).
_C1_OUT, _C1_PAD = 64, 128
_C2_OUT, _C2_PAD = 192, 256
_K1, _K1_PAD = 11 * 11 * 3, 384         # conv1 im2col depth, padded to 128-multiple


def _round_up(x, m):
    return (x + m - 1) // m * m


# ---------------------------------------------------------------------------
# Kernel A: conv1 (single im2col matmul) + bias + ReLU + 3x3 stride-1 window max
# ---------------------------------------------------------------------------
def _conv1_relu_winmax_kernel(x_ref, w_ref, b_ref, o_ref, *, B, oh, ow, ow_pad):
    # x: (B*oh*ow_pad, Kp) bf16   w: (Kp, N) bf16   b: (1, N) f32
    # o: (B, oh-2, ow-2, N) f32  = stride-1 3x3 windowed max of relu(conv1)
    n = w_ref.shape[1]
    y = jnp.dot(x_ref[...], w_ref[...], preferred_element_type=jnp.float32)
    y = jnp.maximum(y + b_ref[...], 0.0)
    # ow_pad is a multiple of 16 -> this reshape is sublane-tile aligned.
    y = y.reshape(B, oh, ow_pad, n)
    # 3-wide windowed max along W (valid ow columns only), then along H.
    mw = jnp.maximum(jnp.maximum(y[:, :, 0:ow - 2, :], y[:, :, 1:ow - 1, :]),
                     y[:, :, 2:ow, :])
    mh = jnp.maximum(jnp.maximum(mw[:, 0:oh - 2], mw[:, 1:oh - 1]), mw[:, 2:oh])
    o_ref[...] = mh.astype(o_ref.dtype)


# ---------------------------------------------------------------------------
# Kernel B: conv2 as 25 in-VMEM shifted-slice matmuls + bias + ReLU
#           + MaxPool2d(3,2) + AvgPool2d(3), all fused
# ---------------------------------------------------------------------------
def _conv2_relu_pool_avg_kernel(x_ref, w_ref, b_ref, o_ref, acc_ref, *, B, s, sp):
    # x: (B, sp+4, sp+4, Cin) f32, zero-padded halo (data at [2:2+s, 2:2+s])
    # w: (25, Cin, Cout) bf16     b: (1, Cout) f32
    # acc: (B*sp*sp, Cout) f32 VMEM scratch     o: (B, Cout) f32
    cin = x_ref.shape[3]
    cout = w_ref.shape[2]
    acc_ref[...] = jnp.zeros_like(acc_ref)
    for t in range(25):                       # static, fully unrolled 5x5 taps
        di, dj = divmod(t, 5)
        patch = x_ref[:, di:di + sp, dj:dj + sp, :]            # (B, sp, sp, Cin) f32
        patch = patch.reshape(B * sp * sp, cin).astype(jnp.bfloat16)
        acc_ref[...] += jnp.dot(patch, w_ref[t],
                                preferred_element_type=jnp.float32)
    y = jnp.maximum(acc_ref[...] + b_ref[...], 0.0).reshape(B, sp, sp, cout)
    # MaxPool2d(3, 2): separable stride-1 windowed max over the s x s valid region.
    mw = jnp.maximum(jnp.maximum(y[:, :, 0:s - 2, :], y[:, :, 1:s - 1, :]),
                     y[:, :, 2:s, :])
    mh = jnp.maximum(jnp.maximum(mw[:, 0:s - 2], mw[:, 1:s - 1]), mw[:, 2:s])
    # AvgPool2d(3) of the p x p max-pool outputs == mean of mh at even indices.
    p = (s - 3) // 2 + 1
    acc = None
    for i in range(p):
        for j in range(p):
            v = mh[:, 2 * i, 2 * j, :]                         # (B, Cout)
            acc = v if acc is None else acc + v
    o_ref[...] = acc * (1.0 / (p * p))


# ---------------------------------------------------------------------------
# XLA-side glue: one-time im2col for conv1 (pad folded in by the caller)
# ---------------------------------------------------------------------------
def _im2col_conv1(x_nhwc, k, stride, pad):
    xp = jnp.pad(x_nhwc, ((0, 0), (pad, pad), (pad, pad), (0, 0)))
    B, H, W, C = xp.shape
    oh = (H - k) // stride + 1
    ow = (W - k) // stride + 1
    cols = []
    for i in range(k):
        for j in range(k):
            cols.append(xp[:, i:i + (oh - 1) * stride + 1:stride,
                            j:j + (ow - 1) * stride + 1:stride, :])
    patches = jnp.stack(cols, axis=3).reshape(B, oh, ow, k * k * C)
    return patches, oh, ow


# ---------------------------------------------------------------------------
# Parameters
# ---------------------------------------------------------------------------
def init_params(key):
    k1, k2, k3, k4 = jax.random.split(key, 4)
    # Same shapes as AlexNet features[0] / features[3]; synthetic values.
    return {
        "w1": jax.random.normal(k1, (_C1_OUT, 3, 11, 11), jnp.float32) * 0.05,
        "b1": jax.random.normal(k2, (_C1_OUT,), jnp.float32) * 0.01,
        "w2": jax.random.normal(k3, (_C2_OUT, _C1_OUT, 5, 5), jnp.float32) * 0.02,
        "b2": jax.random.normal(k4, (_C2_OUT,), jnp.float32) * 0.01,
    }


def prepare_params(params):
    """One-time relayout: OIHW -> matmul layouts, zero-padded lane-dense, bf16."""
    # Conv1: (64,3,11,11) -> (363,64) -> pad to (384,128), bf16.
    w1 = jnp.transpose(params["w1"], (2, 3, 1, 0)).reshape(_K1, _C1_OUT)
    w1 = jnp.pad(w1, ((0, _K1_PAD - _K1), (0, _C1_PAD - _C1_OUT))).astype(jnp.bfloat16)
    b1 = jnp.pad(params["b1"], (0, _C1_PAD - _C1_OUT)).astype(jnp.float32)[None, :]
    # Conv2: (192,64,5,5) -> (5,5,64,192) -> pad Cin->128, Cout->256 -> (25,128,256) bf16.
    w2 = jnp.transpose(params["w2"], (2, 3, 1, 0))
    w2 = jnp.pad(w2, ((0, 0), (0, 0), (0, _C1_PAD - _C1_OUT), (0, _C2_PAD - _C2_OUT)))
    w2 = w2.reshape(25, _C1_PAD, _C2_PAD).astype(jnp.bfloat16)
    b2 = jnp.pad(params["b2"], (0, _C2_PAD - _C2_OUT)).astype(jnp.float32)[None, :]
    return {"w1": w1, "b1": b1, "w2": w2, "b2": b2}


# ---------------------------------------------------------------------------
# Full forward pass (matches the PyTorch module exactly, modulo bf16 matmuls)
# ---------------------------------------------------------------------------
def alexnet_conv4_forward(x_nchw, prepared):
    w1, b1 = prepared["w1"], prepared["b1"]
    w2, b2 = prepared["w2"], prepared["b2"]
    B = x_nchw.shape[0]

    # NCHW -> NHWC (channels on the 128-lane axis).
    x = jnp.transpose(x_nchw, (0, 2, 3, 1)).astype(jnp.float32)

    # features[0:2]: Conv2d(3,64,11,s=4,p=2) + ReLU, fused with the windowed-max
    # half of features[2] MaxPool2d(3,2).  One pad folds M/K alignment + K pad.
    patches, oh, ow = _im2col_conv1(x, k=11, stride=4, pad=2)
    ow_pad = _round_up(ow, 16)                 # 16-row groups: aligned in-kernel reshape
    kp1, n1 = w1.shape
    patches = jnp.pad(
        patches, ((0, 0), (0, 0), (0, ow_pad - ow), (0, kp1 - patches.shape[-1])))
    patches = patches.reshape(B * oh * ow_pad, kp1).astype(jnp.bfloat16)

    winmax = pl.pallas_call(
        functools.partial(_conv1_relu_winmax_kernel,
                          B=B, oh=oh, ow=ow, ow_pad=ow_pad),
        out_shape=jax.ShapeDtypeStruct((B, oh - 2, ow - 2, n1), jnp.float32),
        compiler_params=pltpu.CompilerParams(vmem_limit_bytes=_VMEM_LIMIT),
    )(patches, w1, b1)

    # Finish MaxPool2d(3,2) (stride-2 subsample) fused with the conv2 halo pad.
    pooled = winmax[:, ::2, ::2, :]            # (B, 7, 7, 128)
    s = pooled.shape[1]
    sp = _round_up(s, 8)
    assert (s - 3) // 2 + 1 == 3, "pipeline assumes a 3x3 map before AvgPool2d(3)"
    x2 = jnp.pad(pooled, ((0, 0), (2, sp + 2 - s), (2, sp + 2 - s), (0, 0)))

    # features[3:6] + AvgPool2d(3): conv2 + ReLU + MaxPool2d(3,2) + AvgPool2d(3).
    cout_pad = w2.shape[2]
    feat = pl.pallas_call(
        functools.partial(_conv2_relu_pool_avg_kernel, B=B, s=s, sp=sp),
        out_shape=jax.ShapeDtypeStruct((B, cout_pad), jnp.float32),
        scratch_shapes=[pltpu.VMEM((B * sp * sp, cout_pad), jnp.float32)],
        compiler_params=pltpu.CompilerParams(vmem_limit_bytes=_VMEM_LIMIT),
    )(x2, w2, b2)

    # Drop channel padding (256 -> 192); spatial is 1x1 -> NCHW.
    return feat[:, :_C2_OUT].reshape(B, _C2_OUT, 1, 1)


# ---------------------------------------------------------------------------
# Pure-JAX f32 reference (sanity cross-check only)
# ---------------------------------------------------------------------------
def _reference_forward(x_nchw, params):
    dn = ("NCHW", "OIHW", "NCHW")
    y = jax.lax.conv_general_dilated(x_nchw, params["w1"], (4, 4),
                                     ((2, 2), (2, 2)), dimension_numbers=dn)
    y = jnp.maximum(y + params["b1"][None, :, None, None], 0.0)
    y = jax.lax.reduce_window(y, -jnp.inf, jax.lax.max,
                              (1, 1, 3, 3), (1, 1, 2, 2), "VALID")
    y = jax.lax.conv_general_dilated(y, params["w2"], (1, 1),
                                     ((2, 2), (2, 2)), dimension_numbers=dn)
    y = jnp.maximum(y + params["b2"][None, :, None, None], 0.0)
    y = jax.lax.reduce_window(y, -jnp.inf, jax.lax.max,
                              (1, 1, 3, 3), (1, 1, 2, 2), "VALID")
    y = jax.lax.reduce_window(y, 0.0, jax.lax.add,
                              (1, 1, 3, 3), (1, 1, 3, 3), "VALID") / 9.0
    return y


if __name__ == "__main__":
    key = jax.random.PRNGKey(0)
    kx, kp = jax.random.split(key)
    # 63 -> conv(11,s4,p2)=15 -> maxpool(3,2)=7 -> conv(5,p2)=7
    #    -> maxpool(3,2)=3 -> avgpool(3)=1
    x = jax.random.normal(kx, (2, 3, 63, 63), jnp.float32)   # NCHW, like PyTorch
    params = init_params(kp)
    prepared = prepare_params(params)     # one-time relayout / padding / bf16 cast

    fwd = jax.jit(alexnet_conv4_forward)
    out = jax.block_until_ready(fwd(x, prepared))

    assert out.shape == (2, _C2_OUT, 1, 1), out.shape
    assert bool(jnp.all(jnp.isfinite(out)))

    # Cross-check against the pure-JAX f32 reference (bf16 MXU operands -> loose tol).
    ref = _reference_forward(x, params)
    scale = float(jnp.max(jnp.abs(ref)))
    err = float(jnp.max(jnp.abs(out - ref)))
    assert err <= 0.05 * scale + 1e-2, (err, scale)

    print("KERNEL_OK")
</pallas_src>

<mosaic_0001>
module attributes {stable_mosaic.version = 11 : i64} {
  func.func @_conv1_relu_winmax_kernel(%arg0: memref<480x384xbf16, #tpu.memory_space<vmem>>, %arg1: memref<384x128xbf16, #tpu.memory_space<vmem>>, %arg2: memref<1x128xf32, #tpu.memory_space<vmem>>, %arg3: memref<2x13x13x128xf32, #tpu.memory_space<vmem>>) attributes {dimension_semantics = [], scalar_prefetch = 0 : i64, scratch_operands = 0 : i64, tpu.core_type = #tpu.core_type<tc>} {
    %c0 = arith.constant 0 : index
    %c0_0 = arith.constant 0 : index
    %0 = vector.load %arg0[%c0, %c0_0] : memref<480x384xbf16, #tpu.memory_space<vmem>>, vector<480x384xbf16>
    %c0_1 = arith.constant 0 : index
    %c0_2 = arith.constant 0 : index
    %1 = vector.load %arg1[%c0_1, %c0_2] : memref<384x128xbf16, #tpu.memory_space<vmem>>, vector<384x128xbf16>
    %cst = arith.constant dense<0.000000e+00> : vector<480x128xf32>
    %2 = tpu.matmul %0, %1, %cst {dimension_numbers = #tpu.dot_dimension_numbers<[1], [0], [0], [1], [0, 0, 1, 1], [], []>} : vector<480x384xbf16>, vector<384x128xbf16>, vector<480x128xf32> -> vector<480x128xf32>
    %c0_3 = arith.constant 0 : index
    %c0_4 = arith.constant 0 : index
    %3 = vector.load %arg2[%c0_3, %c0_4] : memref<1x128xf32, #tpu.memory_space<vmem>>, vector<1x128xf32>
    %4 = vector.broadcast %3 : vector<1x128xf32> to vector<480x128xf32>
    %5 = arith.addf %2, %4 : vector<480x128xf32>
    %cst_5 = arith.constant 0.000000e+00 : f32
    %6 = vector.broadcast %cst_5 : f32 to vector<480x128xf32>
    %7 = arith.maximumf %5, %6 : vector<480x128xf32>
    %8 = vector.shape_cast %7 : vector<480x128xf32> to vector<2x15x16x128xf32>
    %9 = vector.extract_strided_slice %8 {offsets = [0, 0, 0, 0], sizes = [2, 15, 13, 128], strides = [1, 1, 1, 1]} : vector<2x15x16x128xf32> to vector<2x15x13x128xf32>
    %10 = vector.extract_strided_slice %8 {offsets = [0, 0, 1, 0], sizes = [2, 15, 13, 128], strides = [1, 1, 1, 1]} : vector<2x15x16x128xf32> to vector<2x15x13x128xf32>
    %11 = arith.maximumf %9, %10 : vector<2x15x13x128xf32>
    %12 = vector.extract_strided_slice %8 {offsets = [0, 0, 2, 0], sizes = [2, 15, 13, 128], strides = [1, 1, 1, 1]} : vector<2x15x16x128xf32> to vector<2x15x13x128xf32>
    %13 = arith.maximumf %11, %12 : vector<2x15x13x128xf32>
    %14 = vector.extract_strided_slice %13 {offsets = [0, 0, 0, 0], sizes = [2, 13, 13, 128], strides = [1, 1, 1, 1]} : vector<2x15x13x128xf32> to vector<2x13x13x128xf32>
    %15 = vector.extract_strided_slice %13 {offsets = [0, 1, 0, 0], sizes = [2, 13, 13, 128], strides = [1, 1, 1, 1]} : vector<2x15x13x128xf32> to vector<2x13x13x128xf32>
    %16 = arith.maximumf %14, %15 : vector<2x13x13x128xf32>
    %17 = vector.extract_strided_slice %13 {offsets = [0, 2, 0, 0], sizes = [2, 13, 13, 128], strides = [1, 1, 1, 1]} : vector<2x15x13x128xf32> to vector<2x13x13x128xf32>
    %18 = arith.maximumf %16, %17 : vector<2x13x13x128xf32>
    %c0_6 = arith.constant 0 : index
    %c0_7 = arith.constant 0 : index
    %c0_8 = arith.constant 0 : index
    %c0_9 = arith.constant 0 : index
    %19 = vector.load %arg3[%c0_6, %c0_7, %c0_8, %c0_9] : memref<2x13x13x128xf32, #tpu.memory_space<vmem>>, vector<2x13x13x128xf32>
    tpu.vector_store %arg3[%c0_6, %c0_7, %c0_8, %c0_9], %18 {strides = array<i32>} : memref<2x13x13x128xf32, #tpu.memory_space<vmem>>, vector<2x13x13x128xf32>,
    return
  }
}

module attributes {stable_mosaic.version = 11 : i64} {
  func.func @_conv2_relu_pool_avg_kernel(%arg0: memref<2x12x12x128xf32, #tpu.memory_space<vmem>>, %arg1: memref<25x128x256xbf16, #tpu.memory_space<vmem>>, %arg2: memref<1x256xf32, #tpu.memory_space<vmem>>, %arg3: memref<2x256xf32, #tpu.memory_space<vmem>>, %arg4: memref<128x256xf32, #tpu.memory_space<vmem>>) attributes {dimension_semantics = [], scalar_prefetch = 0 : i64, scratch_operands = 1 : i64, tpu.core_type = #tpu.core_type<tc>} {
    %cst = arith.constant 0.000000e+00 : f32
    %0 = vector.broadcast %cst : f32 to vector<128x256xf32>
    %c0 = arith.constant 0 : index
    %c0_0 = arith.constant 0 : index
    %1 = vector.load %arg4[%c0, %c0_0] : memref<128x256xf32, #tpu.memory_space<vmem>>, vector<128x256xf32>
    tpu.vector_store %arg4[%c0, %c0_0], %0 {strides = array<i32>} : memref<128x256xf32, #tpu.memory_space<vmem>>, vector<128x256xf32>,
    %c0_1 = arith.constant 0 : index
    %c0_2 = arith.constant 0 : index
    %c0_3 = arith.constant 0 : index
    %c0_4 = arith.constant 0 : index
    %2 = vector.load %arg0[%c0_1, %c0_2, %c0_3, %c0_4] : memref<2x12x12x128xf32, #tpu.memory_space<vmem>>, vector<2x8x8x128xf32>
    %3 = vector.shape_cast %2 : vector<2x8x8x128xf32> to vector<128x128xf32>
    %4 = arith.truncf %3 : vector<128x128xf32> to vector<128x128xbf16>
    %c0_5 = arith.constant 0 : index
    %c0_6 = arith.constant 0 : index
    %5 = vector.load %arg4[%c0_5, %c0_6] : memref<128x256xf32, #tpu.memory_space<vmem>>, vector<128x256xf32>
    %c0_7 = arith.constant 0 : index
    %c0_8 = arith.constant 0 : index
    %c0_9 = arith.constant 0 : index
    %6 = vector.load %arg1[%c0_7, %c0_8, %c0_9] : memref<25x128x256xbf16, #tpu.memory_space<vmem>>, vector<1x128x256xbf16>
    %7 = vector.shape_cast %6 : vector<1x128x256xbf16> to vector<128x256xbf16>
    %cst_10 = arith.constant dense<0.000000e+00> : vector<128x256xf32>
    %8 = tpu.matmul %4, %7, %cst_10 {dimension_numbers = #tpu.dot_dimension_numbers<[1], [0], [0], [1], [0, 0, 1, 1], [], []>} : vector<128x128xbf16>, vector<128x256xbf16>, vector<128x256xf32> -> vector<128x256xf32>
    %9 = arith.addf %5, %8 : vector<128x256xf32>
    %c0_11 = arith.constant 0 : index
    %c0_12 = arith.constant 0 : index
    %10 = vector.load %arg4[%c0_11, %c0_12] : memref<128x256xf32, #tpu.memory_space<vmem>>, vector<128x256xf32>
    tpu.vector_store %arg4[%c0_11, %c0_12], %9 {strides = array<i32>} : memref<128x256xf32, #tpu.memory_space<vmem>>, vector<128x256xf32>,
    %c0_13 = arith.constant 0 : index
    %c0_14 = arith.constant 0 : index
    %c1 = arith.constant 1 : index
    %c0_15 = arith.constant 0 : index
    %11 = vector.load %arg0[%c0_13, %c0_14, %c1, %c0_15] : memref<2x12x12x128xf32, #tpu.memory_space<vmem>>, vector<2x8x8x128xf32>
    %12 = vector.shape_cast %11 : vector<2x8x8x128xf32> to vector<128x128xf32>
    %13 = arith.truncf %12 : vector<128x128xf32> to vector<128x128xbf16>
    %c0_16 = arith.constant 0 : index
    %c0_17 = arith.constant 0 : index
    %14 = vector.load %arg4[%c0_16, %c0_17] : memref<128x256xf32, #tpu.memory_space<vmem>>, vector<128x256xf32>
    %c1_18 = arith.constant 1 : index
    %c0_19 = arith.constant 0 : index
    %c0_20 = arith.constant 0 : index
    %15 = vector.load %arg1[%c1_18, %c0_19, %c0_20] : memref<25x128x256xbf16, #tpu.memory_space<vmem>>, vector<1x128x256xbf16>
    %16 = vector.shape_cast %15 : vector<1x128x256xbf16> to vector<128x256xbf16>
    %cst_21 = arith.constant dense<0.000000e+00> : vector<128x256xf32>
    %17 = tpu.matmul %13, %16, %cst_21 {dimension_numbers = #tpu.dot_dimension_numbers<[1], [0], [0], [1], [0, 0, 1, 1], [], []>} : vector<128x128xbf16>, vector<128x256xbf16>, vector<128x256xf32> -> vector<128x256xf32>
    %18 = arith.addf %14, %17 : vector<128x256xf32>
    %c0_22 = arith.constant 0 : index
    %c0_23 = arith.constant 0 : index
    %19 = vector.load %arg4[%c0_22, %c0_23] : memref<128x256xf32, #tpu.memory_space<vmem>>, vector<128x256xf32>
    tpu.vector_store %arg4[%c0_22, %c0_23], %18 {strides = array<i32>} : memref<128x256xf32, #tpu.memory_space<vmem>>, vector<128x256xf32>,
    %c0_24 = arith.constant 0 : index
    %c0_25 = arith.constant 0 : index
    %c2 = arith.constant 2 : index
    %c0_26 = arith.constant 0 : index
    %20 = vector.load %arg0[%c0_24, %c0_25, %c2, %c0_26] : memref<2x12x12x128xf32, #tpu.memory_space<vmem>>, vector<2x8x8x128xf32>
    %21 = vector.shape_cast %20 : vector<2x8x8x128xf32> to vector<128x128xf32>
    %22 = arith.truncf %21 : vector<128x128xf32> to vector<128x128xbf16>
    %c0_27 = arith.constant 0 : index
    %c0_28 = arith.constant 0 : index
    %23 = vector.load %arg4[%c0_27, %c0_28] : memref<128x256xf32, #tpu.memory_space<vmem>>, vector<128x256xf32>
    %c2_29 = arith.constant 2 : index
    %c0_30 = arith.constant 0 : index
    %c0_31 = arith.constant 0 : index
    %24 = vector.load %arg1[%c2_29, %c0_30, %c0_31] : memref<25x128x256xbf16, #tpu.memory_space<vmem>>, vector<1x128x256xbf16>
    %25 = vector.shape_cast %24 : vector<1x128x256xbf16> to vector<128x256xbf16>
    %cst_32 = arith.constant dense<0.000000e+00> : vector<128x256xf32>
    %26 = tpu.matmul %22, %25, %cst_32 {dimension_numbers = #tpu.dot_dimension_numbers<[1], [0], [0], [1], [0, 0, 1, 1], [], []>} : vector<128x128xbf16>, vector<128x256xbf16>, vector<128x256xf32> -> vector<128x256xf32>
    %27 = arith.addf %23, %26 : vector<128x256xf32>
    %c0_33 = arith.constant 0 : index
    %c0_34 = arith.constant 0 : index
    %28 = vector.load %arg4[%c0_33, %c0_34] : memref<128x256xf32, #tpu.memory_space<vmem>>, vector<128x256xf32>
    tpu.vector_store %arg4[%c0_33, %c0_34], %27 {strides = array<i32>} : memref<128x256xf32, #tpu.memory_space<vmem>>, vector<128x256xf32>,
    %c0_35 = arith.constant 0 : index
    %c0_36 = arith.constant 0 : index
    %c3 = arith.constant 3 : index
    %c0_37 = arith.constant 0 : index
    %29 = vector.load %arg0[%c0_35, %c0_36, %c3, %c0_37] : memref<2x12x12x128xf32, #tpu.memory_space<vmem>>, vector<2x8x8x128xf32>
    %30 = vector.shape_cast %29 : vector<2x8x8x128xf32> to vector<128x128xf32>
    %31 = arith.truncf %30 : vector<128x128xf32> to vector<128x128xbf16>
    %c0_38 = arith.constant 0 : index
    %c0_39 = arith.constant 0 : index
    %32 = vector.load %arg4[%c0_38, %c0_39] : memref<128x256xf32, #tpu.memory_space<vmem>>, vector<128x256xf32>
    %c3_40 = arith.constant 3 : index
    %c0_41 = arith.constant 0 : index
    %c0_42 = arith.constant 0 : index
    %33 = vector.load %arg1[%c3_40, %c0_41, %c0_42] : memref<25x128x256xbf16, #tpu.memory_space<vmem>>, vector<1x128x256xbf16>
    %34 = vector.shape_cast %33 : vector<1x128x256xbf16> to vector<128x256xbf16>
    %cst_43 = arith.constant dense<0.000000e+00> : vector<128x256xf32>
    %35 = tpu.matmul %31, %34, %cst_43 {dimension_numbers = #tpu.dot_dimension_numbers<[1], [0], [0], [1], [0, 0, 1, 1], [], []>} : vector<128x128xbf16>, vector<128x256xbf16>, vector<128x256xf32> -> vector<128x256xf32>
    %36 = arith.addf %32, %35 : vector<128x256xf32>
    %c0_44 = arith.constant 0 : index
    %c0_45 = arith.constant 0 : index
    %37 = vector.load %arg4[%c0_44, %c0_45] : memref<128x256xf32, #tpu.memory_space<vmem>>, vector<128x256xf32>
    tpu.vector_store %arg4[%c0_44, %c0_45], %36 {strides = array<i32>} : memref<128x256xf32, #tpu.memory_space<vmem>>, vector<128x256xf32>,
    %c0_46 = arith.constant 0 : index
    %c0_47 = arith.constant 0 : index
    %c4 = arith.constant 4 : index
    %c0_48 = arith.constant 0 : index
    %38 = vector.load %arg0[%c0_46, %c0_47, %c4, %c0_48] : memref<2x12x12x128xf32, #tpu.memory_space<vmem>>, vector<2x8x8x128xf32>
    %39 = vector.shape_cast %38 : vector<2x8x8x128xf32> to vector<128x128xf32>
    %40 = arith.truncf %39 : vector<128x128xf32> to vector<128x128xbf16>
    %c0_49 = arith.constant 0 : index
    %c0_50 = arith.constant 0 : index
    %41 = vector.load %arg4[%c0_49, %c0_50] : memref<128x256xf32, #tpu.memory_space<vmem>>, vector<128x256xf32>
    %c4_51 = arith.constant 4 : index
    %c0_52 = arith.constant 0 : index
    %c0_53 = arith.constant 0 : index
    %42 = vector.load %arg1[%c4_51, %c0_52, %c0_53] : memref<25x128x256xbf16, #tpu.memory_space<vmem>>, vector<1x128x256xbf16>
    %43 = vector.shape_cast %42 : vector<1x128x256xbf16> to vector<128x256xbf16>
    %cst_54 = arith.constant dense<0.000000e+00> : vector<128x256xf32>
    %44 = tpu.matmul %40, %43, %cst_54 {dimension_numbers = #tpu.dot_dimension_numbers<[1], [0], [0], [1], [0, 0, 1, 1], [], []>} : vector<128x128xbf16>, vector<128x256xbf16>, vector<128x256xf32> -> vector<128x256xf32>
    %45 = arith.addf %41, %44 : vector<128x256xf32>
    %c0_55 = arith.constant 0 : index
    %c0_56 = arith.constant 0 : index
    %46 = vector.load %arg4[%c0_55, %c0_56] : memref<128x256xf32, #tpu.memory_space<vmem>>, vector<128x256xf32>
    tpu.vector_store %arg4[%c0_55, %c0_56], %45 {strides = array<i32>} : memref<128x256xf32, #tpu.memory_space<vmem>>, vector<128x256xf32>,
    %c0_57 = arith.constant 0 : index
    %c1_58 = arith.constant 1 : index
    %c0_59 = arith.constant 0 : index
    %c0_60 = arith.constant 0 : index
    %47 = vector.load %arg0[%c0_57, %c1_58, %c0_59, %c0_60] : memref<2x12x12x128xf32, #tpu.memory_space<vmem>>, vector<2x8x8x128xf32>
    %48 = vector.shape_cast %47 : vector<2x8x8x128xf32> to vector<128x128xf32>
    %49 = arith.truncf %48 : vector<128x128xf32> to vector<128x128xbf16>
    %c0_61 = arith.constant 0 : index
    %c0_62 = arith.constant 0 : index
    %50 = vector.load %arg4[%c0_61, %c0_62] : memref<128x256xf32, #tpu.memory_space<vmem>>, vector<128x256xf32>
    %c5 = arith.constant 5 : index
    %c0_63 = arith.constant 0 : index
    %c0_64 = arith.constant 0 : index
    %51 = vector.load %arg1[%c5, %c0_63, %c0_64] : memref<25x128x256xbf16, #tpu.memory_space<vmem>>, vector<1x128x256xbf16>
    %52 = vector.shape_cast %51 : vector<1x128x256xbf16> to vector<128x256xbf16>
    %cst_65 = arith.constant dense<0.000000e+00> : vector<128x256xf32>
    %53 = tpu.matmul %49, %52, %cst_65 {dimension_numbers = #tpu.dot_dimension_numbers<[1], [0], [0], [1], [0, 0, 1, 1], [], []>} : vector<128x128xbf16>, vector<128x256xbf16>, vector<128x256xf32> -> vector<128x256xf32>
    %54 = arith.addf %50, %53 : vector<128x256xf32>
    %c0_66 = arith.constant 0 : index
    %c0_67 = arith.constant 0 : index
    %55 = vector.load %arg4[%c0_66, %c0_67] : memref<128x256xf32, #tpu.memory_space<vmem>>, vector<128x256xf32>
    tpu.vector_store %arg4[%c0_66, %c0_67], %54 {strides = array<i32>} : memref<128x256xf32, #tpu.memory_space<vmem>>, vector<128x256xf32>,
    %c0_68 = arith.constant 0 : index
    %c1_69 = arith.constant 1 : index
    %c1_70 = arith.constant 1 : index
    %c0_71 = arith.constant 0 : index
    %56 = vector.load %arg0[%c0_68, %c1_69, %c1_70, %c0_71] : memref<2x12x12x128xf32, #tpu.memory_space<vmem>>, vector<2x8x8x128xf32>
    %57 = vector.shape_cast %56 : vector<2x8x8x128xf32> to vector<128x128xf32>
    %58 = arith.truncf %57 : vector<128x128xf32> to vector<128x128xbf16>
    %c0_72 = arith.constant 0 : index
    %c0_73 = arith.constant 0 : index
    %59 = vector.load %arg4[%c0_72, %c0_73] : memref<128x256xf32, #tpu.memory_space<vmem>>, vector<128x256xf32>
    %c6 = arith.constant 6 : index
    %c0_74 = arith.constant 0 : index
    %c0_75 = arith.constant 0 : index
    %60 = vector.load %arg1[%c6, %c0_74, %c0_75] : memref<25x128x256xbf16, #tpu.memory_space<vmem>>, vector<1x128x256xbf16>
    %61 = vector.shape_cast %60 : vector<1x128x256xbf16> to vector<128x256xbf16>
    %cst_76 = arith.constant dense<0.000000e+00> : vector<128x256xf32>
    %62 = tpu.matmul %58, %61, %cst_76 {dimension_numbers = #tpu.dot_dimension_numbers<[1], [0], [0], [1], [0, 0, 1, 1], [], []>} : vector<128x128xbf16>, vector<128x256xbf16>, vector<128x256xf32> -> vector<128x256xf32>
    %63 = arith.addf %59, %62 : vector<128x256xf32>
    %c0_77 = arith.constant 0 : index
    %c0_78 = arith.constant 0 : index
    %64 = vector.load %arg4[%c0_77, %c0_78] : memref<128x256xf32, #tpu.memory_space<vmem>>, vector<128x256xf32>
    tpu.vector_store %arg4[%c0_77, %c0_78], %63 {strides = array<i32>} : memref<128x256xf32, #tpu.memory_space<vmem>>, vector<128x256xf32>,
    %c0_79 = arith.constant 0 : index
    %c1_80 = arith.constant 1 : index
    %c2_81 = arith.constant 2 : index
    %c0_82 = arith.constant 0 : index
    %65 = vector.load %arg0[%c0_79, %c1_80, %c2_81, %c0_82] : memref<2x12x12x128xf32, #tpu.memory_space<vmem>>, vector<2x8x8x128xf32>
    %66 = vector.shape_cast %65 : vector<2x8x8x128xf32> to vector<128x128xf32>
    %67 = arith.truncf %66 : vector<128x128xf32> to vector<128x128xbf16>
    %c0_83 = arith.constant 0 : index
    %c0_84 = arith.constant 0 : index
    %68 = vector.load %arg4[%c0_83, %c0_84] : memref<128x256xf32, #tpu.memory_space<vmem>>, vector<128x256xf32>
    %c7 = arith.constant 7 : index
    %c0_85 = arith.constant 0 : index
    %c0_86 = arith.constant 0 : index
    %69 = vector.load %arg1[%c7, %c0_85, %c0_86] : memref<25x128x256xbf16, #tpu.memory_space<vmem>>, vector<1x128x256xbf16>
    %70 = vector.shape_cast %69 : vector<1x128x256xbf16> to vector<128x256xbf16>
    %cst_87 = arith.constant dense<0.000000e+00> : vector<128x256xf32>
    %71 = tpu.matmul %67, %70, %cst_87 {dimension_numbers = #tpu.dot_dimension_numbers<[1], [0], [0], [1], [0, 0, 1, 1], [], []>} : vector<128x128xbf16>, vector<128x256xbf16>, vector<128x256xf32> -> vector<128x256xf32>
    %72 = arith.addf %68, %71 : vector<128x256xf32>
    %c0_88 = arith.constant 0 : index
    %c0_89 = arith.constant 0 : index
    %73 = vector.load %arg4[%c0_88, %c0_89] : memref<128x256xf32, #tpu.memory_space<vmem>>, vector<128x256xf32>
    tpu.vector_store %arg4[%c0_88, %c0_89], %72 {strides = array<i32>} : memref<128x256xf32, #tpu.memory_space<vmem>>, vector<128x256xf32>,
    %c0_90 = arith.constant 0 : index
    %c1_91 = arith.constant 1 : index
    %c3_92 = arith.constant 3 : index
    %c0_93 = arith.constant 0 : index
    %74 = vector.load %arg0[%c0_90, %c1_91, %c3_92, %c0_93] : memref<2x12x12x128xf32, #tpu.memory_space<vmem>>, vector<2x8x8x128xf32>
    %75 = vector.shape_cast %74 : vector<2x8x8x128xf32> to vector<128x128xf32>
    %76 = arith.truncf %75 : vector<128x128xf32> to vector<128x128xbf16>
    %c0_94 = arith.constant 0 : index
    %c0_95 = arith.constant 0 : index
    %77 = vector.load %arg4[%c0_94, %c0_95] : memref<128x256xf32, #tpu.memory_space<vmem>>, vector<128x256xf32>
    %c8 = arith.constant 8 : index
    %c0_96 = arith.constant 0 : index
    %c0_97 = arith.constant 0 : index
    %78 = vector.load %arg1[%c8, %c0_96, %c0_97] : memref<25x128x256xbf16, #tpu.memory_space<vmem>>, vector<1x128x256xbf16>
    %79 = vector.shape_cast %78 : vector<1x128x256xbf16> to vector<128x256xbf16>
    %cst_98 = arith.constant dense<0.000000e+00> : vector<128x256xf32>
    %80 = tpu.matmul %76, %79, %cst_98 {dimension_numbers = #tpu.dot_dimension_numbers<[1], [0], [0], [1], [0, 0, 1, 1], [], []>} : vector<128x128xbf16>, vector<128x256xbf16>, vector<128x256xf32> -> vector<128x256xf32>
    %81 = arith.addf %77, %80 : vector<128x256xf32>
    %c0_99 = arith.constant 0 : index
    %c0_100 = arith.constant 0 : index
    %82 = vector.load %arg4[%c0_99, %c0_100] : memref<128x256xf32, #tpu.memory_space<vmem>>, vector<128x256xf32>
    tpu.vector_store %arg4[%c0_99, %c0_100], %81 {strides = array<i32>} : memref<128x256xf32, #tpu.memory_space<vmem>>, vector<128x256xf32>,
    %c0_101 = arith.constant 0 : index
    %c1_102 = arith.constant 1 : index
    %c4_103 = arith.constant 4 : index
    %c0_104 = arith.constant 0 : index
    %83 = vector.load %arg0[%c0_101, %c1_102, %c4_103, %c0_104] : memref<2x12x12x128xf32, #tpu.memory_space<vmem>>, vector<2x8x8x128xf32>
    %84 = vector.shape_cast %83 : vector<2x8x8x128xf32> to vector<128x128xf32>
    %85 = arith.truncf %84 : vector<128x128xf32> to vector<128x128xbf16>
    %c0_105 = arith.constant 0 : index
    %c0_106 = arith.constant 0 : index
    %86 = vector.load %arg4[%c0_105, %c0_106] : memref<128x256xf32, #tpu.memory_space<vmem>>, vector<128x256xf32>
    %c9 = arith.constant 9 : index
    %c0_107 = arith.constant 0 : index
    %c0_108 = arith.constant 0 : index
    %87 = vector.load %arg1[%c9, %c0_107, %c0_108] : memref<25x128x256xbf16, #tpu.memory_space<vmem>>, vector<1x128x256xbf16>
    %88 = vector.shape_cast %87 : vector<1x128x256xbf16> to vector<128x256xbf16>
    %cst_109 = arith.constant dense<0.000000e+00> : vector<128x256xf32>
    %89 = tpu.matmul %85, %88, %cst_109 {dimension_numbers = #tpu.dot_dimension_numbers<[1], [0], [0], [1], [0, 0, 1, 1], [], []>} : vector<128x128xbf16>, vector<128x256xbf16>, vector<128x256xf32> -> vector<128x256xf32>
    %90 = arith.addf %86, %89 : vector<128x256xf32>
    %c0_110 = arith.constant 0 : index
    %c0_111 = arith.constant 0 : index
    %91 = vector.load %arg4[%c0_110, %c0_111] : memref<128x256xf32, #tpu.memory_space<vmem>>, vector<128x256xf32>
    tpu.vector_store %arg4[%c0_110, %c0_111], %90 {strides = array<i32>} : memref<128x256xf32, #tpu.memory_space<vmem>>, vector<128x256xf32>,
    %c0_112 = arith.constant 0 : index
    %c2_113 = arith.constant 2 : index
    %c0_114 = arith.constant 0 : index
    %c0_115 = arith.constant 0 : index
    %92 = vector.load %arg0[%c0_112, %c2_113, %c0_114, %c0_115] : memref<2x12x12x128xf32, #tpu.memory_space<vmem>>, vector<2x8x8x128xf32>
    %93 = vector.shape_cast %92 : vector<2x8x8x128xf32> to vector<128x128xf32>
    %94 = arith.truncf %93 : vector<128x128xf32> to vector<128x128xbf16>
    %c0_116 = arith.constant 0 : index
    %c0_117 = arith.constant 0 : index
    %95 = vector.load %arg4[%c0_116, %c0_117] : memref<128x256xf32, #tpu.memory_space<vmem>>, vector<128x256xf32>
    %c10 = arith.constant 10 : index
    %c0_118 = arith.constant 0 : index
    %c0_119 = arith.constant 0 : index
    %96 = vector.load %arg1[%c10, %c0_118, %c0_119] : memref<25x128x256xbf16, #tpu.memory_space<vmem>>, vector<1x128x256xbf16>
    %97 = vector.shape_cast %96 : vector<1x128x256xbf16> to vector<128x256xbf16>
    %cst_120 = arith.constant dense<0.000000e+00> : vector<128x256xf32>
    %98 = tpu.matmul %94, %97, %cst_120 {dimension_numbers = #tpu.dot_dimension_numbers<[1], [0], [0], [1], [0, 0, 1, 1], [], []>} : vector<128x128xbf16>, vector<128x256xbf16>, vector<128x256xf32> -> vector<128x256xf32>
    %99 = arith.addf %95, %98 : vector<128x256xf32>
    %c0_121 = arith.constant 0 : index
    %c0_122 = arith.constant 0 : index
    %100 = vector.load %arg4[%c0_121, %c0_122] : memref<128x256xf32, #tpu.memory_space<vmem>>, vector<128x256xf32>
    tpu.vector_store %arg4[%c0_121, %c0_122], %99 {strides = array<i32>} : memref<128x256xf32, #tpu.memory_space<vmem>>, vector<128x256xf32>,
    %c0_123 = arith.constant 0 : index
    %c2_124 = arith.constant 2 : index
    %c1_125 = arith.constant 1 : index
    %c0_126 = arith.constant 0 : index
    %101 = vector.load %arg0[%c0_123, %c2_124, %c1_125, %c0_126] : memref<2x12x12x128xf32, #tpu.memory_space<vmem>>, vector<2x8x8x128xf32>
    %102 = vector.shape_cast %101 : vector<2x8x8x128xf32> to vector<128x128xf32>
    %103 = arith.truncf %102 : vector<128x128xf32> to vector<128x128xbf16>
    %c0_127 = arith.constant 0 : index
    %c0_128 = arith.constant 0 : index
    %104 = vector.load %arg4[%c0_127, %c0_128] : memref<128x256xf32, #tpu.memory_space<vmem>>, vector<128x256xf32>
    %c11 = arith.constant 11 : index
    %c0_129 = arith.constant 0 : index
    %c0_130 = arith.constant 0 : index
    %105 = vector.load %arg1[%c11, %c0_129, %c0_130] : memref<25x128x256xbf16, #tpu.memory_space<vmem>>, vector<1x128x256xbf16>
    %106 = vector.shape_cast %105 : vector<1x128x256xbf16> to vector<128x256xbf16>
    %cst_131 = arith.constant dense<0.000000e+00> : vector<128x256xf32>
    %107 = tpu.matmul %103, %106, %cst_131 {dimension_numbers = #tpu.dot_dimension_numbers<[1], [0], [0], [1], [0, 0, 1, 1], [], []>} : vector<128x128xbf16>, vector<128x256xbf16>, vector<128x256xf32> -> vector<128x256xf32>
    %108 = arith.addf %104, %107 : vector<128x256xf32>
    %c0_132 = arith.constant 0 : index
    %c0_133 = arith.constant 0 : index
    %109 = vector.load %arg4[%c0_132, %c0_133] : memref<128x256xf32, #tpu.memory_space<vmem>>, vector<128x256xf32>
    tpu.vector_store %arg4[%c0_132, %c0_133], %108 {strides = array<i32>} : memref<128x256xf32, #tpu.memory_space<vmem>>, vector<128x256xf32>,
    %c0_134 = arith.constant 0 : index
    %c2_135 = arith.constant 2 : index
    %c2_136 = arith.constant 2 : index
    %c0_137 = arith.constant 0 : index
    %110 = vector.load %arg0[%c0_134, %c2_135, %c2_136, %c0_137] : memref<2x12x12x128xf32, #tpu.memory_space<vmem>>, vector<2x8x8x128xf32>
    %111 = vector.shape_cast %110 : vector<2x8x8x128xf32> to vector<128x128xf32>
    %112 = arith.truncf %111 : vector<128x128xf32> to vector<128x128xbf16>
    %c0_138 = arith.constant 0 : index
    %c0_139 = arith.constant 0 : index
    %113 = vector.load %arg4[%c0_138, %c0_139] : memref<128x256xf32, #tpu.memory_space<vmem>>, vector<128x256xf32>
    %c12 = arith.constant 12 : index
    %c0_140 = arith.constant 0 : index
    %c0_141 = arith.constant 0 : index
    %114 = vector.load %arg1[%c12, %c0_140, %c0_141] : memref<25x128x256xbf16, #tpu.memory_space<vmem>>, vector<1x128x256xbf16>
    %115 = vector.shape_cast %114 : vector<1x128x256xbf16> to vector<128x256xbf16>
    %cst_142 = arith.constant dense<0.000000e+00> : vector<128x256xf32>
    %116 = tpu.matmul %112, %115, %cst_142 {dimension_numbers = #tpu.dot_dimension_numbers<[1], [0], [0], [1], [0, 0, 1, 1], [], []>} : vector<128x128xbf16>, vector<128x256xbf16>, vector<128x256xf32> -> vector<128x256xf32>
    %117 = arith.addf %113, %116 : vector<128x256xf32>
    %c0_143 = arith.constant 0 : index
    %c0_144 = arith.constant 0 : index
    %118 = vector.load %arg4[%c0_143, %c0_144] : memref<128x256xf32, #tpu.memory_space<vmem>>, vector<128x256xf32>
    tpu.vector_store %arg4[%c0_143, %c0_144], %117 {strides = array<i32>} : memref<128x256xf32, #tpu.memory_space<vmem>>, vector<128x256xf32>,
    %c0_145 = arith.constant 0 : index
    %c2_146 = arith.constant 2 : index
    %c3_147 = arith.constant 3 : index
    %c0_148 = arith.constant 0 : index
    %119 = vector.load %arg0[%c0_145, %c2_146, %c3_147, %c0_148] : memref<2x12x12x128xf32, #tpu.memory_space<vmem>>, vector<2x8x8x128xf32>
    %120 = vector.shape_cast %119 : vector<2x8x8x128xf32> to vector<128x128xf32>
    %121 = arith.truncf %120 : vector<128x128xf32> to vector<128x128xbf16>
    %c0_149 = arith.constant 0 : index
    %c0_150 = arith.constant 0 : index
    %122 = vector.load %arg4[%c0_149, %c0_150] : memref<128x256xf32, #tpu.memory_space<vmem>>, vector<128x256xf32>
    %c13 = arith.constant 13 : index
    %c0_151 = arith.constant 0 : index
    %c0_152 = arith.constant 0 : index
    %123 = vector.load %arg1[%c13, %c0_151, %c0_152] : memref<25x128x256xbf16, #tpu.memory_space<vmem>>, vector<1x128x256xbf16>
    %124 = vector.shape_cast %123 : vector<1x128x256xbf16> to vector<128x256xbf16>
    %cst_153 = arith.constant dense<0.000000e+00> : vector<128x256xf32>
    %125 = tpu.matmul %121, %124, %cst_153 {dimension_numbers = #tpu.dot_dimension_numbers<[1], [0], [0], [1], [0, 0, 1, 1], [], []>} : vector<128x128xbf16>, vector<128x256xbf16>, vector<128x256xf32> -> vector<128x256xf32>
    %126 = arith.addf %122, %125 : vector<128x256xf32>
    %c0_154 = arith.constant 0 : index
    %c0_155 = arith.constant 0 : index
    %127 = vector.load %arg4[%c0_154, %c0_155] : memref<128x256xf32, #tpu.memory_space<vmem>>, vector<128x256xf32>
    tpu.vector_store %arg4[%c0_154, %c0_155], %126 {strides = array<i32>} : memref<128x256xf32, #tpu.memory_space<vmem>>, vector<128x256xf32>,
    %c0_156 = arith.constant 0 : index
    %c2_157 = arith.constant 2 : index
    %c4_158 = arith.constant 4 : index
    %c0_159 = arith.constant 0 : index
    %128 = vector.load %arg0[%c0_156, %c2_157, %c4_158, %c0_159] : memref<2x12x12x128xf32, #tpu.memory_space<vmem>>, vector<2x8x8x128xf32>
    %129 = vector.shape_cast %128 : vector<2x8x8x128xf32> to vector<128x128xf32>
    %130 = arith.truncf %129 : vector<128x128xf32> to vector<128x128xbf16>
    %c0_160 = arith.constant 0 : index
    %c0_161 = arith.constant 0 : index
    %131 = vector.load %arg4[%c0_160, %c0_161] : memref<128x256xf32, #tpu.memory_space<vmem>>, vector<128x256xf32>
    %c14 = arith.constant 14 : index
    %c0_162 = arith.constant 0 : index
    %c0_163 = arith.constant 0 : index
    %132 = vector.load %arg1[%c14, %c0_162, %c0_163] : memref<25x128x256xbf16, #tpu.memory_space<vmem>>, vector<1x128x256xbf16>
    %133 = vector.shape_cast %132 : vector<1x128x256xbf16> to vector<128x256xbf16>
    %cst_164 = arith.constant dense<0.000000e+00> : vector<128x256xf32>
    %134 = tpu.matmul %130, %133, %cst_164 {dimension_numbers = #tpu.dot_dimension_numbers<[1], [0], [0], [1], [0, 0, 1, 1], [], []>} : vector<128x128xbf16>, vector<128x256xbf16>, vector<128x256xf32> -> vector<128x256xf32>
    %135 = arith.addf %131, %134 : vector<128x256xf32>
    %c0_165 = arith.constant 0 : index
    %c0_166 = arith.constant 0 : index
    %136 = vector.load %arg4[%c0_165, %c0_166] : memref<128x256xf32, #tpu.memory_space<vmem>>, vector<128x256xf32>
    tpu.vector_store %arg4[%c0_165, %c0_166], %135 {strides = array<i32>} : memref<128x256xf32, #tpu.memory_space<vmem>>, vector<128x256xf32>,
    %c0_167 = arith.constant 0 : index
    %c3_168 = arith.constant 3 : index
    %c0_169 = arith.constant 0 : index
    %c0_170 = arith.constant 0 : index
    %137 = vector.load %arg0[%c0_167, %c3_168, %c0_169, %c0_170] : memref<2x12x12x128xf32, #tpu.memory_space<vmem>>, vector<2x8x8x128xf32>
    %138 = vector.shape_cast %137 : vector<2x8x8x128xf32> to vector<128x128xf32>
    %139 = arith.truncf %138 : vector<128x128xf32> to vector<128x128xbf16>
    %c0_171 = arith.constant 0 : index
    %c0_172 = arith.constant 0 : index
    %140 = vector.load %arg4[%c0_171, %c0_172] : memref<128x256xf32, #tpu.memory_space<vmem>>, vector<128x256xf32>
    %c15 = arith.constant 15 : index
    %c0_173 = arith.constant 0 : index
    %c0_174 = arith.constant 0 : index
    %141 = vector.load %arg1[%c15, %c0_173, %c0_174] : memref<25x128x256xbf16, #tpu.memory_space<vmem>>, vector<1x128x256xbf16>
    %142 = vector.shape_cast %141 : vector<1x128x256xbf16> to vector<128x256xbf16>
    %cst_175 = arith.constant dense<0.000000e+00> : vector<128x256xf32>
    %143 = tpu.matmul %139, %142, %cst_175 {dimension_numbers = #tpu.dot_dimension_numbers<[1], [0], [0], [1], [0, 0, 1, 1], [], []>} : vector<128x128xbf16>, vector<128x256xbf16>, vector<128x256xf32> -> vector<128x256xf32>
    %144 = arith.addf %140, %143 : vector<128x256xf32>
    %c0_176 = arith.constant 0 : index
    %c0_177 = arith.constant 0 : index
    %145 = vector.load %arg4[%c0_176, %c0_177] : memref<128x256xf32, #tpu.memory_space<vmem>>, vector<128x256xf32>
    tpu.vector_store %arg4[%c0_176, %c0_177], %144 {strides = array<i32>} : memref<128x256xf32, #tpu.memory_space<vmem>>, vector<128x256xf32>,
    %c0_178 = arith.constant 0 : index
    %c3_179 = arith.constant 3 : index
    %c1_180 = arith.constant 1 : index
    %c0_181 = arith.constant 0 : index
    %146 = vector.load %arg0[%c0_178, %c3_179, %c1_180, %c0_181] : memref<2x12x12x128xf32, #tpu.memory_space<vmem>>, vector<2x8x8x128xf32>
    %147 = vector.shape_cast %146 : vector<2x8x8x128xf32> to vector<128x128xf32>
    %148 = arith.truncf %147 : vector<128x128xf32> to vector<128x128xbf16>
    %c0_182 = arith.constant 0 : index
    %c0_183 = arith.constant 0 : index
    %149 = vector.load %arg4[%c0_182, %c0_183] : memref<128x256xf32, #tpu.memory_space<vmem>>, vector<128x256xf32>
    %c16 = arith.constant 16 : index
    %c0_184 = arith.constant 0 : index
    %c0_185 = arith.constant 0 : index
    %150 = vector.load %arg1[%c16, %c0_184, %c0_185] : memref<25x128x256xbf16, #tpu.memory_space<vmem>>, vector<1x128x256xbf16>
    %151 = vector.shape_cast %150 : vector<1x128x256xbf16> to vector<128x256xbf16>
    %cst_186 = arith.constant dense<0.000000e+00> : vector<128x256xf32>
    %152 = tpu.matmul %148, %151, %cst_186 {dimension_numbers = #tpu.dot_dimension_numbers<[1], [0], [0], [1], [0, 0, 1, 1], [], []>} : vector<128x128xbf16>, vector<128x256xbf16>, vector<128x256xf32> -> vector<128x256xf32>
    %153 = arith.addf %149, %152 : vector<128x256xf32>
    %c0_187 = arith.constant 0 : index
    %c0_188 = arith.constant 0 : index
    %154 = vector.load %arg4[%c0_187, %c0_188] : memref<128x256xf32, #tpu.memory_space<vmem>>, vector<128x256xf32>
    tpu.vector_store %arg4[%c0_187, %c0_188], %153 {strides = array<i32>} : memref<128x256xf32, #tpu.memory_space<vmem>>, vector<128x256xf32>,
    %c0_189 = arith.constant 0 : index
    %c3_190 = arith.constant 3 : index
    %c2_191 = arith.constant 2 : index
    %c0_192 = arith.constant 0 : index
    %155 = vector.load %arg0[%c0_189, %c3_190, %c2_191, %c0_192] : memref<2x12x12x128xf32, #tpu.memory_space<vmem>>, vector<2x8x8x128xf32>
    %156 = vector.shape_cast %155 : vector<2x8x8x128xf32> to vector<128x128xf32>
    %157 = arith.truncf %156 : vector<128x128xf32> to vector<128x128xbf16>
    %c0_193 = arith.constant 0 : index
    %c0_194 = arith.constant 0 : index
    %158 = vector.load %arg4[%c0_193, %c0_194] : memref<128x256xf32, #tpu.memory_space<vmem>>, vector<128x256xf32>
    %c17 = arith.constant 17 : index
    %c0_195 = arith.constant 0 : index
    %c0_196 = arith.constant 0 : index
    %159 = vector.load %arg1[%c17, %c0_195, %c0_196] : memref<25x128x256xbf16, #tpu.memory_space<vmem>>, vector<1x128x256xbf16>
    %160 = vector.shape_cast %159 : vector<1x128x256xbf16> to vector<128x256xbf16>
    %cst_197 = arith.constant dense<0.000000e+00> : vector<128x256xf32>
    %161 = tpu.matmul %157, %160, %cst_197 {dimension_numbers = #tpu.dot_dimension_numbers<[1], [0], [0], [1], [0, 0, 1, 1], [], []>} : vector<128x128xbf16>, vector<128x256xbf16>, vector<128x256xf32> -> vector<128x256xf32>
    %162 = arith.addf %158, %161 : vector<128x256xf32>
    %c0_198 = arith.constant 0 : index
    %c0_199 = arith.constant 0 : index
    %163 = vector.load %arg4[%c0_198, %c0_199] : memref<128x256xf32, #tpu.memory_space<vmem>>, vector<128x256xf32>
    tpu.vector_store %arg4[%c0_198, %c0_199], %162 {strides = array<i32>} : memref<128x256xf32, #tpu.memory_space<vmem>>, vector<128x256xf32>,
    %c0_200 = arith.constant 0 : index
    %c3_201 = arith.constant 3 : index
    %c3_202 = arith.constant 3 : index
    %c0_203 = arith.constant 0 : index
    %164 = vector.load %arg0[%c0_200, %c3_201, %c3_202, %c0_203] : memref<2x12x12x128xf32, #tpu.memory_space<vmem>>, vector<2x8x8x128xf32>
    %165 = vector.shape_cast %164 : vector<2x8x8x128xf32> to vector<128x128xf32>
    %166 = arith.truncf %165 : vector<128x128xf32> to vector<128x128xbf16>
    %c0_204 = arith.constant 0 : index
    %c0_205 = arith.constant 0 : index
    %167 = vector.load %arg4[%c0_204, %c0_205] : memref<128x256xf32, #tpu.memory_space<vmem>>, vector<128x256xf32>
    %c18 = arith.constant 18 : index
    %c0_206 = arith.constant 0 : index
    %c0_207 = arith.constant 0 : index
    %168 = vector.load %arg1[%c18, %c0_206, %c0_207] : memref<25x128x256xbf16, #tpu.memory_space<vmem>>, vector<1x128x256xbf16>
    %169 = vector.shape_cast %168 : vector<1x128x256xbf16> to vector<128x256xbf16>
    %cst_208 = arith.constant dense<0.000000e+00> : vector<128x256xf32>
    %170 = tpu.matmul %166, %169, %cst_208 {dimension_numbers = #tpu.dot_dimension_numbers<[1], [0], [0], [1], [0, 0, 1, 1], [], []>} : vector<128x128xbf16>, vector<128x256xbf16>, vector<128x256xf32> -> vector<128x256xf32>
    %171 = arith.addf %167, %170 : vector<128x256xf32>
    %c0_209 = arith.constant 0 : index
    %c0_210 = arith.constant 0 : index
    %172 = vector.load %arg4[%c0_209, %c0_210] : memref<128x256xf32, #tpu.memory_space<vmem>>, vector<128x256xf32>
    tpu.vector_store %arg4[%c0_209, %c0_210], %171 {strides = array<i32>} : memref<128x256xf32, #tpu.memory_space<vmem>>, vector<128x256xf32>,
    %c0_211 = arith.constant 0 : index
    %c3_212 = arith.constant 3 : index
    %c4_213 = arith.constant 4 : index
    %c0_214 = arith.constant 0 : index
    %173 = vector.load %arg0[%c0_211, %c3_212, %c4_213, %c0_214] : memref<2x12x12x128xf32, #tpu.memory_space<vmem>>, vector<2x8x8x128xf32>
    %174 = vector.shape_cast %173 : vector<2x8x8x128xf32> to vector<128x128xf32>
    %175 = arith.truncf %174 : vector<128x128xf32> to vector<128x128xbf16>
    %c0_215 = arith.constant 0 : index
    %c0_216 = arith.constant 0 : index
    %176 = vector.load %arg4[%c0_215, %c0_216] : memref<128x256xf32, #tpu.memory_space<vmem>>, vector<128x256xf32>
    %c19 = arith.constant 19 : index
    %c0_217 = arith.constant 0 : index
    %c0_218 = arith.constant 0 : index
    %177 = vector.load %arg1[%c19, %c0_217, %c0_218] : memref<25x128x256xbf16, #tpu.memory_space<vmem>>, vector<1x128x256xbf16>
    %178 = vector.shape_cast %177 : vector<1x128x256xbf16> to vector<128x256xbf16>
    %cst_219 = arith.constant dense<0.000000e+00> : vector<128x256xf32>
    %179 = tpu.matmul %175, %178, %cst_219 {dimension_numbers = #tpu.dot_dimension_numbers<[1], [0], [0], [1], [0, 0, 1, 1], [], []>} : vector<128x128xbf16>, vector<128x256xbf16>, vector<128x256xf32> -> vector<128x256xf32>
    %180 = arith.addf %176, %179 : vector<128x256xf32>
    %c0_220 = arith.constant 0 : index
    %c0_221 = arith.constant 0 : index
    %181 = vector.load %arg4[%c0_220, %c0_221] : memref<128x256xf32, #tpu.memory_space<vmem>>, vector<128x256xf32>
    tpu.vector_store %arg4[%c0_220, %c0_221], %180 {strides = array<i32>} : memref<128x256xf32, #tpu.memory_space<vmem>>, vector<128x256xf32>,
    %c0_222 = arith.constant 0 : index
    %c4_223 = arith.constant 4 : index
    %c0_224 = arith.constant 0 : index
    %c0_225 = arith.constant 0 : index
    %182 = vector.load %arg0[%c0_222, %c4_223, %c0_224, %c0_225] : memref<2x12x12x128xf32, #tpu.memory_space<vmem>>, vector<2x8x8x128xf32>
    %183 = vector.shape_cast %182 : vector<2x8x8x128xf32> to vector<128x128xf32>
    %184 = arith.truncf %183 : vector<128x128xf32> to vector<128x128xbf16>
    %c0_226 = arith.constant 0 : index
    %c0_227 = arith.constant 0 : index
    %185 = vector.load %arg4[%c0_226, %c0_227] : memref<128x256xf32, #tpu.memory_space<vmem>>, vector<128x256xf32>
    %c20 = arith.constant 20 : index
    %c0_228 = arith.constant 0 : index
    %c0_229 = arith.constant 0 : index
    %186 = vector.load %arg1[%c20, %c0_228, %c0_229] : memref<25x128x256xbf16, #tpu.memory_space<vmem>>, vector<1x128x256xbf16>
    %187 = vector.shape_cast %186 : vector<1x128x256xbf16> to vector<128x256xbf16>
    %cst_230 = arith.constant dense<0.000000e+00> : vector<128x256xf32>
    %188 = tpu.matmul %184, %187, %cst_230 {dimension_numbers = #tpu.dot_dimension_numbers<[1], [0], [0], [1], [0, 0, 1, 1], [], []>} : vector<128x128xbf16>, vector<128x256xbf16>, vector<128x256xf32> -> vector<128x256xf32>
    %189 = arith.addf %185, %188 : vector<128x256xf32>
    %c0_231 = arith.constant 0 : index
    %c0_232 = arith.constant 0 : index
    %190 = vector.load %arg4[%c0_231, %c0_232] : memref<128x256xf32, #tpu.memory_space<vmem>>, vector<128x256xf32>
    tpu.vector_store %arg4[%c0_231, %c0_232], %189 {strides = array<i32>} : memref<128x256xf32, #tpu.memory_space<vmem>>, vector<128x256xf32>,
    %c0_233 = arith.constant 0 : index
    %c4_234 = arith.constant 4 : index
    %c1_235 = arith.constant 1 : index
    %c0_236 = arith.constant 0 : index
    %191 = vector.load %arg0[%c0_233, %c4_234, %c1_235, %c0_236] : memref<2x12x12x128xf32, #tpu.memory_space<vmem>>, vector<2x8x8x128xf32>
    %192 = vector.shape_cast %191 : vector<2x8x8x128xf32> to vector<128x128xf32>
    %193 = arith.truncf %192 : vector<128x128xf32> to vector<128x128xbf16>
    %c0_237 = arith.constant 0 : index
    %c0_238 = arith.constant 0 : index
    %194 = vector.load %arg4[%c0_237, %c0_238] : memref<128x256xf32, #tpu.memory_space<vmem>>, vector<128x256xf32>
    %c21 = arith.constant 21 : index
    %c0_239 = arith.constant 0 : index
    %c0_240 = arith.constant 0 : index
    %195 = vector.load %arg1[%c21, %c0_239, %c0_240] : memref<25x128x256xbf16, #tpu.memory_space<vmem>>, vector<1x128x256xbf16>
    %196 = vector.shape_cast %195 : vector<1x128x256xbf16> to vector<128x256xbf16>
    %cst_241 = arith.constant dense<0.000000e+00> : vector<128x256xf32>
    %197 = tpu.matmul %193, %196, %cst_241 {dimension_numbers = #tpu.dot_dimension_numbers<[1], [0], [0], [1], [0, 0, 1, 1], [], []>} : vector<128x128xbf16>, vector<128x256xbf16>, vector<128x256xf32> -> vector<128x256xf32>
    %198 = arith.addf %194, %197 : vector<128x256xf32>
    %c0_242 = arith.constant 0 : index
    %c0_243 = arith.constant 0 : index
    %199 = vector.load %arg4[%c0_242, %c0_243] : memref<128x256xf32, #tpu.memory_space<vmem>>, vector<128x256xf32>
    tpu.vector_store %arg4[%c0_242, %c0_243], %198 {strides = array<i32>} : memref<128x256xf32, #tpu.memory_space<vmem>>, vector<128x256xf32>,
    %c0_244 = arith.constant 0 : index
    %c4_245 = arith.constant 4 : index
    %c2_246 = arith.constant 2 : index
    %c0_247 = arith.constant 0 : index
    %200 = vector.load %arg0[%c0_244, %c4_245, %c2_246, %c0_247] : memref<2x12x12x128xf32, #tpu.memory_space<vmem>>, vector<2x8x8x128xf32>
    %201 = vector.shape_cast %200 : vector<2x8x8x128xf32> to vector<128x128xf32>
    %202 = arith.truncf %201 : vector<128x128xf32> to vector<128x128xbf16>
    %c0_248 = arith.constant 0 : index
    %c0_249 = arith.constant 0 : index
    %203 = vector.load %arg4[%c0_248, %c0_249] : memref<128x256xf32, #tpu.memory_space<vmem>>, vector<128x256xf32>
    %c22 = arith.constant 22 : index
    %c0_250 = arith.constant 0 : index
    %c0_251 = arith.constant 0 : index
    %204 = vector.load %arg1[%c22, %c0_250, %c0_251] : memref<25x128x256xbf16, #tpu.memory_space<vmem>>, vector<1x128x256xbf16>
    %205 = vector.shape_cast %204 : vector<1x128x256xbf16> to vector<128x256xbf16>
    %cst_252 = arith.constant dense<0.000000e+00> : vector<128x256xf32>
    %206 = tpu.matmul %202, %205, %cst_252 {dimension_numbers = #tpu.dot_dimension_numbers<[1], [0], [0], [1], [0, 0, 1, 1], [], []>} : vector<128x128xbf16>, vector<128x256xbf16>, vector<128x256xf32> -> vector<128x256xf32>
    %207 = arith.addf %203, %206 : vector<128x256xf32>
    %c0_253 = arith.constant 0 : index
    %c0_254 = arith.constant 0 : index
    %208 = vector.load %arg4[%c0_253, %c0_254] : memref<128x256xf32, #tpu.memory_space<vmem>>, vector<128x256xf32>
    tpu.vector_store %arg4[%c0_253, %c0_254], %207 {strides = array<i32>} : memref<128x256xf32, #tpu.memory_space<vmem>>, vector<128x256xf32>,
    %c0_255 = arith.constant 0 : index
    %c4_256 = arith.constant 4 : index
    %c3_257 = arith.constant 3 : index
    %c0_258 = arith.constant 0 : index
    %209 = vector.load %arg0[%c0_255, %c4_256, %c3_257, %c0_258] : memref<2x12x12x128xf32, #tpu.memory_space<vmem>>, vector<2x8x8x128xf32>
    %210 = vector.shape_cast %209 : vector<2x8x8x128xf32> to vector<128x128xf32>
    %211 = arith.truncf %210 : vector<128x128xf32> to vector<128x128xbf16>
    %c0_259 = arith.constant 0 : index
    %c0_260 = arith.constant 0 : index
    %212 = vector.load %arg4[%c0_259, %c0_260] : memref<128x256xf32, #tpu.memory_space<vmem>>, vector<128x256xf32>
    %c23 = arith.constant 23 : index
    %c0_261 = arith.constant 0 : index
    %c0_262 = arith.constant 0 : index
    %213 = vector.load %arg1[%c23, %c0_261, %c0_262] : memref<25x128x256xbf16, #tpu.memory_space<vmem>>, vector<1x128x256xbf16>
    %214 = vector.shape_cast %213 : vector<1x128x256xbf16> to vector<128x256xbf16>
    %cst_263 = arith.constant dense<0.000000e+00> : vector<128x256xf32>
    %215 = tpu.matmul %211, %214, %cst_263 {dimension_numbers = #tpu.dot_dimension_numbers<[1], [0], [0], [1], [0, 0, 1, 1], [], []>} : vector<128x128xbf16>, vector<128x256xbf16>, vector<128x256xf32> -> vector<128x256xf32>
    %216 = arith.addf %212, %215 : vector<128x256xf32>
    %c0_264 = arith.constant 0 : index
    %c0_265 = arith.constant 0 : index
    %217 = vector.load %arg4[%c0_264, %c0_265] : memref<128x256xf32, #tpu.memory_space<vmem>>, vector<128x256xf32>
    tpu.vector_store %arg4[%c0_264, %c0_265], %216 {strides = array<i32>} : memref<128x256xf32, #tpu.memory_space<vmem>>, vector<128x256xf32>,
    %c0_266 = arith.constant 0 : index
    %c4_267 = arith.constant 4 : index
    %c4_268 = arith.constant 4 : index
    %c0_269 = arith.constant 0 : index
    %218 = vector.load %arg0[%c0_266, %c4_267, %c4_268, %c0_269] : memref<2x12x12x128xf32, #tpu.memory_space<vmem>>, vector<2x8x8x128xf32>
    %219 = vector.shape_cast %218 : vector<2x8x8x128xf32> to vector<128x128xf32>
    %220 = arith.truncf %219 : vector<128x128xf32> to vector<128x128xbf16>
    %c0_270 = arith.constant 0 : index
    %c0_271 = arith.constant 0 : index
    %221 = vector.load %arg4[%c0_270, %c0_271] : memref<128x256xf32, #tpu.memory_space<vmem>>, vector<128x256xf32>
    %c24 = arith.constant 24 : index
    %c0_272 = arith.constant 0 : index
    %c0_273 = arith.constant 0 : index
    %222 = vector.load %arg1[%c24, %c0_272, %c0_273] : memref<25x128x256xbf16, #tpu.memory_space<vmem>>, vector<1x128x256xbf16>
    %223 = vector.shape_cast %222 : vector<1x128x256xbf16> to vector<128x256xbf16>
    %cst_274 = arith.constant dense<0.000000e+00> : vector<128x256xf32>
    %224 = tpu.matmul %220, %223, %cst_274 {dimension_numbers = #tpu.dot_dimension_numbers<[1], [0], [0], [1], [0, 0, 1, 1], [], []>} : vector<128x128xbf16>, vector<128x256xbf16>, vector<128x256xf32> -> vector<128x256xf32>
    %225 = arith.addf %221, %224 : vector<128x256xf32>
    %c0_275 = arith.constant 0 : index
    %c0_276 = arith.constant 0 : index
    %226 = vector.load %arg4[%c0_275, %c0_276] : memref<128x256xf32, #tpu.memory_space<vmem>>, vector<128x256xf32>
    tpu.vector_store %arg4[%c0_275, %c0_276], %225 {strides = array<i32>} : memref<128x256xf32, #tpu.memory_space<vmem>>, vector<128x256xf32>,
    %c0_277 = arith.constant 0 : index
    %c0_278 = arith.constant 0 : index
    %227 = vector.load %arg4[%c0_277, %c0_278] : memref<128x256xf32, #tpu.memory_space<vmem>>, vector<128x256xf32>
    %c0_279 = arith.constant 0 : index
    %c0_280 = arith.constant 0 : index
    %228 = vector.load %arg2[%c0_279, %c0_280] : memref<1x256xf32, #tpu.memory_space<vmem>>, vector<1x256xf32>
    %229 = vector.broadcast %228 : vector<1x256xf32> to vector<128x256xf32>
    %230 = arith.addf %227, %229 : vector<128x256xf32>
    %cst_281 = arith.constant 0.000000e+00 : f32
    %231 = vector.broadcast %cst_281 : f32 to vector<128x256xf32>
    %232 = arith.maximumf %230, %231 : vector<128x256xf32>
    %233 = vector.shape_cast %232 : vector<128x256xf32> to vector<2x8x8x256xf32>
    %234 = vector.extract_strided_slice %233 {offsets = [0, 0, 0, 0], sizes = [2, 8, 5, 256], strides = [1, 1, 1, 1]} : vector<2x8x8x256xf32> to vector<2x8x5x256xf32>
    %235 = vector.extract_strided_slice %233 {offsets = [0, 0, 1, 0], sizes = [2, 8, 5, 256], strides = [1, 1, 1, 1]} : vector<2x8x8x256xf32> to vector<2x8x5x256xf32>
    %236 = arith.maximumf %234, %235 : vector<2x8x5x256xf32>
    %237 = vector.extract_strided_slice %233 {offsets = [0, 0, 2, 0], sizes = [2, 8, 5, 256], strides = [1, 1, 1, 1]} : vector<2x8x8x256xf32> to vector<2x8x5x256xf32>
    %238 = arith.maximumf %236, %237 : vector<2x8x5x256xf32>
    %239 = vector.extract_strided_slice %238 {offsets = [0, 0, 0, 0], sizes = [2, 5, 5, 256], strides = [1, 1, 1, 1]} : vector<2x8x5x256xf32> to vector<2x5x5x256xf32>
    %240 = vector.extract_strided_slice %238 {offsets = [0, 1, 0, 0], sizes = [2, 5, 5, 256], strides = [1, 1, 1, 1]} : vector<2x8x5x256xf32> to vector<2x5x5x256xf32>
    %241 = arith.maximumf %239, %240 : vector<2x5x5x256xf32>
    %242 = vector.extract_strided_slice %238 {offsets = [0, 2, 0, 0], sizes = [2, 5, 5, 256], strides = [1, 1, 1, 1]} : vector<2x8x5x256xf32> to vector<2x5x5x256xf32>
    %243 = arith.maximumf %241, %242 : vector<2x5x5x256xf32>
    %244 = vector.extract_strided_slice %243 {offsets = [0, 0, 0, 0], sizes = [2, 1, 1, 256], strides = [1, 1, 1, 1]} : vector<2x5x5x256xf32> to vector<2x1x1x256xf32>
    %245 = vector.shape_cast %244 : vector<2x1x1x256xf32> to vector<2x256xf32>
    %246 = vector.extract_strided_slice %243 {offsets = [0, 0, 2, 0], sizes = [2, 1, 1, 256], strides = [1, 1, 1, 1]} : vector<2x5x5x256xf32> to vector<2x1x1x256xf32>
    %247 = vector.shape_cast %246 : vector<2x1x1x256xf32> to vector<2x256xf32>
    %248 = arith.addf %245, %247 : vector<2x256xf32>
    %249 = vector.extract_strided_slice %243 {offsets = [0, 0, 4, 0], sizes = [2, 1, 1, 256], strides = [1, 1, 1, 1]} : vector<2x5x5x256xf32> to vector<2x1x1x256xf32>
    %250 = vector.shape_cast %249 : vector<2x1x1x256xf32> to vector<2x256xf32>
    %251 = arith.addf %248, %250 : vector<2x256xf32>
    %252 = vector.extract_strided_slice %243 {offsets = [0, 2, 0, 0], sizes = [2, 1, 1, 256], strides = [1, 1, 1, 1]} : vector<2x5x5x256xf32> to vector<2x1x1x256xf32>
    %253 = vector.shape_cast %252 : vector<2x1x1x256xf32> to vector<2x256xf32>
    %254 = arith.addf %251, %253 : vector<2x256xf32>
    %255 = vector.extract_strided_slice %243 {offsets = [0, 2, 2, 0], sizes = [2, 1, 1, 256], strides = [1, 1, 1, 1]} : vector<2x5x5x256xf32> to vector<2x1x1x256xf32>
    %256 = vector.shape_cast %255 : vector<2x1x1x256xf32> to vector<2x256xf32>
    %257 = arith.addf %254, %256 : vector<2x256xf32>
    %258 = vector.extract_strided_slice %243 {offsets = [0, 2, 4, 0], sizes = [2, 1, 1, 256], strides = [1, 1, 1, 1]} : vector<2x5x5x256xf32> to vector<2x1x1x256xf32>
    %259 = vector.shape_cast %258 : vector<2x1x1x256xf32> to vector<2x256xf32>
    %260 = arith.addf %257, %259 : vector<2x256xf32>
    %261 = vector.extract_strided_slice %243 {offsets = [0, 4, 0, 0], sizes = [2, 1, 1, 256], strides = [1, 1, 1, 1]} : vector<2x5x5x256xf32> to vector<2x1x1x256xf32>
    %262 = vector.shape_cast %261 : vector<2x1x1x256xf32> to vector<2x256xf32>
    %263 = arith.addf %260, %262 : vector<2x256xf32>
    %264 = vector.extract_strided_slice %243 {offsets = [0, 4, 2, 0], sizes = [2, 1, 1, 256], strides = [1, 1, 1, 1]} : vector<2x5x5x256xf32> to vector<2x1x1x256xf32>
    %265 = vector.shape_cast %264 : vector<2x1x1x256xf32> to vector<2x256xf32>
    %266 = arith.addf %263, %265 : vector<2x256xf32>
    %267 = vector.extract_strided_slice %243 {offsets = [0, 4, 4, 0], sizes = [2, 1, 1, 256], strides = [1, 1, 1, 1]} : vector<2x5x5x256xf32> to vector<2x1x1x256xf32>
    %268 = vector.shape_cast %267 : vector<2x1x1x256xf32> to vector<2x256xf32>
    %269 = arith.addf %266, %268 : vector<2x256xf32>
    %cst_282 = arith.constant 0.111111112 : f32
    %270 = vector.broadcast %cst_282 : f32 to vector<2x256xf32>
    %271 = arith.mulf %269, %270 : vector<2x256xf32>
    %c0_283 = arith.constant 0 : index
    %c0_284 = arith.constant 0 : index
    %272 = vector.load %arg3[%c0_283, %c0_284] : memref<2x256xf32, #tpu.memory_space<vmem>>, vector<2x256xf32>
    tpu.vector_store %arg3[%c0_283, %c0_284], %271 {strides = array<i32>} : memref<2x256xf32, #tpu.memory_space<vmem>>, vector<2x256xf32>,
    return
  }
}

</mosaic_0001>

<bundles_post_ra>
// kernel: alexnet_conv4_forward.2
= control target key start
LH: loop header
LB: loop body
LE: loop exit
PB: predicated region body
PF: predicated region fallthrough
CT: control target
= control target key end

     0   :  { %v2469_v0 = vmov 0   ;;  %vm1480_vm0 = vcmask 1046528   ;;  %vm1691_vm1 = vcmask 1045504   ;;  %s3606_s1 = inlined_call_operand.vmem [shape: bf16[384,128], index: 1, kind: input, shape index: {}]   ;;  %s3607_s0 = inlined_call_operand.vmem [shape: bf16[480,384], index: 0, kind: input, shape index: {}]   ;;  %s3608_s2 = inlined_call_operand.vmem [shape: f32[1,128], index: 2, kind: input, shape index: {}]   ;;  %s3609_s3 = inlined_call_operand.vmem [shape: f32[2,13,13,128], index: 3, kind: output, shape index: {}]  }
   0x1   :  { %814 = vmatprep.subr.bf16.mxu0 %v2469_v0  ;;  %2291 = vmatprep.subr.bf16.mxu1 %v2469_v0  ;;  %v2324_v1 = vld [vmem:[%s3606_s1] sm:$0xff]   ;;  %v2325_v2 = vld [vmem:[%s3606_s1 + $0x8] sm:$0xff]   ;;  %v2326_v3 = vld [vmem:[%s3606_s1 + $0x10] sm:$0xff]  }
   0x2   :  { %815 = vmatpush1.bf16.msra.mxu0 %v2324_v1  ;;  %2307 = vmatpush1.bf16.msra.mxu1 %v2324_v1  ;;  %v2327_v4 = vld [vmem:[%s3606_s1 + $0x18] sm:$0xff]   ;;  %v2328_v5 = vld [vmem:[%s3606_s1 + $0x20] sm:$0xff]   ;;  %v2329_v7 = vld [vmem:[%s3606_s1 + $0x28] sm:$0xff]  }
   0x3   :  { %816 = vmatprep.subr.bf16.mxu0 %v2469_v0  ;;  %2292 = vmatprep.subr.bf16.mxu1 %v2469_v0  ;;  %v2342_v6 = vld [vmem:[%s3607_s0 + $0x4] ss:$12 sps:$4 sm:$0xff]   ;;  %v2345_v8 = vld [vmem:[%s3607_s0 + $0x22c] ss:$12 sps:$4 sm:$0xff]   ;;  %v2343_v21 = vld [vmem:[%s3607_s0 + $0x228] ss:$12 sps:$4 sm:$0xff]  }
   0x4   :  { %846 = vmatprep.mubr.bf16.mxu0 %v2342_v6  ;;  %1030 = vmatprep.mubr.bf16.mxu1 %v2345_v8  ;;  %v2330_v9 = vld [vmem:[%s3606_s1 + $0x30] sm:$0xff]   ;;  %v2331_v10 = vld [vmem:[%s3606_s1 + $0x38] sm:$0xff]   ;;  %v2332_v11 = vld [vmem:[%s3606_s1 + $0x40] sm:$0xff]  }
   0x5   :  { %v2333_v12 = vld [vmem:[%s3606_s1 + $0x48] sm:$0xff]   ;;  %v2334_v13 = vld [vmem:[%s3606_s1 + $0x50] sm:$0xff]   ;;  %v2335_v14 = vld [vmem:[%s3606_s1 + $0x58] sm:$0xff]  }
   0x6   :  { %817 = vmatpush1.bf16.msra.mxu0 %v2325_v2  ;;  %2308 = vmatpush1.bf16.msra.mxu1 %v2325_v2  ;;  %v2336_v15 = vld [vmem:[%s3606_s1 + $0x60] sm:$0xff]   ;;  %v2337_v16 = vld [vmem:[%s3606_s1 + $0x68] sm:$0xff]   ;;  %v2338_v17 = vld [vmem:[%s3606_s1 + $0x70] sm:$0xff]  }
   0x7   :  { %818 = vmatprep.subr.bf16.mxu0 %v2469_v0  ;;  %2293 = vmatprep.subr.bf16.mxu1 %v2469_v0  ;;  %v2339_v18 = vld [vmem:[%s3606_s1 + $0x78] sm:$0xff]   ;;  %v2352_v19 = vld [vmem:[%s3606_s1 + $0x80] sm:$0xff]   ;;  %v2357_v24 = vld [vmem:[%s3606_s1 + $0x88] sm:$0xff]  }
   0x8   :  { %v2340_v20 = vld [vmem:[%s3607_s0] ss:$12 sps:$4 sm:$0xff]   ;;  %v2346_v22 = vld [vmem:[%s3607_s0 + $0x1c] ss:$12 sps:$4 sm:$0xff]   ;;  %v2348_v23 = vld [vmem:[%s3607_s0 + $0x244] ss:$12 sps:$4 sm:$0xff]  }
   0x9   :  { %v2350_v25 = vld [vmem:[%s3607_s0 + $0x18] ss:$12 sps:$4 sm:$0xff]   ;;  %v2351_v26 = vld [vmem:[%s3607_s0 + $0x240] ss:$12 sps:$4 sm:$0xff]   ;;  %v2360_v27 = vld [vmem:[%s3606_s1 + $0x90] sm:$0xff]  }
   0xa   :  { %819 = vmatpush1.bf16.msra.mxu0 %v2326_v3  ;;  %2309 = vmatpush1.bf16.msra.mxu1 %v2326_v3  ;;  %v2353_v28 = vld [vmem:[%s3607_s0 + $0x34] ss:$12 sps:$4 sm:$0xff]   ;;  %v2355_v29 = vld [vmem:[%s3607_s0 + $0x25c] ss:$12 sps:$4 sm:$0xff]   ;;  %v2359_v32 = vld [vmem:[%s3607_s0 + $0x258] ss:$12 sps:$4 sm:$0xff]  }
   0xb   :  { %820 = vmatprep.subr.bf16.mxu0 %v2469_v0  ;;  %2294 = vmatprep.subr.bf16.mxu1 %v2469_v0  ;;  %v2367_v30 = vld [vmem:[%s3606_s1 + $0x98] sm:$0xff]   ;;  %v2374_v33 = vld [vmem:[%s3606_s1 + $0xa0] sm:$0xff]   ;;  %v2381_v36 = vld [vmem:[%s3606_s1 + $0xa8] sm:$0xff]  }
   0xc   :  { %v2358_v31 = vld [vmem:[%s3607_s0 + $0x30] ss:$12 sps:$4 sm:$0xff]   ;;  %v2361_v34 = vld [vmem:[%s3607_s0 + $0x4c] ss:$12 sps:$4 sm:$0xff]   ;;  %v2363_v35 = vld [vmem:[%s3607_s0 + $0x274] ss:$12 sps:$4 sm:$0xff]  }
   0xd   :  { %v2365_v37 = vld [vmem:[%s3607_s0 + $0x48] ss:$12 sps:$4 sm:$0xff]   ;;  %v2366_v38 = vld [vmem:[%s3607_s0 + $0x270] ss:$12 sps:$4 sm:$0xff]   ;;  %v2370_v40 = vld [vmem:[%s3607_s0 + $0x28c] ss:$12 sps:$4 sm:$0xff]  }
   0xe   :  { %821 = vmatpush1.bf16.msra.mxu0 %v2327_v4  ;;  %2310 = vmatpush1.bf16.msra.mxu1 %v2327_v4  ;;  %v2368_v39 = vld [vmem:[%s3607_s0 + $0x64] ss:$12 sps:$4 sm:$0xff]   ;;  %v2389_v42 = vld [vmem:[%s3606_s1 + $0xb8] sm:$0xff]   ;;  %v2372_v43 = vld [vmem:[%s3607_s0 + $0x60] ss:$12 sps:$4 sm:$0xff]  }
   0xf   :  { %822 = vmatprep.subr.bf16.mxu0 %v2469_v0  ;;  %2295 = vmatprep.subr.bf16.mxu1 %v2469_v0  ;;  %v2388_v41 = vld [vmem:[%s3606_s1 + $0xb0] sm:$0xff]   ;;  %v2375_v45 = vld [vmem:[%s3607_s0 + $0x7c] ss:$12 sps:$4 sm:$0xff]   ;;  %v2379_v47 = vld [vmem:[%s3607_s0 + $0x78] ss:$12 sps:$4 sm:$0xff]  }
  0x10   :  { %v2373_v44 = vld [vmem:[%s3607_s0 + $0x288] ss:$12 sps:$4 sm:$0xff]   ;;  %v2377_v46 = vld [vmem:[%s3607_s0 + $0x2a4] ss:$12 sps:$4 sm:$0xff]   ;;  %v2380_v48 = vld [vmem:[%s3607_s0 + $0x2a0] ss:$12 sps:$4 sm:$0xff]  }
  0x11   :  { %v2382_v49 = vld [vmem:[%s3607_s0 + $0x94] ss:$12 sps:$4 sm:$0xff]   ;;  %v2384_v50 = vld [vmem:[%s3607_s0 + $0x2bc] ss:$12 sps:$4 sm:$0xff]   ;;  %v2387_v52 = vld [vmem:[%s3607_s0 + $0x2b8] ss:$12 sps:$4 sm:$0xff]  }
  0x12   :  { %823 = vmatpush1.bf16.msra.mxu0 %v2328_v5  ;;  %2311 = vmatpush1.bf16.msra.mxu1 %v2328_v5  ;;  %v2386_v51 = vld [vmem:[%s3607_s0 + $0x90] ss:$12 sps:$4 sm:$0xff]   ;;  %v2390_v53 = vld [vmem:[%s3607_s0 + $0xac] ss:$12 sps:$4 sm:$0xff]   ;;  %v2392_v54 = vld [vmem:[%s3607_s0 + $0x8] ss:$12 sps:$4 sm:$0xff]  }
  0x13   :  { %824 = vmatprep.subr.bf16.mxu0 %v2469_v0  ;;  %2296 = vmatprep.subr.bf16.mxu1 %v2469_v0  ;;  %v2393_v55 = vld [vmem:[%s3607_s0 + $0xa8] ss:$12 sps:$4 sm:$0xff]   ;;  %v2394_v56 = vld [vmem:[%s3607_s0 + $0x20] ss:$12 sps:$4 sm:$0xff]   ;;  %v2395_v57 = vld [vmem:[%s3607_s0 + $0xc4] ss:$12 sps:$4 sm:$0xff]  }
  0x14   :  { %v2397_v58 = vld [vmem:[%s3607_s0 + $0x38] ss:$12 sps:$4 sm:$0xff]   ;;  %v2398_v59 = vld [vmem:[%s3607_s0 + $0xc0] ss:$12 sps:$4 sm:$0xff]   ;;  %v2399_v60 = vld [vmem:[%s3607_s0 + $0x50] ss:$12 sps:$4 sm:$0xff]  }
  0x15   :  { %v2400_v61 = vld [vmem:[%s3607_s0 + $0xdc] ss:$12 sps:$4 sm:$0xff]   ;;  %v2403_v63 = vld [vmem:[%s3607_s0 + $0xd8] ss:$12 sps:$4 sm:$0xff]   ;;  %v2405_v1 = vld [vmem:[%s3607_s0 + $0xf4] ss:$12 sps:$4 sm:$0xff]  }
  0x16   :  { %825 = vmatpush1.bf16.msra.mxu0 %v2329_v7  ;;  %2312 = vmatpush1.bf16.msra.mxu1 %v2329_v7  ;;  %v2402_v62 = vld [vmem:[%s3607_s0 + $0x68] ss:$12 sps:$4 sm:$0xff]   ;;  %v2407_v2 = vld [vmem:[%s3607_s0 + $0x98] ss:$12 sps:$4 sm:$0xff]   ;;  %v2408_v3 = vld [vmem:[%s3607_s0 + $0xf0] ss:$12 sps:$4 sm:$0xff]  }
  0x17   :  { %826 = vmatprep.subr.bf16.mxu0 %v2469_v0  ;;  %2297 = vmatprep.subr.bf16.mxu1 %v2469_v0  ;;  %v2409_v4 = vld [vmem:[%s3607_s0 + $0xb0] ss:$12 sps:$4 sm:$0xff]   ;;  %v2410_v5 = vld [vmem:[%s3607_s0 + $0x10c] ss:$12 sps:$4 sm:$0xff]   ;;  %v2412_v6 = vld [vmem:[%s3607_s0 + $0xc8] ss:$12 sps:$4 sm:$0xff]  }
  0x18   :  { %v2413_v7 = vld [vmem:[%s3607_s0 + $0x108] ss:$12 sps:$4 sm:$0xff]   ;;  %v2414_v8 = vld [vmem:[%s3607_s0 + $0xe0] ss:$12 sps:$4 sm:$0xff]  }
  0x1a   :  { %827 = vmatpush1.bf16.msra.mxu0 %v2330_v9  ;;  %2313 = vmatpush1.bf16.msra.mxu1 %v2330_v9  ;;  %v2415_v9 = vld [vmem:[%s3607_s0 + $0x124] ss:$12 sps:$4 sm:$0xff]  }
  0x1b   :  { %828 = vmatprep.subr.bf16.mxu0 %v2469_v0  ;;  %2298 = vmatprep.subr.bf16.mxu1 %v2469_v0 }
  0x1e   :  { %829 = vmatpush1.bf16.msra.mxu0 %v2331_v10  ;;  %2314 = vmatpush1.bf16.msra.mxu1 %v2331_v10  ;;  %v2417_v10 = vld [vmem:[%s3607_s0 + $0xf8] ss:$12 sps:$4 sm:$0xff]  }
  0x1f   :  { %830 = vmatprep.subr.bf16.mxu0 %v2469_v0  ;;  %2299 = vmatprep.subr.bf16.mxu1 %v2469_v0 }
  0x22   :  { %831 = vmatpush1.bf16.msra.mxu0 %v2332_v11  ;;  %2315 = vmatpush1.bf16.msra.mxu1 %v2332_v11  ;;  %v2418_v11 = vld [vmem:[%s3607_s0 + $0x120] ss:$12 sps:$4 sm:$0xff]  }
  0x23   :  { %832 = vmatprep.subr.bf16.mxu0 %v2469_v0  ;;  %2300 = vmatprep.subr.bf16.mxu1 %v2469_v0 }
  0x26   :  { %833 = vmatpush1.bf16.msra.mxu0 %v2333_v12  ;;  %2316 = vmatpush1.bf16.msra.mxu1 %v2333_v12  ;;  %v2419_v12 = vld [vmem:[%s3607_s0 + $0x110] ss:$12 sps:$4 sm:$0xff]  }
  0x27   :  { %834 = vmatprep.subr.bf16.mxu0 %v2469_v0  ;;  %2301 = vmatprep.subr.bf16.mxu1 %v2469_v0 }
  0x2a   :  { %835 = vmatpush1.bf16.msra.mxu0 %v2334_v13  ;;  %2317 = vmatpush1.bf16.msra.mxu1 %v2334_v13  ;;  %v2420_v13 = vld [vmem:[%s3607_s0 + $0x13c] ss:$12 sps:$4 sm:$0xff]  }
  0x2b   :  { %836 = vmatprep.subr.bf16.mxu0 %v2469_v0  ;;  %2302 = vmatprep.subr.bf16.mxu1 %v2469_v0 }
  0x2e   :  { %837 = vmatpush1.bf16.msra.mxu0 %v2335_v14  ;;  %2318 = vmatpush1.bf16.msra.mxu1 %v2335_v14  ;;  %v2422_v14 = vld [vmem:[%s3607_s0 + $0x128] ss:$12 sps:$4 sm:$0xff]  }
  0x2f   :  { %838 = vmatprep.subr.bf16.mxu0 %v2469_v0  ;;  %2303 = vmatprep.subr.bf16.mxu1 %v2469_v0 }
  0x32   :  { %839 = vmatpush1.bf16.msra.mxu0 %v2336_v15  ;;  %2319 = vmatpush1.bf16.msra.mxu1 %v2336_v15  ;;  %v2423_v15 = vld [vmem:[%s3607_s0 + $0x138] ss:$12 sps:$4 sm:$0xff]  }
  0x33   :  { %840 = vmatprep.subr.bf16.mxu0 %v2469_v0  ;;  %2304 = vmatprep.subr.bf16.mxu1 %v2469_v0 }
  0x36   :  { %841 = vmatpush1.bf16.msra.mxu0 %v2337_v16  ;;  %2320 = vmatpush1.bf16.msra.mxu1 %v2337_v16  ;;  %v2424_v16 = vld [vmem:[%s3607_s0 + $0x140] ss:$12 sps:$4 sm:$0xff]  }
  0x37   :  { %842 = vmatprep.subr.bf16.mxu0 %v2469_v0  ;;  %2305 = vmatprep.subr.bf16.mxu1 %v2469_v0 }
  0x3a   :  { %843 = vmatpush1.bf16.msra.mxu0 %v2338_v17  ;;  %2321 = vmatpush1.bf16.msra.mxu1 %v2338_v17  ;;  %v2425_v17 = vld [vmem:[%s3607_s0 + $0x154] ss:$12 sps:$4 sm:$0xff]  }
  0x3b   :  { %844 = vmatprep.subr.bf16.mxu0 %v2469_v0  ;;  %2306 = vmatprep.subr.bf16.mxu1 %v2469_v0  ;;  %v2404_v0 = vld [vmem:[%s3607_s0 + $0x80] ss:$12 sps:$4 sm:$0xff]  }
  0x3e   :  { %845 = vmatpush1.bf16.msra.mxu0 %v2339_v18  ;;  %2322 = vmatpush1.bf16.msra.mxu1 %v2339_v18  ;;  %v2427_v18 = vld [vmem:[%s3607_s0 + $0x158] ss:$12 sps:$4 sm:$0xff]  }
  0x3f   :  { %2215 = vmatprep.subr.bf16.mxu1 %v2352_v19 }
  0x41   :  { %847 = vmatmul.mubr.bf16.vlgmr.msra.gmra.mrb[0].mxu0 %v2340_v20  ;;  %1031 = vmatmul.mubr.bf16.vlgmr.msra.gmra.mrb[0].mxu1 %v2343_v21  ;;  %v2429_v20 = vld [vmem:[%s3607_s0 + $0x170] ss:$12 sps:$4 sm:$0xff]   ;;  %v2430_v21 = vld [vmem:[%s3607_s0 + $0x16c] ss:$12 sps:$4 sm:$0xff]  }
  0x42   :  { %854 = vmatprep.mubr.bf16.mxu0 %v2346_v22  ;;  %1038 = vmatprep.mubr.bf16.mxu1 %v2348_v23  ;;  %v2432_v22 = vld [vmem:[%s3607_s0 + $0x188] ss:$12 sps:$4 sm:$0xff]  }
  0x43   :  { %2216 = vmatpush3.bf16.msra.mxu1 %v2352_v19  ;;  %v2428_v19 = vld [vmem:[%s3607_s0 + $0x150] ss:$12 sps:$4 sm:$0xff]   ;;  %v2433_v23 = vld [vmem:[%s3607_s0 + $0x168] ss:$12 sps:$4 sm:$0xff]  }
  0x44   :  { %2217 = vmatprep.subr.bf16.mxu1 %v2357_v24 }
  0x47   :  { %2218 = vmatpush3.bf16.msra.mxu1 %v2357_v24  ;;  %v2434_v24 = vld [vmem:[%s3607_s0 + $0x1a0] ss:$12 sps:$4 sm:$0xff]  }
  0x48   :  { %2219 = vmatprep.subr.bf16.mxu1 %v2360_v27 }
  0x49   :  { %855 = vmatmul.mubr.bf16.gmra.mrb[4].mxu0 %v2350_v25  ;;  %1039 = vmatmul.mubr.bf16.gmra.mrb[4].mxu1 %v2351_v26  ;;  %v2435_v25 = vld [vmem:[%s3607_s0 + $0x184] ss:$12 sps:$4 sm:$0xff]  }
  0x4a   :  { %862 = vmatprep.mubr.bf16.mxu0 %v2353_v28  ;;  %1046 = vmatprep.mubr.bf16.mxu1 %v2355_v29  ;;  %v2437_v26 = vld [vmem:[%s3607_s0 + $0x1b8] ss:$12 sps:$4 sm:$0xff]   ;;  %v2439_v28 = vld [vmem:[%s3607_s0 + $0x1d0] ss:$12 sps:$4 sm:$0xff]  }
  0x4b   :  { %2220 = vmatpush3.bf16.msra.mxu1 %v2360_v27  ;;  %v2438_v27 = vld [vmem:[%s3607_s0 + $0x180] ss:$12 sps:$4 sm:$0xff]   ;;  %v2440_v29 = vld [vmem:[%s3607_s0 + $0x19c] ss:$12 sps:$4 sm:$0xff]  }
  0x4c   :  { %2221 = vmatprep.subr.bf16.mxu1 %v2367_v30 }
  0x4f   :  { %2222 = vmatpush3.bf16.msra.mxu1 %v2367_v30  ;;  %v2442_v30 = vld [vmem:[%s3607_s0 + $0x1e8] ss:$12 sps:$4 sm:$0xff]  }
  0x50   :  { %2223 = vmatprep.subr.bf16.mxu1 %v2374_v33 }
  0x51   :  { %863 = vmatmul.mubr.bf16.gmra.mrb[8].mxu0 %v2358_v31  ;;  %1047 = vmatmul.mubr.bf16.gmra.mrb[8].mxu1 %v2359_v32  ;;  %v2443_v31 = vld [vmem:[%s3607_s0 + $0x198] ss:$12 sps:$4 sm:$0xff]   ;;  %v2444_v32 = vld [vmem:[%s3607_s0 + $0x200] ss:$12 sps:$4 sm:$0xff]  }
  0x52   :  { %870 = vmatprep.mubr.bf16.mxu0 %v2361_v34  ;;  %1054 = vmatprep.mubr.bf16.mxu1 %v2363_v35  ;;  %v2447_v34 = vld [vmem:[%s3607_s0 + $0x218] ss:$12 sps:$4 sm:$0xff]   ;;  %v2448_v35 = vld [vmem:[%s3607_s0 + $0x1b0] ss:$12 sps:$4 sm:$0xff]  }
  0x53   :  { %2224 = vmatpush3.bf16.msra.mxu1 %v2374_v33  ;;  %v2445_v33 = vld [vmem:[%s3607_s0 + $0x1b4] ss:$12 sps:$4 sm:$0xff]  }
  0x54   :  { %2225 = vmatprep.subr.bf16.mxu1 %v2381_v36 }
  0x57   :  { %2226 = vmatpush3.bf16.msra.mxu1 %v2381_v36  ;;  %v2449_v36 = vld [vmem:[%s3607_s0 + $0x230] ss:$12 sps:$4 sm:$0xff]  }
  0x58   :  { %2227 = vmatprep.subr.bf16.mxu1 %v2388_v41 }
  0x59   :  { %871 = vmatmul.mubr.bf16.gmra.mrb[12].mxu0 %v2365_v37  ;;  %1055 = vmatmul.mubr.bf16.gmra.mrb[12].mxu1 %v2366_v38  ;;  %v2450_v37 = vld [vmem:[%s3607_s0 + $0x1cc] ss:$12 sps:$4 sm:$0xff]   ;;  %v2452_v38 = vld [vmem:[%s3607_s0 + $0x248] ss:$12 sps:$4 sm:$0xff]  }
  0x5a   :  { %878 = vmatprep.mubr.bf16.mxu0 %v2368_v39  ;;  %1062 = vmatprep.mubr.bf16.mxu1 %v2370_v40  ;;  %v2453_v39 = vld [vmem:[%s3607_s0 + $0x1c8] ss:$12 sps:$4 sm:$0xff]   ;;  %v2454_v40 = vld [vmem:[%s3607_s0 + $0x260] ss:$12 sps:$4 sm:$0xff]  }
  0x5b   :  { %2228 = vmatpush3.bf16.msra.mxu1 %v2388_v41  ;;  %v2455_v41 = vld [vmem:[%s3607_s0 + $0x1e4] ss:$12 sps:$4 sm:$0xff]  }
  0x5c   :  { %2229 = vmatprep.subr.bf16.mxu1 %v2389_v42 }
  0x5f   :  { %2230 = vmatpush3.bf16.msra.mxu1 %v2389_v42  ;;  %v2457_v42 = vld [vmem:[%s3607_s0 + $0x278] ss:$12 sps:$4 sm:$0xff]  }
  0x61   :  { %879 = vmatmul.mubr.bf16.gmra.mrb[16].mxu0 %v2372_v43  ;;  %1063 = vmatmul.mubr.bf16.gmra.mrb[16].mxu1 %v2373_v44  ;;  %v2458_v43 = vld [vmem:[%s3607_s0 + $0x1e0] ss:$12 sps:$4 sm:$0xff]   ;;  %v2459_v44 = vld [vmem:[%s3607_s0 + $0x290] ss:$12 sps:$4 sm:$0xff]  }
  0x62   :  { %886 = vmatprep.mubr.bf16.mxu0 %v2375_v45  ;;  %1070 = vmatprep.mubr.bf16.mxu1 %v2377_v46  ;;  %v2460_v45 = vld [vmem:[%s3607_s0 + $0x1fc] ss:$12 sps:$4 sm:$0xff]  }
  0x63   :  { %v2462_v46 = vld [vmem:[%s3607_s0 + $0x2a8] ss:$12 sps:$4 sm:$0xff]  }
  0x69   :  { %887 = vmatmul.mubr.bf16.gmra.mrb[20].mxu0 %v2379_v47  ;;  %1071 = vmatmul.mubr.bf16.gmra.mrb[20].mxu1 %v2380_v48  ;;  %v2463_v47 = vld [vmem:[%s3607_s0 + $0x1f8] ss:$12 sps:$4 sm:$0xff]   ;;  %v2464_v48 = vld [vmem:[%s3607_s0 + $0x2c0] ss:$12 sps:$4 sm:$0xff]  }
  0x6a   :  { %894 = vmatprep.mubr.bf16.mxu0 %v2382_v49  ;;  %1078 = vmatprep.mubr.bf16.mxu1 %v2384_v50  ;;  %v2465_v49 = vld [vmem:[%s3607_s0 + $0x214] ss:$12 sps:$4 sm:$0xff]   ;;  %v2467_v50 = vld [vmem:[%s3607_s0 + $0x210] ss:$12 sps:$4 sm:$0xff]  }
  0x71   :  { %895 = vmatmul.mubr.bf16.gmra.mrb[24].mxu0 %v2386_v51  ;;  %1079 = vmatmul.mubr.bf16.gmra.mrb[24].mxu1 %v2387_v52 }
  0x72   :  { %902 = vmatprep.mubr.bf16.mxu0 %v2390_v53  ;;  %2231 = vmatprep.mubr.bf16.mxu1 %v2392_v54 }
  0x79   :  { %903 = vmatmul.mubr.bf16.gmra.mrb[28].mxu0 %v2393_v55  ;;  %2232 = vmatmul.mubr.bf16.vlgmr.msra.gmra.mrb[28].mxu1 %v2394_v56 }
  0x7a   :  { %910 = vmatprep.mubr.bf16.mxu0 %v2395_v57  ;;  %2235 = vmatprep.mubr.bf16.mxu1 %v2397_v58 }
  0x81   :  { %911 = vmatmul.mubr.bf16.gmra.mrb[32].mxu0 %v2398_v59  ;;  %2236 = vmatmul.mubr.bf16.gmra.mrb[32].mxu1 %v2399_v60 }
  0x82   :  { %918 = vmatprep.mubr.bf16.mxu0 %v2400_v61  ;;  %2239 = vmatprep.mubr.bf16.mxu1 %v2402_v62 }
  0x89   :  { %919 = vmatmul.mubr.bf16.gmra.mrb[36].mxu0 %v2403_v63  ;;  %2240 = vmatmul.mubr.bf16.gmra.mrb[36].mxu1 %v2404_v0 }
  0x8a   :  { %926 = vmatprep.mubr.bf16.mxu0 %v2405_v1  ;;  %2243 = vmatprep.mubr.bf16.mxu1 %v2407_v2 }
  0x91   :  { %927 = vmatmul.mubr.bf16.gmra.mrb[40].mxu0 %v2408_v3  ;;  %2244 = vmatmul.mubr.bf16.gmra.mrb[40].mxu1 %v2409_v4 }
  0x92   :  { %934 = vmatprep.mubr.bf16.mxu0 %v2410_v5  ;;  %2247 = vmatprep.mubr.bf16.mxu1 %v2412_v6 }
  0x99   :  { %935 = vmatmul.mubr.bf16.gmra.mrb[44].mxu0 %v2413_v7  ;;  %2248 = vmatmul.mubr.bf16.gmra.mrb[44].mxu1 %v2414_v8 }
  0x9a   :  { %942 = vmatprep.mubr.bf16.mxu0 %v2415_v9  ;;  %2251 = vmatprep.mubr.bf16.mxu1 %v2417_v10 }
  0xa1   :  { %943 = vmatmul.mubr.bf16.gmra.mrb[48].mxu0 %v2418_v11  ;;  %2252 = vmatmul.mubr.bf16.gmra.mrb[48].mxu1 %v2419_v12 }
  0xa2   :  { %950 = vmatprep.mubr.bf16.mxu0 %v2420_v13  ;;  %2255 = vmatprep.mubr.bf16.mxu1 %v2422_v14 }
  0xa9   :  { %951 = vmatmul.mubr.bf16.gmra.mrb[52].mxu0 %v2423_v15  ;;  %2256 = vmatmul.mubr.bf16.gmra.mrb[52].mxu1 %v2424_v16 }
  0xaa   :  { %958 = vmatprep.mubr.bf16.mxu0 %v2425_v17  ;;  %2259 = vmatprep.mubr.bf16.mxu1 %v2427_v18 }
  0xb1   :  { %959 = vmatmul.mubr.bf16.gmra.mrb[56].mxu0 %v2428_v19  ;;  %2260 = vmatmul.mubr.bf16.gmra.mrb[56].mxu1 %v2429_v20 }
  0xb2   :  { %966 = vmatprep.mubr.bf16.mxu0 %v2430_v21  ;;  %2263 = vmatprep.mubr.bf16.mxu1 %v2432_v22 }
  0xb9   :  { %967 = vmatmul.mubr.bf16.gmra.mrb[60].mxu0 %v2433_v23  ;;  %2264 = vmatmul.mubr.bf16.gmra.mrb[60].mxu1 %v2434_v24 }
  0xba   :  { %974 = vmatprep.mubr.bf16.mxu0 %v2435_v25  ;;  %2267 = vmatprep.mubr.bf16.mxu1 %v2437_v26 }
  0xc1   :  { %975 = vmatmul.mubr.bf16.gmra.mrb[64].mxu0 %v2438_v27  ;;  %2268 = vmatmul.mubr.bf16.gmra.mrb[64].mxu1 %v2439_v28 }
  0xc2   :  { %982 = vmatprep.mubr.bf16.mxu0 %v2440_v29  ;;  %2271 = vmatprep.mubr.bf16.mxu1 %v2442_v30 }
  0xc9   :  { %983 = vmatmul.mubr.bf16.gmra.mrb[68].mxu0 %v2443_v31  ;;  %2272 = vmatmul.mubr.bf16.gmra.mrb[68].mxu1 %v2444_v32 }
  0xca   :  { %990 = vmatprep.mubr.bf16.mxu0 %v2445_v33  ;;  %2275 = vmatprep.mubr.bf16.mxu1 %v2447_v34 }
  0xd1   :  { %991 = vmatmul.mubr.bf16.gmra.mrb[72].mxu0 %v2448_v35  ;;  %2276 = vmatmul.mubr.bf16.gmra.mrb[72].mxu1 %v2449_v36 }
  0xd2   :  { %998 = vmatprep.mubr.bf16.mxu0 %v2450_v37  ;;  %2279 = vmatprep.mubr.bf16.mxu1 %v2452_v38 }
  0xd9   :  { %999 = vmatmul.mubr.bf16.gmra.mrb[76].mxu0 %v2453_v39  ;;  %2280 = vmatmul.mubr.bf16.gmra.mrb[76].mxu1 %v2454_v40 }
  0xda   :  { %1006 = vmatprep.mubr.bf16.mxu0 %v2455_v41  ;;  %2283 = vmatprep.mubr.bf16.mxu1 %v2457_v42 }
  0xe1   :  { %1007 = vmatmul.mubr.bf16.gmra.mrb[80].mxu0 %v2458_v43  ;;  %2284 = vmatmul.mubr.bf16.gmra.mrb[80].mxu1 %v2459_v44  ;;  %v2901_v43 = vld [vmem:[%s3608_s2] ss:$0 sm:$0xff] }
  0xe2   :  { %1014 = vmatprep.mubr.bf16.mxu0 %v2460_v45  ;;  %2287 = vmatprep.mubr.bf16.mxu1 %v2462_v46 }
  0xe9   :  { %1015 = vmatmul.mubr.bf16.gmra.mrb[84].mxu0 %v2463_v47  ;;  %2288 = vmatmul.mubr.bf16.gmra.mrb[84].mxu1 %v2464_v48 }
  0xea   :  { %1022 = vmatprep.mubr.bf16.mxu0 %v2465_v49 }
  0xf1   :  { %1023 = vmatmul.mubr.bf16.gmra.mrb[88].mxu0 %v2467_v50 }
 0x114   :  { %v848_v51 = vpop.f32.mrb[0].mxu0  ;;  %v2864_v52 = vpop.f32.mrb[0].mxu1 }
 0x115   :  { %v850_v53 = vpop.f32.mrb[1].mxu0  ;;  %v1034_v54 = vpop.f32.mrb[1].mxu1  ;;  %v849_v45 = vadd.f32 %v2901_v43, %v848_v51 }
 0x116   :  { %v851_v55 = vpop.f32.mrb[2].mxu0  ;;  %v2866_v56 = vpop.f32.mrb[2].mxu1 }
 0x117   :  { %v853_v57 = vpop.f32.mrb[3].mxu0  ;;  %v1037_v58 = vpop.f32.mrb[3].mxu1  ;;  %v852_v54 = vadd.f32 %v2901_v43, %v851_v55 }
 0x11c   :  { %v856_v59 = vpop.f32.mrb[4].mxu0  ;;  %v2868_v60 = vpop.f32.mrb[4].mxu1 }
 0x11d   :  { %v858_v61 = vpop.f32.mrb[5].mxu0  ;;  %v1042_v62 = vpop.f32.mrb[5].mxu1  ;;  %v857_v44 = vadd.f32 %v2901_v43, %v856_v59 }
 0x11e   :  { %v859_v63 = vpop.f32.mrb[6].mxu0  ;;  %v2870_v0 = vpop.f32.mrb[6].mxu1 }
 0x11f   :  { %v861_v1 = vpop.f32.mrb[7].mxu0  ;;  %v1045_v2 = vpop.f32.mrb[7].mxu1  ;;  %v860_v48 = vadd.f32 %v2901_v43, %v859_v63 }
 0x124   :  { %v864_v3 = vpop.f32.mrb[8].mxu0  ;;  %v2872_v4 = vpop.f32.mrb[8].mxu1 }
 0x125   :  { %v866_v5 = vpop.f32.mrb[9].mxu0  ;;  %v1050_v6 = vpop.f32.mrb[9].mxu1 }
 0x126   :  { %v867_v7 = vpop.f32.mrb[10].mxu0  ;;  %v2874_v8 = vpop.f32.mrb[10].mxu1  ;;  %v865_v6 = vadd.f32 %v2901_v43, %v864_v3 }
 0x127   :  { %v869_v9 = vpop.f32.mrb[11].mxu0  ;;  %v1053_v10 = vpop.f32.mrb[11].mxu1  ;;  %v868_v63 = vadd.f32 %v2901_v43, %v867_v7 }
 0x12c   :  { %v872_v11 = vpop.f32.mrb[12].mxu0  ;;  %v2876_v12 = vpop.f32.mrb[12].mxu1 }
 0x12d   :  { %v874_v13 = vpop.f32.mrb[13].mxu0  ;;  %v1058_v14 = vpop.f32.mrb[13].mxu1  ;;  %v873_v9 = vadd.f32 %v2901_v43, %v872_v11 }
 0x12e   :  { %v875_v15 = vpop.f32.mrb[14].mxu0  ;;  %v2878_v16 = vpop.f32.mrb[14].mxu1 }
 0x12f   :  { %v877_v17 = vpop.f32.mrb[15].mxu0  ;;  %v1061_v18 = vpop.f32.mrb[15].mxu1  ;;  %v876_v55 = vadd.f32 %v2901_v43, %v875_v15 }
 0x134   :  { %v880_v19 = vpop.f32.mrb[16].mxu0  ;;  %v2880_v20 = vpop.f32.mrb[16].mxu1 }
 0x135   :  { %v882_v21 = vpop.f32.mrb[17].mxu0  ;;  %v1066_v22 = vpop.f32.mrb[17].mxu1  ;;  %v2914_v13 = vadd.f32 %v2901_v43, %v880_v19 }
 0x136   :  { %v883_v23 = vpop.f32.mrb[18].mxu0  ;;  %v2882_v24 = vpop.f32.mrb[18].mxu1 }
 0x137   :  { %v885_v25 = vpop.f32.mrb[19].mxu0  ;;  %v1069_v26 = vpop.f32.mrb[19].mxu1  ;;  %v2917_v14 = vadd.f32 %v2901_v43, %v883_v23 }
 0x13c   :  { %v888_v27 = vpop.f32.mrb[20].mxu0  ;;  %v2884_v28 = vpop.f32.mrb[20].mxu1 }
 0x13d   :  { %v890_v29 = vpop.f32.mrb[21].mxu0  ;;  %v1074_v30 = vpop.f32.mrb[21].mxu1 }
 0x13e   :  { %v2886_v31 = vpop.f32.mrb[22].mxu0  ;;  %v2888_v32 = vpop.f32.mrb[22].mxu1 }
 0x13f   :  { %v893_v33 = vpop.f32.mrb[23].mxu0  ;;  %v1077_v34 = vpop.f32.mrb[23].mxu1 }
 0x140   :  { %v889_v33 = vadd.f32 %v2901_v43, %v888_v27 }
 0x144   :  { %v2890_v35 = vpop.f32.mrb[24].mxu0  ;;  %v2892_v36 = vpop.f32.mrb[24].mxu1 }
 0x145   :  { %v898_v37 = vpop.f32.mrb[25].mxu0  ;;  %v1082_v38 = vpop.f32.mrb[25].mxu1 }
 0x146   :  { %v2894_v39 = vpop.f32.mrb[26].mxu0  ;;  %v2896_v40 = vpop.f32.mrb[26].mxu1 }
 0x147   :  { %v901_v41 = vpop.f32.mrb[27].mxu0  ;;  %v1085_v42 = vpop.f32.mrb[27].mxu1 }
 0x14c   :  { %v2905_v46 = vpop.f32.mrb[28].mxu0  ;;  %v2233_v47 = vpop.f32.mrb[28].mxu1 }
 0x14d   :  { %v1130_v49 = vadd.f32 %v2233_v47, %v857_v44  ;;  %v906_v50 = vpop.f32.mrb[29].mxu0  ;;  %v1121_v53 = vpop.f32.mrb[29].mxu1 }
 0x14e   :  { %v1122_v57 = vadd.f32 %v1121_v53, %v849_v45  ;;  %v907_v58 = vpop.f32.mrb[30].mxu0  ;;  %v2234_v61 = vpop.f32.mrb[30].mxu1 }
 0x14f   :  { %v1362_v62 = vmax.f32 %v1130_v49, 0.0  ;;  %v1133_v1 = vadd.f32 %v2234_v61, %v860_v48  ;;  %v909_v2 = vpop.f32.mrb[31].mxu0  ;;  %v1124_v5 = vpop.f32.mrb[31].mxu1 }
 0x150   :  { %v1360_v59 = vmax.f32 %v1122_v57, 0.0  ;;  %v1125_v51 = vadd.f32 %v1124_v5, %v852_v54  ;;  %v892_v57 = vadd.f32 %v2901_v43, %v2886_v31  ;;  %v2941_v31 = vadd.f32 %v2901_v43, %v2905_v46 }
 0x151   :  { %v1363_v10 = vmax.f32 %v1133_v1, 0.0  ;;  %v1484_v18 = vrot.slane %v1362_v62, 1  ;;  %v1695_v21 = vrot.slane %v1362_v62, 2 }
 0x152   :  { %v1361_v17 = vmax.f32 %v1125_v51, 0.0  ;;  %v1481_v26 = vrot.slane %v1360_v59, 1  ;;  %v1692_v3 = vrot.slane %v1360_v59, 2 }
 0x153   :  { %v1485_v22 = vrot.slane %v1363_v10, 1  ;;  %v1696_v25 = vrot.slane %v1363_v10, 2 }
 0x154   :  { %v1482_v29 = vrot.slane %v1361_v17, 1  ;;  %v1693_v7 = vrot.slane %v1361_v17, 2  ;;  %v912_v30 = vpop.f32.mrb[32].mxu0  ;;  %v2237_v11 = vpop.f32.mrb[32].mxu1 }
 0x155   :  { %v1486_v15 = vsel %vm1480_vm0, %v1484_v18, %v1485_v22  ;;  %v1634_v19 = vmax.f32 %v1363_v10, %v1485_v22  ;;  %v1697_v34 = vsel %vm1691_vm1, %v1695_v21, %v1696_v25  ;;  %v914_v23 = vpop.f32.mrb[33].mxu0  ;;  %v1137_v37 = vpop.f32.mrb[33].mxu1  ;;  %v1146_v50 = vadd.f32 %v2237_v11, %v873_v9 }
 0x156   :  { %v1633_v38 = vmax.f32 %v1362_v62, %v1486_v15  ;;  %v1483_v41 = vsel %vm1480_vm0, %v1481_v26, %v1482_v29  ;;  %v1632_v42 = vmax.f32 %v1361_v17, %v1482_v29  ;;  %v1694_v44 = vsel %vm1691_vm1, %v1692_v3, %v1693_v7  ;;  %v915_v45 = vpop.f32.mrb[34].mxu0  ;;  %v2238_v47 = vpop.f32.mrb[34].mxu1 }
 0x157   :  { %v2924_v48 = vmax.f32 %v1634_v19, %v1696_v25  ;;  %v1631_v49 = vmax.f32 %v1360_v59, %v1483_v41  ;;  %v1138_v27 = vadd.f32 %v1137_v37, %v865_v6  ;;  %v917_v53 = vpop.f32.mrb[35].mxu0  ;;  %v1140_v54 = vpop.f32.mrb[35].mxu1  ;;  %v1149_v1 = vadd.f32 %v2238_v47, %v876_v55 }
 0x158   :  { %v2928_v61 = vmax.f32 %v1633_v38, %v1697_v34  ;;  %v1843_v62 = vmax.f32 %v1632_v42, %v1693_v7  ;;  %v1366_v5 = vmax.f32 %v1146_v50, 0.0  ;;  %v1141_v10 = vadd.f32 %v1140_v54, %v868_v63 }
 0x159   :  { %v1842_v2 = vmax.f32 %v1631_v49, %v1694_v44  ;;  %v1364_v51 = vmax.f32 %v1138_v27, 0.0  ;;  %v2932_v17 = vadd.f32 %v2901_v43, %v2890_v35  ;;  %v2936_v59 = vadd.f32 %v2901_v43, %v2894_v39 }
 0x15a   :  { %v1903_v6 = vmax.f32 %v1843_v62, %v2924_v48  ;;  %v1367_v9 = vmax.f32 %v1149_v1, 0.0  ;;  %v2944_v55 = vadd.f32 %v2901_v43, %v907_v58  ;;  %v1490_v18 = vrot.slane %v1366_v5, 1 }
 0x15b   :  { %v1902_v63 = vmax.f32 %v1842_v2, %v2928_v61  ;;  %v1701_v21 = vrot.slane %v1366_v5, 2  ;;  %v1365_v25 = vmax.f32 %v1141_v10, 0.0  ;;  %v2948_v3 = vadd.f32 %v2901_v43, %v912_v30 }
 0x15c   :  { %v1491_v35 = vrot.slane %v1367_v9, 1  ;;  %v1702_v22 = vrot.slane %v1367_v9, 2  ;;  %v920_v26 = vpop.f32.mrb[36].mxu0  ;;  %v2241_v39 = vpop.f32.mrb[36].mxu1  ;;  %v1487_v29 = vrot.slane %v1364_v51, 1  ;;  %v1698_v7 = vrot.slane %v1364_v51, 2 }
 0x15d   :  { %v1162_v11 = vadd.f32 %v2241_v39, %v889_v33  ;;  %v922_v46 = vpop.f32.mrb[37].mxu0  ;;  %v1153_v15 = vpop.f32.mrb[37].mxu1  ;;  %v1488_v23 = vrot.slane %v1365_v25, 1  ;;  %v1699_v42 = vrot.slane %v1365_v25, 2  ;;  %v2956_v33 = vadd.f32 %v2901_v43, %v915_v45 }
 0x15e   :  { %v1492_v58 = vsel %vm1480_vm0, %v1490_v18, %v1491_v35  ;;  %v1638_v19 = vmax.f32 %v1367_v9, %v1491_v35  ;;  %v1703_v34 = vsel %vm1691_vm1, %v1701_v21, %v1702_v22  ;;  %v923_v37 = vpop.f32.mrb[38].mxu0  ;;  %v2242_v38 = vpop.f32.mrb[38].mxu1  ;;  %v1154_v30 = vadd.f32 %v1153_v15, %v2914_v13 }
 0x15f   :  { %v1637_v41 = vmax.f32 %v1366_v5, %v1492_v58  ;;  %v2952_v44 = vmax.f32 %v1162_v11, 0.0  ;;  %v925_v47 = vpop.f32.mrb[39].mxu0  ;;  %v1156_v49 = vpop.f32.mrb[39].mxu1  ;;  %v1489_v27 = vsel %vm1480_vm0, %v1487_v29, %v1488_v23  ;;  %v1636_v53 = vmax.f32 %v1365_v25, %v1488_v23 }
 0x160   :  { %v2958_v50 = vmax.f32 %v1638_v19, %v1702_v22  ;;  %v1635_v62 = vmax.f32 %v1364_v51, %v1489_v27  ;;  %v1700_v1 = vsel %vm1691_vm1, %v1698_v7, %v1699_v42  ;;  %v2965_v2 = vadd.f32 %v2901_v43, %v920_v26 }
 0x161   :  { %v2961_v54 = vmax.f32 %v1637_v41, %v1703_v34  ;;  %v2967_v5 = vmax.f32 %v1636_v53, %v1699_v42  ;;  %v1368_v13 = vmax.f32 %v1154_v30, 0.0  ;;  %v2970_v10 = vadd.f32 %v2901_v43, %v923_v37 }
 0x162   :  { %v1165_v45 = vadd.f32 %v2242_v38, %v892_v57  ;;  %v2972_v9 = vmax.f32 %v1635_v62, %v1700_v1  ;;  %v1496_v18 = vrot.slane %v2952_v44, 1  ;;  %v1707_v21 = vrot.slane %v2952_v44, 2 }
 0x163   :  { %v1157_v51 = vadd.f32 %v1156_v49, %v2917_v14  ;;  %v1905_v35 = vmax.f32 %v2924_v48, %v2967_v5  ;;  %v1907_v22 = vmax.f32 %v2967_v5, %v2958_v50  ;;  %v1955_v25 = vmax.f32 %v1903_v6, %v2967_v5 }
 0x164   :  { %v1493_v26 = vrot.slane %v1368_v13, 1  ;;  %v928_v39 = vpop.f32.mrb[40].mxu0  ;;  %v2245_v29 = vpop.f32.mrb[40].mxu1  ;;  %v1904_v57 = vmax.f32 %v2928_v61, %v2972_v9  ;;  %v1906_v7 = vmax.f32 %v2972_v9, %v2961_v54  ;;  %v1954_v11 = vmax.f32 %v1902_v63, %v2972_v9 }
 0x165   :  { %v1704_v14 = vrot.slane %v1368_v13, 2  ;;  %v930_v46 = vpop.f32.mrb[41].mxu0  ;;  %v1169_v15 = vpop.f32.mrb[41].mxu1  ;;  %v1957_v48 = vmax.f32 %v1905_v35, %v2958_v50  ;;  %2007 = vst [vmem:[%s3609_s3 + $0x8] sm:$0x1f] %v1955_v25  ;;  %v1371_v6 = vmax.f32 %v1165_v45, 0.0  ;;  %v2992_v19 = vadd.f32 %v2901_v43, %v928_v39 }
 0x166   :  { %v1369_v58 = vmax.f32 %v1157_v51, 0.0  ;;  %v931_v61 = vpop.f32.mrb[42].mxu0  ;;  %v2246_v34 = vpop.f32.mrb[42].mxu1  ;;  %v1956_v23 = vmax.f32 %v1904_v57, %v2961_v54  ;;  %2006 = vst [vmem:[%s3609_s3] sm:$0xff] %v1954_v11  ;;  %v1178_v63 = vadd.f32 %v2245_v29, %v2941_v31  ;;  %v1170_v37 = vadd.f32 %v1169_v15, %v2932_v17 }
 0x167   :  { %v3001_v38 = vadd.f32 %v2901_v43, %v931_v61  ;;  %v933_v41 = vpop.f32.mrb[43].mxu0  ;;  %v1172_v42 = vpop.f32.mrb[43].mxu1  ;;  %2009 = vst [vmem:[%s3609_s3 + $0x18] sm:$0x1f] %v1957_v48  ;;  %v1497_v30 = vrot.slane %v1371_v6, 1  ;;  %v1708_v47 = vrot.slane %v1371_v6, 2  ;;  %v1181_v53 = vadd.f32 %v2246_v34, %v2944_v55 }
 0x168   :  { %v1494_v49 = vrot.slane %v1369_v58, 1  ;;  %v1705_v27 = vrot.slane %v1369_v58, 2  ;;  %2008 = vst [vmem:[%s3609_s3 + $0x10] sm:$0xff] %v1956_v23  ;;  %v3009_v31 = vmax.f32 %v1178_v63, 0.0  ;;  %v3011_v17 = vmax.f32 %v1170_v37, 0.0 }
 0x169   :  { %v1173_v62 = vadd.f32 %v1172_v42, %v2936_v59  ;;  %v1498_v1 = vsel %vm1480_vm0, %v1496_v18, %v1497_v30  ;;  %v1642_v45 = vmax.f32 %v1371_v6, %v1497_v30  ;;  %v1709_v9 = vsel %vm1691_vm1, %v1707_v21, %v1708_v47 }
 0x16a   :  { %v1495_v51 = vsel %vm1480_vm0, %v1493_v26, %v1494_v49  ;;  %v1641_v35 = vmax.f32 %v2952_v44, %v1498_v1  ;;  %v1640_v39 = vmax.f32 %v1369_v58, %v1494_v49  ;;  %v1706_v29 = vsel %vm1691_vm1, %v1704_v14, %v1705_v27 }
 0x16b   :  { %v1639_v25 = vmax.f32 %v1368_v13, %v1495_v51  ;;  %v3020_v57 = vmax.f32 %v1642_v45, %v1708_v47  ;;  %v1502_v11 = vrot.slane %v3009_v31, 1  ;;  %v1713_v55 = vrot.slane %v3009_v31, 2 }
 0x16c   :  { %v1499_v59 = vrot.slane %v3011_v17, 1  ;;  %v936_v18 = vpop.f32.mrb[44].mxu0  ;;  %v2249_v46 = vpop.f32.mrb[44].mxu1  ;;  %v3025_v15 = vmax.f32 %v1641_v35, %v1709_v9  ;;  %v1851_v26 = vmax.f32 %v1640_v39, %v1705_v27  ;;  %v1710_v44 = vrot.slane %v3011_v17, 2 }
 0x16d   :  { %v3027_v21 = vmax.f32 %v1639_v25, %v1706_v29  ;;  %v938_v13 = vpop.f32.mrb[45].mxu0  ;;  %v1185_v48 = vpop.f32.mrb[45].mxu1  ;;  %v1375_v14 = vmax.f32 %v1181_v53, 0.0  ;;  %v1373_v6 = vmax.f32 %v1173_v62, 0.0  ;;  %v3031_v58 = vadd.f32 %v2901_v43, %v936_v18 }
 0x16e   :  { %v1194_v61 = vadd.f32 %v2249_v46, %v2965_v2  ;;  %v939_v34 = vpop.f32.mrb[46].mxu0  ;;  %v2250_v23 = vpop.f32.mrb[46].mxu1  ;;  %v1909_v37 = vmax.f32 %v2958_v50, %v1851_v26  ;;  %v1911_v42 = vmax.f32 %v1851_v26, %v3020_v57  ;;  %v1959_v2 = vmax.f32 %v1907_v22, %v1851_v26 }
 0x16f   :  { %v1908_v63 = vmax.f32 %v2961_v54, %v3027_v21  ;;  %v1910_v41 = vmax.f32 %v3027_v21, %v3025_v15  ;;  %v941_v30 = vpop.f32.mrb[47].mxu0  ;;  %v1188_v47 = vpop.f32.mrb[47].mxu1  ;;  %v1958_v49 = vmax.f32 %v1906_v7, %v3027_v21  ;;  %v1503_v27 = vrot.slane %v1375_v14, 1 }
 0x170   :  { %v1714_v53 = vrot.slane %v1375_v14, 2  ;;  %v1961_v54 = vmax.f32 %v1909_v37, %v3020_v57  ;;  %v1500_v1 = vrot.slane %v1373_v6, 1  ;;  %v1711_v45 = vrot.slane %v1373_v6, 2  ;;  %2011 = vst [vmem:[%s3609_s3 + $0x28] sm:$0x1f] %v1959_v2 }
 0x171   :  { %v1960_v62 = vmax.f32 %v1908_v63, %v3025_v15  ;;  %2010 = vst [vmem:[%s3609_s3 + $0x20] sm:$0xff] %v1958_v49  ;;  %v1504_v7 = vsel %vm1480_vm0, %v1502_v11, %v1503_v27  ;;  %v1646_v50 = vmax.f32 %v1375_v14, %v1503_v27  ;;  %v3054_v22 = vmax.f32 %v1194_v61, 0.0 }
 0x172   :  { %v1715_v5 = vsel %vm1691_vm1, %v1713_v55, %v1714_v53  ;;  %2013 = vst [vmem:[%s3609_s3 + $0x38] sm:$0x1f] %v1961_v54  ;;  %v1645_v9 = vmax.f32 %v3009_v31, %v1504_v7  ;;  %v1501_v51 = vsel %vm1480_vm0, %v1499_v59, %v1500_v1  ;;  %v1644_v35 = vmax.f32 %v1373_v6, %v1500_v1 }
 0x173   :  { %2012 = vst [vmem:[%s3609_s3 + $0x30] sm:$0xff] %v1960_v62  ;;  %v1712_v25 = vsel %vm1691_vm1, %v1710_v44, %v1711_v45  ;;  %v3065_v39 = vmax.f32 %v1646_v50, %v1714_v53  ;;  %v1643_v29 = vmax.f32 %v3011_v17, %v1501_v51  ;;  %v1508_v11 = vrot.slane %v3054_v22, 1 }
 0x174   :  { %v1719_v55 = vrot.slane %v3054_v22, 2  ;;  %v944_v18 = vpop.f32.mrb[48].mxu0  ;;  %v2253_v46 = vpop.f32.mrb[48].mxu1  ;;  %v3070_v21 = vmax.f32 %v1645_v9, %v1715_v5  ;;  %v3072_v26 = vmax.f32 %v1644_v35, %v1711_v45  ;;  %v1186_v31 = vadd.f32 %v1185_v48, %v2948_v3 }
 0x175   :  { %v940_v59 = vadd.f32 %v2901_v43, %v939_v34  ;;  %v946_v13 = vpop.f32.mrb[49].mxu0  ;;  %v1201_v44 = vpop.f32.mrb[49].mxu1  ;;  %v3076_v14 = vmax.f32 %v1643_v29, %v1712_v25  ;;  %v1197_v17 = vadd.f32 %v2250_v23, %v2970_v10  ;;  %v1189_v6 = vadd.f32 %v1188_v47, %v2956_v33 }
 0x176   :  { %v945_v61 = vadd.f32 %v2901_v43, %v944_v18  ;;  %v947_v63 = vpop.f32.mrb[50].mxu0  ;;  %v2254_v37 = vpop.f32.mrb[50].mxu1  ;;  %v1913_v30 = vmax.f32 %v3020_v57, %v3072_v26  ;;  %v1915_v3 = vmax.f32 %v3072_v26, %v3065_v39  ;;  %v1963_v48 = vmax.f32 %v1911_v42, %v3072_v26 }
 0x177   :  { %v1376_v34 = vmax.f32 %v1186_v31, 0.0  ;;  %v949_v49 = vpop.f32.mrb[51].mxu0  ;;  %v1204_v2 = vpop.f32.mrb[51].mxu1  ;;  %v1912_v10 = vmax.f32 %v3025_v15, %v3076_v14  ;;  %v1914_v33 = vmax.f32 %v3076_v14, %v3070_v21  ;;  %v1962_v23 = vmax.f32 %v1910_v41, %v3076_v14 }
 0x178   :  { %v1379_v47 = vmax.f32 %v1197_v17, 0.0  ;;  %v1965_v27 = vmax.f32 %v1913_v30, %v3065_v39  ;;  %2015 = vst [vmem:[%s3609_s3 + $0x48] sm:$0x1f] %v1963_v48  ;;  %v1377_v53 = vmax.f32 %v1189_v6, 0.0  ;;  %v1210_v41 = vadd.f32 %v2253_v46, %v3031_v58 }
 0x179   :  { %v1505_v57 = vrot.slane %v1376_v34, 1  ;;  %v1716_v42 = vrot.slane %v1376_v34, 2  ;;  %v1964_v62 = vmax.f32 %v1912_v10, %v3070_v21  ;;  %2014 = vst [vmem:[%s3609_s3 + $0x40] sm:$0xff] %v1962_v23  ;;  %v1202_v7 = vadd.f32 %v1201_v44, %v2992_v19 }
 0x17a   :  { %v1509_v15 = vrot.slane %v1379_v47, 1  ;;  %v1720_v54 = vrot.slane %v1379_v47, 2  ;;  %2017 = vst [vmem:[%s3609_s3 + $0x58] sm:$0x1f] %v1965_v27  ;;  %v1506_v1 = vrot.slane %v1377_v53, 1  ;;  %v1717_v45 = vrot.slane %v1377_v53, 2 }
 0x17b   :  { %v948_v50 = vadd.f32 %v2901_v43, %v947_v63  ;;  %2016 = vst [vmem:[%s3609_s3 + $0x50] sm:$0xff] %v1964_v62  ;;  %v3110_v58 = vmax.f32 %v1210_v41, 0.0  ;;  %v1213_v30 = vadd.f32 %v2254_v37, %v940_v59  ;;  %v1205_v23 = vadd.f32 %v1204_v2, %v3001_v38 }
 0x17c   :  { %v1510_v5 = vsel %vm1480_vm0, %v1508_v11, %v1509_v15  ;;  %v1650_v9 = vmax.f32 %v1379_v47, %v1509_v15  ;;  %v1721_v51 = vsel %vm1691_vm1, %v1719_v55, %v1720_v54  ;;  %v952_v35 = vpop.f32.mrb[52].mxu0  ;;  %v2257_v25 = vpop.f32.mrb[52].mxu1  ;;  %v1507_v18 = vsel %vm1480_vm0, %v1505_v57, %v1506_v1 }
 0x17d   :  { %v1649_v29 = vmax.f32 %v3054_v22, %v1510_v5  ;;  %v1648_v19 = vmax.f32 %v1377_v53, %v1506_v1  ;;  %v1718_v46 = vsel %vm1691_vm1, %v1716_v42, %v1717_v45  ;;  %v954_v26 = vpop.f32.mrb[53].mxu0  ;;  %v1217_v31 = vpop.f32.mrb[53].mxu1  ;;  %v1647_v44 = vmax.f32 %v1376_v34, %v1507_v18 }
 0x17e   :  { %v3115_v13 = vmax.f32 %v1650_v9, %v1720_v54  ;;  %v1514_v11 = vrot.slane %v3110_v58, 1  ;;  %v1725_v55 = vrot.slane %v3110_v58, 2  ;;  %v955_v14 = vpop.f32.mrb[54].mxu0  ;;  %v2258_v17 = vpop.f32.mrb[54].mxu1  ;;  %v1380_v22 = vmax.f32 %v1202_v7, 0.0 }
 0x17f   :  { %v3119_v6 = vmax.f32 %v1649_v29, %v1721_v51  ;;  %v3121_v63 = vmax.f32 %v1648_v19, %v1717_v45  ;;  %v957_v48 = vpop.f32.mrb[55].mxu0  ;;  %v1220_v49 = vpop.f32.mrb[55].mxu1  ;;  %v3123_v10 = vmax.f32 %v1647_v44, %v1718_v46  ;;  %v953_v34 = vadd.f32 %v2901_v43, %v952_v35 }
 0x180   :  { %v1218_v47 = vadd.f32 %v1217_v31, %v945_v61  ;;  %v1511_v53 = vrot.slane %v1380_v22, 1  ;;  %v1722_v2 = vrot.slane %v1380_v22, 2  ;;  %v1381_v62 = vmax.f32 %v1205_v23, 0.0 }
 0x181   :  { %v1917_v27 = vmax.f32 %v3065_v39, %v3121_v63  ;;  %v1919_v57 = vmax.f32 %v3121_v63, %v3115_v13  ;;  %v1967_v42 = vmax.f32 %v1915_v3, %v3121_v63  ;;  %v1916_v59 = vmax.f32 %v3070_v21, %v3123_v10 }
 0x182   :  { %v1918_v37 = vmax.f32 %v3123_v10, %v3119_v6  ;;  %v1966_v38 = vmax.f32 %v1914_v33, %v3123_v10  ;;  %v1383_v39 = vmax.f32 %v1213_v30, 0.0  ;;  %v1226_v15 = vadd.f32 %v2257_v25, %v953_v34 }
 0x183   :  { %v1969_v61 = vmax.f32 %v1917_v27, %v3115_v13  ;;  %2019 = vst [vmem:[%s3609_s3 + $0x68] sm:$0x1f] %v1967_v42  ;;  %v1968_v3 = vmax.f32 %v1916_v59, %v3119_v6  ;;  %v3145_v21 = vmax.f32 %v1218_v47, 0.0  ;;  %v956_v33 = vadd.f32 %v2901_v43, %v955_v14 }
 0x184   :  { %2018 = vst [vmem:[%s3609_s3 + $0x60] sm:$0xff] %v1966_v38  ;;  %v1221_v54 = vadd.f32 %v1220_v49, %v948_v50  ;;  %v960_v41 = vpop.f32.mrb[56].mxu0  ;;  %v3148_v1 = vpop.f32.mrb[56].mxu1  ;;  %v1515_v45 = vrot.slane %v1383_v39, 1  ;;  %v1726_v7 = vrot.slane %v1383_v39, 2  ;;  %v1512_v5 = vrot.slane %v1381_v62, 1 }
 0x185   :  { %2021 = vst [vmem:[%s3609_s3 + $0x78] sm:$0x1f] %v1969_v61  ;;  %v1723_v9 = vrot.slane %v1381_v62, 2  ;;  %v962_v51 = vpop.f32.mrb[57].mxu0  ;;  %v1233_v35 = vpop.f32.mrb[57].mxu1  ;;  %2020 = vst [vmem:[%s3609_s3 + $0x70] sm:$0xff] %v1968_v3  ;;  %v1229_v18 = vadd.f32 %v2258_v17, %v956_v33  ;;  %v961_v61 = vadd.f32 %v2901_v43, %v960_v41 }
 0x186   :  { %v1386_v25 = vmax.f32 %v1226_v15, 0.0  ;;  %v1517_v50 = vrot.slane %v3145_v21, 1  ;;  %v1728_v29 = vrot.slane %v3145_v21, 2  ;;  %v963_v19 = vpop.f32.mrb[58].mxu0  ;;  %v2262_v46 = vpop.f32.mrb[58].mxu1  ;;  %v1516_v26 = vsel %vm1480_vm0, %v1514_v11, %v1515_v45 }
 0x187   :  { %v1654_v31 = vmax.f32 %v1383_v39, %v1515_v45  ;;  %v1727_v44 = vsel %vm1691_vm1, %v1725_v55, %v1726_v7  ;;  %v1513_v14 = vsel %vm1480_vm0, %v1511_v53, %v1512_v5  ;;  %v965_v63 = vpop.f32.mrb[59].mxu0  ;;  %v1236_v30 = vpop.f32.mrb[59].mxu1  ;;  %v1653_v48 = vmax.f32 %v3110_v58, %v1516_v26 }
 0x188   :  { %v1651_v49 = vmax.f32 %v1380_v22, %v1513_v14  ;;  %v1652_v10 = vmax.f32 %v1381_v62, %v1512_v5  ;;  %v1724_v23 = vsel %vm1691_vm1, %v1722_v2, %v1723_v9  ;;  %v1520_v17 = vrot.slane %v1386_v25, 1 }
 0x189   :  { %v3163_v34 = vmax.f32 %v1654_v31, %v1726_v7  ;;  %v1731_v47 = vrot.slane %v1386_v25, 2  ;;  %v1387_v27 = vmax.f32 %v1229_v18, 0.0  ;;  %v3165_v42 = vmax.f32 %v1653_v48, %v1727_v44 }
 0x18a   :  { %v3167_v11 = vmax.f32 %v1651_v49, %v1724_v23  ;;  %v1863_v55 = vmax.f32 %v1652_v10, %v1723_v9  ;;  %v1385_v59 = vmax.f32 %v1221_v54, 0.0  ;;  %v964_v58 = vadd.f32 %v2901_v43, %v963_v19 }
 0x18b   :  { %v1521_v53 = vrot.slane %v1387_v27, 1  ;;  %v1732_v38 = vrot.slane %v1387_v27, 2  ;;  %v1234_v31 = vadd.f32 %v1233_v35, %v961_v61 }
 0x18c   :  { %v1920_v22 = vmax.f32 %v3119_v6, %v3167_v11  ;;  %v1921_v2 = vmax.f32 %v3115_v13, %v1863_v55  ;;  %v1922_v39 = vmax.f32 %v3167_v11, %v3165_v42  ;;  %v1923_v62 = vmax.f32 %v1863_v55, %v3163_v34  ;;  %v968_v15 = vpop.f32.mrb[60].mxu0  ;;  %v3177_v3 = vpop.f32.mrb[60].mxu1 }
 0x18d   :  { %v1970_v33 = vmax.f32 %v1918_v37, %v3167_v11  ;;  %v1971_v54 = vmax.f32 %v1919_v57, %v1863_v55  ;;  %v1522_v41 = vsel %vm1480_vm0, %v1520_v17, %v1521_v53  ;;  %v1658_v45 = vmax.f32 %v1387_v27, %v1521_v53  ;;  %v970_v7 = vpop.f32.mrb[61].mxu0  ;;  %v3181_v5 = vpop.f32.mrb[61].mxu1 }
 0x18e   :  { %v1972_v6 = vmax.f32 %v1920_v22, %v3165_v42  ;;  %v1973_v13 = vmax.f32 %v1921_v2, %v3163_v34  ;;  %v1657_v9 = vmax.f32 %v1386_v25, %v1522_v41  ;;  %v1733_v51 = vsel %vm1691_vm1, %v1731_v47, %v1732_v38  ;;  %v971_v18 = vpop.f32.mrb[62].mxu0  ;;  %v3186_v19 = vpop.f32.mrb[62].mxu1 }
 0x18f   :  { %2022 = vst [vmem:[%s3609_s3 + $0x80] sm:$0xff] %v1970_v33  ;;  %2023 = vst [vmem:[%s3609_s3 + $0x88] sm:$0x1f] %v1971_v54  ;;  %v1869_v57 = vmax.f32 %v1658_v45, %v1732_v38  ;;  %v1518_v37 = vrot.slane %v1385_v59, 1  ;;  %v1729_v26 = vrot.slane %v1385_v59, 2  ;;  %v973_v44 = vpop.f32.mrb[63].mxu0  ;;  %v1237_v63 = vadd.f32 %v1236_v30, %v964_v58 }
 0x190   :  { %v1252_v14 = vpop.f32.mrb[63].mxu1  ;;  %2024 = vst [vmem:[%s3609_s3 + $0x90] sm:$0xff] %v1972_v6  ;;  %2025 = vst [vmem:[%s3609_s3 + $0x98] sm:$0x1f] %v1973_v13  ;;  %v1868_v25 = vmax.f32 %v1657_v9, %v1733_v51  ;;  %v969_v48 = vadd.f32 %v2901_v43, %v968_v15  ;;  %v972_v49 = vadd.f32 %v2901_v43, %v971_v18  ;;  %v1388_v17 = vmax.f32 %v1234_v31, 0.0 }
 0x191   :  { %v1519_v10 = vsel %vm1480_vm0, %v1517_v50, %v1518_v37  ;;  %v1656_v23 = vmax.f32 %v1385_v59, %v1518_v37  ;;  %v1730_v35 = vsel %vm1691_vm1, %v1728_v29, %v1729_v26  ;;  %v1389_v27 = vmax.f32 %v1237_v63, 0.0 }
 0x192   :  { %v1655_v47 = vmax.f32 %v3145_v21, %v1519_v10  ;;  %v1242_v11 = vadd.f32 %v3148_v1, %v969_v48  ;;  %v1245_v55 = vadd.f32 %v2262_v46, %v972_v49  ;;  %v1523_v38 = vrot.slane %v1388_v17, 1 }
 0x193   :  { %v1867_v53 = vmax.f32 %v1656_v23, %v1729_v26  ;;  %v1734_v61 = vrot.slane %v1388_v17, 2  ;;  %v1524_v58 = vrot.slane %v1389_v27, 1  ;;  %v1735_v22 = vrot.slane %v1389_v27, 2 }
 0x194   :  { %v1866_v30 = vmax.f32 %v1655_v47, %v1730_v35  ;;  %v1390_v2 = vmax.f32 %v1242_v11, 0.0  ;;  %v976_v15 = vpop.f32.mrb[64].mxu0  ;;  %v3206_v33 = vpop.f32.mrb[64].mxu1  ;;  %v3209_v54 = vmax.f32 %v1245_v55, 0.0 }
 0x195   :  { %v1925_v50 = vmax.f32 %v3163_v34, %v1867_v53  ;;  %v1975_v29 = vmax.f32 %v1923_v62, %v1867_v53  ;;  %v1927_v59 = vmax.f32 %v1867_v53, %v1869_v57  ;;  %v978_v21 = vpop.f32.mrb[65].mxu0  ;;  %v3211_v41 = vpop.f32.mrb[65].mxu1  ;;  %v1525_v45 = vsel %vm1480_vm0, %v1523_v38, %v1524_v58 }
 0x196   :  { %v1924_v1 = vmax.f32 %v3165_v42, %v1866_v30  ;;  %v1974_v46 = vmax.f32 %v1922_v39, %v1866_v30  ;;  %v1660_v7 = vmax.f32 %v1389_v27, %v1524_v58  ;;  %v979_v6 = vpop.f32.mrb[66].mxu0  ;;  %v3215_v13 = vpop.f32.mrb[66].mxu1  ;;  %v1659_v34 = vmax.f32 %v1388_v17, %v1525_v45 }
 0x197   :  { %v1977_v9 = vmax.f32 %v1925_v50, %v1869_v57  ;;  %2027 = vst [vmem:[%s3609_s3 + $0xa8] sm:$0x1f] %v1975_v29  ;;  %v1736_v62 = vsel %vm1691_vm1, %v1734_v61, %v1735_v22  ;;  %v1926_v51 = vmax.f32 %v1866_v30, %v1868_v25  ;;  %v981_v18 = vpop.f32.mrb[67].mxu0  ;;  %v3221_v37 = vpop.f32.mrb[67].mxu1  ;;  %v1526_v26 = vrot.slane %v1390_v2, 1 }
 0x198   :  { %v1976_v42 = vmax.f32 %v1924_v1, %v1868_v25  ;;  %2026 = vst [vmem:[%s3609_s3 + $0xa0] sm:$0xff] %v1974_v46  ;;  %v1871_v39 = vmax.f32 %v1660_v7, %v1735_v22  ;;  %v1737_v31 = vrot.slane %v1390_v2, 2  ;;  %v1870_v57 = vmax.f32 %v1659_v34, %v1736_v62 }
 0x199   :  { %2029 = vst [vmem:[%s3609_s3 + $0xb8] sm:$0x1f] %v1977_v9  ;;  %v1527_v44 = vrot.slane %v3209_v54, 1  ;;  %v1738_v63 = vrot.slane %v3209_v54, 2  ;;  %v977_v48 = vadd.f32 %v2901_v43, %v976_v15  ;;  %v980_v49 = vadd.f32 %v2901_v43, %v979_v6 }
 0x19a   :  { %2028 = vst [vmem:[%s3609_s3 + $0xb0] sm:$0xff] %v1976_v42  ;;  %v1979_v25 = vmax.f32 %v1927_v59, %v1871_v39  ;;  %v1978_v10 = vmax.f32 %v1926_v51, %v1870_v57  ;;  %v1033_v30 = vadd.f32 %v2901_v43, %v2864_v52  ;;  %v1036_v15 = vadd.f32 %v2901_v43, %v2866_v56 }
 0x19b   :  { %v1528_v23 = vsel %vm1480_vm0, %v1526_v26, %v1527_v44  ;;  %v1739_v35 = vsel %vm1691_vm1, %v1737_v31, %v1738_v63  ;;  %v1250_v47 = vadd.f32 %v3181_v5, %v977_v48  ;;  %v1253_v27 = vadd.f32 %v1252_v14, %v980_v49 }
 0x19c   :  { %2031 = vst [vmem:[%s3609_s3 + $0xc8] sm:$0x1f] %v1979_v25  ;;  %v1661_v17 = vmax.f32 %v1390_v2, %v1528_v23  ;;  %v984_v11 = vpop.f32.mrb[68].mxu0  ;;  %v3242_v55 = vpop.f32.mrb[68].mxu1  ;;  %2030 = vst [vmem:[%s3609_s3 + $0xc0] sm:$0xff] %v1978_v10  ;;  %v1662_v50 = vmax.f32 %v3209_v54, %v1527_v44  ;;  %v3265_v6 = vadd.f32 %v2901_v43, %v2868_v60 }
 0x19d   :  { %v985_v53 = vadd.f32 %v2901_v43, %v984_v11  ;;  %v986_v38 = vpop.f32.mrb[69].mxu0  ;;  %v3248_v61 = vpop.f32.mrb[69].mxu1  ;;  %v1392_v22 = vmax.f32 %v1250_v47, 0.0  ;;  %v1393_v5 = vmax.f32 %v1253_v27, 0.0  ;;  %v3269_v56 = vadd.f32 %v2901_v43, %v2870_v0 }
 0x19e   :  { %v3252_v58 = vmax.f32 %v1661_v17, %v1739_v35  ;;  %v987_v14 = vpop.f32.mrb[70].mxu0  ;;  %v3254_v2 = vpop.f32.mrb[70].mxu1  ;;  %v3274_v9 = vadd.f32 %v2901_v43, %v2872_v4  ;;  %v3280_v60 = vadd.f32 %v2901_v43, %v2874_v8  ;;  %v3284_v0 = vadd.f32 %v2901_v43, %v2876_v12 }
 0x19f   :  { %v1258_v29 = vadd.f32 %v3177_v3, %v985_v53  ;;  %v988_v59 = vadd.f32 %v2901_v43, %v987_v14  ;;  %v989_v21 = vpop.f32.mrb[71].mxu0  ;;  %v3261_v1 = vpop.f32.mrb[71].mxu1  ;;  %v1529_v52 = vrot.slane %v1392_v22, 1  ;;  %v1740_v46 = vrot.slane %v1392_v22, 2 }
 0x1a0   :  { %v1530_v45 = vrot.slane %v1393_v5, 1  ;;  %v1741_v7 = vrot.slane %v1393_v5, 2  ;;  %v3295_v12 = vadd.f32 %v2901_v43, %v2878_v16  ;;  %v3322_v21 = vadd.f32 %v2901_v43, %v2888_v32 }
 0x1a1   :  { %v1394_v54 = vmax.f32 %v1258_v29, 0.0  ;;  %v1261_v3 = vadd.f32 %v3186_v19, %v988_v59  ;;  %v1873_v19 = vmax.f32 %v1662_v50, %v1738_v63  ;;  %v3299_v63 = vadd.f32 %v2901_v43, %v2880_v20 }
 0x1a2   :  { %v1531_v34 = vsel %vm1480_vm0, %v1529_v52, %v1530_v45  ;;  %v1664_v62 = vmax.f32 %v1393_v5, %v1530_v45  ;;  %v1742_v51 = vsel %vm1691_vm1, %v1740_v46, %v1741_v7 }
 0x1a3   :  { %v1663_v18 = vmax.f32 %v1392_v22, %v1531_v34  ;;  %v1395_v42 = vmax.f32 %v1261_v3, 0.0  ;;  %v1532_v4 = vrot.slane %v1394_v54, 1  ;;  %v1743_v26 = vrot.slane %v1394_v54, 2 }
 0x1a4   :  { %v3286_v39 = vmax.f32 %v1664_v62, %v1741_v7  ;;  %v992_v31 = vpop.f32.mrb[72].mxu0  ;;  %v2277_v57 = vpop.f32.mrb[72].mxu1 }
 0x1a5   :  { %v3288_v44 = vmax.f32 %v1663_v18, %v1742_v51  ;;  %v1533_v48 = vrot.slane %v1395_v42, 1  ;;  %v1744_v25 = vrot.slane %v1395_v42, 2  ;;  %v993_v8 = vadd.f32 %v2901_v43, %v992_v31  ;;  %v994_v49 = vpop.f32.mrb[73].mxu0  ;;  %v3291_v10 = vpop.f32.mrb[73].mxu1 }
 0x1a6   :  { %v1929_v23 = vmax.f32 %v1873_v19, %v3286_v39  ;;  %v1306_v35 = vadd.f32 %v2277_v57, %v1033_v30  ;;  %v995_v17 = vpop.f32.mrb[74].mxu0  ;;  %v2278_v47 = vpop.f32.mrb[74].mxu1  ;;  %v3312_v30 = vadd.f32 %v2901_v43, %v2882_v24 }
 0x1a7   :  { %v1928_v27 = vmax.f32 %v3252_v58, %v3288_v44  ;;  %v1534_v11 = vsel %vm1480_vm0, %v1532_v4, %v1533_v48  ;;  %v1666_v53 = vmax.f32 %v1395_v42, %v1533_v48  ;;  %v1745_v38 = vsel %vm1691_vm1, %v1743_v26, %v1744_v25  ;;  %v997_v22 = vpop.f32.mrb[75].mxu0  ;;  %v3306_v16 = vpop.f32.mrb[75].mxu1 }
 0x1a8   :  { %v1665_v5 = vmax.f32 %v1394_v54, %v1534_v11  ;;  %v1266_v20 = vadd.f32 %v3211_v41, %v993_v8  ;;  %v1406_v14 = vmax.f32 %v1306_v35, 0.0  ;;  %v996_v50 = vadd.f32 %v2901_v43, %v995_v17 }
 0x1a9   :  { %v3316_v58 = vadd.f32 %v2901_v43, %v2884_v28  ;;  %v3318_v29 = vmax.f32 %v1666_v53, %v1744_v25  ;;  %v1309_v59 = vadd.f32 %v2278_v47, %v1036_v15  ;;  %v3326_v41 = vadd.f32 %v2901_v43, %v2892_v36 }
 0x1aa   :  { %v3328_v52 = vmax.f32 %v1665_v5, %v1745_v38  ;;  %v1396_v46 = vmax.f32 %v1266_v20, 0.0  ;;  %v1269_v45 = vadd.f32 %v3221_v37, %v996_v50  ;;  %v1550_v54 = vrot.slane %v1406_v14, 1 }
 0x1ab   :  { %v1931_v24 = vmax.f32 %v3286_v39, %v3318_v29  ;;  %v1981_v28 = vmax.f32 %v1929_v23, %v3318_v29  ;;  %v1407_v7 = vmax.f32 %v1309_v59, 0.0  ;;  %v1761_v3 = vrot.slane %v1406_v14, 2 }
 0x1ac   :  { %v1930_v15 = vmax.f32 %v3288_v44, %v3328_v52  ;;  %v1980_v32 = vmax.f32 %v1928_v27, %v3328_v52  ;;  %v1000_v36 = vpop.f32.mrb[76].mxu0  ;;  %v2281_v34 = vpop.f32.mrb[76].mxu1  ;;  %v1397_v62 = vmax.f32 %v1269_v45, 0.0  ;;  %v1535_v39 = vrot.slane %v1396_v46, 1 }
 0x1ad   :  { %2033 = vst [vmem:[%s3609_s3 + $0xd8] sm:$0x1f] %v1981_v28  ;;  %v1551_v51 = vrot.slane %v1407_v7, 1  ;;  %v1762_v18 = vrot.slane %v1407_v7, 2  ;;  %v1001_v42 = vadd.f32 %v2901_v43, %v1000_v36  ;;  %v1002_v37 = vpop.f32.mrb[77].mxu0  ;;  %v1313_v19 = vpop.f32.mrb[77].mxu1  ;;  %v1322_v26 = vadd.f32 %v2281_v34, %v3274_v9 }
 0x1ae   :  { %2032 = vst [vmem:[%s3609_s3 + $0xd0] sm:$0xff] %v1980_v32  ;;  %v1746_v4 = vrot.slane %v1396_v46, 2  ;;  %v1314_v31 = vadd.f32 %v1313_v19, %v3265_v6  ;;  %v1003_v57 = vpop.f32.mrb[78].mxu0  ;;  %v2282_v44 = vpop.f32.mrb[78].mxu1  ;;  %v1536_v48 = vrot.slane %v1397_v62, 1  ;;  %v1747_v25 = vrot.slane %v1397_v62, 2 }
 0x1af   :  { %v1552_v8 = vsel %vm1480_vm0, %v1550_v54, %v1551_v51  ;;  %v1678_v49 = vmax.f32 %v1407_v7, %v1551_v51  ;;  %v1005_v43 = vpop.f32.mrb[79].mxu0  ;;  %v1316_v23 = vpop.f32.mrb[79].mxu1  ;;  %v1763_v17 = vsel %vm1691_vm1, %v1761_v3, %v1762_v18  ;;  %v1274_v47 = vadd.f32 %v3206_v33, %v1001_v42  ;;  %v3354_v6 = vld [vmem:[%s3608_s2] ss:$0 sm:$0xff] }
 0x1b0   :  { %v1677_v35 = vmax.f32 %v1406_v14, %v1552_v8  ;;  %v3349_v27 = vmax.f32 %v1322_v26, 0.0  ;;  %v3358_v9 = vadd.f32 %v3354_v6, %v2896_v40  ;;  %v1537_v11 = vsel %vm1480_vm0, %v1535_v39, %v1536_v48 }
 0x1b1   :  { %v1668_v53 = vmax.f32 %v1397_v62, %v1536_v48  ;;  %v1748_v38 = vsel %vm1691_vm1, %v1746_v4, %v1747_v25  ;;  %v1667_v22 = vmax.f32 %v1396_v46, %v1537_v11  ;;  %v3364_v33 = vmax.f32 %v1678_v49, %v1762_v18 }
 0x1b2   :  { %v3362_v5 = vmax.f32 %v1677_v35, %v1763_v17  ;;  %v3366_v20 = vmax.f32 %v1274_v47, 0.0  ;;  %v1556_v50 = vrot.slane %v3349_v27, 1  ;;  %v3371_v59 = vmax.f32 %v1314_v31, 0.0 }
 0x1b3   :  { %v3368_v14 = vmax.f32 %v1668_v53, %v1747_v25  ;;  %v1004_v40 = vadd.f32 %v3354_v6, %v1003_v57  ;;  %v3374_v28 = vmax.f32 %v1667_v22, %v1748_v38  ;;  %v1767_v46 = vrot.slane %v3349_v27, 2 }
 0x1b4   :  { %v1538_v45 = vrot.slane %v3366_v20, 1  ;;  %v1325_v7 = vadd.f32 %v2282_v44, %v3280_v60  ;;  %v1008_v32 = vpop.f32.mrb[80].mxu0  ;;  %v2285_v54 = vpop.f32.mrb[80].mxu1  ;;  %v1749_v34 = vrot.slane %v3366_v20, 2  ;;  %v1553_v62 = vrot.slane %v3371_v59, 1 }
 0x1b5   :  { %v1933_v3 = vmax.f32 %v3318_v29, %v3368_v14  ;;  %v1983_v36 = vmax.f32 %v1931_v24, %v3368_v14  ;;  %v1010_v51 = vpop.f32.mrb[81].mxu0  ;;  %v1329_v18 = vpop.f32.mrb[81].mxu1  ;;  %v1932_v42 = vmax.f32 %v3328_v52, %v3374_v28  ;;  %v1982_v37 = vmax.f32 %v1930_v15, %v3374_v28 }
 0x1b6   :  { %v1277_v60 = vadd.f32 %v3215_v13, %v1004_v40  ;;  %v1411_v19 = vmax.f32 %v1325_v7, 0.0  ;;  %v1011_v39 = vpop.f32.mrb[82].mxu0  ;;  %v3388_v4 = vpop.f32.mrb[82].mxu1  ;;  %v1317_v29 = vadd.f32 %v1316_v23, %v3269_v56  ;;  %v1009_v24 = vadd.f32 %v3354_v6, %v1008_v32 }
 0x1b7   :  { %2035 = vst [vmem:[%s3609_s3 + $0xe8] sm:$0x1f] %v1983_v36  ;;  %v1338_v26 = vadd.f32 %v2285_v54, %v3299_v63  ;;  %v1330_v52 = vadd.f32 %v1329_v18, %v3284_v0  ;;  %v1013_v31 = vpop.f32.mrb[83].mxu0  ;;  %v1332_v15 = vpop.f32.mrb[83].mxu1  ;;  %2034 = vst [vmem:[%s3609_s3 + $0xe0] sm:$0xff] %v1982_v37  ;;  %v1764_v13 = vrot.slane %v3371_v59, 2  ;;  %v1012_v63 = vadd.f32 %v3354_v6, %v1011_v39 }
 0x1b8   :  { %v1399_v57 = vmax.f32 %v1277_v60, 0.0  ;;  %v1557_v44 = vrot.slane %v1411_v19, 1  ;;  %v1768_v48 = vrot.slane %v1411_v19, 2  ;;  %v1409_v25 = vmax.f32 %v1317_v29, 0.0 }
 0x1b9   :  { %v1282_v56 = vadd.f32 %v3248_v61, %v1009_v24  ;;  %v3402_v8 = vmax.f32 %v1338_v26, 0.0 }
 0x1ba   :  { %v1539_v49 = vrot.slane %v1399_v57, 1  ;;  %v1750_v0 = vrot.slane %v1399_v57, 2  ;;  %v1558_v43 = vsel %vm1480_vm0, %v1556_v50, %v1557_v44  ;;  %v1682_v23 = vmax.f32 %v1411_v19, %v1557_v44 }
 0x1bb   :  { %v1681_v35 = vmax.f32 %v3349_v27, %v1558_v43  ;;  %v1769_v17 = vsel %vm1691_vm1, %v1767_v46, %v1768_v48  ;;  %v1554_v47 = vrot.slane %v1409_v25, 1  ;;  %v1765_v11 = vrot.slane %v1409_v25, 2 }
 0x1bc   :  { %v1540_v53 = vsel %vm1480_vm0, %v1538_v45, %v1539_v49  ;;  %v1670_v38 = vmax.f32 %v1399_v57, %v1539_v49  ;;  %v1751_v61 = vsel %vm1691_vm1, %v1749_v34, %v1750_v0  ;;  %v3410_v22 = vmax.f32 %v1682_v23, %v1768_v48  ;;  %v1016_v40 = vpop.f32.mrb[84].mxu0  ;;  %v2289_v7 = vpop.f32.mrb[84].mxu1 }
 0x1bd   :  { %v1669_v32 = vmax.f32 %v3366_v20, %v1540_v53  ;;  %v3413_v54 = vmax.f32 %v1681_v35, %v1769_v17  ;;  %v1555_v50 = vsel %vm1480_vm0, %v1553_v62, %v1554_v47  ;;  %v1680_v27 = vmax.f32 %v1409_v25, %v1554_v47  ;;  %v1018_v36 = vpop.f32.mrb[85].mxu0  ;;  %v1345_v46 = vpop.f32.mrb[85].mxu1 }
 0x1be   :  { %v3416_v51 = vmax.f32 %v1670_v38, %v1750_v0  ;;  %v1679_v45 = vmax.f32 %v3371_v59, %v1555_v50  ;;  %v1766_v18 = vsel %vm1691_vm1, %v1764_v13, %v1765_v11  ;;  %v3420_v34 = vmax.f32 %v1282_v56, 0.0  ;;  %v1019_v37 = vpop.f32.mrb[86].mxu0  ;;  %v2290_v60 = vpop.f32.mrb[86].mxu1 }
 0x1bf   :  { %v3422_v19 = vmax.f32 %v1669_v32, %v1751_v61  ;;  %v3424_v20 = vmax.f32 %v1680_v27, %v1765_v11  ;;  %v1562_v39 = vrot.slane %v3402_v8, 1  ;;  %v3427_v62 = vmax.f32 %v1330_v52, 0.0  ;;  %v1021_v29 = vpop.f32.mrb[87].mxu0  ;;  %v3429_v24 = vpop.f32.mrb[87].mxu1 }
 0x1c0   :  { %v1935_v59 = vmax.f32 %v3368_v14, %v3416_v51  ;;  %v1985_v26 = vmax.f32 %v1933_v3, %v3416_v51  ;;  %v3434_v31 = vmax.f32 %v1679_v45, %v1766_v18  ;;  %v1773_v13 = vrot.slane %v3402_v8, 2 }
 0x1c1   :  { %v1934_v57 = vmax.f32 %v3374_v28, %v3422_v19  ;;  %v1984_v44 = vmax.f32 %v1932_v42, %v3422_v19  ;;  %v1945_v52 = vmax.f32 %v3364_v33, %v3424_v20  ;;  %v1947_v48 = vmax.f32 %v3424_v20, %v3410_v22 }
 0x1c2   :  { %2037 = vst [vmem:[%s3609_s3 + $0xf8] sm:$0x1f] %v1985_v26  ;;  %v1944_v14 = vmax.f32 %v3362_v5, %v3434_v31  ;;  %v1946_v3 = vmax.f32 %v3434_v31, %v3413_v54  ;;  %v1541_v28 = vrot.slane %v3420_v34, 1  ;;  %v1752_v42 = vrot.slane %v3420_v34, 2 }
 0x1c3   :  { %2036 = vst [vmem:[%s3609_s3 + $0xf0] sm:$0xff] %v1984_v44  ;;  %v1997_v25 = vmax.f32 %v1945_v52, %v3410_v22  ;;  %v1559_v56 = vrot.slane %v3427_v62, 1  ;;  %v1285_v49 = vadd.f32 %v3261_v1, %v1012_v63  ;;  %v1341_v0 = vadd.f32 %v3388_v4, %v3312_v30 }
 0x1c4   :  { %v1996_v43 = vmax.f32 %v1944_v14, %v3413_v54  ;;  %v1333_v23 = vadd.f32 %v1332_v15, %v3295_v12  ;;  %v1017_v35 = vadd.f32 %v3354_v6, %v1016_v40  ;;  %v1354_v17 = vadd.f32 %v2289_v7, %v3326_v41  ;;  %v3465_v47 = vpop.f32.mrb[88].mxu0 }
 0x1c5   :  { %2049 = vst [vmem:[%s3609_s3 + $0x158] sm:$0x1f] %v1997_v25  ;;  %v1770_v11 = vrot.slane %v3427_v62, 2  ;;  %v1401_v1 = vmax.f32 %v1285_v49, 0.0  ;;  %v1415_v63 = vmax.f32 %v1341_v0, 0.0  ;;  %v1346_v30 = vadd.f32 %v1345_v46, %v3316_v58  ;;  %v1026_v4 = vpop.f32.mrb[89].mxu0 }
 0x1c6   :  { %2048 = vst [vmem:[%s3609_s3 + $0x150] sm:$0xff] %v1996_v43  ;;  %v1413_v12 = vmax.f32 %v1333_v23, 0.0  ;;  %v1290_v41 = vadd.f32 %v3242_v55, %v1017_v35  ;;  %v1020_v15 = vadd.f32 %v3354_v6, %v1019_v37  ;;  %v1357_v53 = vadd.f32 %v2290_v60, %v3358_v9  ;;  %v3478_v38 = vpop.f32.mrb[90].mxu0 }
 0x1c7   :  { %v1542_v61 = vrot.slane %v1401_v1, 1  ;;  %v1753_v40 = vrot.slane %v1401_v1, 2  ;;  %v1563_v7 = vrot.slane %v1415_v63, 1  ;;  %v1774_v32 = vrot.slane %v1415_v63, 2  ;;  %v1029_v50 = vpop.f32.mrb[91].mxu0 }
 0x1c8   :  { %v1560_v58 = vrot.slane %v1413_v12, 1  ;;  %v1771_v27 = vrot.slane %v1413_v12, 2  ;;  %v3480_v36 = vmax.f32 %v1290_v41, 0.0  ;;  %v3482_v46 = vmax.f32 %v1354_v17, 0.0 }
 0x1c9   :  { %v1543_v45 = vsel %vm1480_vm0, %v1541_v28, %v1542_v61  ;;  %v1672_v55 = vmax.f32 %v1401_v1, %v1542_v61  ;;  %v1754_v18 = vsel %vm1691_vm1, %v1752_v42, %v1753_v40  ;;  %v1564_v9 = vsel %vm1480_vm0, %v1562_v39, %v1563_v7 }
 0x1ca   :  { %v1671_v37 = vmax.f32 %v3420_v34, %v1543_v45  ;;  %v1685_v60 = vmax.f32 %v3402_v8, %v1564_v9  ;;  %v1686_v29 = vmax.f32 %v1415_v63, %v1563_v7  ;;  %v1775_v26 = vsel %vm1691_vm1, %v1773_v13, %v1774_v32 }
 0x1cb   :  { %v3490_v44 = vmax.f32 %v1672_v55, %v1753_v40  ;;  %v1561_v52 = vsel %vm1480_vm0, %v1559_v56, %v1560_v58  ;;  %v1684_v14 = vmax.f32 %v1413_v12, %v1560_v58  ;;  %v1772_v25 = vsel %vm1691_vm1, %v1770_v11, %v1771_v27 }
 0x1cc   :  { %v3494_v28 = vmax.f32 %v1671_v37, %v1754_v18  ;;  %v3496_v49 = vmax.f32 %v1685_v60, %v1775_v26  ;;  %v1683_v39 = vmax.f32 %v3427_v62, %v1561_v52  ;;  %v1568_v34 = vrot.slane %v3482_v46, 1 }
 0x1cd   :  { %v1937_v8 = vmax.f32 %v3416_v51, %v3490_v44  ;;  %v1987_v13 = vmax.f32 %v1935_v59, %v3490_v44  ;;  %v3503_v42 = vmax.f32 %v1686_v29, %v1774_v32  ;;  %v1895_v0 = vmax.f32 %v1684_v14, %v1771_v27 }
 0x1ce   :  { %v1936_v56 = vmax.f32 %v3422_v19, %v3494_v28  ;;  %v1986_v43 = vmax.f32 %v1934_v57, %v3494_v28  ;;  %v1894_v23 = vmax.f32 %v1683_v39, %v1772_v25  ;;  %v1544_v35 = vrot.slane %v3480_v36, 1 }
 0x1cf   :  { %2039 = vst [vmem:[%s3609_s3 + $0x108] sm:$0x1f] %v1987_v13  ;;  %v1949_v62 = vmax.f32 %v3410_v22, %v1895_v0  ;;  %v1999_v51 = vmax.f32 %v1947_v48, %v1895_v0  ;;  %v1755_v59 = vrot.slane %v3480_v36, 2  ;;  %v1416_v17 = vmax.f32 %v1346_v30, 0.0 }
 0x1d0   :  { %2038 = vst [vmem:[%s3609_s3 + $0x100] sm:$0xff] %v1986_v43  ;;  %v1948_v19 = vmax.f32 %v3413_v54, %v1894_v23  ;;  %v1998_v57 = vmax.f32 %v1946_v3, %v1894_v23  ;;  %v1293_v11 = vadd.f32 %v3254_v2, %v1020_v15  ;;  %v1419_v1 = vmax.f32 %v1357_v53, 0.0 }
 0x1d1   :  { %v2001_v63 = vmax.f32 %v1949_v62, %v3503_v42  ;;  %2051 = vst [vmem:[%s3609_s3 + $0x168] sm:$0x1f] %v1999_v51  ;;  %v1779_v22 = vrot.slane %v3482_v46, 2  ;;  %v1565_v48 = vrot.slane %v1416_v17, 1  ;;  %v1349_v30 = vadd.f32 %v3429_v24, %v3322_v21 }
 0x1d2   :  { %v2000_v4 = vmax.f32 %v1948_v19, %v3496_v49  ;;  %2050 = vst [vmem:[%s3609_s3 + $0x160] sm:$0xff] %v1998_v57  ;;  %v1403_v2 = vmax.f32 %v1293_v11, 0.0  ;;  %v1569_v54 = vrot.slane %v1419_v1, 1  ;;  %v1780_v3 = vrot.slane %v1419_v1, 2 }
 0x1d3   :  { %2053 = vst [vmem:[%s3609_s3 + $0x178] sm:$0x1f] %v2001_v63  ;;  %v1776_v12 = vrot.slane %v1416_v17, 2  ;;  %v1417_v41 = vmax.f32 %v1349_v30, 0.0  ;;  %v1950_v15 = vmax.f32 %v1894_v23, %v3496_v49  ;;  %v1951_v53 = vmax.f32 %v1895_v0, %v3503_v42 }
 0x1d4   :  { %2052 = vst [vmem:[%s3609_s3 + $0x170] sm:$0xff] %v2000_v4  ;;  %v1545_v21 = vrot.slane %v1403_v2, 1  ;;  %v1756_v24 = vrot.slane %v1403_v2, 2  ;;  %v1570_v61 = vsel %vm1480_vm0, %v1568_v34, %v1569_v54  ;;  %v1025_v40 = vadd.f32 %v3354_v6, %v3465_v47 }
 0x1d5   :  { %v1689_v7 = vmax.f32 %v3482_v46, %v1570_v61  ;;  %v1781_v32 = vsel %vm1691_vm1, %v1779_v22, %v1780_v3  ;;  %v1566_v50 = vrot.slane %v1417_v41, 1  ;;  %v1777_v58 = vrot.slane %v1417_v41, 2 }
 0x1d6   :  { %v1546_v27 = vsel %vm1480_vm0, %v1544_v35, %v1545_v21  ;;  %v1674_v45 = vmax.f32 %v1403_v2, %v1545_v21  ;;  %v1757_v55 = vsel %vm1691_vm1, %v1755_v59, %v1756_v24  ;;  %v1690_v18 = vmax.f32 %v1419_v1, %v1569_v54 }
 0x1d7   :  { %v1673_v9 = vmax.f32 %v3480_v36, %v1546_v27  ;;  %v1900_v37 = vmax.f32 %v1689_v7, %v1781_v32  ;;  %v1567_v60 = vsel %vm1480_vm0, %v1565_v48, %v1566_v50  ;;  %v1688_v29 = vmax.f32 %v1417_v41, %v1566_v50 }
 0x1d8   :  { %v1885_v26 = vmax.f32 %v1674_v45, %v1756_v24  ;;  %v1687_v47 = vmax.f32 %v1416_v17, %v1567_v60  ;;  %v1778_v46 = vsel %vm1691_vm1, %v1776_v12, %v1777_v58  ;;  %v1298_v52 = vadd.f32 %v3291_v10, %v1025_v40 }
 0x1d9   :  { %v1884_v14 = vmax.f32 %v1673_v9, %v1757_v55  ;;  %v1899_v25 = vmax.f32 %v1688_v29, %v1777_v58  ;;  %v1028_v39 = vadd.f32 %v3354_v6, %v3478_v38  ;;  %v1901_v0 = vmax.f32 %v1690_v18, %v1780_v3 }
 0x1da   :  { %v1939_v34 = vmax.f32 %v3490_v44, %v1885_v26  ;;  %v1989_v13 = vmax.f32 %v1937_v8, %v1885_v26  ;;  %v1898_v36 = vmax.f32 %v1687_v47, %v1778_v46  ;;  %v1404_v38 = vmax.f32 %v1298_v52, 0.0 }
 0x1db   :  { %v1938_v43 = vmax.f32 %v3494_v28, %v1884_v14  ;;  %v1988_v23 = vmax.f32 %v1936_v56, %v1884_v14  ;;  %v1953_v35 = vmax.f32 %v3503_v42, %v1899_v25  ;;  %v2003_v62 = vmax.f32 %v1951_v53, %v1899_v25 }
 0x1dc   :  { %2041 = vst [vmem:[%s3609_s3 + $0x118] sm:$0x1f] %v1989_v13  ;;  %v1952_v10 = vmax.f32 %v3496_v49, %v1898_v36  ;;  %v2002_v51 = vmax.f32 %v1950_v15, %v1898_v36  ;;  %v1301_v44 = vadd.f32 %v3306_v16, %v1028_v39  ;;  %v1547_v8 = vrot.slane %v1404_v38, 1 }
 0x1dd   :  { %2040 = vst [vmem:[%s3609_s3 + $0x110] sm:$0xff] %v1988_v23  ;;  %v2005_v6 = vmax.f32 %v1953_v35, %v1901_v0  ;;  %2055 = vst [vmem:[%s3609_s3 + $0x188] sm:$0x1f] %v2003_v62  ;;  %v1758_v42 = vrot.slane %v1404_v38, 2 }
 0x1de   :  { %v2004_v28 = vmax.f32 %v1952_v10, %v1900_v37  ;;  %2054 = vst [vmem:[%s3609_s3 + $0x180] sm:$0xff] %v2002_v51  ;;  %v1405_v49 = vmax.f32 %v1301_v44, 0.0 }
 0x1df   :  { %2057 = vst [vmem:[%s3609_s3 + $0x198] sm:$0x1f] %v2005_v6 }
 0x1e0   :  { %2056 = vst [vmem:[%s3609_s3 + $0x190] sm:$0xff] %v2004_v28  ;;  %v1548_v56 = vrot.slane %v1405_v49, 1  ;;  %v1759_v59 = vrot.slane %v1405_v49, 2 }
 0x1e2   :  { %v1549_v16 = vsel %vm1480_vm0, %v1547_v8, %v1548_v56  ;;  %v1676_v17 = vmax.f32 %v1405_v49, %v1548_v56  ;;  %v1760_v19 = vsel %vm1691_vm1, %v1758_v42, %v1759_v59 }
 0x1e3   :  { %v1675_v57 = vmax.f32 %v1404_v38, %v1549_v16 }
 0x1e4   :  { %v1887_v11 = vmax.f32 %v1676_v17, %v1759_v59 }
 0x1e5   :  { %v1886_v1 = vmax.f32 %v1675_v57, %v1760_v19 }
 0x1e6   :  { %v1941_v63 = vmax.f32 %v1885_v26, %v1887_v11  ;;  %v1943_v22 = vmax.f32 %v1887_v11, %v3364_v33  ;;  %v1991_v48 = vmax.f32 %v1939_v34, %v1887_v11 }
 0x1e7   :  { %v1940_v30 = vmax.f32 %v1884_v14, %v1886_v1  ;;  %v1942_v4 = vmax.f32 %v1886_v1, %v3362_v5  ;;  %v1990_v2 = vmax.f32 %v1938_v43, %v1886_v1 }
 0x1e8   :  { %v1993_v54 = vmax.f32 %v1941_v63, %v3364_v33  ;;  %v1995_v3 = vmax.f32 %v1943_v22, %v3424_v20  ;;  %2043 = vst [vmem:[%s3609_s3 + $0x128] sm:$0x1f] %v1991_v48 }
 0x1e9   :  { %v1992_v12 = vmax.f32 %v1940_v30, %v3362_v5  ;;  %v1994_v41 = vmax.f32 %v1942_v4, %v3434_v31  ;;  %2042 = vst [vmem:[%s3609_s3 + $0x120] sm:$0xff] %v1990_v2 }
 0x1ea   :  { %2045 = vst [vmem:[%s3609_s3 + $0x138] sm:$0x1f] %v1993_v54  ;;  %2047 = vst [vmem:[%s3609_s3 + $0x148] sm:$0x1f] %v1995_v3 }
 0x1eb   :  { %2044 = vst [vmem:[%s3609_s3 + $0x130] sm:$0xff] %v1992_v12  ;;  %2046 = vst [vmem:[%s3609_s3 + $0x140] sm:$0xff] %v1994_v41 }

// kernel: alexnet_conv4_forward.3
= control target key start
LH: loop header
LB: loop body
LE: loop exit
PB: predicated region body
PF: predicated region fallthrough
CT: control target
= control target key end

     0   :  { %v11076_v1 = vmov 0   ;;  %vm8737_vm0 = vcmask 1041409   ;;  %vm8739_vm1 = vcmask 1043459   ;;  %vm8741_vm2 = vcmask 1045509   ;;  %s14123_s1 = inlined_call_operand.vmem [shape: bf16[25,128,256], index: 1, kind: input, shape index: {}]   ;;  %s14124_s0 = inlined_call_operand.vmem [shape: f32[2,12,12,128], index: 0, kind: input, shape index: {}]   ;;  %s14125_s2 = inlined_call_operand.vmem [shape: f32[1,256], index: 2, kind: input, shape index: {}]   ;;  %s14126_s3 = inlined_call_operand.vmem [shape: f32[2,256], index: 3, kind: output, shape index: {}]  }
   0x1   :  { %v10449_v0 = vld [vmem:[%s14123_s1 + $0x4] ss:$8 sps:$4 sm:$0xff]   ;;  %231 = vmatprep.mubr.bf16.mxu1 %v11076_v1  ;;  %4193 = vmatprep.mubr.bf16.mxu0 %v11076_v1  ;;  %v10453_v3 = vld [vmem:[%s14123_s1] ss:$8 sps:$4 sm:$0xff]   ;;  %v10455_v5 = vld [vmem:[%s14123_s1 + $0x14] ss:$8 sps:$4 sm:$0xff]  }
   0x2   :  { %v10451_v2 = vld [vmem:[%s14123_s1 + $0x604] ss:$8 sps:$4 sm:$0xff]   ;;  %199 = vmatprep.subr.bf16.mxu1 %v10449_v0  ;;  %v10454_v4 = vld [vmem:[%s14123_s1 + $0x600] ss:$8 sps:$4 sm:$0xff]   ;;  %v10457_v6 = vld [vmem:[%s14123_s1 + $0x614] ss:$8 sps:$4 sm:$0xff]  }
   0x3   :  { %4161 = vmatprep.subr.bf16.mxu0 %v10451_v2  ;;  %200 = vmatpush1.bf16.msra.mxu1 %v10453_v3  ;;  %v10459_v7 = vld [vmem:[%s14123_s1 + $0x10] ss:$8 sps:$4 sm:$0xff]   ;;  %v10461_v9 = vld [vmem:[%s14123_s1 + $0x24] ss:$8 sps:$4 sm:$0xff]   ;;  %v10465_v11 = vld [vmem:[%s14123_s1 + $0x20] ss:$8 sps:$4 sm:$0xff]  }
   0x4   :  { %4162 = vmatpush1.bf16.msra.mxu0 %v10454_v4  ;;  %201 = vmatprep.subr.bf16.mxu1 %v10455_v5  ;;  %v10460_v8 = vld [vmem:[%s14123_s1 + $0x610] ss:$8 sps:$4 sm:$0xff]   ;;  %v10463_v10 = vld [vmem:[%s14123_s1 + $0x624] ss:$8 sps:$4 sm:$0xff]   ;;  %v10466_v12 = vld [vmem:[%s14123_s1 + $0x620] ss:$8 sps:$4 sm:$0xff]  }
   0x5   :  { %4163 = vmatprep.subr.bf16.mxu0 %v10457_v6  ;;  %v10467_v13 = vld [vmem:[%s14123_s1 + $0x34] ss:$8 sps:$4 sm:$0xff]   ;;  %v10471_v15 = vld [vmem:[%s14123_s1 + $0x30] ss:$8 sps:$4 sm:$0xff]   ;;  %v10473_v17 = vld [vmem:[%s14123_s1 + $0x44] ss:$8 sps:$4 sm:$0xff]  }
   0x6   :  { %v10469_v14 = vld [vmem:[%s14123_s1 + $0x634] ss:$8 sps:$4 sm:$0xff]   ;;  %v10472_v16 = vld [vmem:[%s14123_s1 + $0x630] ss:$8 sps:$4 sm:$0xff]   ;;  %v10475_v18 = vld [vmem:[%s14123_s1 + $0x644] ss:$8 sps:$4 sm:$0xff]  }
   0x7   :  { %202 = vmatpush1.bf16.msra.mxu1 %v10459_v7  ;;  %v10477_v19 = vld [vmem:[%s14123_s1 + $0x40] ss:$8 sps:$4 sm:$0xff]   ;;  %v10479_v21 = vld [vmem:[%s14123_s1 + $0x54] ss:$8 sps:$4 sm:$0xff]   ;;  %v10483_v23 = vld [vmem:[%s14123_s1 + $0x50] ss:$8 sps:$4 sm:$0xff]  }
   0x8   :  { %4164 = vmatpush1.bf16.msra.mxu0 %v10460_v8  ;;  %203 = vmatprep.subr.bf16.mxu1 %v10461_v9  ;;  %v10478_v20 = vld [vmem:[%s14123_s1 + $0x640] ss:$8 sps:$4 sm:$0xff]   ;;  %v10481_v22 = vld [vmem:[%s14123_s1 + $0x654] ss:$8 sps:$4 sm:$0xff]   ;;  %v10484_v24 = vld [vmem:[%s14123_s1 + $0x650] ss:$8 sps:$4 sm:$0xff]  }
   0x9   :  { %4165 = vmatprep.subr.bf16.mxu0 %v10463_v10  ;;  %v10485_v25 = vld [vmem:[%s14123_s1 + $0x64] ss:$8 sps:$4 sm:$0xff]   ;;  %v10489_v27 = vld [vmem:[%s14123_s1 + $0x60] ss:$8 sps:$4 sm:$0xff]   ;;  %v10491_v29 = vld [vmem:[%s14123_s1 + $0x74] ss:$8 sps:$4 sm:$0xff]  }
   0xa   :  { %v10487_v26 = vld [vmem:[%s14123_s1 + $0x664] ss:$8 sps:$4 sm:$0xff]   ;;  %v10490_v28 = vld [vmem:[%s14123_s1 + $0x660] ss:$8 sps:$4 sm:$0xff]   ;;  %v10493_v30 = vld [vmem:[%s14123_s1 + $0x674] ss:$8 sps:$4 sm:$0xff]  }
   0xb   :  { %204 = vmatpush1.bf16.msra.mxu1 %v10465_v11  ;;  %v10495_v31 = vld [vmem:[%s14123_s1 + $0x70] ss:$8 sps:$4 sm:$0xff]   ;;  %v47_v33 = vld [vmem:[%s14124_s0] sm:$0xff]  ;;  %v10505_v43 = vld [vmem:[%s14123_s1 + $0x694] ss:$8 sps:$4 sm:$0xff]   ;;  %vm8743_vm3 = vcmask 1047559  }
   0xc   :  { %4166 = vmatpush1.bf16.msra.mxu0 %v10466_v12  ;;  %205 = vmatprep.subr.bf16.mxu1 %v10467_v13  ;;  %v10496_v32 = vld [vmem:[%s14123_s1 + $0x670] ss:$8 sps:$4 sm:$0xff]   ;;  %v10499_v35 = vld [vmem:[%s14123_s1 + $0x84] ss:$8 sps:$4 sm:$0xff]   ;;  %v10497_v41 = vld [vmem:[%s14123_s1 + $0x80] ss:$8 sps:$4 sm:$0xff]  }
   0xd   :  { %4167 = vmatprep.subr.bf16.mxu0 %v10469_v14  ;;  %v48_v34 = vld [vmem:[%s14124_s0 + $0x10] sm:$0xff]  ;;  %v9231_v36 = vld [vmem:[%s14124_s0 + $0x22] sm:$0xff] }
   0xe   :  { %v9232_v37 = vld [vmem:[%s14124_s0 + $0x32] sm:$0xff]  ;;  %v10502_v38 = vld [vmem:[%s14123_s1 + $0x684] ss:$8 sps:$4 sm:$0xff]   ;;  %v63_v39 = vpack.c.bf16 %v48_v34, %v47_v33  ;;  %v10500_v42 = vld [vmem:[%s14123_s1 + $0x680] ss:$8 sps:$4 sm:$0xff]  }
   0xf   :  { %206 = vmatpush1.bf16.msra.mxu1 %v10471_v15  ;;  %v11214_v40 = vpack.c.bf16 %v9232_v37, %v9231_v36  ;;  %v10503_v44 = vld [vmem:[%s14123_s1 + $0x690] ss:$8 sps:$4 sm:$0xff]   ;;  %v49_v45 = vld [vmem:[%s14124_s0 + $0x20] sm:$0xff]  ;;  %v10508_v47 = vld [vmem:[%s14123_s1 + $0x94] ss:$8 sps:$4 sm:$0xff]  }
  0x10   :  { %4168 = vmatpush1.bf16.msra.mxu0 %v10472_v16  ;;  %207 = vmatprep.subr.bf16.mxu1 %v10473_v17  ;;  %v11234_v46 = vld [vmem:[%s14124_s0 + $0x30] sm:$0xff]  ;;  %v9233_v49 = vld [vmem:[%s14124_s0 + $0x42] sm:$0xff] }
  0x11   :  { %4169 = vmatprep.subr.bf16.mxu0 %v10475_v18  ;;  %v10506_v48 = vld [vmem:[%s14123_s1 + $0x90] ss:$8 sps:$4 sm:$0xff]   ;;  %v10511_v51 = vld [vmem:[%s14123_s1 + $0x6a4] ss:$8 sps:$4 sm:$0xff]   ;;  %v64_v53 = vpack.c.bf16 %v11234_v46, %v49_v45  ;;  %v10509_v55 = vld [vmem:[%s14123_s1 + $0x6a0] ss:$8 sps:$4 sm:$0xff]  }
  0x12   :  { %v9234_v50 = vld [vmem:[%s14124_s0 + $0x52] sm:$0xff]  ;;  %v10517_v52 = vld [vmem:[%s14123_s1 + $0xa4] ss:$8 sps:$4 sm:$0xff]   ;;  %v10515_v59 = vld [vmem:[%s14123_s1 + $0xa0] ss:$8 sps:$4 sm:$0xff]  }
  0x13   :  { %208 = vmatpush1.bf16.msra.mxu1 %v10477_v19  ;;  %v11258_v54 = vpack.c.bf16 %v9234_v50, %v9233_v49  ;;  %v10514_v56 = vld [vmem:[%s14123_s1 + $0x6b4] ss:$8 sps:$4 sm:$0xff]   ;;  %v10512_v57 = vld [vmem:[%s14123_s1 + $0x6b0] ss:$8 sps:$4 sm:$0xff]   ;;  %v11272_v58 = vld [vmem:[%s14124_s0 + $0x40] sm:$0xff] }
  0x14   :  { %4170 = vmatpush1.bf16.msra.mxu0 %v10478_v20  ;;  %209 = vmatprep.subr.bf16.mxu1 %v10479_v21  ;;  %v10526_v60 = vld [vmem:[%s14123_s1 + $0xb4] ss:$8 sps:$4 sm:$0xff]   ;;  %v9235_v62 = vld [vmem:[%s14124_s0 + $0x62] sm:$0xff]  ;;  %v10524_v2 = vld [vmem:[%s14123_s1 + $0xb0] ss:$8 sps:$4 sm:$0xff]   ;;  %v5015_v33 = vpack.c.bf16 %v11272_v58, %v11234_v46 }
  0x15   :  { %4171 = vmatprep.subr.bf16.mxu0 %v10481_v22  ;;  %v11285_v61 = vld [vmem:[%s14124_s0 + $0x50] sm:$0xff]  ;;  %v10520_v0 = vld [vmem:[%s14123_s1 + $0x6c4] ss:$8 sps:$4 sm:$0xff]   ;;  %v10518_v5 = vld [vmem:[%s14123_s1 + $0x6c0] ss:$8 sps:$4 sm:$0xff]  }
  0x16   :  { %v9236_v63 = vld [vmem:[%s14124_s0 + $0x72] sm:$0xff]  ;;  %v65_v3 = vpack.c.bf16 %v11285_v61, %v11272_v58  ;;  %v11316_v8 = vld [vmem:[%s14124_s0 + $0x60] sm:$0xff] }
  0x17   :  { %210 = vmatpush1.bf16.msra.mxu1 %v10483_v23  ;;  %v11302_v4 = vpack.c.bf16 %v9236_v63, %v9235_v62  ;;  %v10523_v6 = vld [vmem:[%s14123_s1 + $0x6d4] ss:$8 sps:$4 sm:$0xff]   ;;  %v10521_v7 = vld [vmem:[%s14123_s1 + $0x6d0] ss:$8 sps:$4 sm:$0xff]   ;;  %v10535_v10 = vld [vmem:[%s14123_s1 + $0xc4] ss:$8 sps:$4 sm:$0xff]  }
  0x18   :  { %4172 = vmatpush1.bf16.msra.mxu0 %v10484_v24  ;;  %211 = vmatprep.subr.bf16.mxu1 %v10485_v25  ;;  %v54_v9 = vld [vmem:[%s14124_s0 + $0x70] sm:$0xff]  ;;  %v10533_v11 = vld [vmem:[%s14123_s1 + $0xc0] ss:$8 sps:$4 sm:$0xff]   ;;  %v10529_v15 = vld [vmem:[%s14123_s1 + $0x6e4] ss:$8 sps:$4 sm:$0xff]  }
  0x19   :  { %4173 = vmatprep.subr.bf16.mxu0 %v10487_v26  ;;  %v9237_v12 = vld [vmem:[%s14124_s0 + $0x82] sm:$0xff]  ;;  %v9238_v13 = vld [vmem:[%s14124_s0 + $0x92] sm:$0xff]  ;;  %v66_v16 = vpack.c.bf16 %v54_v9, %v11316_v8 }
  0x1a   :  { %v10538_v14 = vld [vmem:[%s14123_s1 + $0xd4] ss:$8 sps:$4 sm:$0xff]   ;;  %v4027_v17 = vpack.c.bf16 %v9238_v13, %v9237_v12  ;;  %v10527_v18 = vld [vmem:[%s14123_s1 + $0x6e0] ss:$8 sps:$4 sm:$0xff]   ;;  %v10530_v20 = vld [vmem:[%s14123_s1 + $0x6f0] ss:$8 sps:$4 sm:$0xff]  }
  0x1b   :  { %212 = vmatpush1.bf16.msra.mxu1 %v10489_v27  ;;  %v10532_v19 = vld [vmem:[%s14123_s1 + $0x6f4] ss:$8 sps:$4 sm:$0xff]   ;;  %v55_v21 = vld [vmem:[%s14124_s0 + $0xc0] sm:$0xff]  ;;  %v10536_v22 = vld [vmem:[%s14123_s1 + $0xd0] ss:$8 sps:$4 sm:$0xff]  }
  0x1c   :  { %4174 = vmatpush1.bf16.msra.mxu0 %v10490_v28  ;;  %213 = vmatprep.subr.bf16.mxu1 %v10491_v29  ;;  %v10541_v23 = vld [vmem:[%s14123_s1 + $0xe4] ss:$8 sps:$4 sm:$0xff]   ;;  %v56_v24 = vld [vmem:[%s14124_s0 + $0xd0] sm:$0xff]  ;;  %v10539_v28 = vld [vmem:[%s14123_s1 + $0xe0] ss:$8 sps:$4 sm:$0xff]  }
  0x1d   :  { %4175 = vmatprep.subr.bf16.mxu0 %v10493_v30  ;;  %v9279_v25 = vld [vmem:[%s14124_s0 + $0x23] sm:$0xff]  ;;  %v9280_v26 = vld [vmem:[%s14124_s0 + $0x33] sm:$0xff]  ;;  %v67_v29 = vpack.c.bf16 %v56_v24, %v55_v21 }
  0x1e   :  { %v10547_v27 = vld [vmem:[%s14123_s1 + $0x704] ss:$8 sps:$4 sm:$0xff]   ;;  %v11378_v30 = vpack.c.bf16 %v9280_v26, %v9279_v25  ;;  %v10542_v36 = vld [vmem:[%s14123_s1 + $0xf0] ss:$8 sps:$4 sm:$0xff]   ;;  %v10553_v37 = vld [vmem:[%s14123_s1 + $0x714] ss:$8 sps:$4 sm:$0xff]  }
  0x1f   :  { %214 = vmatpush1.bf16.msra.mxu1 %v10495_v31  ;;  %v10544_v31 = vld [vmem:[%s14123_s1 + $0xf4] ss:$8 sps:$4 sm:$0xff]   ;;  %v57_v34 = vld [vmem:[%s14124_s0 + $0xe0] sm:$0xff]  ;;  %v10554_v25 = vld [vmem:[%s14123_s1 + $0x110] ss:$8 sps:$4 sm:$0xff]  }
  0x20   :  { %4176 = vmatpush1.bf16.msra.mxu0 %v10496_v32  ;;  %529 = vmatprep.subr.bf16.mxu1 %v10499_v35  ;;  %v10545_v32 = vld [vmem:[%s14123_s1 + $0x700] ss:$8 sps:$4 sm:$0xff]   ;;  %v11394_v35 = vld [vmem:[%s14124_s0 + $0xf0] sm:$0xff] }
  0x21   :  { %4491 = vmatprep.subr.bf16.mxu0 %v10502_v38  ;;  %v9281_v38 = vld [vmem:[%s14124_s0 + $0x43] sm:$0xff]  ;;  %v10562_v49 = vld [vmem:[%s14123_s1 + $0x734] ss:$8 sps:$4 sm:$0xff]  }
  0x22   :  { %232 = vmatmul.mubr.bf16.vlgmr.msra.gmra.mrb[0].mxu1 %v63_v39  ;;  %v10550_v39 = vld [vmem:[%s14123_s1 + $0x104] ss:$8 sps:$4 sm:$0xff]   ;;  %v10571_v62 = vld [vmem:[%s14123_s1 + $0x754] ss:$8 sps:$4 sm:$0xff]   ;;  %v10653_v58 = vld [vmem:[%s14123_s1 + $0x820] ss:$8 sps:$4 sm:$0xff]  }
  0x23   :  { %4194 = vmatmul.mubr.bf16.vlgmr.msra.gmra.mrb[0].mxu0 %v11214_v40  ;;  %530 = vmatpush1.bf16.msra.mxu1 %v10497_v41  ;;  %v9282_v41 = vld [vmem:[%s14124_s0 + $0x53] sm:$0xff]  ;;  %v11435_v50 = vld [vmem:[%s14124_s0 + $0x100] sm:$0xff] }
  0x24   :  { %4492 = vmatpush1.bf16.msra.mxu0 %v10500_v42  ;;  %241 = vmatprep.mubr.bf16.mxu1 %v11076_v1  ;;  %v10551_v42 = vld [vmem:[%s14123_s1 + $0x710] ss:$8 sps:$4 sm:$0xff]   ;;  %v11421_v45 = vpack.c.bf16 %v9282_v41, %v9281_v38  ;;  %v11470_v63 = vld [vmem:[%s14124_s0 + $0x120] sm:$0xff]  ;;  %v10556_v21 = vld [vmem:[%s14123_s1 + $0x114] ss:$8 sps:$4 sm:$0xff]  }
  0x25   :  { %4493 = vmatprep.subr.bf16.mxu0 %v10505_v43  ;;  %4203 = vmatprep.mubr.bf16.mxu0 %v11076_v1  ;;  %v10559_v43 = vld [vmem:[%s14123_s1 + $0x724] ss:$8 sps:$4 sm:$0xff]   ;;  %v377_v13 = vld [vmem:[%s14124_s0 + $0x11] sm:$0xff] }
  0x26   :  { %531 = vmatprep.subr.bf16.mxu1 %v10508_v47  ;;  %v10557_v47 = vld [vmem:[%s14123_s1 + $0x720] ss:$8 sps:$4 sm:$0xff]   ;;  %v379_v24 = vld [vmem:[%s14124_s0 + $0x31] sm:$0xff] }
  0x27   :  { %532 = vmatpush1.bf16.msra.mxu1 %v10506_v48  ;;  %v5016_v48 = vpack.c.bf16 %v11316_v8, %v11285_v61  ;;  %v376_v12 = vld [vmem:[%s14124_s0 + $0x1] sm:$0xff]  ;;  %v381_v38 = vld [vmem:[%s14124_s0 + $0x51] sm:$0xff] }
  0x28   :  { %4494 = vmatpush1.bf16.msra.mxu0 %v10503_v44  ;;  %533 = vmatprep.subr.bf16.mxu1 %v10517_v52  ;;  %v68_v44 = vpack.c.bf16 %v11394_v35, %v57_v34  ;;  %v9283_v52 = vld [vmem:[%s14124_s0 + $0x63] sm:$0xff]  ;;  %v9292_v41 = vld [vmem:[%s14124_s0 + $0x133] sm:$0xff] }
  0x29   :  { %4495 = vmatprep.subr.bf16.mxu0 %v10511_v51  ;;  %v11442_v51 = vld [vmem:[%s14124_s0 + $0x110] sm:$0xff]  ;;  %v9289_v26 = vld [vmem:[%s14124_s0 + $0x103] sm:$0xff] }
  0x2a   :  { %242 = vmatmul.mubr.bf16.gmra.mrb[4].mxu1 %v64_v53  ;;  %v9284_v53 = vld [vmem:[%s14124_s0 + $0x73] sm:$0xff]  ;;  %v5020_v34 = vpack.c.bf16 %v11470_v63, %v11442_v51 }
  0x2b   :  { %4204 = vmatmul.mubr.bf16.gmra.mrb[4].mxu0 %v11258_v54  ;;  %251 = vmatprep.mubr.bf16.mxu1 %v11076_v1  ;;  %v11049_v8 = vld [vmem:[%s14124_s0 + $0x70] sm:$0xff] }
  0x2c   :  { %4496 = vmatpush1.bf16.msra.mxu0 %v10509_v55  ;;  %4213 = vmatprep.mubr.bf16.mxu0 %v11076_v1  ;;  %v10560_v55 = vld [vmem:[%s14123_s1 + $0x730] ss:$8 sps:$4 sm:$0xff]  }
  0x2d   :  { %4497 = vmatprep.subr.bf16.mxu0 %v10514_v56  ;;  %534 = vmatpush1.bf16.msra.mxu1 %v10515_v59  ;;  %v10568_v56 = vld [vmem:[%s14123_s1 + $0x744] ss:$8 sps:$4 sm:$0xff]   ;;  %v11458_v59 = vpack.c.bf16 %v9284_v53, %v9283_v52  ;;  %v10586_v52 = vld [vmem:[%s14123_s1 + $0x154] ss:$8 sps:$4 sm:$0xff]  }
  0x2e   :  { %535 = vmatprep.subr.bf16.mxu1 %v10526_v60  ;;  %v10566_v60 = vld [vmem:[%s14123_s1 + $0x740] ss:$8 sps:$4 sm:$0xff]  }
  0x2f   :  { %v382_v53 = vld [vmem:[%s14124_s0 + $0x61] sm:$0xff] }
  0x30   :  { %4498 = vmatpush1.bf16.msra.mxu0 %v10512_v57  ;;  %v69_v57 = vpack.c.bf16 %v11442_v51, %v11435_v50  ;;  %v11050_v51 = vld [vmem:[%s14124_s0 + $0x130] sm:$0xff] }
  0x31   :  { %4499 = vmatprep.subr.bf16.mxu0 %v10520_v0  ;;  %536 = vmatpush1.bf16.msra.mxu1 %v10524_v2  ;;  %v62_v0 = vld [vmem:[%s14124_s0 + $0x130] sm:$0xff]  ;;  %v9285_v2 = vld [vmem:[%s14124_s0 + $0x83] sm:$0xff] }
  0x32   :  { %252 = vmatmul.mubr.bf16.gmra.mrb[8].mxu1 %v65_v3  ;;  %537 = vmatprep.subr.bf16.mxu1 %v10535_v10  ;;  %v9286_v3 = vld [vmem:[%s14124_s0 + $0x93] sm:$0xff]  ;;  %v10575_v10 = vld [vmem:[%s14123_s1 + $0x760] ss:$8 sps:$4 sm:$0xff]  }
  0x33   :  { %4214 = vmatmul.mubr.bf16.gmra.mrb[8].mxu0 %v11302_v4  ;;  %261 = vmatprep.mubr.bf16.mxu1 %v11076_v1  ;;  %v4357_v9 = vpack.c.bf16 %v9286_v3, %v9285_v2  ;;  %v10587_v3 = vld [vmem:[%s14123_s1 + $0x160] ss:$8 sps:$4 sm:$0xff]  }
  0x34   :  { %4500 = vmatpush1.bf16.msra.mxu0 %v10518_v5  ;;  %4223 = vmatprep.mubr.bf16.mxu0 %v11076_v1  ;;  %v10569_v5 = vld [vmem:[%s14123_s1 + $0x750] ss:$8 sps:$4 sm:$0xff]  }
  0x35   :  { %4501 = vmatprep.subr.bf16.mxu0 %v10523_v6  ;;  %538 = vmatpush1.bf16.msra.mxu1 %v10533_v11  ;;  %v10577_v6 = vld [vmem:[%s14123_s1 + $0x764] ss:$8 sps:$4 sm:$0xff]   ;;  %v10580_v11 = vld [vmem:[%s14123_s1 + $0x774] ss:$8 sps:$4 sm:$0xff]  }
  0x36   :  { %539 = vmatprep.subr.bf16.mxu1 %v10538_v14  ;;  %v9287_v14 = vld [vmem:[%s14124_s0 + $0xe3] sm:$0xff] }
  0x38   :  { %4502 = vmatpush1.bf16.msra.mxu0 %v10521_v7  ;;  %v70_v7 = vpack.c.bf16 %v62_v0, %v11470_v63 }
  0x39   :  { %4503 = vmatprep.subr.bf16.mxu0 %v10529_v15  ;;  %540 = vmatpush1.bf16.msra.mxu1 %v10536_v22  ;;  %v9288_v15 = vld [vmem:[%s14124_s0 + $0xf3] sm:$0xff]  ;;  %v5019_v22 = vpack.c.bf16 %v11435_v50, %v11394_v35  ;;  %v10659_v35 = vld [vmem:[%s14123_s1 + $0x220] ss:$8 sps:$4 sm:$0xff]  }
  0x3a   :  { %262 = vmatmul.mubr.bf16.gmra.mrb[12].mxu1 %v66_v16  ;;  %541 = vmatprep.subr.bf16.mxu1 %v10541_v23  ;;  %v10578_v16 = vld [vmem:[%s14123_s1 + $0x770] ss:$8 sps:$4 sm:$0xff]   ;;  %v378_v23 = vld [vmem:[%s14124_s0 + $0x21] sm:$0xff]  ;;  %v10670_v50 = vld [vmem:[%s14123_s1 + $0x234] ss:$8 sps:$4 sm:$0xff]  }
  0x3b   :  { %4224 = vmatmul.mubr.bf16.gmra.mrb[12].mxu0 %v4027_v17  ;;  %271 = vmatprep.mubr.bf16.mxu1 %v11076_v1  ;;  %v10595_v17 = vld [vmem:[%s14123_s1 + $0x784] ss:$8 sps:$4 sm:$0xff]  }
  0x3c   :  { %4504 = vmatpush1.bf16.msra.mxu0 %v10527_v18  ;;  %4523 = vmatprep.mubr.bf16.mxu0 %v11076_v1  ;;  %v392_v18 = vpack.c.bf16 %v377_v13, %v376_v12  ;;  %v10598_v12 = vld [vmem:[%s14123_s1 + $0x184] ss:$8 sps:$4 sm:$0xff]  }
  0x3d   :  { %4505 = vmatprep.subr.bf16.mxu0 %v10532_v19  ;;  %542 = vmatpush1.bf16.msra.mxu1 %v10539_v28  ;;  %v11516_v19 = vpack.c.bf16 %v9288_v15, %v9287_v14  ;;  %v10565_v28 = vld [vmem:[%s14123_s1 + $0x124] ss:$8 sps:$4 sm:$0xff]   ;;  %v10593_v15 = vld [vmem:[%s14123_s1 + $0x780] ss:$8 sps:$4 sm:$0xff]  }
  0x3e   :  { %543 = vmatprep.subr.bf16.mxu1 %v10544_v31 }
  0x40   :  { %4506 = vmatpush1.bf16.msra.mxu0 %v10530_v20  ;;  %v10548_v20 = vld [vmem:[%s14123_s1 + $0x100] ss:$8 sps:$4 sm:$0xff]  }
  0x41   :  { %4821 = vmatprep.subr.bf16.mxu0 %v10547_v27  ;;  %544 = vmatpush1.bf16.msra.mxu1 %v10542_v36  ;;  %v9290_v27 = vld [vmem:[%s14124_s0 + $0x113] sm:$0xff] }
  0x42   :  { %272 = vmatmul.mubr.bf16.gmra.mrb[16].mxu1 %v67_v29  ;;  %859 = vmatprep.subr.bf16.mxu1 %v10550_v39  ;;  %v393_v29 = vpack.c.bf16 %v379_v24, %v378_v23  ;;  %v11547_v31 = vpack.c.bf16 %v9290_v27, %v9289_v26  ;;  %v10574_v36 = vld [vmem:[%s14123_s1 + $0x134] ss:$8 sps:$4 sm:$0xff]   ;;  %v9291_v39 = vld [vmem:[%s14124_s0 + $0x123] sm:$0xff]  ;;  %v10599_v23 = vld [vmem:[%s14123_s1 + $0x790] ss:$8 sps:$4 sm:$0xff]  }
  0x43   :  { %4524 = vmatmul.mubr.bf16.vlgmr.msra.gmra.mrb[0].mxu0 %v11378_v30  ;;  %281 = vmatprep.mubr.bf16.mxu1 %v11076_v1  ;;  %v10607_v24 = vld [vmem:[%s14123_s1 + $0x7a4] ss:$8 sps:$4 sm:$0xff]   ;;  %v10605_v27 = vld [vmem:[%s14123_s1 + $0x7a0] ss:$8 sps:$4 sm:$0xff]  }
  0x44   :  { %4533 = vmatprep.mubr.bf16.mxu0 %v11076_v1  ;;  %4822 = vmatpush1.bf16.msra.mxu0 %v10545_v32  ;;  %v10563_v32 = vld [vmem:[%s14123_s1 + $0x120] ss:$8 sps:$4 sm:$0xff]  }
  0x45   :  { %4823 = vmatprep.subr.bf16.mxu0 %v10553_v37  ;;  %v380_v37 = vld [vmem:[%s14124_s0 + $0x41] sm:$0xff] }
  0x48   :  { %4824 = vmatpush1.bf16.msra.mxu0 %v10551_v42  ;;  %v10572_v42 = vld [vmem:[%s14123_s1 + $0x130] ss:$8 sps:$4 sm:$0xff]  }
  0x49   :  { %4825 = vmatprep.subr.bf16.mxu0 %v10559_v43  ;;  %v10583_v43 = vld [vmem:[%s14123_s1 + $0x144] ss:$8 sps:$4 sm:$0xff]  }
  0x4a   :  { %282 = vmatmul.mubr.bf16.gmra.mrb[20].mxu1 %v68_v44  ;;  %v394_v44 = vpack.c.bf16 %v381_v38, %v380_v37  ;;  %v9332_v37 = vld [vmem:[%s14124_s0 + $0x74] sm:$0xff] }
  0x4b   :  { %4534 = vmatmul.mubr.bf16.gmra.mrb[4].mxu0 %v11421_v45  ;;  %291 = vmatprep.mubr.bf16.mxu1 %v11076_v1  ;;  %v10608_v38 = vld [vmem:[%s14123_s1 + $0x7b0] ss:$8 sps:$4 sm:$0xff]  }
  0x4c   :  { %4543 = vmatprep.mubr.bf16.mxu0 %v11076_v1  ;;  %4826 = vmatpush1.bf16.msra.mxu0 %v10557_v47  ;;  %v11578_v47 = vpack.c.bf16 %v9292_v41, %v9291_v39  ;;  %v10616_v39 = vld [vmem:[%s14123_s1 + $0x7c4] ss:$8 sps:$4 sm:$0xff]  }
  0x4d   :  { %4827 = vmatprep.subr.bf16.mxu0 %v10562_v49  ;;  %v10581_v49 = vld [vmem:[%s14123_s1 + $0x140] ss:$8 sps:$4 sm:$0xff]  }
  0x50   :  { %4828 = vmatpush1.bf16.msra.mxu0 %v10560_v55  ;;  %v383_v55 = vld [vmem:[%s14124_s0 + $0x71] sm:$0xff] }
  0x51   :  { %4829 = vmatprep.subr.bf16.mxu0 %v10568_v56  ;;  %v9293_v56 = vld [vmem:[%s14124_s0 + $0x143] sm:$0xff]  ;;  %v395_v0 = vpack.c.bf16 %v383_v55, %v382_v53  ;;  %v9334_v55 = vld [vmem:[%s14124_s0 + $0x94] sm:$0xff] }
  0x52   :  { %292 = vmatmul.mubr.bf16.gmra.mrb[24].mxu1 %v69_v57  ;;  %v9294_v57 = vld [vmem:[%s14124_s0 + $0x153] sm:$0xff]  ;;  %v9333_v53 = vld [vmem:[%s14124_s0 + $0x84] sm:$0xff] }
  0x53   :  { %4544 = vmatmul.mubr.bf16.gmra.mrb[8].mxu0 %v11458_v59  ;;  %301 = vmatprep.mubr.bf16.mxu1 %v11076_v1  ;;  %v4361_v2 = vpack.c.bf16 %v9294_v57, %v9293_v56  ;;  %v10617_v56 = vld [vmem:[%s14123_s1 + $0x7d0] ss:$8 sps:$4 sm:$0xff]   ;;  %v10625_v57 = vld [vmem:[%s14123_s1 + $0x7e4] ss:$8 sps:$4 sm:$0xff]  }
  0x54   :  { %4553 = vmatprep.mubr.bf16.mxu0 %v11076_v1  ;;  %4830 = vmatpush1.bf16.msra.mxu0 %v10566_v60  ;;  %v10584_v60 = vld [vmem:[%s14123_s1 + $0x150] ss:$8 sps:$4 sm:$0xff]  }
  0x55   :  { %4831 = vmatprep.subr.bf16.mxu0 %v10571_v62  ;;  %v10589_v62 = vld [vmem:[%s14123_s1 + $0x164] ss:$8 sps:$4 sm:$0xff]  }
  0x58   :  { %4832 = vmatpush1.bf16.msra.mxu0 %v10569_v5  ;;  %v10592_v5 = vld [vmem:[%s14123_s1 + $0x174] ss:$8 sps:$4 sm:$0xff]  }
  0x59   :  { %4833 = vmatprep.subr.bf16.mxu0 %v10577_v6  ;;  %v384_v6 = vld [vmem:[%s14124_s0 + $0xc1] sm:$0xff] }
  0x5a   :  { %302 = vmatmul.mubr.bf16.gmra.mrb[28].mxu1 %v70_v7  ;;  %v385_v7 = vld [vmem:[%s14124_s0 + $0xd1] sm:$0xff] }
  0x5b   :  { %4554 = vmatmul.mubr.bf16.gmra.mrb[16].mxu0 %v4357_v9  ;;  %561 = vmatprep.mubr.bf16.mxu1 %v11076_v1  ;;  %v9327_v9 = vld [vmem:[%s14124_s0 + $0x24] sm:$0xff]  ;;  %v396_v13 = vpack.c.bf16 %v385_v7, %v384_v6  ;;  %v9336_v7 = vld [vmem:[%s14124_s0 + $0xf4] sm:$0xff] }
  0x5c   :  { %4563 = vmatprep.mubr.bf16.mxu0 %v11076_v1  ;;  %4834 = vmatpush1.bf16.msra.mxu0 %v10575_v10  ;;  %v9328_v10 = vld [vmem:[%s14124_s0 + $0x34] sm:$0xff]  ;;  %v9335_v6 = vld [vmem:[%s14124_s0 + $0xe4] sm:$0xff] }
  0x5d   :  { %4835 = vmatprep.subr.bf16.mxu0 %v10580_v11  ;;  %v10590_v11 = vld [vmem:[%s14123_s1 + $0x170] ss:$8 sps:$4 sm:$0xff]   ;;  %v11633_v14 = vpack.c.bf16 %v9328_v10, %v9327_v9  ;;  %v10643_v10 = vld [vmem:[%s14123_s1 + $0x804] ss:$8 sps:$4 sm:$0xff]  }
  0x5e   :  { %v10626_v9 = vld [vmem:[%s14123_s1 + $0x7f0] ss:$8 sps:$4 sm:$0xff]  }
  0x60   :  { %4836 = vmatpush1.bf16.msra.mxu0 %v10578_v16  ;;  %v386_v16 = vld [vmem:[%s14124_s0 + $0xe1] sm:$0xff] }
  0x61   :  { %5152 = vmatprep.subr.bf16.mxu0 %v10595_v17  ;;  %v10601_v17 = vld [vmem:[%s14123_s1 + $0x794] ss:$8 sps:$4 sm:$0xff]  }
  0x62   :  { %562 = vmatmul.mubr.bf16.vlgmr.msra.gmra.mrb[0].mxu1 %v392_v18  ;;  %v387_v18 = vld [vmem:[%s14124_s0 + $0xf1] sm:$0xff] }
  0x63   :  { %4564 = vmatmul.mubr.bf16.gmra.mrb[20].mxu0 %v11516_v19  ;;  %860 = vmatpush1.bf16.msra.mxu1 %v10548_v20  ;;  %v9329_v20 = vld [vmem:[%s14124_s0 + $0x44] sm:$0xff] }
  0x64   :  { %571 = vmatprep.mubr.bf16.mxu1 %v11076_v1  ;;  %4573 = vmatprep.mubr.bf16.mxu0 %v11076_v1 }
  0x65   :  { %861 = vmatprep.subr.bf16.mxu1 %v10556_v21  ;;  %v9330_v21 = vld [vmem:[%s14124_s0 + $0x54] sm:$0xff] }
  0x66   :  { %v11662_v26 = vpack.c.bf16 %v9330_v21, %v9329_v20  ;;  %v10613_v20 = vld [vmem:[%s14123_s1 + $0x1a4] ss:$8 sps:$4 sm:$0xff]  }
  0x67   :  { %862 = vmatpush1.bf16.msra.mxu1 %v10554_v25  ;;  %v397_v25 = vpack.c.bf16 %v387_v18, %v386_v16  ;;  %v10602_v16 = vld [vmem:[%s14123_s1 + $0x190] ss:$8 sps:$4 sm:$0xff]  }
  0x68   :  { %863 = vmatprep.subr.bf16.mxu1 %v10565_v28  ;;  %v10610_v28 = vld [vmem:[%s14123_s1 + $0x7b4] ss:$8 sps:$4 sm:$0xff]  }
  0x69   :  { %v9338_v18 = vld [vmem:[%s14124_s0 + $0x114] sm:$0xff] }
  0x6a   :  { %572 = vmatmul.mubr.bf16.gmra.mrb[4].mxu1 %v393_v29  ;;  %v388_v29 = vld [vmem:[%s14124_s0 + $0x101] sm:$0xff] }
  0x6b   :  { %4574 = vmatmul.mubr.bf16.gmra.mrb[24].mxu0 %v11547_v31  ;;  %581 = vmatprep.mubr.bf16.mxu1 %v11076_v1 }
  0x6c   :  { %4583 = vmatprep.mubr.bf16.mxu0 %v11076_v1  ;;  %864 = vmatpush1.bf16.msra.mxu1 %v10563_v32  ;;  %v389_v32 = vld [vmem:[%s14124_s0 + $0x111] sm:$0xff] }
  0x6d   :  { %865 = vmatprep.subr.bf16.mxu1 %v10574_v36  ;;  %v9331_v36 = vld [vmem:[%s14124_s0 + $0x64] sm:$0xff]  ;;  %v398_v41 = vpack.c.bf16 %v389_v32, %v388_v29 }
  0x6e   :  { %v10629_v32 = vld [vmem:[%s14123_s1 + $0x1c0] ss:$8 sps:$4 sm:$0xff]  }
  0x70   :  { %866 = vmatpush1.bf16.msra.mxu1 %v10572_v42  ;;  %v11691_v42 = vpack.c.bf16 %v9332_v37, %v9331_v36  ;;  %v10634_v36 = vld [vmem:[%s14123_s1 + $0x1d4] ss:$8 sps:$4 sm:$0xff]   ;;  %v9341_v37 = vld [vmem:[%s14124_s0 + $0x144] sm:$0xff] }
  0x71   :  { %867 = vmatprep.subr.bf16.mxu1 %v10583_v43  ;;  %v10614_v43 = vld [vmem:[%s14123_s1 + $0x7c0] ss:$8 sps:$4 sm:$0xff]  }
  0x72   :  { %582 = vmatmul.mubr.bf16.gmra.mrb[8].mxu1 %v394_v44  ;;  %v10619_v44 = vld [vmem:[%s14123_s1 + $0x7d4] ss:$8 sps:$4 sm:$0xff]  }
  0x73   :  { %4584 = vmatmul.mubr.bf16.gmra.mrb[28].mxu0 %v11578_v47  ;;  %591 = vmatprep.mubr.bf16.mxu1 %v11076_v1 }
  0x74   :  { %4593 = vmatprep.mubr.bf16.mxu0 %v11076_v1  ;;  %868 = vmatpush1.bf16.msra.mxu1 %v10581_v49  ;;  %v11702_v49 = vld [vmem:[%s14124_s0 + $0x121] sm:$0xff] }
  0x75   :  { %869 = vmatprep.subr.bf16.mxu1 %v10586_v52  ;;  %v391_v52 = vld [vmem:[%s14124_s0 + $0x131] sm:$0xff] }
  0x78   :  { %870 = vmatpush1.bf16.msra.mxu1 %v10584_v60  ;;  %v399_v60 = vpack.c.bf16 %v391_v52, %v11702_v49  ;;  %v714_v52 = vld [vmem:[%s14124_s0 + $0xc2] sm:$0xff] }
  0x79   :  { %871 = vmatprep.subr.bf16.mxu1 %v10589_v62  ;;  %v4687_v62 = vpack.c.bf16 %v9334_v55, %v9333_v53  ;;  %v715_v53 = vld [vmem:[%s14124_s0 + $0xd2] sm:$0xff] }
  0x7a   :  { %592 = vmatmul.mubr.bf16.gmra.mrb[32].mxu1 %v395_v0  ;;  %v10623_v0 = vld [vmem:[%s14123_s1 + $0x7e0] ss:$8 sps:$4 sm:$0xff]   ;;  %v10638_v55 = vld [vmem:[%s14123_s1 + $0x1f0] ss:$8 sps:$4 sm:$0xff]  }
  0x7b   :  { %4594 = vmatmul.mubr.bf16.gmra.mrb[32].mxu0 %v4361_v2  ;;  %601 = vmatprep.mubr.bf16.mxu1 %v11076_v1  ;;  %v10628_v2 = vld [vmem:[%s14123_s1 + $0x7f4] ss:$8 sps:$4 sm:$0xff]  }
  0x7c   :  { %4853 = vmatprep.mubr.bf16.mxu0 %v11076_v1  ;;  %872 = vmatpush1.bf16.msra.mxu1 %v10587_v3  ;;  %v706_v3 = vld [vmem:[%s14124_s0 + $0x2] sm:$0xff] }
  0x7d   :  { %873 = vmatprep.subr.bf16.mxu1 %v10592_v5  ;;  %v707_v5 = vld [vmem:[%s14124_s0 + $0x12] sm:$0xff] }
  0x80   :  { %874 = vmatpush1.bf16.msra.mxu1 %v10590_v11  ;;  %v10596_v11 = vld [vmem:[%s14123_s1 + $0x180] ss:$8 sps:$4 sm:$0xff]  }
  0x81   :  { %1189 = vmatprep.subr.bf16.mxu1 %v10598_v12  ;;  %v722_v12 = vpack.c.bf16 %v707_v5, %v706_v3  ;;  %v10655_v3 = vld [vmem:[%s14123_s1 + $0x824] ss:$8 sps:$4 sm:$0xff]  }
  0x82   :  { %602 = vmatmul.mubr.bf16.gmra.mrb[16].mxu1 %v396_v13  ;;  %v11752_v13 = vpack.c.bf16 %v9336_v7, %v9335_v6  ;;  %v11876_v5 = vld [vmem:[%s14124_s0 + $0x102] sm:$0xff]  ;;  %v11881_v6 = vld [vmem:[%s14124_s0 + $0x112] sm:$0xff] }
  0x83   :  { %4854 = vmatmul.mubr.bf16.vlgmr.msra.gmra.mrb[0].mxu0 %v11633_v14  ;;  %611 = vmatprep.mubr.bf16.mxu1 %v11076_v1  ;;  %v11889_v7 = vld [vmem:[%s14124_s0 + $0x80] sm:$0xff]  ;;  %v728_v61 = vpack.c.bf16 %v11881_v6, %v11876_v5 }
  0x84   :  { %4863 = vmatprep.mubr.bf16.mxu0 %v11076_v1  ;;  %5153 = vmatpush1.bf16.msra.mxu0 %v10593_v15  ;;  %v10604_v15 = vld [vmem:[%s14123_s1 + $0x194] ss:$8 sps:$4 sm:$0xff]  }
  0x85   :  { %5154 = vmatprep.subr.bf16.mxu0 %v10601_v17  ;;  %v9337_v17 = vld [vmem:[%s14124_s0 + $0x104] sm:$0xff] }
  0x86   :  { %v11772_v21 = vpack.c.bf16 %v9338_v18, %v9337_v17  ;;  %v9381_v17 = vld [vmem:[%s14124_s0 + $0x90] sm:$0xff]  ;;  %v9382_v18 = vld [vmem:[%s14124_s0 + $0xa0] sm:$0xff] }
  0x88   :  { %5155 = vmatpush1.bf16.msra.mxu0 %v10599_v23  ;;  %v10611_v23 = vld [vmem:[%s14123_s1 + $0x1a0] ss:$8 sps:$4 sm:$0xff]  }
  0x89   :  { %5156 = vmatprep.subr.bf16.mxu0 %v10607_v24  ;;  %v10622_v24 = vld [vmem:[%s14123_s1 + $0x1b4] ss:$8 sps:$4 sm:$0xff]  }
  0x8a   :  { %612 = vmatmul.mubr.bf16.gmra.mrb[20].mxu1 %v397_v25  ;;  %v9339_v25 = vld [vmem:[%s14124_s0 + $0x124] sm:$0xff] }
  0x8b   :  { %4864 = vmatmul.mubr.bf16.gmra.mrb[4].mxu0 %v11662_v26  ;;  %621 = vmatprep.mubr.bf16.mxu1 %v11076_v1 }
  0x8c   :  { %4873 = vmatprep.mubr.bf16.mxu0 %v11076_v1  ;;  %5157 = vmatpush1.bf16.msra.mxu0 %v10605_v27  ;;  %v9340_v27 = vld [vmem:[%s14124_s0 + $0x134] sm:$0xff] }
  0x8d   :  { %5158 = vmatprep.subr.bf16.mxu0 %v10610_v28  ;;  %v10620_v28 = vld [vmem:[%s14123_s1 + $0x1b0] ss:$8 sps:$4 sm:$0xff]   ;;  %v11796_v29 = vpack.c.bf16 %v9340_v27, %v9339_v25  ;;  %v5018_v25 = vpack.c.bf16 %v9382_v18, %v9381_v17  ;;  %v10671_v27 = vld [vmem:[%s14123_s1 + $0x860] ss:$8 sps:$4 sm:$0xff]  }
  0x8e   :  { %v10701_v18 = vld [vmem:[%s14123_s1 + $0x8a0] ss:$8 sps:$4 sm:$0xff]  }
  0x90   :  { %5159 = vmatpush1.bf16.msra.mxu0 %v10608_v38  ;;  %v9342_v38 = vld [vmem:[%s14124_s0 + $0x154] sm:$0xff] }
  0x91   :  { %5160 = vmatprep.subr.bf16.mxu0 %v10616_v39  ;;  %v10632_v39 = vld [vmem:[%s14123_s1 + $0x1d0] ss:$8 sps:$4 sm:$0xff]  }
  0x92   :  { %622 = vmatmul.mubr.bf16.gmra.mrb[24].mxu1 %v398_v41  ;;  %v4691_v41 = vpack.c.bf16 %v9342_v38, %v9341_v37  ;;  %v10691_v37 = vld [vmem:[%s14123_s1 + $0x884] ss:$8 sps:$4 sm:$0xff]   ;;  %v10644_v38 = vld [vmem:[%s14123_s1 + $0x200] ss:$8 sps:$4 sm:$0xff]  }
  0x93   :  { %4874 = vmatmul.mubr.bf16.gmra.mrb[8].mxu0 %v11691_v42  ;;  %631 = vmatprep.mubr.bf16.mxu1 %v11076_v1 }
  0x94   :  { %4883 = vmatprep.mubr.bf16.mxu0 %v11076_v1  ;;  %5161 = vmatpush1.bf16.msra.mxu0 %v10614_v43  ;;  %v10635_v43 = vld [vmem:[%s14123_s1 + $0x1e0] ss:$8 sps:$4 sm:$0xff]  }
  0x95   :  { %5162 = vmatprep.subr.bf16.mxu0 %v10619_v44  ;;  %v10640_v44 = vld [vmem:[%s14123_s1 + $0x1f4] ss:$8 sps:$4 sm:$0xff]  }
  0x98   :  { %5163 = vmatpush1.bf16.msra.mxu0 %v10617_v56  ;;  %v726_v56 = vpack.c.bf16 %v715_v53, %v714_v52  ;;  %v10682_v52 = vld [vmem:[%s14123_s1 + $0x254] ss:$8 sps:$4 sm:$0xff]  }
  0x99   :  { %5164 = vmatprep.subr.bf16.mxu0 %v10625_v57  ;;  %v10641_v57 = vld [vmem:[%s14123_s1 + $0x800] ss:$8 sps:$4 sm:$0xff]   ;;  %v9389_v53 = vld [vmem:[%s14124_s0 + $0x150] sm:$0xff] }
  0x9a   :  { %632 = vmatmul.mubr.bf16.gmra.mrb[36].mxu1 %v399_v60  ;;  %v10649_v60 = vld [vmem:[%s14123_s1 + $0x814] ss:$8 sps:$4 sm:$0xff]  }
  0x9b   :  { %4884 = vmatmul.mubr.bf16.gmra.mrb[36].mxu0 %v4687_v62  ;;  %891 = vmatprep.mubr.bf16.mxu1 %v11076_v1  ;;  %v716_v62 = vld [vmem:[%s14124_s0 + $0xe2] sm:$0xff] }
  0x9c   :  { %4893 = vmatprep.mubr.bf16.mxu0 %v11076_v1  ;;  %5165 = vmatpush1.bf16.msra.mxu0 %v10623_v0  ;;  %v11856_v0 = vld [vmem:[%s14124_s0 + $0xf2] sm:$0xff] }
  0x9d   :  { %5166 = vmatprep.subr.bf16.mxu0 %v10628_v2  ;;  %v10647_v2 = vld [vmem:[%s14123_s1 + $0x810] ss:$8 sps:$4 sm:$0xff]   ;;  %v727_v46 = vpack.c.bf16 %v11856_v0, %v716_v62  ;;  %v1044_v62 = vld [vmem:[%s14124_s0 + $0xc3] sm:$0xff] }
  0xa0   :  { %5167 = vmatpush1.bf16.msra.mxu0 %v10626_v9  ;;  %v10656_v9 = vld [vmem:[%s14123_s1 + $0x830] ss:$8 sps:$4 sm:$0xff]  }
  0xa1   :  { %5482 = vmatprep.subr.bf16.mxu0 %v10643_v10  ;;  %v10664_v10 = vld [vmem:[%s14123_s1 + $0x844] ss:$8 sps:$4 sm:$0xff]  }
  0xa2   :  { %892 = vmatmul.mubr.bf16.vlgmr.msra.gmra.mrb[0].mxu1 %v722_v12  ;;  %v10667_v12 = vld [vmem:[%s14123_s1 + $0x854] ss:$8 sps:$4 sm:$0xff]  }
  0xa3   :  { %4894 = vmatmul.mubr.bf16.gmra.mrb[20].mxu0 %v11752_v13  ;;  %1190 = vmatpush1.bf16.msra.mxu1 %v10596_v11  ;;  %v10662_v11 = vld [vmem:[%s14123_s1 + $0x840] ss:$8 sps:$4 sm:$0xff]  }
  0xa4   :  { %901 = vmatprep.mubr.bf16.mxu1 %v11076_v1  ;;  %4903 = vmatprep.mubr.bf16.mxu0 %v11076_v1 }
  0xa5   :  { %1191 = vmatprep.subr.bf16.mxu1 %v10604_v15  ;;  %v11914_v15 = vld [vmem:[%s14124_s0 + $0x122] sm:$0xff] }
  0xa7   :  { %1192 = vmatpush1.bf16.msra.mxu1 %v10602_v16  ;;  %v11919_v16 = vld [vmem:[%s14124_s0 + $0x132] sm:$0xff] }
  0xa8   :  { %1193 = vmatprep.subr.bf16.mxu1 %v10613_v20  ;;  %v10665_v20 = vld [vmem:[%s14123_s1 + $0x850] ss:$8 sps:$4 sm:$0xff]  }
  0xaa   :  { %902 = vmatmul.mubr.bf16.gmra.mrb[4].mxu1 %v11214_v40  ;;  %v10631_v40 = vld [vmem:[%s14123_s1 + $0x1c4] ss:$8 sps:$4 sm:$0xff]  }
  0xab   :  { %4904 = vmatmul.mubr.bf16.gmra.mrb[24].mxu0 %v11772_v21  ;;  %911 = vmatprep.mubr.bf16.mxu1 %v11076_v1 }
  0xac   :  { %4913 = vmatprep.mubr.bf16.mxu0 %v11076_v1  ;;  %1194 = vmatpush1.bf16.msra.mxu1 %v10611_v23  ;;  %v10673_v23 = vld [vmem:[%s14123_s1 + $0x864] ss:$8 sps:$4 sm:$0xff]  }
  0xad   :  { %1195 = vmatprep.subr.bf16.mxu1 %v10622_v24  ;;  %v729_v24 = vpack.c.bf16 %v11919_v16, %v11914_v15 }
  0xb0   :  { %1196 = vmatpush1.bf16.msra.mxu1 %v10620_v28  ;;  %v10676_v28 = vld [vmem:[%s14123_s1 + $0x874] ss:$8 sps:$4 sm:$0xff]  }
  0xb1   :  { %1197 = vmatprep.subr.bf16.mxu1 %v10631_v40  ;;  %v1036_v40 = vld [vmem:[%s14124_s0 + $0x3] sm:$0xff] }
  0xb2   :  { %912 = vmatmul.mubr.bf16.gmra.mrb[8].mxu1 %v11258_v54  ;;  %v10637_v54 = vld [vmem:[%s14123_s1 + $0x1e4] ss:$8 sps:$4 sm:$0xff]  }
  0xb3   :  { %4914 = vmatmul.mubr.bf16.gmra.mrb[28].mxu0 %v11796_v29  ;;  %921 = vmatprep.mubr.bf16.mxu1 %v11076_v1 }
  0xb4   :  { %4923 = vmatprep.mubr.bf16.mxu0 %v11076_v1  ;;  %1198 = vmatpush1.bf16.msra.mxu1 %v10629_v32  ;;  %v1037_v32 = vld [vmem:[%s14124_s0 + $0x13] sm:$0xff] }
  0xb5   :  { %1199 = vmatprep.subr.bf16.mxu1 %v10634_v36  ;;  %v10674_v36 = vld [vmem:[%s14123_s1 + $0x870] ss:$8 sps:$4 sm:$0xff]  }
  0xb8   :  { %1200 = vmatpush1.bf16.msra.mxu1 %v10632_v39  ;;  %v1052_v39 = vpack.c.bf16 %v1037_v32, %v1036_v40  ;;  %v11055_v40 = vld [vmem:[%s14124_s0 + $0x71] sm:$0xff] }
  0xb9   :  { %1201 = vmatprep.subr.bf16.mxu1 %v10637_v54  ;;  %v10652_v54 = vld [vmem:[%s14123_s1 + $0x214] ss:$8 sps:$4 sm:$0xff]  }
  0xba   :  { %922 = vmatmul.mubr.bf16.gmra.mrb[40].mxu1 %v11302_v4  ;;  %v10646_v4 = vld [vmem:[%s14123_s1 + $0x204] ss:$8 sps:$4 sm:$0xff]  }
  0xbb   :  { %4924 = vmatmul.mubr.bf16.gmra.mrb[40].mxu0 %v4691_v41  ;;  %931 = vmatprep.mubr.bf16.mxu1 %v11076_v1  ;;  %v10650_v41 = vld [vmem:[%s14123_s1 + $0x210] ss:$8 sps:$4 sm:$0xff]  }
  0xbc   :  { %5184 = vmatprep.mubr.bf16.mxu0 %v11076_v1  ;;  %1202 = vmatpush1.bf16.msra.mxu1 %v10635_v43  ;;  %v10661_v43 = vld [vmem:[%s14123_s1 + $0x224] ss:$8 sps:$4 sm:$0xff]  }
  0xbd   :  { %1203 = vmatprep.subr.bf16.mxu1 %v10640_v44  ;;  %v10668_v44 = vld [vmem:[%s14123_s1 + $0x230] ss:$8 sps:$4 sm:$0xff]  }
  0xc0   :  { %1204 = vmatpush1.bf16.msra.mxu1 %v10638_v55  ;;  %v9390_v55 = vld [vmem:[%s14124_s0 + $0x160] sm:$0xff] }
  0xc1   :  { %1519 = vmatprep.subr.bf16.mxu1 %v10646_v4  ;;  %v10680_v4 = vld [vmem:[%s14123_s1 + $0x250] ss:$8 sps:$4 sm:$0xff]  }
  0xc2   :  { %932 = vmatmul.mubr.bf16.gmra.mrb[16].mxu1 %v726_v56  ;;  %v5022_v56 = vpack.c.bf16 %v9390_v55, %v9389_v53  ;;  %v10722_v53 = vld [vmem:[%s14123_s1 + $0x8f0] ss:$8 sps:$4 sm:$0xff]  }
  0xc3   :  { %5185 = vmatmul.mubr.bf16.vlgmr.msra.gmra.mrb[0].mxu0 %v5015_v33  ;;  %941 = vmatprep.mubr.bf16.mxu1 %v11076_v1  ;;  %v10658_v33 = vld [vmem:[%s14123_s1 + $0x834] ss:$8 sps:$4 sm:$0xff]  }
  0xc4   :  { %5194 = vmatprep.mubr.bf16.mxu0 %v11076_v1  ;;  %5483 = vmatpush1.bf16.msra.mxu0 %v10641_v57  ;;  %v10683_v57 = vld [vmem:[%s14123_s1 + $0x260] ss:$8 sps:$4 sm:$0xff]  }
  0xc5   :  { %5484 = vmatprep.subr.bf16.mxu0 %v10649_v60  ;;  %v10688_v60 = vld [vmem:[%s14123_s1 + $0x274] ss:$8 sps:$4 sm:$0xff]  }
  0xc8   :  { %5485 = vmatpush1.bf16.msra.mxu0 %v10647_v2  ;;  %v1045_v2 = vld [vmem:[%s14124_s0 + $0xd3] sm:$0xff] }
  0xc9   :  { %5486 = vmatprep.subr.bf16.mxu0 %v10655_v3  ;;  %v10686_v3 = vld [vmem:[%s14123_s1 + $0x270] ss:$8 sps:$4 sm:$0xff]  }
  0xca   :  { %942 = vmatmul.mubr.bf16.gmra.mrb[20].mxu1 %v727_v46  ;;  %v1056_v46 = vpack.c.bf16 %v1045_v2, %v1044_v62  ;;  %v10698_v62 = vld [vmem:[%s14123_s1 + $0x290] ss:$8 sps:$4 sm:$0xff]   ;;  %v10709_v2 = vld [vmem:[%s14123_s1 + $0x2a4] ss:$8 sps:$4 sm:$0xff]  }
  0xcb   :  { %5195 = vmatmul.mubr.bf16.gmra.mrb[4].mxu0 %v5016_v48  ;;  %951 = vmatprep.mubr.bf16.mxu1 %v11076_v1  ;;  %v5017_v48 = vpack.c.bf16 %v11889_v7, %v11049_v8  ;;  %v10695_v8 = vld [vmem:[%s14123_s1 + $0x890] ss:$8 sps:$4 sm:$0xff]  }
  0xcc   :  { %5204 = vmatprep.mubr.bf16.mxu0 %v11076_v1  ;;  %5487 = vmatpush1.bf16.msra.mxu0 %v10653_v58  ;;  %v11051_v58 = vld [vmem:[%s14124_s0 + $0x31] sm:$0xff] }
  0xcd   :  { %5488 = vmatprep.subr.bf16.mxu0 %v10658_v33  ;;  %v11052_v33 = vld [vmem:[%s14124_s0 + $0x41] sm:$0xff] }
  0xd0   :  { %5489 = vmatpush1.bf16.msra.mxu0 %v10656_v9  ;;  %v5345_v9 = vpack.c.bf16 %v11052_v33, %v11051_v58  ;;  %v10718_v58 = vld [vmem:[%s14123_s1 + $0x2b4] ss:$8 sps:$4 sm:$0xff]   ;;  %v10716_v33 = vld [vmem:[%s14123_s1 + $0x2b0] ss:$8 sps:$4 sm:$0xff]  }
  0xd1   :  { %5490 = vmatprep.subr.bf16.mxu0 %v10664_v10  ;;  %v10689_v10 = vld [vmem:[%s14123_s1 + $0x880] ss:$8 sps:$4 sm:$0xff]  }
  0xd2   :  { %952 = vmatmul.mubr.bf16.gmra.mrb[24].mxu1 %v728_v61  ;;  %v10697_v61 = vld [vmem:[%s14123_s1 + $0x894] ss:$8 sps:$4 sm:$0xff]  }
  0xd3   :  { %5205 = vmatmul.mubr.bf16.gmra.mrb[8].mxu0 %v5017_v48  ;;  %961 = vmatprep.mubr.bf16.mxu1 %v11076_v1  ;;  %v10703_v48 = vld [vmem:[%s14123_s1 + $0x8a4] ss:$8 sps:$4 sm:$0xff]  }
  0xd4   :  { %5214 = vmatprep.mubr.bf16.mxu0 %v11076_v1  ;;  %5491 = vmatpush1.bf16.msra.mxu0 %v10662_v11  ;;  %v11053_v11 = vld [vmem:[%s14124_s0 + $0x51] sm:$0xff] }
  0xd5   :  { %5492 = vmatprep.subr.bf16.mxu0 %v10667_v12  ;;  %v11054_v12 = vld [vmem:[%s14124_s0 + $0x61] sm:$0xff] }
  0xd6   :  { %v5346_v17 = vpack.c.bf16 %v11054_v12, %v11053_v11 }
  0xd8   :  { %5493 = vmatpush1.bf16.msra.mxu0 %v10665_v20  ;;  %v10706_v20 = vld [vmem:[%s14123_s1 + $0x8b4] ss:$8 sps:$4 sm:$0xff]  }
  0xd9   :  { %5494 = vmatprep.subr.bf16.mxu0 %v10673_v23  ;;  %v12081_v23 = vld [vmem:[%s14124_s0 + $0x81] sm:$0xff] }
  0xda   :  { %962 = vmatmul.mubr.bf16.gmra.mrb[44].mxu1 %v729_v24  ;;  %v10704_v24 = vld [vmem:[%s14123_s1 + $0x8b0] ss:$8 sps:$4 sm:$0xff]   ;;  %v5347_v32 = vpack.c.bf16 %v12081_v23, %v11055_v40 }
  0xdb   :  { %5215 = vmatmul.mubr.bf16.gmra.mrb[44].mxu0 %v5018_v25  ;;  %1221 = vmatprep.mubr.bf16.mxu1 %v11076_v1  ;;  %v9437_v40 = vld [vmem:[%s14124_s0 + $0x151] sm:$0xff] }
  0xdc   :  { %5224 = vmatprep.mubr.bf16.mxu0 %v11076_v1  ;;  %5495 = vmatpush1.bf16.msra.mxu0 %v10671_v27 }
  0xdd   :  { %5496 = vmatprep.subr.bf16.mxu0 %v10676_v28 }
  0xe0   :  { %5497 = vmatpush1.bf16.msra.mxu0 %v10674_v36 }
  0xe1   :  { %5812 = vmatprep.subr.bf16.mxu0 %v10691_v37 }
  0xe2   :  { %1222 = vmatmul.mubr.bf16.vlgmr.msra.gmra.mrb[0].mxu1 %v1052_v39 }
  0xe3   :  { %5225 = vmatmul.mubr.bf16.gmra.mrb[20].mxu0 %v5019_v22  ;;  %1520 = vmatpush1.bf16.msra.mxu1 %v10644_v38  ;;  %v11987_v22 = vld [vmem:[%s14124_s0 + $0x140] sm:$0xff] }
  0xe4   :  { %1231 = vmatprep.mubr.bf16.mxu1 %v11076_v1  ;;  %5234 = vmatprep.mubr.bf16.mxu0 %v11076_v1  ;;  %v5021_v63 = vpack.c.bf16 %v11987_v22, %v11050_v51  ;;  %v10719_v51 = vld [vmem:[%s14123_s1 + $0x8e0] ss:$8 sps:$4 sm:$0xff]  }
  0xe5   :  { %1521 = vmatprep.subr.bf16.mxu1 %v10652_v54 }
  0xe7   :  { %1522 = vmatpush1.bf16.msra.mxu1 %v10650_v41  ;;  %v10710_v41 = vld [vmem:[%s14123_s1 + $0x8c0] ss:$8 sps:$4 sm:$0xff]  }
  0xe8   :  { %1523 = vmatprep.subr.bf16.mxu1 %v10661_v43  ;;  %v10715_v43 = vld [vmem:[%s14123_s1 + $0x8d4] ss:$8 sps:$4 sm:$0xff]  }
  0xea   :  { %1232 = vmatmul.mubr.bf16.gmra.mrb[4].mxu1 %v11378_v30  ;;  %v10679_v30 = vld [vmem:[%s14123_s1 + $0x244] ss:$8 sps:$4 sm:$0xff]  }
  0xeb   :  { %5235 = vmatmul.mubr.bf16.gmra.mrb[24].mxu0 %v5020_v34  ;;  %1241 = vmatprep.mubr.bf16.mxu1 %v11076_v1  ;;  %v10677_v34 = vld [vmem:[%s14123_s1 + $0x240] ss:$8 sps:$4 sm:$0xff]  }
  0xec   :  { %5244 = vmatprep.mubr.bf16.mxu0 %v11076_v1  ;;  %1524 = vmatpush1.bf16.msra.mxu1 %v10659_v35  ;;  %v9429_v35 = vld [vmem:[%s14124_s0 + $0x91] sm:$0xff] }
  0xed   :  { %1525 = vmatprep.subr.bf16.mxu1 %v10670_v50  ;;  %v9430_v50 = vld [vmem:[%s14124_s0 + $0xa1] sm:$0xff] }
  0xf0   :  { %1526 = vmatpush1.bf16.msra.mxu1 %v10668_v44  ;;  %v10713_v44 = vld [vmem:[%s14123_s1 + $0x8d0] ss:$8 sps:$4 sm:$0xff]  }
  0xf1   :  { %1527 = vmatprep.subr.bf16.mxu1 %v10679_v30  ;;  %v5348_v30 = vpack.c.bf16 %v9430_v50, %v9429_v35  ;;  %v9471_v35 = vld [vmem:[%s14124_s0 + $0x32] sm:$0xff] }
  0xf2   :  { %1242 = vmatmul.mubr.bf16.gmra.mrb[8].mxu1 %v11421_v45  ;;  %v10685_v45 = vld [vmem:[%s14123_s1 + $0x264] ss:$8 sps:$4 sm:$0xff]   ;;  %v10734_v50 = vld [vmem:[%s14123_s1 + $0x2f0] ss:$8 sps:$4 sm:$0xff]  }
  0xf3   :  { %5245 = vmatmul.mubr.bf16.gmra.mrb[28].mxu0 %v5021_v63  ;;  %1251 = vmatprep.mubr.bf16.mxu1 %v11076_v1  ;;  %v10724_v63 = vld [vmem:[%s14123_s1 + $0x8f4] ss:$8 sps:$4 sm:$0xff]  }
  0xf4   :  { %5254 = vmatprep.mubr.bf16.mxu0 %v11076_v1  ;;  %1528 = vmatpush1.bf16.msra.mxu1 %v10677_v34  ;;  %v1366_v34 = vld [vmem:[%s14124_s0 + $0x4] sm:$0xff] }
  0xf5   :  { %1529 = vmatprep.subr.bf16.mxu1 %v10682_v52  ;;  %v1367_v52 = vld [vmem:[%s14124_s0 + $0x14] sm:$0xff] }
  0xf6   :  { %v1382_v55 = vpack.c.bf16 %v1367_v52, %v1366_v34  ;;  %v9473_v34 = vld [vmem:[%s14124_s0 + $0x52] sm:$0xff]  ;;  %v9474_v52 = vld [vmem:[%s14124_s0 + $0x62] sm:$0xff] }
  0xf8   :  { %1530 = vmatpush1.bf16.msra.mxu1 %v10680_v4  ;;  %v11056_v4 = vld [vmem:[%s14124_s0 + $0xf1] sm:$0xff] }
  0xf9   :  { %1531 = vmatprep.subr.bf16.mxu1 %v10685_v45  ;;  %v11057_v45 = vld [vmem:[%s14124_s0 + $0x101] sm:$0xff] }
  0xfa   :  { %1252 = vmatmul.mubr.bf16.gmra.mrb[48].mxu1 %v11458_v59  ;;  %v10694_v59 = vld [vmem:[%s14123_s1 + $0x284] ss:$8 sps:$4 sm:$0xff]  }
  0xfb   :  { %5255 = vmatmul.mubr.bf16.gmra.mrb[48].mxu0 %v5022_v56  ;;  %1261 = vmatprep.mubr.bf16.mxu1 %v11076_v1  ;;  %v5349_v56 = vpack.c.bf16 %v11057_v45, %v11056_v4  ;;  %v10749_v4 = vld [vmem:[%s14123_s1 + $0x920] ss:$8 sps:$4 sm:$0xff]   ;;  %v10754_v45 = vld [vmem:[%s14123_s1 + $0x934] ss:$8 sps:$4 sm:$0xff]  }
  0xfc   :  { %5514 = vmatprep.mubr.bf16.mxu0 %v11076_v1  ;;  %1532 = vmatpush1.bf16.msra.mxu1 %v10683_v57  ;;  %v10692_v57 = vld [vmem:[%s14123_s1 + $0x280] ss:$8 sps:$4 sm:$0xff]  }
  0xfd   :  { %1533 = vmatprep.subr.bf16.mxu1 %v10688_v60  ;;  %v10700_v60 = vld [vmem:[%s14123_s1 + $0x294] ss:$8 sps:$4 sm:$0xff]  }
 0x100   :  { %1534 = vmatpush1.bf16.msra.mxu1 %v10686_v3  ;;  %v11058_v3 = vld [vmem:[%s14124_s0 + $0x111] sm:$0xff] }
 0x101   :  { %1850 = vmatprep.subr.bf16.mxu1 %v10694_v59  ;;  %v5350_v59 = vpack.c.bf16 %v11702_v49, %v11058_v3  ;;  %v12179_v49 = vld [vmem:[%s14124_s0 + $0x141] sm:$0xff] }
 0x102   :  { %1262 = vmatmul.mubr.bf16.gmra.mrb[16].mxu1 %v1056_v46  ;;  %v10707_v46 = vld [vmem:[%s14123_s1 + $0x2a0] ss:$8 sps:$4 sm:$0xff]  }
 0x103   :  { %5515 = vmatmul.mubr.bf16.vlgmr.msra.gmra.mrb[0].mxu0 %v5345_v9  ;;  %1271 = vmatprep.mubr.bf16.mxu1 %v11076_v1 }
 0x104   :  { %5524 = vmatprep.mubr.bf16.mxu0 %v11076_v1  ;;  %5813 = vmatpush1.bf16.msra.mxu0 %v10689_v10 }
 0x105   :  { %5814 = vmatprep.subr.bf16.mxu0 %v10697_v61 }
 0x108   :  { %5815 = vmatpush1.bf16.msra.mxu0 %v10695_v8  ;;  %v11059_v8 = vld [vmem:[%s14124_s0 + $0x131] sm:$0xff] }
 0x109   :  { %5816 = vmatprep.subr.bf16.mxu0 %v10703_v48  ;;  %v5351_v48 = vpack.c.bf16 %v12179_v49, %v11059_v8 }
 0x10a   :  { %1272 = vmatmul.mubr.bf16.gmra.mrb[20].mxu1 %v11516_v19  ;;  %v10712_v19 = vld [vmem:[%s14123_s1 + $0x8c4] ss:$8 sps:$4 sm:$0xff]  }
 0x10b   :  { %5525 = vmatmul.mubr.bf16.gmra.mrb[4].mxu0 %v5346_v17  ;;  %1281 = vmatprep.mubr.bf16.mxu1 %v11076_v1 }
 0x10c   :  { %5534 = vmatprep.mubr.bf16.mxu0 %v11076_v1  ;;  %5817 = vmatpush1.bf16.msra.mxu0 %v10701_v18 }
 0x10d   :  { %v12086_v25 = vpop.f32.mrb[12].mxu1  ;;  %5818 = vmatprep.subr.bf16.mxu0 %v10706_v20  ;;  %v10725_v20 = vld [vmem:[%s14123_s1 + $0x2c0] ss:$8 sps:$4 sm:$0xff]  }
 0x10e   :  { %v12088_v27 = vpop.f32.mrb[12].mxu0  ;;  %v12093_v28 = vpop.f32.mrb[13].mxu1 }
 0x10f   :  { %v12099_v36 = vpop.f32.mrb[13].mxu0  ;;  %v267_v37 = vpop.f32.mrb[14].mxu1 }
 0x110   :  { %v4229_v38 = vpop.f32.mrb[14].mxu0  ;;  %v269_v39 = vpop.f32.mrb[15].mxu1  ;;  %5819 = vmatpush1.bf16.msra.mxu0 %v10704_v24  ;;  %v10728_v37 = vld [vmem:[%s14123_s1 + $0x2d0] ss:$8 sps:$4 sm:$0xff]  }
 0x111   :  { %v4231_v54 = vpop.f32.mrb[15].mxu0  ;;  %5820 = vmatprep.subr.bf16.mxu0 %v10712_v19  ;;  %v10730_v19 = vld [vmem:[%s14123_s1 + $0x2d4] ss:$8 sps:$4 sm:$0xff]   ;;  %v10731_v39 = vld [vmem:[%s14123_s1 + $0x2e0] ss:$8 sps:$4 sm:$0xff]  }
 0x112   :  { %1282 = vmatmul.mubr.bf16.gmra.mrb[24].mxu1 %v11547_v31  ;;  %v10721_v31 = vld [vmem:[%s14123_s1 + $0x8e4] ss:$8 sps:$4 sm:$0xff]   ;;  %v10736_v54 = vld [vmem:[%s14123_s1 + $0x2f4] ss:$8 sps:$4 sm:$0xff]  }
 0x113   :  { %5535 = vmatmul.mubr.bf16.gmra.mrb[8].mxu0 %v5347_v32  ;;  %1291 = vmatprep.mubr.bf16.mxu1 %v11076_v1  ;;  %v9438_v32 = vld [vmem:[%s14124_s0 + $0x161] sm:$0xff] }
 0x114   :  { %5544 = vmatprep.mubr.bf16.mxu0 %v11076_v1  ;;  %5821 = vmatpush1.bf16.msra.mxu0 %v10710_v41  ;;  %v5352_v38 = vpack.c.bf16 %v9438_v32, %v9437_v40  ;;  %v1374_v41 = vld [vmem:[%s14124_s0 + $0xc4] sm:$0xff]  ;;  %v10772_v40 = vld [vmem:[%s14123_s1 + $0x974] ss:$8 sps:$4 sm:$0xff]  }
 0x115   :  { %5822 = vmatprep.subr.bf16.mxu0 %v10715_v43  ;;  %v1375_v43 = vld [vmem:[%s14124_s0 + $0xd4] sm:$0xff] }
 0x116   :  { %v8895_v32 = vld [vmem:[%s14124_s0 + $0x10] sm:$0xff] }
 0x118   :  { %5823 = vmatpush1.bf16.msra.mxu0 %v10713_v44  ;;  %v10742_v44 = vld [vmem:[%s14123_s1 + $0x304] ss:$8 sps:$4 sm:$0xff]  }
 0x119   :  { %5824 = vmatprep.subr.bf16.mxu0 %v10721_v31  ;;  %v1386_v31 = vpack.c.bf16 %v1375_v43, %v1374_v41  ;;  %v10748_v41 = vld [vmem:[%s14123_s1 + $0x314] ss:$8 sps:$4 sm:$0xff]  }
 0x11a   :  { %1292 = vmatmul.mubr.bf16.gmra.mrb[52].mxu1 %v11578_v47  ;;  %v10739_v47 = vld [vmem:[%s14123_s1 + $0x904] ss:$8 sps:$4 sm:$0xff]   ;;  %v8897_v43 = vld [vmem:[%s14124_s0 + $0x30] sm:$0xff] }
 0x11b   :  { %5545 = vmatmul.mubr.bf16.gmra.mrb[52].mxu0 %v5348_v30  ;;  %1551 = vmatprep.mubr.bf16.mxu1 %v11076_v1 }
 0x11c   :  { %5554 = vmatprep.mubr.bf16.mxu0 %v11076_v1  ;;  %5825 = vmatpush1.bf16.msra.mxu0 %v10719_v51  ;;  %v10737_v51 = vld [vmem:[%s14123_s1 + $0x900] ss:$8 sps:$4 sm:$0xff]  }
 0x11d   :  { %5826 = vmatprep.subr.bf16.mxu0 %v10724_v63  ;;  %v10745_v63 = vld [vmem:[%s14123_s1 + $0x914] ss:$8 sps:$4 sm:$0xff]  }
 0x120   :  { %5827 = vmatpush1.bf16.msra.mxu0 %v10722_v53  ;;  %v10743_v53 = vld [vmem:[%s14123_s1 + $0x910] ss:$8 sps:$4 sm:$0xff]  }
 0x121   :  { %6142 = vmatprep.subr.bf16.mxu0 %v10739_v47  ;;  %v10751_v47 = vld [vmem:[%s14123_s1 + $0x924] ss:$8 sps:$4 sm:$0xff]  }
 0x122   :  { %1552 = vmatmul.mubr.bf16.vlgmr.msra.gmra.mrb[0].mxu1 %v1382_v55  ;;  %v12270_v55 = vpack.c.bf16 %v9474_v52, %v9473_v34  ;;  %v10775_v52 = vld [vmem:[%s14123_s1 + $0x344] ss:$8 sps:$4 sm:$0xff]  }
 0x123   :  { %5555 = vmatmul.mubr.bf16.gmra.mrb[20].mxu0 %v5349_v56  ;;  %1851 = vmatpush1.bf16.msra.mxu1 %v10692_v57  ;;  %v9475_v56 = vld [vmem:[%s14124_s0 + $0x72] sm:$0xff]  ;;  %v9476_v57 = vld [vmem:[%s14124_s0 + $0x82] sm:$0xff] }
 0x124   :  { %1561 = vmatprep.mubr.bf16.mxu1 %v11076_v1  ;;  %5564 = vmatprep.mubr.bf16.mxu0 %v11076_v1 }
 0x125   :  { %1852 = vmatprep.subr.bf16.mxu1 %v10700_v60  ;;  %v10752_v60 = vld [vmem:[%s14123_s1 + $0x930] ss:$8 sps:$4 sm:$0xff]  }
 0x127   :  { %1853 = vmatpush1.bf16.msra.mxu1 %v10698_v62 }
 0x128   :  { %1854 = vmatprep.subr.bf16.mxu1 %v10709_v2  ;;  %v10760_v2 = vld [vmem:[%s14123_s1 + $0x944] ss:$8 sps:$4 sm:$0xff]  }
 0x12a   :  { %1562 = vmatmul.mubr.bf16.gmra.mrb[4].mxu1 %v11633_v14  ;;  %v10727_v14 = vld [vmem:[%s14123_s1 + $0x2c4] ss:$8 sps:$4 sm:$0xff]  }
 0x12b   :  { %5565 = vmatmul.mubr.bf16.gmra.mrb[24].mxu0 %v5350_v59  ;;  %1571 = vmatprep.mubr.bf16.mxu1 %v11076_v1 }
 0x12c   :  { %5574 = vmatprep.mubr.bf16.mxu0 %v11076_v1  ;;  %1855 = vmatpush1.bf16.msra.mxu1 %v10707_v46  ;;  %v12299_v46 = vpack.c.bf16 %v9476_v57, %v9475_v56 }
 0x12d   :  { %v12184_v9 = vpop.f32.mrb[28].mxu1  ;;  %1856 = vmatprep.subr.bf16.mxu1 %v10718_v58 }
 0x12e   :  { %v12189_v10 = vpop.f32.mrb[16].mxu0  ;;  %v12191_v61 = vpop.f32.mrb[29].mxu1 }
 0x12f   :  { %v12197_v11 = vpop.f32.mrb[17].mxu0  ;;  %v307_v12 = vpop.f32.mrb[30].mxu1 }
 0x130   :  { %v4559_v17 = vpop.f32.mrb[18].mxu0  ;;  %v309_v18 = vpop.f32.mrb[31].mxu1  ;;  %1857 = vmatpush1.bf16.msra.mxu1 %v10716_v33 }
 0x131   :  { %v4561_v24 = vpop.f32.mrb[19].mxu0  ;;  %1858 = vmatprep.subr.bf16.mxu1 %v10727_v14  ;;  %v10758_v17 = vld [vmem:[%s14123_s1 + $0x940] ss:$8 sps:$4 sm:$0xff]  }
 0x132   :  { %1572 = vmatmul.mubr.bf16.gmra.mrb[8].mxu1 %v11662_v26  ;;  %v10733_v26 = vld [vmem:[%s14123_s1 + $0x2e4] ss:$8 sps:$4 sm:$0xff]  }
 0x133   :  { %5575 = vmatmul.mubr.bf16.gmra.mrb[28].mxu0 %v5351_v48  ;;  %1581 = vmatprep.mubr.bf16.mxu1 %v11076_v1  ;;  %v9478_v18 = vld [vmem:[%s14124_s0 + $0xa2] sm:$0xff] }
 0x134   :  { %5584 = vmatprep.mubr.bf16.mxu0 %v11076_v1  ;;  %1859 = vmatpush1.bf16.msra.mxu1 %v10725_v20  ;;  %v10761_v20 = vld [vmem:[%s14123_s1 + $0x950] ss:$8 sps:$4 sm:$0xff]  }
 0x135   :  { %1860 = vmatprep.subr.bf16.mxu1 %v10730_v19  ;;  %v10767_v19 = vld [vmem:[%s14123_s1 + $0x960] ss:$8 sps:$4 sm:$0xff]  }
 0x138   :  { %1861 = vmatpush1.bf16.msra.mxu1 %v10728_v37  ;;  %v8896_v37 = vld [vmem:[%s14124_s0 + $0x20] sm:$0xff] }
 0x139   :  { %1862 = vmatprep.subr.bf16.mxu1 %v10733_v26  ;;  %v10770_v26 = vld [vmem:[%s14123_s1 + $0x970] ss:$8 sps:$4 sm:$0xff]  }
 0x13a   :  { %1582 = vmatmul.mubr.bf16.gmra.mrb[56].mxu1 %v11691_v42  ;;  %v9472_v42 = vld [vmem:[%s14124_s0 + $0x42] sm:$0xff] }
 0x13b   :  { %5585 = vmatmul.mubr.bf16.gmra.mrb[56].mxu0 %v5352_v38  ;;  %1591 = vmatprep.mubr.bf16.mxu1 %v11076_v1  ;;  %v12247_v30 = vpack.c.bf16 %v9472_v42, %v9471_v35  ;;  %v1713_v38 = vpack.c.bf16 %v8896_v37, %v8895_v32  ;;  %v10757_v35 = vld [vmem:[%s14123_s1 + $0x324] ss:$8 sps:$4 sm:$0xff]  }
 0x13c   :  { %5844 = vmatprep.mubr.bf16.mxu0 %v11076_v1  ;;  %1863 = vmatpush1.bf16.msra.mxu1 %v10731_v39  ;;  %v5679_v39 = vpack.c.bf16 %v11876_v5, %v11856_v0  ;;  %v12364_v0 = vld [vmem:[%s14124_s0 + $0x40] sm:$0xff]  ;;  %v10746_v5 = vld [vmem:[%s14123_s1 + $0x310] ss:$8 sps:$4 sm:$0xff]  }
 0x13d   :  { %1864 = vmatprep.subr.bf16.mxu1 %v10736_v54  ;;  %v10740_v54 = vld [vmem:[%s14123_s1 + $0x300] ss:$8 sps:$4 sm:$0xff]   ;;  %v1714_v42 = vpack.c.bf16 %v12364_v0, %v8897_v43  ;;  %v10790_v32 = vld [vmem:[%s14123_s1 + $0x384] ss:$8 sps:$4 sm:$0xff]  }
 0x13e   :  { %v9522_v43 = vld [vmem:[%s14124_s0 + $0x63] sm:$0xff] }
 0x140   :  { %1865 = vmatpush1.bf16.msra.mxu1 %v10734_v50  ;;  %v5680_v50 = vpack.c.bf16 %v11914_v15, %v11881_v6  ;;  %v12387_v6 = vld [vmem:[%s14124_s0 + $0x50] sm:$0xff]  ;;  %v12392_v15 = vld [vmem:[%s14124_s0 + $0x60] sm:$0xff] }
 0x141   :  { %2180 = vmatprep.subr.bf16.mxu1 %v10742_v44  ;;  %v10755_v44 = vld [vmem:[%s14123_s1 + $0x320] ss:$8 sps:$4 sm:$0xff]  }
 0x142   :  { %1592 = vmatmul.mubr.bf16.gmra.mrb[16].mxu1 %v1386_v31  ;;  %v10766_v31 = vld [vmem:[%s14123_s1 + $0x334] ss:$8 sps:$4 sm:$0xff]  }
 0x143   :  { %5845 = vmatmul.mubr.bf16.vlgmr.msra.gmra.mrb[0].mxu0 %v12247_v30  ;;  %1601 = vmatprep.mubr.bf16.mxu1 %v11076_v1 }
 0x144   :  { %5854 = vmatprep.mubr.bf16.mxu0 %v11076_v1  ;;  %6143 = vmatpush1.bf16.msra.mxu0 %v10737_v51  ;;  %v12397_v51 = vld [vmem:[%s14124_s0 + $0x142] sm:$0xff] }
 0x145   :  { %6144 = vmatprep.subr.bf16.mxu0 %v10745_v63  ;;  %v10764_v63 = vld [vmem:[%s14123_s1 + $0x330] ss:$8 sps:$4 sm:$0xff]   ;;  %v5681_v56 = vpack.c.bf16 %v12397_v51, %v11919_v16 }
 0x146   :  { %v12430_v16 = vld [vmem:[%s14124_s0 + $0x70] sm:$0xff] }
 0x148   :  { %6145 = vmatpush1.bf16.msra.mxu0 %v10743_v53 }
 0x149   :  { %6146 = vmatprep.subr.bf16.mxu0 %v10751_v47 }
 0x14a   :  { %1602 = vmatmul.mubr.bf16.gmra.mrb[20].mxu1 %v11752_v13 }
 0x14b   :  { %5855 = vmatmul.mubr.bf16.gmra.mrb[4].mxu0 %v12270_v55  ;;  %1611 = vmatprep.mubr.bf16.mxu1 %v11076_v1 }
 0x14c   :  { %5864 = vmatprep.mubr.bf16.mxu0 %v11076_v1  ;;  %6147 = vmatpush1.bf16.msra.mxu0 %v10749_v4 }
 0x14d   :  { %v593_v13 = vpop.f32.mrb[32].mxu1  ;;  %6148 = vmatprep.subr.bf16.mxu0 %v10754_v45  ;;  %v1715_v45 = vpack.c.bf16 %v12392_v15, %v12387_v6 }
 0x14e   :  { %v12291_v62 = vpop.f32.mrb[32].mxu0  ;;  %v12297_v3 = vadd.f32 %v593_v13, %v12086_v25  ;;  %v595_v59 = vpop.f32.mrb[33].mxu1  ;;  %v10763_v25 = vld [vmem:[%s14123_s1 + $0x954] ss:$8 sps:$4 sm:$0xff]  }
 0x14f   :  { %v12301_v58 = vpop.f32.mrb[33].mxu0  ;;  %v12304_v33 = vadd.f32 %v595_v59, %v12093_v28  ;;  %v597_v14 = vpop.f32.mrb[34].mxu1  ;;  %v9477_v28 = vld [vmem:[%s14124_s0 + $0x92] sm:$0xff] }
 0x150   :  { %v4599_v8 = vpop.f32.mrb[34].mxu0  ;;  %v599_v48 = vpop.f32.mrb[35].mxu1  ;;  %6149 = vmatpush1.bf16.msra.mxu0 %v10752_v60  ;;  %v5678_v24 = vpack.c.bf16 %v9478_v18, %v9477_v28  ;;  %v10779_v18 = vld [vmem:[%s14123_s1 + $0x360] ss:$8 sps:$4 sm:$0xff]  }
 0x151   :  { %v4601_v12 = vpop.f32.mrb[35].mxu0  ;;  %6150 = vmatprep.subr.bf16.mxu0 %v10760_v2  ;;  %v10778_v8 = vld [vmem:[%s14123_s1 + $0x354] ss:$8 sps:$4 sm:$0xff]   ;;  %v9486_v48 = vld [vmem:[%s14124_s0 + $0x162] sm:$0xff] }
 0x152   :  { %1612 = vmatmul.mubr.bf16.gmra.mrb[24].mxu1 %v11772_v21  ;;  %v10769_v21 = vld [vmem:[%s14123_s1 + $0x964] ss:$8 sps:$4 sm:$0xff]   ;;  %v10776_v12 = vld [vmem:[%s14123_s1 + $0x350] ss:$8 sps:$4 sm:$0xff]  }
 0x153   :  { %5865 = vmatmul.mubr.bf16.gmra.mrb[8].mxu0 %v12299_v46  ;;  %1621 = vmatprep.mubr.bf16.mxu1 %v11076_v1 }
 0x154   :  { %5874 = vmatprep.mubr.bf16.mxu0 %v11076_v1  ;;  %6151 = vmatpush1.bf16.msra.mxu0 %v10758_v17  ;;  %v10781_v17 = vld [vmem:[%s14123_s1 + $0x364] ss:$8 sps:$4 sm:$0xff]  }
 0x155   :  { %6152 = vmatprep.subr.bf16.mxu0 %v10763_v25  ;;  %v1716_v25 = vpack.c.bf16 %v11889_v7, %v12430_v16  ;;  %v8904_v7 = vld [vmem:[%s14124_s0 + $0xe0] sm:$0xff] }
 0x158   :  { %6153 = vmatpush1.bf16.msra.mxu0 %v10761_v20  ;;  %v10784_v20 = vld [vmem:[%s14123_s1 + $0x374] ss:$8 sps:$4 sm:$0xff]  }
 0x159   :  { %6154 = vmatprep.subr.bf16.mxu0 %v10769_v21  ;;  %v8903_v21 = vld [vmem:[%s14124_s0 + $0xd0] sm:$0xff] }
 0x15a   :  { %1622 = vmatmul.mubr.bf16.gmra.mrb[60].mxu1 %v11796_v29  ;;  %v10787_v29 = vld [vmem:[%s14123_s1 + $0x984] ss:$8 sps:$4 sm:$0xff]   ;;  %v1717_v37 = vpack.c.bf16 %v8904_v7, %v8903_v21  ;;  %v10809_v7 = vld [vmem:[%s14123_s1 + $0x9d0] ss:$8 sps:$4 sm:$0xff]  }
 0x15b   :  { %5875 = vmatmul.mubr.bf16.gmra.mrb[60].mxu0 %v5678_v24  ;;  %1882 = vmatprep.mubr.bf16.mxu1 %v11076_v1  ;;  %v9519_v24 = vld [vmem:[%s14124_s0 + $0x33] sm:$0xff]  ;;  %v9526_v21 = vld [vmem:[%s14124_s0 + $0xa3] sm:$0xff] }
 0x15c   :  { %5884 = vmatprep.mubr.bf16.mxu0 %v11076_v1  ;;  %6155 = vmatpush1.bf16.msra.mxu0 %v10767_v19  ;;  %v9520_v19 = vld [vmem:[%s14124_s0 + $0x43] sm:$0xff] }
 0x15d   :  { %6156 = vmatprep.subr.bf16.mxu0 %v10772_v40  ;;  %v10782_v40 = vld [vmem:[%s14123_s1 + $0x370] ss:$8 sps:$4 sm:$0xff]  }
 0x160   :  { %6157 = vmatpush1.bf16.msra.mxu0 %v10770_v26  ;;  %v12472_v26 = vpack.c.bf16 %v9520_v19, %v9519_v24  ;;  %v10817_v24 = vld [vmem:[%s14123_s1 + $0x9e4] ss:$8 sps:$4 sm:$0xff]  }
 0x161   :  { %6472 = vmatprep.subr.bf16.mxu0 %v10787_v29  ;;  %v10785_v29 = vld [vmem:[%s14123_s1 + $0x980] ss:$8 sps:$4 sm:$0xff]  }
 0x162   :  { %1883 = vmatmul.mubr.bf16.vlgmr.msra.gmra.mrb[0].mxu1 %v1713_v38  ;;  %v10793_v38 = vld [vmem:[%s14123_s1 + $0x994] ss:$8 sps:$4 sm:$0xff]  }
 0x163   :  { %5885 = vmatmul.mubr.bf16.gmra.mrb[20].mxu0 %v5679_v39  ;;  %2181 = vmatpush1.bf16.msra.mxu1 %v10740_v54  ;;  %v8905_v39 = vld [vmem:[%s14124_s0 + $0xf0] sm:$0xff]  ;;  %v12489_v54 = vld [vmem:[%s14124_s0 + $0x100] sm:$0xff] }
 0x164   :  { %1892 = vmatprep.mubr.bf16.mxu1 %v11076_v1  ;;  %5894 = vmatprep.mubr.bf16.mxu0 %v11076_v1 }
 0x165   :  { %2182 = vmatprep.subr.bf16.mxu1 %v10748_v41  ;;  %v9521_v41 = vld [vmem:[%s14124_s0 + $0x53] sm:$0xff] }
 0x167   :  { %2183 = vmatpush1.bf16.msra.mxu1 %v10746_v5  ;;  %v10791_v5 = vld [vmem:[%s14123_s1 + $0x990] ss:$8 sps:$4 sm:$0xff]  }
 0x168   :  { %2184 = vmatprep.subr.bf16.mxu1 %v10757_v35  ;;  %v10799_v35 = vld [vmem:[%s14123_s1 + $0x9a4] ss:$8 sps:$4 sm:$0xff]  }
 0x16a   :  { %1893 = vmatmul.mubr.bf16.gmra.mrb[4].mxu1 %v1714_v42  ;;  %v1718_v42 = vpack.c.bf16 %v12489_v54, %v8905_v39  ;;  %v9528_v39 = vld [vmem:[%s14124_s0 + $0x103] sm:$0xff] }
 0x16b   :  { %5895 = vmatmul.mubr.bf16.gmra.mrb[24].mxu0 %v5680_v50  ;;  %1902 = vmatprep.mubr.bf16.mxu1 %v11076_v1  ;;  %v12504_v50 = vpack.c.bf16 %v9522_v43, %v9521_v41  ;;  %v10818_v41 = vld [vmem:[%s14123_s1 + $0x9f0] ss:$8 sps:$4 sm:$0xff]   ;;  %v10835_v43 = vld [vmem:[%s14123_s1 + $0xa04] ss:$8 sps:$4 sm:$0xff]  }
 0x16c   :  { %5904 = vmatprep.mubr.bf16.mxu0 %v11076_v1  ;;  %2185 = vmatpush1.bf16.msra.mxu1 %v10755_v44  ;;  %v10797_v44 = vld [vmem:[%s14123_s1 + $0x9a0] ss:$8 sps:$4 sm:$0xff]  }
 0x16d   :  { %v633_v34 = vpop.f32.mrb[36].mxu1  ;;  %2186 = vmatprep.subr.bf16.mxu1 %v10766_v31  ;;  %v10802_v31 = vld [vmem:[%s14123_s1 + $0x9b4] ss:$8 sps:$4 sm:$0xff]  }
 0x16e   :  { %v12405_v53 = vpop.f32.mrb[36].mxu0  ;;  %v12408_v47 = vadd.f32 %v633_v34, %v12184_v9  ;;  %v635_v4 = vpop.f32.mrb[37].mxu1  ;;  %v10773_v9 = vld [vmem:[%s14123_s1 + $0x340] ss:$8 sps:$4 sm:$0xff]  }
 0x16f   :  { %v12414_v57 = vpop.f32.mrb[37].mxu0  ;;  %v12417_v60 = vadd.f32 %v635_v4, %v12191_v61  ;;  %v637_v13 = vpop.f32.mrb[38].mxu1  ;;  %v9485_v61 = vld [vmem:[%s14124_s0 + $0x152] sm:$0xff]  ;;  %v12523_v34 = vld [vmem:[%s14124_s0 + $0x120] sm:$0xff] }
 0x170   :  { %v4889_v2 = vpop.f32.mrb[38].mxu0  ;;  %v639_v59 = vpop.f32.mrb[39].mxu1  ;;  %2187 = vmatpush1.bf16.msra.mxu1 %v10764_v63  ;;  %v5682_v28 = vpack.c.bf16 %v9486_v48, %v9485_v61  ;;  %v12516_v63 = vld [vmem:[%s14124_s0 + $0x110] sm:$0xff]  ;;  %v9524_v4 = vld [vmem:[%s14124_s0 + $0x83] sm:$0xff] }
 0x171   :  { %v4891_v14 = vpop.f32.mrb[39].mxu0  ;;  %2188 = vmatprep.subr.bf16.mxu1 %v10775_v52  ;;  %v9523_v52 = vld [vmem:[%s14124_s0 + $0x73] sm:$0xff]  ;;  %v10808_v2 = vld [vmem:[%s14123_s1 + $0x9c4] ss:$8 sps:$4 sm:$0xff]  }
 0x172   :  { %1903 = vmatmul.mubr.bf16.gmra.mrb[8].mxu1 %v1715_v45  ;;  %v10800_v45 = vld [vmem:[%s14123_s1 + $0x9b0] ss:$8 sps:$4 sm:$0xff]   ;;  %v1719_v14 = vpack.c.bf16 %v12523_v34, %v12516_v63 }
 0x173   :  { %5905 = vmatmul.mubr.bf16.gmra.mrb[28].mxu0 %v5681_v56  ;;  %1912 = vmatprep.mubr.bf16.mxu1 %v11076_v1 }
 0x174   :  { %5914 = vmatprep.mubr.bf16.mxu0 %v11076_v1  ;;  %2189 = vmatpush1.bf16.msra.mxu1 %v10773_v9 }
 0x175   :  { %2190 = vmatprep.subr.bf16.mxu1 %v10778_v8  ;;  %v12544_v8 = vpack.c.bf16 %v9524_v4, %v9523_v52  ;;  %v12617_v52 = vld [vmem:[%s14124_s0 + $0x41] sm:$0xff]  ;;  %v10794_v4 = vld [vmem:[%s14123_s1 + $0x390] ss:$8 sps:$4 sm:$0xff]  }
 0x178   :  { %2191 = vmatpush1.bf16.msra.mxu1 %v10776_v12 }
 0x179   :  { %2192 = vmatprep.subr.bf16.mxu1 %v10781_v17 }
 0x17a   :  { %1913 = vmatmul.mubr.bf16.gmra.mrb[64].mxu1 %v1716_v25 }
 0x17b   :  { %5915 = vmatmul.mubr.bf16.gmra.mrb[64].mxu0 %v5682_v28  ;;  %1922 = vmatprep.mubr.bf16.mxu1 %v11076_v1 }
 0x17c   :  { %6174 = vmatprep.mubr.bf16.mxu0 %v11076_v1  ;;  %2193 = vmatpush1.bf16.msra.mxu1 %v10779_v18  ;;  %v10811_v18 = vld [vmem:[%s14123_s1 + $0x9d4] ss:$8 sps:$4 sm:$0xff]  }
 0x17d   :  { %2194 = vmatprep.subr.bf16.mxu1 %v10784_v20  ;;  %v9525_v20 = vld [vmem:[%s14124_s0 + $0x93] sm:$0xff] }
 0x180   :  { %2195 = vmatpush1.bf16.msra.mxu1 %v10782_v40  ;;  %v6008_v40 = vpack.c.bf16 %v9526_v21, %v9525_v20  ;;  %v10812_v20 = vld [vmem:[%s14123_s1 + $0x3b0] ss:$8 sps:$4 sm:$0xff]  }
 0x181   :  { %2510 = vmatprep.subr.bf16.mxu1 %v10790_v32  ;;  %v10815_v32 = vld [vmem:[%s14123_s1 + $0x9e0] ss:$8 sps:$4 sm:$0xff]  }
 0x182   :  { %1923 = vmatmul.mubr.bf16.gmra.mrb[16].mxu1 %v1717_v37  ;;  %v10820_v37 = vld [vmem:[%s14123_s1 + $0x9f4] ss:$8 sps:$4 sm:$0xff]  }
 0x183   :  { %6175 = vmatmul.mubr.bf16.vlgmr.msra.gmra.mrb[0].mxu0 %v12472_v26  ;;  %1932 = vmatprep.mubr.bf16.mxu1 %v11076_v1 }
 0x184   :  { %6184 = vmatprep.mubr.bf16.mxu0 %v11076_v1  ;;  %6473 = vmatpush1.bf16.msra.mxu0 %v10785_v29  ;;  %v8943_v29 = vld [vmem:[%s14124_s0 + $0x11] sm:$0xff] }
 0x185   :  { %6474 = vmatprep.subr.bf16.mxu0 %v10793_v38  ;;  %v9527_v38 = vld [vmem:[%s14124_s0 + $0xf3] sm:$0xff] }
 0x188   :  { %6475 = vmatpush1.bf16.msra.mxu0 %v10791_v5 }
 0x189   :  { %6476 = vmatprep.subr.bf16.mxu0 %v10799_v35  ;;  %v6009_v35 = vpack.c.bf16 %v9528_v39, %v9527_v38 }
 0x18a   :  { %1933 = vmatmul.mubr.bf16.gmra.mrb[20].mxu1 %v1718_v42  ;;  %v10788_v42 = vld [vmem:[%s14123_s1 + $0x380] ss:$8 sps:$4 sm:$0xff]  }
 0x18b   :  { %6185 = vmatmul.mubr.bf16.gmra.mrb[4].mxu0 %v12504_v50  ;;  %1942 = vmatprep.mubr.bf16.mxu1 %v11076_v1 }
 0x18c   :  { %6194 = vmatprep.mubr.bf16.mxu0 %v11076_v1  ;;  %6477 = vmatpush1.bf16.msra.mxu0 %v10797_v44  ;;  %v10796_v44 = vld [vmem:[%s14123_s1 + $0x394] ss:$8 sps:$4 sm:$0xff]  }
 0x18d   :  { %v923_v56 = vpop.f32.mrb[40].mxu1  ;;  %6478 = vmatprep.subr.bf16.mxu0 %v10802_v31  ;;  %v8945_v31 = vld [vmem:[%s14124_s0 + $0x31] sm:$0xff] }
 0x18e   :  { %v12534_v13 = vpop.f32.mrb[40].mxu0  ;;  %v12540_v59 = vadd.f32 %v923_v56, %v12297_v3  ;;  %v925_v9 = vpop.f32.mrb[41].mxu1  ;;  %v10806_v3 = vld [vmem:[%s14123_s1 + $0x9c0] ss:$8 sps:$4 sm:$0xff]  }
 0x18f   :  { %v12546_v61 = vpop.f32.mrb[41].mxu0  ;;  %v12549_v48 = vadd.f32 %v925_v9, %v12304_v33  ;;  %v927_v12 = vpop.f32.mrb[42].mxu1  ;;  %v12563_v33 = vld [vmem:[%s14124_s0 + $0x130] sm:$0xff]  ;;  %v9530_v56 = vld [vmem:[%s14124_s0 + $0x123] sm:$0xff]  ;;  %v2044_v9 = vpack.c.bf16 %v12617_v52, %v8945_v31 }
 0x190   :  { %v4929_v17 = vpop.f32.mrb[42].mxu0  ;;  %v929_v25 = vpop.f32.mrb[43].mxu1  ;;  %6479 = vmatpush1.bf16.msra.mxu0 %v10800_v45  ;;  %v1720_v19 = vpack.c.bf16 %v11987_v22, %v12563_v33  ;;  %v8944_v22 = vld [vmem:[%s14124_s0 + $0x21] sm:$0xff]  ;;  %v9529_v45 = vld [vmem:[%s14124_s0 + $0x113] sm:$0xff] }
 0x191   :  { %v4931_v28 = vpop.f32.mrb[43].mxu0  ;;  %6480 = vmatprep.subr.bf16.mxu0 %v10808_v2  ;;  %v2043_v5 = vpack.c.bf16 %v8944_v22, %v8943_v29  ;;  %v10805_v2 = vld [vmem:[%s14123_s1 + $0x3a4] ss:$8 sps:$4 sm:$0xff]   ;;  %v10803_v12 = vld [vmem:[%s14123_s1 + $0x3a0] ss:$8 sps:$4 sm:$0xff]   ;;  %v12643_v25 = vld [vmem:[%s14124_s0 + $0x51] sm:$0xff] }
 0x192   :  { %1943 = vmatmul.mubr.bf16.gmra.mrb[24].mxu1 %v1719_v14  ;;  %v6010_v14 = vpack.c.bf16 %v9530_v56, %v9529_v45  ;;  %v10814_v17 = vld [vmem:[%s14123_s1 + $0x3b4] ss:$8 sps:$4 sm:$0xff]   ;;  %v12650_v28 = vld [vmem:[%s14124_s0 + $0x61] sm:$0xff] }
 0x193   :  { %6195 = vmatmul.mubr.bf16.gmra.mrb[8].mxu0 %v12544_v8  ;;  %1952 = vmatprep.mubr.bf16.mxu1 %v11076_v1  ;;  %v10829_v31 = vld [vmem:[%s14123_s1 + $0x3e4] ss:$8 sps:$4 sm:$0xff]   ;;  %v10827_v56 = vld [vmem:[%s14123_s1 + $0x3e0] ss:$8 sps:$4 sm:$0xff]  }
 0x194   :  { %6204 = vmatprep.mubr.bf16.mxu0 %v11076_v1  ;;  %6481 = vmatpush1.bf16.msra.mxu0 %v10806_v3  ;;  %v9531_v3 = vld [vmem:[%s14124_s0 + $0x133] sm:$0xff] }
 0x195   :  { %6482 = vmatprep.subr.bf16.mxu0 %v10811_v18  ;;  %v9532_v18 = vld [vmem:[%s14124_s0 + $0x143] sm:$0xff] }
 0x198   :  { %6483 = vmatpush1.bf16.msra.mxu0 %v10809_v7  ;;  %v10823_v7 = vld [vmem:[%s14123_s1 + $0x3c4] ss:$8 sps:$4 sm:$0xff]  }
 0x199   :  { %6484 = vmatprep.subr.bf16.mxu0 %v10817_v24 }
 0x19a   :  { %1953 = vmatmul.mubr.bf16.gmra.mrb[68].mxu1 %v1720_v19 }
 0x19b   :  { %6205 = vmatmul.mubr.bf16.gmra.mrb[68].mxu0 %v6008_v40  ;;  %2212 = vmatprep.mubr.bf16.mxu1 %v11076_v1 }
 0x19c   :  { %6214 = vmatprep.mubr.bf16.mxu0 %v11076_v1  ;;  %6485 = vmatpush1.bf16.msra.mxu0 %v10815_v32  ;;  %v2045_v32 = vpack.c.bf16 %v12650_v28, %v12643_v25 }
 0x19d   :  { %6486 = vmatprep.subr.bf16.mxu0 %v10820_v37  ;;  %v12671_v37 = vpack.c.bf16 %v9532_v18, %v9531_v3  ;;  %v10838_v3 = vld [vmem:[%s14123_s1 + $0x404] ss:$8 sps:$4 sm:$0xff]  }
 0x1a0   :  { %6487 = vmatpush1.bf16.msra.mxu0 %v10818_v41 }
 0x1a1   :  { %6803 = vmatprep.subr.bf16.mxu0 %v10835_v43 }
 0x1a2   :  { %2213 = vmatmul.mubr.bf16.vlgmr.msra.gmra.mrb[0].mxu1 %v2043_v5  ;;  %v10826_v5 = vld [vmem:[%s14123_s1 + $0x3d4] ss:$8 sps:$4 sm:$0xff]  }
 0x1a3   :  { %6215 = vmatmul.mubr.bf16.gmra.mrb[20].mxu0 %v6009_v35  ;;  %2511 = vmatpush1.bf16.msra.mxu1 %v10788_v42  ;;  %v9533_v35 = vld [vmem:[%s14124_s0 + $0x153] sm:$0xff]  ;;  %v9534_v42 = vld [vmem:[%s14124_s0 + $0x163] sm:$0xff] }
 0x1a4   :  { %2222 = vmatprep.mubr.bf16.mxu1 %v11076_v1  ;;  %6224 = vmatprep.mubr.bf16.mxu0 %v11076_v1  ;;  %v6012_v45 = vpack.c.bf16 %v9534_v42, %v9533_v35  ;;  %v10845_v35 = vld [vmem:[%s14123_s1 + $0xa20] ss:$8 sps:$4 sm:$0xff]   ;;  %v10850_v42 = vld [vmem:[%s14123_s1 + $0xa34] ss:$8 sps:$4 sm:$0xff]  }
 0x1a5   :  { %2512 = vmatprep.subr.bf16.mxu1 %v10796_v44  ;;  %v10824_v44 = vld [vmem:[%s14123_s1 + $0x3d0] ss:$8 sps:$4 sm:$0xff]  }
 0x1a7   :  { %2513 = vmatpush1.bf16.msra.mxu1 %v10794_v4 }
 0x1a8   :  { %2514 = vmatprep.subr.bf16.mxu1 %v10805_v2  ;;  %v10832_v2 = vld [vmem:[%s14123_s1 + $0x3f4] ss:$8 sps:$4 sm:$0xff]  }
 0x1aa   :  { %2223 = vmatmul.mubr.bf16.gmra.mrb[4].mxu1 %v2044_v9  ;;  %v8951_v9 = vld [vmem:[%s14124_s0 + $0xd1] sm:$0xff] }
 0x1ab   :  { %6225 = vmatmul.mubr.bf16.gmra.mrb[24].mxu0 %v6010_v14  ;;  %2232 = vmatprep.mubr.bf16.mxu1 %v11076_v1  ;;  %v9567_v14 = vld [vmem:[%s14124_s0 + $0x34] sm:$0xff] }
 0x1ac   :  { %6234 = vmatprep.mubr.bf16.mxu0 %v11076_v1  ;;  %2515 = vmatpush1.bf16.msra.mxu1 %v10803_v12  ;;  %v9568_v12 = vld [vmem:[%s14124_s0 + $0x44] sm:$0xff] }
 0x1ad   :  { %v963_v21 = vpop.f32.mrb[44].mxu1  ;;  %2516 = vmatprep.subr.bf16.mxu1 %v10814_v17  ;;  %v10830_v17 = vld [vmem:[%s14123_s1 + $0x3f0] ss:$8 sps:$4 sm:$0xff]  }
 0x1ae   :  { %v12664_v24 = vpop.f32.mrb[44].mxu0  ;;  %v12667_v19 = vadd.f32 %v963_v21, %v12408_v47  ;;  %v965_v40 = vpop.f32.mrb[45].mxu1  ;;  %v10821_v47 = vld [vmem:[%s14123_s1 + $0x3c0] ss:$8 sps:$4 sm:$0xff]  }
 0x1af   :  { %v12673_v29 = vpop.f32.mrb[45].mxu0  ;;  %v12676_v22 = vadd.f32 %v965_v40, %v12417_v60  ;;  %v967_v38 = vpop.f32.mrb[46].mxu1  ;;  %v12690_v60 = vld [vmem:[%s14124_s0 + $0x71] sm:$0xff]  ;;  %v10833_v21 = vld [vmem:[%s14123_s1 + $0xa00] ss:$8 sps:$4 sm:$0xff]  }
 0x1b0   :  { %v5220_v39 = vpop.f32.mrb[46].mxu0  ;;  %v969_v41 = vpop.f32.mrb[47].mxu1  ;;  %2517 = vmatpush1.bf16.msra.mxu1 %v10812_v20  ;;  %v2046_v4 = vpack.c.bf16 %v12081_v23, %v12690_v60  ;;  %v8952_v23 = vld [vmem:[%s14124_s0 + $0xe1] sm:$0xff]  ;;  %v12732_v20 = vpack.c.bf16 %v9568_v12, %v9567_v14  ;;  %v8953_v40 = vld [vmem:[%s14124_s0 + $0xf1] sm:$0xff] }
 0x1b1   :  { %v5222_v43 = vpop.f32.mrb[47].mxu0  ;;  %2518 = vmatprep.subr.bf16.mxu1 %v10823_v7  ;;  %v2047_v18 = vpack.c.bf16 %v8952_v23, %v8951_v9  ;;  %v10841_v7 = vld [vmem:[%s14123_s1 + $0xa14] ss:$8 sps:$4 sm:$0xff]   ;;  %v9570_v39 = vld [vmem:[%s14124_s0 + $0x64] sm:$0xff]  ;;  %v10839_v41 = vld [vmem:[%s14123_s1 + $0xa10] ss:$8 sps:$4 sm:$0xff]  }
 0x1b2   :  { %2233 = vmatmul.mubr.bf16.gmra.mrb[8].mxu1 %v2045_v32  ;;  %v12749_v32 = vld [vmem:[%s14124_s0 + $0x101] sm:$0xff]  ;;  %v9569_v38 = vld [vmem:[%s14124_s0 + $0x54] sm:$0xff] }
 0x1b3   :  { %6235 = vmatmul.mubr.bf16.gmra.mrb[28].mxu0 %v12671_v37  ;;  %2242 = vmatprep.mubr.bf16.mxu1 %v11076_v1  ;;  %v2048_v43 = vpack.c.bf16 %v12749_v32, %v8953_v40  ;;  %v10856_v23 = vld [vmem:[%s14123_s1 + $0xa44] ss:$8 sps:$4 sm:$0xff]  }
 0x1b4   :  { %6244 = vmatprep.mubr.bf16.mxu0 %v11076_v1  ;;  %2519 = vmatpush1.bf16.msra.mxu1 %v10821_v47  ;;  %v10847_v47 = vld [vmem:[%s14123_s1 + $0xa24] ss:$8 sps:$4 sm:$0xff]  }
 0x1b5   :  { %2520 = vmatprep.subr.bf16.mxu1 %v10826_v5  ;;  %v12764_v5 = vpack.c.bf16 %v9570_v39, %v9569_v38 }
 0x1b8   :  { %2521 = vmatpush1.bf16.msra.mxu1 %v10824_v44  ;;  %v12776_v44 = vld [vmem:[%s14124_s0 + $0x111] sm:$0xff] }
 0x1b9   :  { %2522 = vmatprep.subr.bf16.mxu1 %v10829_v31  ;;  %v12783_v31 = vld [vmem:[%s14124_s0 + $0x121] sm:$0xff] }
 0x1ba   :  { %2243 = vmatmul.mubr.bf16.gmra.mrb[72].mxu1 %v2046_v4  ;;  %v9571_v4 = vld [vmem:[%s14124_s0 + $0x74] sm:$0xff] }
 0x1bb   :  { %6245 = vmatmul.mubr.bf16.gmra.mrb[72].mxu0 %v6012_v45  ;;  %2252 = vmatprep.mubr.bf16.mxu1 %v11076_v1  ;;  %v9572_v45 = vld [vmem:[%s14124_s0 + $0x84] sm:$0xff] }
 0x1bc   :  { %6504 = vmatprep.mubr.bf16.mxu0 %v11076_v1  ;;  %2523 = vmatpush1.bf16.msra.mxu1 %v10827_v56  ;;  %v10848_v56 = vld [vmem:[%s14123_s1 + $0xa30] ss:$8 sps:$4 sm:$0xff]  }
 0x1bd   :  { %2524 = vmatprep.subr.bf16.mxu1 %v10832_v2 }
 0x1c0   :  { %2525 = vmatpush1.bf16.msra.mxu1 %v10830_v17  ;;  %v2049_v17 = vpack.c.bf16 %v12783_v31, %v12776_v44 }
 0x1c1   :  { %2840 = vmatprep.subr.bf16.mxu1 %v10838_v3  ;;  %v12804_v3 = vpack.c.bf16 %v9572_v45, %v9571_v4 }
 0x1c2   :  { %2253 = vmatmul.mubr.bf16.gmra.mrb[16].mxu1 %v2047_v18 }
 0x1c3   :  { %6505 = vmatmul.mubr.bf16.vlgmr.msra.gmra.mrb[0].mxu0 %v12732_v20  ;;  %2262 = vmatprep.mubr.bf16.mxu1 %v11076_v1 }
 0x1c4   :  { %6514 = vmatprep.mubr.bf16.mxu0 %v11076_v1  ;;  %6804 = vmatpush1.bf16.msra.mxu0 %v10833_v21 }
 0x1c5   :  { %6805 = vmatprep.subr.bf16.mxu0 %v10841_v7 }
 0x1c8   :  { %6806 = vmatpush1.bf16.msra.mxu0 %v10839_v41  ;;  %v10859_v41 = vld [vmem:[%s14123_s1 + $0xa54] ss:$8 sps:$4 sm:$0xff]  }
 0x1c9   :  { %6807 = vmatprep.subr.bf16.mxu0 %v10847_v47  ;;  %v9573_v47 = vld [vmem:[%s14124_s0 + $0x94] sm:$0xff] }
 0x1ca   :  { %2263 = vmatmul.mubr.bf16.gmra.mrb[20].mxu1 %v2048_v43  ;;  %v9574_v43 = vld [vmem:[%s14124_s0 + $0xa4] sm:$0xff] }
 0x1cb   :  { %6515 = vmatmul.mubr.bf16.gmra.mrb[4].mxu0 %v12764_v5  ;;  %2272 = vmatprep.mubr.bf16.mxu1 %v11076_v1  ;;  %v6338_v45 = vpack.c.bf16 %v9574_v43, %v9573_v47  ;;  %v10842_v47 = vld [vmem:[%s14123_s1 + $0x410] ss:$8 sps:$4 sm:$0xff]  }
 0x1cc   :  { %6524 = vmatprep.mubr.bf16.mxu0 %v11076_v1  ;;  %6808 = vmatpush1.bf16.msra.mxu0 %v10845_v35  ;;  %v10857_v35 = vld [vmem:[%s14123_s1 + $0xa50] ss:$8 sps:$4 sm:$0xff]  }
 0x1cd   :  { %v1253_v2 = vpop.f32.mrb[48].mxu1  ;;  %6809 = vmatprep.subr.bf16.mxu0 %v10850_v42  ;;  %v10865_v42 = vld [vmem:[%s14123_s1 + $0xa64] ss:$8 sps:$4 sm:$0xff]   ;;  %v9577_v43 = vld [vmem:[%s14124_s0 + $0x114] sm:$0xff] }
 0x1ce   :  { %v12794_v9 = vpop.f32.mrb[48].mxu0  ;;  %v12800_v14 = vadd.f32 %v1253_v2, %v12540_v59  ;;  %v1255_v12 = vpop.f32.mrb[49].mxu1  ;;  %v10854_v59 = vld [vmem:[%s14123_s1 + $0xa40] ss:$8 sps:$4 sm:$0xff]   ;;  %v10868_v2 = vld [vmem:[%s14123_s1 + $0xa74] ss:$8 sps:$4 sm:$0xff]  }
 0x1cf   :  { %v12806_v18 = vpop.f32.mrb[49].mxu0  ;;  %v12809_v21 = vadd.f32 %v1255_v12, %v12549_v48  ;;  %v1257_v7 = vpop.f32.mrb[50].mxu1  ;;  %v12823_v48 = vld [vmem:[%s14124_s0 + $0x131] sm:$0xff] }
 0x1d0   :  { %v5260_v40 = vpop.f32.mrb[50].mxu0  ;;  %v1259_v38 = vpop.f32.mrb[51].mxu1  ;;  %6810 = vmatpush1.bf16.msra.mxu0 %v10848_v56  ;;  %v2050_v4 = vpack.c.bf16 %v12179_v49, %v12823_v48  ;;  %v10863_v56 = vld [vmem:[%s14123_s1 + $0xa60] ss:$8 sps:$4 sm:$0xff]   ;;  %v9575_v12 = vld [vmem:[%s14124_s0 + $0xf4] sm:$0xff] }
 0x1d1   :  { %v5262_v39 = vpop.f32.mrb[51].mxu0  ;;  %6811 = vmatprep.subr.bf16.mxu0 %v10856_v23  ;;  %v8991_v23 = vld [vmem:[%s14124_s0 + $0x12] sm:$0xff]  ;;  %v8992_v49 = vld [vmem:[%s14124_s0 + $0x22] sm:$0xff] }
 0x1d2   :  { %2273 = vmatmul.mubr.bf16.gmra.mrb[24].mxu1 %v2049_v17  ;;  %v9576_v17 = vld [vmem:[%s14124_s0 + $0x104] sm:$0xff]  ;;  %v10866_v7 = vld [vmem:[%s14123_s1 + $0xa70] ss:$8 sps:$4 sm:$0xff]   ;;  %v2373_v38 = vpack.c.bf16 %v8992_v49, %v8991_v23 }
 0x1d3   :  { %6525 = vmatmul.mubr.bf16.gmra.mrb[8].mxu0 %v12804_v3  ;;  %2282 = vmatprep.mubr.bf16.mxu1 %v11076_v1  ;;  %v10883_v40 = vld [vmem:[%s14123_s1 + $0xa84] ss:$8 sps:$4 sm:$0xff]   ;;  %v6339_v39 = vpack.c.bf16 %v9576_v17, %v9575_v12  ;;  %v10860_v49 = vld [vmem:[%s14123_s1 + $0x430] ss:$8 sps:$4 sm:$0xff]  }
 0x1d4   :  { %6534 = vmatprep.mubr.bf16.mxu0 %v11076_v1  ;;  %6812 = vmatpush1.bf16.msra.mxu0 %v10854_v59  ;;  %v10836_v59 = vld [vmem:[%s14123_s1 + $0x400] ss:$8 sps:$4 sm:$0xff]  }
 0x1d5   :  { %6813 = vmatprep.subr.bf16.mxu0 %v10859_v41  ;;  %v10844_v41 = vld [vmem:[%s14123_s1 + $0x414] ss:$8 sps:$4 sm:$0xff]   ;;  %v9580_v23 = vld [vmem:[%s14124_s0 + $0x144] sm:$0xff] }
 0x1d8   :  { %6814 = vmatpush1.bf16.msra.mxu0 %v10857_v35  ;;  %v9578_v35 = vld [vmem:[%s14124_s0 + $0x124] sm:$0xff] }
 0x1d9   :  { %6815 = vmatprep.subr.bf16.mxu0 %v10865_v42  ;;  %v10853_v42 = vld [vmem:[%s14123_s1 + $0x424] ss:$8 sps:$4 sm:$0xff]  }
 0x1da   :  { %2283 = vmatmul.mubr.bf16.gmra.mrb[76].mxu1 %v2050_v4  ;;  %v6340_v4 = vpack.c.bf16 %v9578_v35, %v9577_v43  ;;  %v10869_v35 = vld [vmem:[%s14123_s1 + $0x440] ss:$8 sps:$4 sm:$0xff]  }
 0x1db   :  { %6535 = vmatmul.mubr.bf16.gmra.mrb[76].mxu0 %v6338_v45  ;;  %2542 = vmatprep.mubr.bf16.mxu1 %v11076_v1  ;;  %v10851_v45 = vld [vmem:[%s14123_s1 + $0x420] ss:$8 sps:$4 sm:$0xff]  }
 0x1dc   :  { %6544 = vmatprep.mubr.bf16.mxu0 %v11076_v1  ;;  %6816 = vmatpush1.bf16.msra.mxu0 %v10863_v56  ;;  %v10862_v56 = vld [vmem:[%s14123_s1 + $0x434] ss:$8 sps:$4 sm:$0xff]  }
 0x1dd   :  { %6817 = vmatprep.subr.bf16.mxu0 %v10868_v2  ;;  %v9579_v2 = vld [vmem:[%s14124_s0 + $0x134] sm:$0xff] }
 0x1e0   :  { %6818 = vmatpush1.bf16.msra.mxu0 %v10866_v7 }
 0x1e1   :  { %7133 = vmatprep.subr.bf16.mxu0 %v10883_v40 }
 0x1e2   :  { %2543 = vmatmul.mubr.bf16.vlgmr.msra.gmra.mrb[0].mxu1 %v2373_v38  ;;  %v12911_v38 = vpack.c.bf16 %v9580_v23, %v9579_v2  ;;  %v10875_v2 = vld [vmem:[%s14123_s1 + $0x460] ss:$8 sps:$4 sm:$0xff]   ;;  %v10880_v23 = vld [vmem:[%s14123_s1 + $0x474] ss:$8 sps:$4 sm:$0xff]  }
 0x1e3   :  { %6545 = vmatmul.mubr.bf16.gmra.mrb[20].mxu0 %v6339_v39  ;;  %2841 = vmatpush1.bf16.msra.mxu1 %v10836_v59 }
 0x1e4   :  { %2552 = vmatprep.mubr.bf16.mxu1 %v11076_v1  ;;  %6554 = vmatprep.mubr.bf16.mxu0 %v11076_v1 }
 0x1e5   :  { %2842 = vmatprep.subr.bf16.mxu1 %v10844_v41 }
 0x1e7   :  { %2843 = vmatpush1.bf16.msra.mxu1 %v10842_v47 }
 0x1e8   :  { %2844 = vmatprep.subr.bf16.mxu1 %v10853_v42 }
 0x1ea   :  { %2553 = vmatmul.mubr.bf16.gmra.mrb[4].mxu1 %v12247_v30  ;;  %v10871_v30 = vld [vmem:[%s14123_s1 + $0x444] ss:$8 sps:$4 sm:$0xff]  }
 0x1eb   :  { %6555 = vmatmul.mubr.bf16.gmra.mrb[24].mxu0 %v6340_v4  ;;  %2562 = vmatprep.mubr.bf16.mxu1 %v11076_v1  ;;  %v9582_v4 = vld [vmem:[%s14124_s0 + $0x164] sm:$0xff] }
 0x1ec   :  { %6564 = vmatprep.mubr.bf16.mxu0 %v11076_v1  ;;  %2845 = vmatpush1.bf16.msra.mxu1 %v10851_v45  ;;  %v10872_v45 = vld [vmem:[%s14123_s1 + $0x450] ss:$8 sps:$4 sm:$0xff]  }
 0x1ed   :  { %v1293_v12 = vpop.f32.mrb[52].mxu1  ;;  %2846 = vmatprep.subr.bf16.mxu1 %v10862_v56 }
 0x1ee   :  { %v12906_v17 = vpop.f32.mrb[52].mxu0  ;;  %v12909_v7 = vadd.f32 %v1293_v12, %v12667_v19  ;;  %v1295_v40 = vpop.f32.mrb[53].mxu1  ;;  %v10874_v19 = vld [vmem:[%s14123_s1 + $0x454] ss:$8 sps:$4 sm:$0xff]   ;;  %v9000_v12 = vld [vmem:[%s14124_s0 + $0xe2] sm:$0xff] }
 0x1ef   :  { %v12913_v39 = vpop.f32.mrb[53].mxu0  ;;  %v12916_v59 = vadd.f32 %v1295_v40, %v12676_v22  ;;  %v1297_v41 = vpop.f32.mrb[54].mxu1  ;;  %v9581_v22 = vld [vmem:[%s14124_s0 + $0x154] sm:$0xff] }
 0x1f0   :  { %v5550_v47 = vpop.f32.mrb[54].mxu0  ;;  %v1299_v43 = vpop.f32.mrb[55].mxu1  ;;  %2847 = vmatpush1.bf16.msra.mxu1 %v10860_v49  ;;  %v6342_v56 = vpack.c.bf16 %v9582_v4, %v9581_v22  ;;  %v8999_v49 = vld [vmem:[%s14124_s0 + $0xd2] sm:$0xff]  ;;  %v6666_v41 = vpack.c.bf16 %v12387_v6, %v12364_v0  ;;  %v12977_v6 = vld [vmem:[%s14124_s0 + $0x102] sm:$0xff]  ;;  %v6667_v22 = vpack.c.bf16 %v12430_v16, %v12392_v15 }
 0x1f1   :  { %v5552_v42 = vpop.f32.mrb[55].mxu0  ;;  %2848 = vmatprep.subr.bf16.mxu1 %v10871_v30  ;;  %v10878_v30 = vld [vmem:[%s14123_s1 + $0x470] ss:$8 sps:$4 sm:$0xff]   ;;  %v2377_v40 = vpack.c.bf16 %v9000_v12, %v8999_v49  ;;  %v10881_v47 = vld [vmem:[%s14123_s1 + $0xa80] ss:$8 sps:$4 sm:$0xff]  }
 0x1f2   :  { %2563 = vmatmul.mubr.bf16.gmra.mrb[8].mxu1 %v12270_v55  ;;  %v10877_v55 = vld [vmem:[%s14123_s1 + $0x464] ss:$8 sps:$4 sm:$0xff]   ;;  %v10889_v43 = vld [vmem:[%s14123_s1 + $0xa94] ss:$8 sps:$4 sm:$0xff]   ;;  %v10893_v4 = vld [vmem:[%s14123_s1 + $0xaa0] ss:$8 sps:$4 sm:$0xff]  }
 0x1f3   :  { %6565 = vmatmul.mubr.bf16.gmra.mrb[28].mxu0 %v12911_v38  ;;  %2572 = vmatprep.mubr.bf16.mxu1 %v11076_v1  ;;  %v9001_v0 = vld [vmem:[%s14124_s0 + $0xf2] sm:$0xff]  ;;  %v10895_v42 = vld [vmem:[%s14123_s1 + $0xaa4] ss:$8 sps:$4 sm:$0xff]  }
 0x1f4   :  { %6574 = vmatprep.mubr.bf16.mxu0 %v11076_v1  ;;  %2849 = vmatpush1.bf16.msra.mxu1 %v10869_v35  ;;  %v10887_v35 = vld [vmem:[%s14123_s1 + $0xa90] ss:$8 sps:$4 sm:$0xff]   ;;  %v13004_v15 = vld [vmem:[%s14124_s0 + $0x122] sm:$0xff] }
 0x1f5   :  { %2850 = vmatprep.subr.bf16.mxu1 %v10874_v19  ;;  %v2378_v19 = vpack.c.bf16 %v12977_v6, %v9001_v0  ;;  %v9619_v16 = vld [vmem:[%s14124_s0 + $0x80] sm:$0xff] }
 0x1f6   :  { %v10904_v12 = vld [vmem:[%s14123_s1 + $0xac4] ss:$8 sps:$4 sm:$0xff]  }
 0x1f8   :  { %2851 = vmatpush1.bf16.msra.mxu1 %v10872_v45  ;;  %v10898_v45 = vld [vmem:[%s14123_s1 + $0xab4] ss:$8 sps:$4 sm:$0xff]  }
 0x1f9   :  { %2852 = vmatprep.subr.bf16.mxu1 %v10877_v55  ;;  %v12997_v55 = vld [vmem:[%s14124_s0 + $0x112] sm:$0xff] }
 0x1fa   :  { %2573 = vmatmul.mubr.bf16.gmra.mrb[80].mxu1 %v12299_v46  ;;  %v10886_v46 = vld [vmem:[%s14123_s1 + $0x484] ss:$8 sps:$4 sm:$0xff]  }
 0x1fb   :  { %6575 = vmatmul.mubr.bf16.gmra.mrb[80].mxu0 %v6342_v56  ;;  %2582 = vmatprep.mubr.bf16.mxu1 %v11076_v1  ;;  %v9620_v56 = vld [vmem:[%s14124_s0 + $0x90] sm:$0xff] }
 0x1fc   :  { %6835 = vmatprep.mubr.bf16.mxu0 %v11076_v1  ;;  %2853 = vmatpush1.bf16.msra.mxu1 %v10875_v2  ;;  %v10896_v2 = vld [vmem:[%s14123_s1 + $0xab0] ss:$8 sps:$4 sm:$0xff]  }
 0x1fd   :  { %2854 = vmatprep.subr.bf16.mxu1 %v10880_v23 }
 0x200   :  { %2855 = vmatpush1.bf16.msra.mxu1 %v10878_v30 }
 0x201   :  { %3170 = vmatprep.subr.bf16.mxu1 %v10886_v46 }
 0x202   :  { %2583 = vmatmul.mubr.bf16.gmra.mrb[16].mxu1 %v2377_v40  ;;  %v2379_v40 = vpack.c.bf16 %v13004_v15, %v12997_v55 }
 0x203   :  { %6836 = vmatmul.mubr.bf16.vlgmr.msra.gmra.mrb[0].mxu0 %v6666_v41  ;;  %2592 = vmatprep.mubr.bf16.mxu1 %v11076_v1  ;;  %v13025_v41 = vpack.c.bf16 %v9620_v56, %v9619_v16  ;;  %v10905_v16 = vld [vmem:[%s14123_s1 + $0xad0] ss:$8 sps:$4 sm:$0xff]   ;;  %v10913_v56 = vld [vmem:[%s14123_s1 + $0xae4] ss:$8 sps:$4 sm:$0xff]  }
 0x204   :  { %6845 = vmatprep.mubr.bf16.mxu0 %v11076_v1  ;;  %7134 = vmatpush1.bf16.msra.mxu0 %v10881_v47 }
 0x205   :  { %7135 = vmatprep.subr.bf16.mxu0 %v10889_v43 }
 0x208   :  { %7136 = vmatpush1.bf16.msra.mxu0 %v10887_v35 }
 0x209   :  { %7137 = vmatprep.subr.bf16.mxu0 %v10895_v42 }
 0x20a   :  { %2593 = vmatmul.mubr.bf16.gmra.mrb[20].mxu1 %v2378_v19 }
 0x20b   :  { %6846 = vmatmul.mubr.bf16.gmra.mrb[4].mxu0 %v6667_v22  ;;  %2602 = vmatprep.mubr.bf16.mxu1 %v11076_v1  ;;  %v10907_v22 = vld [vmem:[%s14123_s1 + $0xad4] ss:$8 sps:$4 sm:$0xff]  }
 0x20c   :  { %6855 = vmatprep.mubr.bf16.mxu0 %v11076_v1  ;;  %7138 = vmatpush1.bf16.msra.mxu0 %v10893_v4  ;;  %v9621_v4 = vld [vmem:[%s14124_s0 + $0xa0] sm:$0xff] }
 0x20d   :  { %v1583_v23 = vpop.f32.mrb[56].mxu1  ;;  %7139 = vmatprep.subr.bf16.mxu0 %v10898_v45  ;;  %v9622_v45 = vld [vmem:[%s14124_s0 + $0xb0] sm:$0xff] }
 0x20e   :  { %v13015_v49 = vpop.f32.mrb[56].mxu0  ;;  %v13021_v30 = vadd.f32 %v1583_v23, %v12800_v14  ;;  %v1585_v46 = vpop.f32.mrb[57].mxu1  ;;  %v10902_v14 = vld [vmem:[%s14123_s1 + $0xac0] ss:$8 sps:$4 sm:$0xff]   ;;  %v6669_v23 = vpack.c.bf16 %v9622_v45, %v9621_v4  ;;  %v10890_v4 = vld [vmem:[%s14123_s1 + $0x490] ss:$8 sps:$4 sm:$0xff]  }
 0x20f   :  { %v13027_v47 = vpop.f32.mrb[57].mxu0  ;;  %v13030_v43 = vadd.f32 %v1585_v46, %v12809_v21  ;;  %v1587_v0 = vpop.f32.mrb[58].mxu1  ;;  %v13044_v21 = vld [vmem:[%s14124_s0 + $0x132] sm:$0xff]  ;;  %v10899_v45 = vld [vmem:[%s14123_s1 + $0x4a0] ss:$8 sps:$4 sm:$0xff]  }
 0x210   :  { %v5590_v35 = vpop.f32.mrb[58].mxu0  ;;  %v1589_v42 = vpop.f32.mrb[59].mxu1  ;;  %7140 = vmatpush1.bf16.msra.mxu0 %v10896_v2  ;;  %v2380_v2 = vpack.c.bf16 %v12397_v51, %v13044_v21  ;;  %v10916_v46 = vld [vmem:[%s14123_s1 + $0xaf4] ss:$8 sps:$4 sm:$0xff]   ;;  %v10914_v0 = vld [vmem:[%s14123_s1 + $0xaf0] ss:$8 sps:$4 sm:$0xff]  }
 0x211   :  { %v5592_v19 = vpop.f32.mrb[59].mxu0  ;;  %7141 = vmatprep.subr.bf16.mxu0 %v10904_v12  ;;  %v10911_v12 = vld [vmem:[%s14123_s1 + $0xae0] ss:$8 sps:$4 sm:$0xff]   ;;  %v9039_v51 = vld [vmem:[%s14124_s0 + $0x13] sm:$0xff]  ;;  %v10931_v35 = vld [vmem:[%s14123_s1 + $0xb04] ss:$8 sps:$4 sm:$0xff]  }
 0x212   :  { %2603 = vmatmul.mubr.bf16.gmra.mrb[24].mxu1 %v2379_v40  ;;  %v9040_v40 = vld [vmem:[%s14124_s0 + $0x23] sm:$0xff]  ;;  %v6670_v19 = vpack.c.bf16 %v12516_v63, %v12489_v54  ;;  %v6671_v63 = vpack.c.bf16 %v12563_v33, %v12523_v34  ;;  %v9628_v33 = vld [vmem:[%s14124_s0 + $0x150] sm:$0xff] }
 0x213   :  { %6856 = vmatmul.mubr.bf16.gmra.mrb[8].mxu0 %v13025_v41  ;;  %2612 = vmatprep.mubr.bf16.mxu1 %v11076_v1  ;;  %v2703_v42 = vpack.c.bf16 %v9040_v40, %v9039_v51  ;;  %v10901_v54 = vld [vmem:[%s14123_s1 + $0x4a4] ss:$8 sps:$4 sm:$0xff]  }
 0x214   :  { %6865 = vmatprep.mubr.bf16.mxu0 %v11076_v1  ;;  %7142 = vmatpush1.bf16.msra.mxu0 %v10902_v14  ;;  %v10884_v14 = vld [vmem:[%s14123_s1 + $0x480] ss:$8 sps:$4 sm:$0xff]  }
 0x215   :  { %7143 = vmatprep.subr.bf16.mxu0 %v10907_v22  ;;  %v10892_v22 = vld [vmem:[%s14123_s1 + $0x494] ss:$8 sps:$4 sm:$0xff]   ;;  %v9627_v34 = vld [vmem:[%s14124_s0 + $0x140] sm:$0xff] }
 0x216   :  { %v13124_v51 = vpack.c.bf16 %v9628_v33, %v9627_v34  ;;  %v9047_v34 = vld [vmem:[%s14124_s0 + $0xd3] sm:$0xff]  ;;  %v9048_v33 = vld [vmem:[%s14124_s0 + $0xe3] sm:$0xff] }
 0x218   :  { %7144 = vmatpush1.bf16.msra.mxu0 %v10905_v16  ;;  %v10910_v16 = vld [vmem:[%s14123_s1 + $0x4b4] ss:$8 sps:$4 sm:$0xff]  }
 0x219   :  { %7145 = vmatprep.subr.bf16.mxu0 %v10913_v56  ;;  %v10908_v56 = vld [vmem:[%s14123_s1 + $0x4b0] ss:$8 sps:$4 sm:$0xff]  }
 0x21a   :  { %2613 = vmatmul.mubr.bf16.gmra.mrb[84].mxu1 %v2380_v2 }
 0x21b   :  { %6866 = vmatmul.mubr.bf16.gmra.mrb[84].mxu0 %v6669_v23  ;;  %2872 = vmatprep.mubr.bf16.mxu1 %v11076_v1 }
 0x21c   :  { %6875 = vmatprep.mubr.bf16.mxu0 %v11076_v1  ;;  %7146 = vmatpush1.bf16.msra.mxu0 %v10911_v12 }
 0x21d   :  { %7147 = vmatprep.subr.bf16.mxu0 %v10916_v46 }
 0x220   :  { %7148 = vmatpush1.bf16.msra.mxu0 %v10914_v0 }
 0x221   :  { %7463 = vmatprep.subr.bf16.mxu0 %v10931_v35 }
 0x222   :  { %2873 = vmatmul.mubr.bf16.vlgmr.msra.gmra.mrb[0].mxu1 %v2703_v42 }
 0x223   :  { %6876 = vmatmul.mubr.bf16.gmra.mrb[20].mxu0 %v6670_v19  ;;  %3171 = vmatpush1.bf16.msra.mxu1 %v10884_v14  ;;  %v10917_v14 = vld [vmem:[%s14123_s1 + $0x4c0] ss:$8 sps:$4 sm:$0xff]  }
 0x224   :  { %2882 = vmatprep.mubr.bf16.mxu1 %v11076_v1  ;;  %6885 = vmatprep.mubr.bf16.mxu0 %v11076_v1 }
 0x225   :  { %3172 = vmatprep.subr.bf16.mxu1 %v10892_v22 }
 0x227   :  { %3173 = vmatpush1.bf16.msra.mxu1 %v10890_v4  ;;  %v9630_v4 = vld [vmem:[%s14124_s0 + $0x170] sm:$0xff] }
 0x228   :  { %3174 = vmatprep.subr.bf16.mxu1 %v10901_v54  ;;  %v10920_v54 = vld [vmem:[%s14123_s1 + $0x4d0] ss:$8 sps:$4 sm:$0xff]  }
 0x22a   :  { %2883 = vmatmul.mubr.bf16.gmra.mrb[4].mxu1 %v12472_v26  ;;  %v10919_v26 = vld [vmem:[%s14123_s1 + $0x4c4] ss:$8 sps:$4 sm:$0xff]  }
 0x22b   :  { %6886 = vmatmul.mubr.bf16.gmra.mrb[24].mxu0 %v6671_v63  ;;  %2892 = vmatprep.mubr.bf16.mxu1 %v11076_v1 }
 0x22c   :  { %6895 = vmatprep.mubr.bf16.mxu0 %v11076_v1  ;;  %3175 = vmatpush1.bf16.msra.mxu1 %v10899_v45  ;;  %v10923_v45 = vld [vmem:[%s14123_s1 + $0x4e0] ss:$8 sps:$4 sm:$0xff]  }
 0x22d   :  { %v1623_v2 = vpop.f32.mrb[60].mxu1  ;;  %3176 = vmatprep.subr.bf16.mxu1 %v10910_v16  ;;  %v10928_v16 = vld [vmem:[%s14123_s1 + $0x4f4] ss:$8 sps:$4 sm:$0xff]  }
 0x22e   :  { %v13119_v23 = vpop.f32.mrb[60].mxu0  ;;  %v13122_v12 = vadd.f32 %v1623_v2, %v12909_v7  ;;  %v1625_v46 = vpop.f32.mrb[61].mxu1  ;;  %v10922_v7 = vld [vmem:[%s14123_s1 + $0x4d4] ss:$8 sps:$4 sm:$0xff]   ;;  %v2707_v2 = vpack.c.bf16 %v9048_v33, %v9047_v34 }
 0x22f   :  { %v13126_v40 = vpop.f32.mrb[61].mxu0  ;;  %v13129_v0 = vadd.f32 %v1625_v46, %v12916_v59  ;;  %v1627_v35 = vpop.f32.mrb[62].mxu1  ;;  %v9629_v59 = vld [vmem:[%s14124_s0 + $0x160] sm:$0xff] }
 0x230   :  { %v5880_v42 = vpop.f32.mrb[62].mxu0  ;;  %v1629_v19 = vpop.f32.mrb[63].mxu1  ;;  %3177 = vmatpush1.bf16.msra.mxu1 %v10908_v56  ;;  %v6673_v63 = vpack.c.bf16 %v9630_v4, %v9629_v59  ;;  %v10926_v56 = vld [vmem:[%s14123_s1 + $0x4f0] ss:$8 sps:$4 sm:$0xff]   ;;  %v10929_v46 = vld [vmem:[%s14123_s1 + $0xb00] ss:$8 sps:$4 sm:$0xff]  }
 0x231   :  { %v5882_v22 = vpop.f32.mrb[63].mxu0  ;;  %3178 = vmatprep.subr.bf16.mxu1 %v10919_v26  ;;  %v6996_v26 = vpack.c.bf16 %v12643_v25, %v12617_v52  ;;  %v10937_v35 = vld [vmem:[%s14123_s1 + $0xb14] ss:$8 sps:$4 sm:$0xff]   ;;  %v13190_v25 = vld [vmem:[%s14124_s0 + $0x103] sm:$0xff]  ;;  %v10935_v42 = vld [vmem:[%s14123_s1 + $0xb10] ss:$8 sps:$4 sm:$0xff]  }
 0x232   :  { %2893 = vmatmul.mubr.bf16.gmra.mrb[8].mxu1 %v12504_v50  ;;  %v10925_v50 = vld [vmem:[%s14123_s1 + $0x4e4] ss:$8 sps:$4 sm:$0xff]   ;;  %v9049_v52 = vld [vmem:[%s14124_s0 + $0xf3] sm:$0xff]  ;;  %v6997_v22 = vpack.c.bf16 %v12690_v60, %v12650_v28 }
 0x233   :  { %6896 = vmatmul.mubr.bf16.gmra.mrb[28].mxu0 %v13124_v51  ;;  %2902 = vmatprep.mubr.bf16.mxu1 %v11076_v1  ;;  %v10943_v19 = vld [vmem:[%s14123_s1 + $0xb24] ss:$8 sps:$4 sm:$0xff]   ;;  %v10946_v59 = vld [vmem:[%s14123_s1 + $0xb34] ss:$8 sps:$4 sm:$0xff]  }
 0x234   :  { %6905 = vmatprep.mubr.bf16.mxu0 %v11076_v1  ;;  %3179 = vmatpush1.bf16.msra.mxu1 %v10917_v14  ;;  %v2708_v14 = vpack.c.bf16 %v13190_v25, %v9049_v52  ;;  %v13210_v4 = vld [vmem:[%s14124_s0 + $0x113] sm:$0xff]  ;;  %v13217_v28 = vld [vmem:[%s14124_s0 + $0x123] sm:$0xff] }
 0x235   :  { %3180 = vmatprep.subr.bf16.mxu1 %v10922_v7  ;;  %v10941_v7 = vld [vmem:[%s14123_s1 + $0xb20] ss:$8 sps:$4 sm:$0xff]  }
 0x236   :  { %v9667_v60 = vld [vmem:[%s14124_s0 + $0x81] sm:$0xff] }
 0x238   :  { %3181 = vmatpush1.bf16.msra.mxu1 %v10920_v54  ;;  %v9668_v54 = vld [vmem:[%s14124_s0 + $0x91] sm:$0xff] }
 0x239   :  { %3182 = vmatprep.subr.bf16.mxu1 %v10925_v50  ;;  %v10944_v50 = vld [vmem:[%s14123_s1 + $0xb30] ss:$8 sps:$4 sm:$0xff]  }
 0x23a   :  { %2903 = vmatmul.mubr.bf16.gmra.mrb[88].mxu1 %v12544_v8  ;;  %v10934_v8 = vld [vmem:[%s14123_s1 + $0x504] ss:$8 sps:$4 sm:$0xff]  }
 0x23b   :  { %6906 = vmatmul.mubr.bf16.gmra.mrb[88].mxu0 %v6673_v63  ;;  %2912 = vmatprep.mubr.bf16.mxu1 %v11076_v1 }
 0x23c   :  { %7165 = vmatprep.mubr.bf16.mxu0 %v11076_v1  ;;  %3183 = vmatpush1.bf16.msra.mxu1 %v10923_v45 }
 0x23d   :  { %3184 = vmatprep.subr.bf16.mxu1 %v10928_v16  ;;  %v10952_v16 = vld [vmem:[%s14123_s1 + $0xb44] ss:$8 sps:$4 sm:$0xff]  }
 0x240   :  { %3185 = vmatpush1.bf16.msra.mxu1 %v10926_v56  ;;  %v2709_v56 = vpack.c.bf16 %v13217_v28, %v13210_v4 }
 0x241   :  { %3501 = vmatprep.subr.bf16.mxu1 %v10934_v8  ;;  %v13238_v8 = vpack.c.bf16 %v9668_v54, %v9667_v60  ;;  %v10959_v60 = vld [vmem:[%s14123_s1 + $0xb60] ss:$8 sps:$4 sm:$0xff]   ;;  %v10964_v54 = vld [vmem:[%s14123_s1 + $0xb74] ss:$8 sps:$4 sm:$0xff]  }
 0x242   :  { %2913 = vmatmul.mubr.bf16.gmra.mrb[16].mxu1 %v2707_v2 }
 0x243   :  { %7166 = vmatmul.mubr.bf16.vlgmr.msra.gmra.mrb[0].mxu0 %v6996_v26  ;;  %2922 = vmatprep.mubr.bf16.mxu1 %v11076_v1 }
 0x244   :  { %7175 = vmatprep.mubr.bf16.mxu0 %v11076_v1  ;;  %7464 = vmatpush1.bf16.msra.mxu0 %v10929_v46 }
 0x245   :  { %7465 = vmatprep.subr.bf16.mxu0 %v10937_v35 }
 0x248   :  { %7466 = vmatpush1.bf16.msra.mxu0 %v10935_v42 }
 0x249   :  { %7467 = vmatprep.subr.bf16.mxu0 %v10943_v19  ;;  %v10955_v19 = vld [vmem:[%s14123_s1 + $0xb54] ss:$8 sps:$4 sm:$0xff]  }
 0x24a   :  { %2923 = vmatmul.mubr.bf16.gmra.mrb[20].mxu1 %v2708_v14  ;;  %v9670_v14 = vld [vmem:[%s14124_s0 + $0xb1] sm:$0xff] }
 0x24b   :  { %7176 = vmatmul.mubr.bf16.gmra.mrb[4].mxu0 %v6997_v22  ;;  %2932 = vmatprep.mubr.bf16.mxu1 %v11076_v1  ;;  %v10953_v22 = vld [vmem:[%s14123_s1 + $0xb50] ss:$8 sps:$4 sm:$0xff]  }
 0x24c   :  { %7185 = vmatprep.mubr.bf16.mxu0 %v11076_v1  ;;  %7468 = vmatpush1.bf16.msra.mxu0 %v10941_v7  ;;  %v10961_v7 = vld [vmem:[%s14123_s1 + $0xb64] ss:$8 sps:$4 sm:$0xff]  }
 0x24d   :  { %v1914_v63 = vpop.f32.mrb[64].mxu1  ;;  %7469 = vmatprep.subr.bf16.mxu0 %v10946_v59 }
 0x24e   :  { %v13228_v45 = vpop.f32.mrb[64].mxu0  ;;  %v13234_v34 = vadd.f32 %v1914_v63, %v13021_v30  ;;  %v1916_v33 = vpop.f32.mrb[65].mxu1  ;;  %v10950_v30 = vld [vmem:[%s14123_s1 + $0xb40] ss:$8 sps:$4 sm:$0xff]  }
 0x24f   :  { %v13240_v2 = vpop.f32.mrb[65].mxu0  ;;  %v13243_v26 = vadd.f32 %v1916_v33, %v13030_v43  ;;  %v1918_v46 = vpop.f32.mrb[66].mxu1  ;;  %v9669_v43 = vld [vmem:[%s14124_s0 + $0xa1] sm:$0xff] }
 0x250   :  { %14128 = vst [vmem:[#allocation3_spill] sm:$0xff] %v13240_v2  ;;  %v5920_v35 = vpop.f32.mrb[66].mxu0  ;;  %v1920_v52 = vpop.f32.mrb[67].mxu1  ;;  %7470 = vmatpush1.bf16.msra.mxu0 %v10944_v50  ;;  %v6999_v59 = vpack.c.bf16 %v9670_v14, %v9669_v43  ;;  %v9087_v50 = vld [vmem:[%s14124_s0 + $0x14] sm:$0xff]  ;;  %v9088_v63 = vld [vmem:[%s14124_s0 + $0x24] sm:$0xff] }
 0x251   :  { %v5922_v42 = vpop.f32.mrb[67].mxu0  ;;  %7471 = vmatprep.subr.bf16.mxu0 %v10952_v16  ;;  %v10962_v16 = vld [vmem:[%s14123_s1 + $0xb70] ss:$8 sps:$4 sm:$0xff]   ;;  %v3033_v33 = vpack.c.bf16 %v9088_v63, %v9087_v50  ;;  %v10932_v46 = vld [vmem:[%s14123_s1 + $0x500] ss:$8 sps:$4 sm:$0xff]  }
 0x252   :  { %2933 = vmatmul.mubr.bf16.gmra.mrb[24].mxu1 %v2709_v56  ;;  %v7000_v56 = vpack.c.bf16 %v12776_v44, %v12749_v32  ;;  %v10940_v35 = vld [vmem:[%s14123_s1 + $0x514] ss:$8 sps:$4 sm:$0xff]   ;;  %v10938_v52 = vld [vmem:[%s14123_s1 + $0x510] ss:$8 sps:$4 sm:$0xff]   ;;  %v10949_v32 = vld [vmem:[%s14123_s1 + $0x524] ss:$8 sps:$4 sm:$0xff]   ;;  %v7001_v44 = vpack.c.bf16 %v12823_v48, %v12783_v31 }
 0x253   :  { %7186 = vmatmul.mubr.bf16.gmra.mrb[8].mxu0 %v13238_v8  ;;  %2942 = vmatprep.mubr.bf16.mxu1 %v11076_v1  ;;  %v10947_v42 = vld [vmem:[%s14123_s1 + $0x520] ss:$8 sps:$4 sm:$0xff]   ;;  %v9676_v48 = vld [vmem:[%s14124_s0 + $0x151] sm:$0xff] }
 0x254   :  { %7195 = vmatprep.mubr.bf16.mxu0 %v11076_v1  ;;  %7472 = vmatpush1.bf16.msra.mxu0 %v10950_v30  ;;  %v10958_v30 = vld [vmem:[%s14123_s1 + $0x534] ss:$8 sps:$4 sm:$0xff]   ;;  %v9675_v31 = vld [vmem:[%s14124_s0 + $0x141] sm:$0xff] }
 0x255   :  { %7473 = vmatprep.subr.bf16.mxu0 %v10955_v19  ;;  %v10956_v19 = vld [vmem:[%s14123_s1 + $0x530] ss:$8 sps:$4 sm:$0xff]  }
 0x258   :  { %7474 = vmatpush1.bf16.msra.mxu0 %v10953_v22 }
 0x259   :  { %7475 = vmatprep.subr.bf16.mxu0 %v10961_v7 }
 0x25a   :  { %2943 = vmatmul.mubr.bf16.gmra.mrb[92].mxu1 %v12671_v37  ;;  %v10979_v37 = vld [vmem:[%s14123_s1 + $0xb84] ss:$8 sps:$4 sm:$0xff]  }
 0x25b   :  { %7196 = vmatmul.mubr.bf16.gmra.mrb[92].mxu0 %v6999_v59  ;;  %3202 = vmatprep.mubr.bf16.mxu1 %v11076_v1  ;;  %v13331_v59 = vpack.c.bf16 %v9676_v48, %v9675_v31  ;;  %v10974_v31 = vld [vmem:[%s14123_s1 + $0x570] ss:$8 sps:$4 sm:$0xff]   ;;  %v10982_v48 = vld [vmem:[%s14123_s1 + $0x584] ss:$8 sps:$4 sm:$0xff]  }
 0x25c   :  { %7205 = vmatprep.mubr.bf16.mxu0 %v11076_v1  ;;  %7476 = vmatpush1.bf16.msra.mxu0 %v10959_v60 }
 0x25d   :  { %7477 = vmatprep.subr.bf16.mxu0 %v10964_v54 }
 0x260   :  { %7478 = vmatpush1.bf16.msra.mxu0 %v10962_v16 }
 0x261   :  { %7793 = vmatprep.subr.bf16.mxu0 %v10979_v37  ;;  %v10965_v37 = vld [vmem:[%s14123_s1 + $0x540] ss:$8 sps:$4 sm:$0xff]  }
 0x262   :  { %3203 = vmatmul.mubr.bf16.vlgmr.msra.gmra.mrb[0].mxu1 %v3033_v33 }
 0x263   :  { %7206 = vmatmul.mubr.bf16.gmra.mrb[20].mxu0 %v7000_v56  ;;  %3502 = vmatpush1.bf16.msra.mxu1 %v10932_v46  ;;  %v9678_v56 = vld [vmem:[%s14124_s0 + $0x171] sm:$0xff] }
 0x264   :  { %3212 = vmatprep.mubr.bf16.mxu1 %v11076_v1  ;;  %7215 = vmatprep.mubr.bf16.mxu0 %v11076_v1  ;;  %v10968_v46 = vld [vmem:[%s14123_s1 + $0x550] ss:$8 sps:$4 sm:$0xff]  }
 0x265   :  { %3503 = vmatprep.subr.bf16.mxu1 %v10940_v35 }
 0x267   :  { %3504 = vmatpush1.bf16.msra.mxu1 %v10938_v52  ;;  %v10971_v52 = vld [vmem:[%s14123_s1 + $0x560] ss:$8 sps:$4 sm:$0xff]  }
 0x268   :  { %3505 = vmatprep.subr.bf16.mxu1 %v10949_v32  ;;  %v10976_v32 = vld [vmem:[%s14123_s1 + $0x574] ss:$8 sps:$4 sm:$0xff]  }
 0x26a   :  { %3213 = vmatmul.mubr.bf16.gmra.mrb[4].mxu1 %v12732_v20  ;;  %v10967_v20 = vld [vmem:[%s14123_s1 + $0x544] ss:$8 sps:$4 sm:$0xff]  }
 0x26b   :  { %7216 = vmatmul.mubr.bf16.gmra.mrb[24].mxu0 %v7001_v44  ;;  %3222 = vmatprep.mubr.bf16.mxu1 %v11076_v1  ;;  %v9095_v44 = vld [vmem:[%s14124_s0 + $0xd4] sm:$0xff] }
 0x26c   :  { %7225 = vmatprep.mubr.bf16.mxu0 %v11076_v1  ;;  %3506 = vmatpush1.bf16.msra.mxu1 %v10947_v42  ;;  %v9096_v42 = vld [vmem:[%s14124_s0 + $0xe4] sm:$0xff] }
 0x26d   :  { %v1954_v43 = vpop.f32.mrb[68].mxu1  ;;  %3507 = vmatprep.subr.bf16.mxu1 %v10958_v30  ;;  %v9711_v30 = vld [vmem:[%s14124_s0 + $0x42] sm:$0xff] }
 0x26e   :  { %v13326_v14 = vpop.f32.mrb[68].mxu0  ;;  %v13329_v22 = vadd.f32 %v1954_v43, %v13122_v12  ;;  %v1956_v7 = vpop.f32.mrb[69].mxu1  ;;  %v10970_v12 = vld [vmem:[%s14123_s1 + $0x554] ss:$8 sps:$4 sm:$0xff]  }
 0x26f   :  { %v13333_v60 = vpop.f32.mrb[69].mxu0  ;;  %v13336_v54 = vadd.f32 %v1956_v7, %v13129_v0  ;;  %v1958_v50 = vpop.f32.mrb[70].mxu1  ;;  %v9677_v0 = vld [vmem:[%s14124_s0 + $0x161] sm:$0xff]  ;;  %v10985_v7 = vld [vmem:[%s14123_s1 + $0xb94] ss:$8 sps:$4 sm:$0xff]  }
 0x270   :  { %v6210_v63 = vpop.f32.mrb[70].mxu0  ;;  %v1960_v16 = vpop.f32.mrb[71].mxu1  ;;  %3508 = vmatpush1.bf16.msra.mxu1 %v10956_v19  ;;  %v7003_v35 = vpack.c.bf16 %v9678_v56, %v9677_v0  ;;  %v3037_v19 = vpack.c.bf16 %v9096_v42, %v9095_v44  ;;  %v9097_v50 = vld [vmem:[%s14124_s0 + $0xf4] sm:$0xff] }
 0x271   :  { %v6212_v33 = vpop.f32.mrb[71].mxu0  ;;  %3509 = vmatprep.subr.bf16.mxu1 %v10967_v20  ;;  %v10977_v20 = vld [vmem:[%s14123_s1 + $0xb80] ss:$8 sps:$4 sm:$0xff]   ;;  %v9716_v44 = vld [vmem:[%s14124_s0 + $0x92] sm:$0xff] }
 0x272   :  { %3223 = vmatmul.mubr.bf16.gmra.mrb[8].mxu1 %v12764_v5  ;;  %v10973_v5 = vld [vmem:[%s14123_s1 + $0x564] ss:$8 sps:$4 sm:$0xff]   ;;  %v10983_v33 = vld [vmem:[%s14123_s1 + $0xb90] ss:$8 sps:$4 sm:$0xff]  }
 0x273   :  { %7226 = vmatmul.mubr.bf16.gmra.mrb[28].mxu0 %v13331_v59  ;;  %3232 = vmatprep.mubr.bf16.mxu1 %v11076_v1  ;;  %v13401_v63 = vld [vmem:[%s14124_s0 + $0x104] sm:$0xff]  ;;  %v10992_v42 = vld [vmem:[%s14123_s1 + $0xbb0] ss:$8 sps:$4 sm:$0xff]  }
 0x274   :  { %7235 = vmatprep.mubr.bf16.mxu0 %v11076_v1  ;;  %3510 = vmatpush1.bf16.msra.mxu1 %v10965_v37  ;;  %v9713_v16 = vld [vmem:[%s14124_s0 + $0x62] sm:$0xff]  ;;  %v9714_v37 = vld [vmem:[%s14124_s0 + $0x72] sm:$0xff]  ;;  %v3038_v0 = vpack.c.bf16 %v13401_v63, %v9097_v50 }
 0x275   :  { %3511 = vmatprep.subr.bf16.mxu1 %v10970_v12  ;;  %v10991_v12 = vld [vmem:[%s14123_s1 + $0xba4] ss:$8 sps:$4 sm:$0xff]   ;;  %v7327_v56 = vpack.c.bf16 %v9714_v37, %v9713_v16 }
 0x278   :  { %3512 = vmatpush1.bf16.msra.mxu1 %v10968_v46  ;;  %v10989_v46 = vld [vmem:[%s14123_s1 + $0xba0] ss:$8 sps:$4 sm:$0xff]  }
 0x279   :  { %3513 = vmatprep.subr.bf16.mxu1 %v10973_v5  ;;  %v10994_v5 = vld [vmem:[%s14123_s1 + $0xbb4] ss:$8 sps:$4 sm:$0xff]  }
 0x27a   :  { %3233 = vmatmul.mubr.bf16.gmra.mrb[96].mxu1 %v12804_v3  ;;  %v9712_v3 = vld [vmem:[%s14124_s0 + $0x52] sm:$0xff] }
 0x27b   :  { %7236 = vmatmul.mubr.bf16.gmra.mrb[96].mxu0 %v7003_v35  ;;  %3242 = vmatprep.mubr.bf16.mxu1 %v11076_v1  ;;  %v7326_v43 = vpack.c.bf16 %v9712_v3, %v9711_v30  ;;  %v13425_v35 = vld [vmem:[%s14124_s0 + $0x114] sm:$0xff] }
 0x27c   :  { %7495 = vmatprep.mubr.bf16.mxu0 %v11076_v1  ;;  %3514 = vmatpush1.bf16.msra.mxu1 %v10971_v52  ;;  %v13432_v52 = vld [vmem:[%s14124_s0 + $0x124] sm:$0xff] }
 0x27d   :  { %3515 = vmatprep.subr.bf16.mxu1 %v10976_v32  ;;  %v9715_v32 = vld [vmem:[%s14124_s0 + $0x82] sm:$0xff] }
 0x280   :  { %3516 = vmatpush1.bf16.msra.mxu1 %v10974_v31  ;;  %v11000_v31 = vld [vmem:[%s14123_s1 + $0xbc4] ss:$8 sps:$4 sm:$0xff]  }
 0x281   :  { %3831 = vmatprep.subr.bf16.mxu1 %v10982_v48 }
 0x282   :  { %3243 = vmatmul.mubr.bf16.gmra.mrb[16].mxu1 %v3037_v19 }
 0x283   :  { %7496 = vmatmul.mubr.bf16.vlgmr.msra.gmra.mrb[0].mxu0 %v7326_v43  ;;  %3252 = vmatprep.mubr.bf16.mxu1 %v11076_v1  ;;  %v3039_v43 = vpack.c.bf16 %v13432_v52, %v13425_v35 }
 0x284   :  { %7505 = vmatprep.mubr.bf16.mxu0 %v11076_v1  ;;  %7794 = vmatpush1.bf16.msra.mxu0 %v10977_v20  ;;  %v7328_v20 = vpack.c.bf16 %v9716_v44, %v9715_v32  ;;  %v11007_v44 = vld [vmem:[%s14123_s1 + $0xbe0] ss:$8 sps:$4 sm:$0xff]  }
 0x285   :  { %7795 = vmatprep.subr.bf16.mxu0 %v10985_v7 }
 0x288   :  { %7796 = vmatpush1.bf16.msra.mxu0 %v10983_v33 }
 0x289   :  { %7797 = vmatprep.subr.bf16.mxu0 %v10991_v12 }
 0x28a   :  { %3253 = vmatmul.mubr.bf16.gmra.mrb[20].mxu1 %v3038_v0  ;;  %v11003_v0 = vld [vmem:[%s14123_s1 + $0xbd4] ss:$8 sps:$4 sm:$0xff]  }
 0x28b   :  { %7506 = vmatmul.mubr.bf16.gmra.mrb[4].mxu0 %v7327_v56  ;;  %3262 = vmatprep.mubr.bf16.mxu1 %v11076_v1  ;;  %v9718_v56 = vld [vmem:[%s14124_s0 + $0xb2] sm:$0xff] }
 0x28c   :  { %7515 = vmatprep.mubr.bf16.mxu0 %v11076_v1  ;;  %7798 = vmatpush1.bf16.msra.mxu0 %v10989_v46  ;;  %v11001_v46 = vld [vmem:[%s14123_s1 + $0xbd0] ss:$8 sps:$4 sm:$0xff]  }
 0x28d   :  { %v2244_v30 = vpop.f32.mrb[72].mxu1  ;;  %7799 = vmatprep.subr.bf16.mxu0 %v10994_v5  ;;  %v11009_v5 = vld [vmem:[%s14123_s1 + $0xbe4] ss:$8 sps:$4 sm:$0xff]  }
 0x28e   :  { %v13443_v3 = vpop.f32.mrb[72].mxu0  ;;  %v13449_v48 = vadd.f32 %v2244_v30, %v13234_v34  ;;  %v2246_v19 = vpop.f32.mrb[73].mxu1  ;;  %v10998_v34 = vld [vmem:[%s14123_s1 + $0xbc0] ss:$8 sps:$4 sm:$0xff]  }
 0x28f   :  { %14129 = vst [vmem:[#allocation4_spill] sm:$0xff] %v13443_v3  ;;  %v13453_v7 = vpop.f32.mrb[73].mxu0  ;;  %v13456_v50 = vadd.f32 %v2246_v19, %v13243_v26  ;;  %v2248_v16 = vpop.f32.mrb[74].mxu1  ;;  %v9717_v26 = vld [vmem:[%s14124_s0 + $0xa2] sm:$0xff]  ;;  %v11010_v19 = vld [vmem:[%s14123_s1 + $0xbf0] ss:$8 sps:$4 sm:$0xff]  }
 0x290   :  { %14130 = vst [vmem:[#allocation5_spill] sm:$0xff] %v13453_v7  ;;  %v6250_v37 = vpop.f32.mrb[74].mxu0  ;;  %v2250_v33 = vpop.f32.mrb[75].mxu1  ;;  %7800 = vmatpush1.bf16.msra.mxu0 %v10992_v42  ;;  %v7329_v32 = vpack.c.bf16 %v9718_v56, %v9717_v26  ;;  %v11012_v42 = vld [vmem:[%s14123_s1 + $0xbf4] ss:$8 sps:$4 sm:$0xff]   ;;  %v9135_v30 = vld [vmem:[%s14124_s0 + $0x20] sm:$0xff] }
 0x291   :  { %v6252_v12 = vpop.f32.mrb[75].mxu0  ;;  %7801 = vmatprep.subr.bf16.mxu0 %v11000_v31  ;;  %v9136_v31 = vld [vmem:[%s14124_s0 + $0x30] sm:$0xff]  ;;  %v10980_v16 = vld [vmem:[%s14123_s1 + $0x580] ss:$8 sps:$4 sm:$0xff]  }
 0x292   :  { %3263 = vmatmul.mubr.bf16.gmra.mrb[24].mxu1 %v3039_v43  ;;  %v3364_v43 = vpack.c.bf16 %v9136_v31, %v9135_v30  ;;  %v10988_v37 = vld [vmem:[%s14123_s1 + $0x594] ss:$8 sps:$4 sm:$0xff]   ;;  %v9137_v33 = vld [vmem:[%s14124_s0 + $0x40] sm:$0xff] }
 0x293   :  { %7516 = vmatmul.mubr.bf16.gmra.mrb[8].mxu0 %v7328_v20  ;;  %3272 = vmatprep.mubr.bf16.mxu1 %v11076_v1  ;;  %v7330_v20 = vpack.c.bf16 %v12997_v55, %v12977_v6  ;;  %v9138_v6 = vld [vmem:[%s14124_s0 + $0x50] sm:$0xff]  ;;  %v10997_v12 = vld [vmem:[%s14123_s1 + $0x5a4] ss:$8 sps:$4 sm:$0xff]   ;;  %v10995_v26 = vld [vmem:[%s14123_s1 + $0x5a0] ss:$8 sps:$4 sm:$0xff]  }
 0x294   :  { %7525 = vmatprep.mubr.bf16.mxu0 %v11076_v1  ;;  %7802 = vmatpush1.bf16.msra.mxu0 %v10998_v34  ;;  %v10986_v55 = vld [vmem:[%s14123_s1 + $0x590] ss:$8 sps:$4 sm:$0xff]   ;;  %v3365_v34 = vpack.c.bf16 %v9138_v6, %v9137_v33  ;;  %v11006_v56 = vld [vmem:[%s14123_s1 + $0x5b4] ss:$8 sps:$4 sm:$0xff]  }
 0x295   :  { %7803 = vmatprep.subr.bf16.mxu0 %v11003_v0  ;;  %v7331_v0 = vpack.c.bf16 %v13044_v21, %v13004_v15  ;;  %v9140_v15 = vld [vmem:[%s14124_s0 + $0x70] sm:$0xff]  ;;  %v9723_v21 = vld [vmem:[%s14124_s0 + $0x142] sm:$0xff] }
 0x298   :  { %7804 = vmatpush1.bf16.msra.mxu0 %v11001_v46  ;;  %v9139_v46 = vld [vmem:[%s14124_s0 + $0x60] sm:$0xff] }
 0x299   :  { %7805 = vmatprep.subr.bf16.mxu0 %v11009_v5  ;;  %v9724_v5 = vld [vmem:[%s14124_s0 + $0x152] sm:$0xff] }
 0x29a   :  { %3273 = vmatmul.mubr.bf16.gmra.mrb[100].mxu1 %v12911_v38  ;;  %v11027_v38 = vld [vmem:[%s14123_s1 + $0xc04] ss:$8 sps:$4 sm:$0xff]  }
 0x29b   :  { %7526 = vmatmul.mubr.bf16.gmra.mrb[100].mxu0 %v7329_v32  ;;  %3533 = vmatprep.mubr.bf16.mxu1 %v11076_v1  ;;  %v11004_v32 = vld [vmem:[%s14123_s1 + $0x5b0] ss:$8 sps:$4 sm:$0xff]  }
 0x29c   :  { %7535 = vmatprep.mubr.bf16.mxu0 %v11076_v1  ;;  %7806 = vmatpush1.bf16.msra.mxu0 %v11007_v44 }
 0x29d   :  { %7807 = vmatprep.subr.bf16.mxu0 %v11012_v42  ;;  %v11015_v42 = vld [vmem:[%s14123_s1 + $0x5c4] ss:$8 sps:$4 sm:$0xff]  }
 0x2a0   :  { %7808 = vmatpush1.bf16.msra.mxu0 %v11010_v19 }
 0x2a1   :  { %8123 = vmatprep.subr.bf16.mxu0 %v11027_v38  ;;  %v3366_v38 = vpack.c.bf16 %v9140_v15, %v9139_v46  ;;  %v11019_v46 = vld [vmem:[%s14123_s1 + $0x5e0] ss:$8 sps:$4 sm:$0xff]   ;;  %v11024_v15 = vld [vmem:[%s14123_s1 + $0x5f4] ss:$8 sps:$4 sm:$0xff]  }
 0x2a2   :  { %3534 = vmatmul.mubr.bf16.vlgmr.msra.gmra.mrb[0].mxu1 %v3364_v43  ;;  %v13554_v43 = vpack.c.bf16 %v9724_v5, %v9723_v21  ;;  %v9143_v21 = vld [vmem:[%s14124_s0 + $0xe0] sm:$0xff]  ;;  %v9144_v5 = vld [vmem:[%s14124_s0 + $0xf0] sm:$0xff] }
 0x2a3   :  { %7536 = vmatmul.mubr.bf16.gmra.mrb[20].mxu0 %v7330_v20  ;;  %3832 = vmatpush1.bf16.msra.mxu1 %v10980_v16 }
 0x2a4   :  { %3543 = vmatprep.mubr.bf16.mxu1 %v11076_v1  ;;  %7545 = vmatprep.mubr.bf16.mxu0 %v11076_v1 }
 0x2a5   :  { %3833 = vmatprep.subr.bf16.mxu1 %v10988_v37 }
 0x2a7   :  { %3834 = vmatpush1.bf16.msra.mxu1 %v10986_v55  ;;  %v11013_v55 = vld [vmem:[%s14123_s1 + $0x5c0] ss:$8 sps:$4 sm:$0xff]  }
 0x2a8   :  { %3835 = vmatprep.subr.bf16.mxu1 %v10997_v12 }
 0x2aa   :  { %3544 = vmatmul.mubr.bf16.gmra.mrb[4].mxu1 %v3365_v34  ;;  %v9726_v34 = vld [vmem:[%s14124_s0 + $0x172] sm:$0xff] }
 0x2ab   :  { %7546 = vmatmul.mubr.bf16.gmra.mrb[24].mxu0 %v7331_v0  ;;  %3553 = vmatprep.mubr.bf16.mxu1 %v11076_v1  ;;  %v11016_v0 = vld [vmem:[%s14123_s1 + $0x5d0] ss:$8 sps:$4 sm:$0xff]  }
 0x2ac   :  { %7555 = vmatprep.mubr.bf16.mxu0 %v11076_v1  ;;  %3836 = vmatpush1.bf16.msra.mxu1 %v10995_v26  ;;  %v11021_v26 = vld [vmem:[%s14123_s1 + $0x5e4] ss:$8 sps:$4 sm:$0xff]  }
 0x2ad   :  { %v2284_v44 = vpop.f32.mrb[76].mxu1  ;;  %3837 = vmatprep.subr.bf16.mxu1 %v11006_v56 }
 0x2ae   :  { %v13549_v30 = vpop.f32.mrb[76].mxu0  ;;  %v13552_v31 = vadd.f32 %v2284_v44, %v13329_v22  ;;  %v2286_v19 = vpop.f32.mrb[77].mxu1  ;;  %v11018_v22 = vld [vmem:[%s14123_s1 + $0x5d4] ss:$8 sps:$4 sm:$0xff]   ;;  %v11022_v44 = vld [vmem:[%s14123_s1 + $0x5f0] ss:$8 sps:$4 sm:$0xff]  }
 0x2af   :  { %v13556_v20 = vpop.f32.mrb[77].mxu0  ;;  %v13559_v16 = vadd.f32 %v2286_v19, %v13336_v54  ;;  %v2288_v37 = vpop.f32.mrb[78].mxu1  ;;  %v9725_v54 = vld [vmem:[%s14124_s0 + $0x162] sm:$0xff] }
 0x2b0   :  { %v6540_v33 = vpop.f32.mrb[78].mxu0  ;;  %v2290_v6 = vpop.f32.mrb[79].mxu1  ;;  %3838 = vmatpush1.bf16.msra.mxu1 %v11004_v32  ;;  %v7333_v56 = vpack.c.bf16 %v9726_v34, %v9725_v54  ;;  %v9759_v32 = vld [vmem:[%s14124_s0 + $0x43] sm:$0xff]  ;;  %v11028_v54 = vld [vmem:[%s14123_s1 + $0xc10] ss:$8 sps:$4 sm:$0xff]  }
 0x2b1   :  { %v6542_v12 = vpop.f32.mrb[79].mxu0  ;;  %3839 = vmatprep.subr.bf16.mxu1 %v11015_v42  ;;  %v3368_v42 = vpack.c.bf16 %v9144_v5, %v9143_v21  ;;  %v11060_v37 = vld [vmem:[%s14123_s1 + $0x604] ss:$8 sps:$4 sm:$0xff]   ;;  %v11030_v33 = vld [vmem:[%s14123_s1 + $0xc14] ss:$8 sps:$4 sm:$0xff]  }
 0x2b2   :  { %3554 = vmatmul.mubr.bf16.gmra.mrb[8].mxu1 %v3366_v38  ;;  %v11025_v38 = vld [vmem:[%s14123_s1 + $0xc00] ss:$8 sps:$4 sm:$0xff]   ;;  %v11033_v34 = vld [vmem:[%s14123_s1 + $0xc24] ss:$8 sps:$4 sm:$0xff]   ;;  %v9148_v21 = vld [vmem:[%s14124_s0 + $0x130] sm:$0xff] }
 0x2b3   :  { %7556 = vmatmul.mubr.bf16.gmra.mrb[28].mxu0 %v13554_v43  ;;  %3563 = vmatprep.mubr.bf16.mxu1 %v11076_v1  ;;  %v9145_v6 = vld [vmem:[%s14124_s0 + $0x100] sm:$0xff] }
 0x2b4   :  { %7565 = vmatprep.mubr.bf16.mxu0 %v11076_v1  ;;  %3840 = vmatpush1.bf16.msra.mxu1 %v11013_v55  ;;  %v9146_v55 = vld [vmem:[%s14124_s0 + $0x110] sm:$0xff]  ;;  %v9761_v12 = vld [vmem:[%s14124_s0 + $0x63] sm:$0xff] }
 0x2b5   :  { %3841 = vmatprep.subr.bf16.mxu1 %v11018_v22  ;;  %v9762_v22 = vld [vmem:[%s14124_s0 + $0x73] sm:$0xff]  ;;  %v9763_v5 = vld [vmem:[%s14124_s0 + $0x83] sm:$0xff] }
 0x2b8   :  { %3842 = vmatpush1.bf16.msra.mxu1 %v11016_v0  ;;  %v3369_v0 = vpack.c.bf16 %v9146_v55, %v9145_v6 }
 0x2b9   :  { %3843 = vmatprep.subr.bf16.mxu1 %v11021_v26  ;;  %v7657_v26 = vpack.c.bf16 %v9762_v22, %v9761_v12 }
 0x2ba   :  { %3564 = vmatmul.mubr.bf16.gmra.mrb[104].mxu1 %v13025_v41  ;;  %v9760_v41 = vld [vmem:[%s14124_s0 + $0x53] sm:$0xff] }
 0x2bb   :  { %7566 = vmatmul.mubr.bf16.gmra.mrb[104].mxu0 %v7333_v56  ;;  %3573 = vmatprep.mubr.bf16.mxu1 %v11076_v1  ;;  %v7656_v19 = vpack.c.bf16 %v9760_v41, %v9759_v32  ;;  %v11031_v56 = vld [vmem:[%s14123_s1 + $0xc20] ss:$8 sps:$4 sm:$0xff]   ;;  %v9764_v32 = vld [vmem:[%s14124_s0 + $0x93] sm:$0xff] }
 0x2bc   :  { %7825 = vmatprep.mubr.bf16.mxu0 %v11076_v1  ;;  %3844 = vmatpush1.bf16.msra.mxu1 %v11019_v46  ;;  %v11036_v46 = vld [vmem:[%s14123_s1 + $0xc34] ss:$8 sps:$4 sm:$0xff]   ;;  %v11034_v41 = vld [vmem:[%s14123_s1 + $0xc30] ss:$8 sps:$4 sm:$0xff]   ;;  %v7658_v6 = vpack.c.bf16 %v9764_v32, %v9763_v5  ;;  %v11043_v5 = vld [vmem:[%s14123_s1 + $0xc60] ss:$8 sps:$4 sm:$0xff]  }
 0x2bd   :  { %3845 = vmatprep.subr.bf16.mxu1 %v11024_v15  ;;  %v9147_v15 = vld [vmem:[%s14124_s0 + $0x120] sm:$0xff]  ;;  %v11048_v32 = vld [vmem:[%s14123_s1 + $0xc74] ss:$8 sps:$4 sm:$0xff]  }
 0x2c0   :  { %3846 = vmatpush1.bf16.msra.mxu1 %v11022_v44 }
 0x2c1   :  { %9855 = vmatprep.subr.bf16.mxu1 %v11060_v37 }
 0x2c2   :  { %3574 = vmatmul.mubr.bf16.gmra.mrb[16].mxu1 %v3368_v42 }
 0x2c3   :  { %7826 = vmatmul.mubr.bf16.vlgmr.msra.gmra.mrb[0].mxu0 %v7656_v19  ;;  %3583 = vmatprep.mubr.bf16.mxu1 %v11076_v1  ;;  %v11039_v19 = vld [vmem:[%s14123_s1 + $0xc44] ss:$8 sps:$4 sm:$0xff]  }
 0x2c4   :  { %7835 = vmatprep.mubr.bf16.mxu0 %v11076_v1  ;;  %8124 = vmatpush1.bf16.msra.mxu0 %v11025_v38 }
 0x2c5   :  { %8125 = vmatprep.subr.bf16.mxu0 %v11030_v33  ;;  %v3370_v33 = vpack.c.bf16 %v9148_v21, %v9147_v15  ;;  %v11045_v15 = vld [vmem:[%s14123_s1 + $0xc64] ss:$8 sps:$4 sm:$0xff]  }
 0x2c8   :  { %8126 = vmatpush1.bf16.msra.mxu0 %v11028_v54 }
 0x2c9   :  { %8127 = vmatprep.subr.bf16.mxu0 %v11033_v34 }
 0x2ca   :  { %3584 = vmatmul.mubr.bf16.gmra.mrb[20].mxu1 %v3369_v0 }
 0x2cb   :  { %7836 = vmatmul.mubr.bf16.gmra.mrb[4].mxu0 %v7657_v26  ;;  %3593 = vmatprep.mubr.bf16.mxu1 %v11076_v1  ;;  %v11037_v26 = vld [vmem:[%s14123_s1 + $0xc40] ss:$8 sps:$4 sm:$0xff]  }
 0x2cc   :  { %7845 = vmatprep.mubr.bf16.mxu0 %v11076_v1  ;;  %8128 = vmatpush1.bf16.msra.mxu0 %v11031_v56  ;;  %v9766_v56 = vld [vmem:[%s14124_s0 + $0xb3] sm:$0xff] }
 0x2cd   :  { %v2574_v44 = vpop.f32.mrb[80].mxu1  ;;  %8129 = vmatprep.subr.bf16.mxu0 %v11036_v46  ;;  %v11040_v46 = vld [vmem:[%s14123_s1 + $0xc50] ss:$8 sps:$4 sm:$0xff]  }
 0x2ce   :  { %v13658_v42 = vpop.f32.mrb[80].mxu0  ;;  %v13664_v38 = vadd.f32 %v2574_v44, %v13449_v48  ;;  %v2576_v37 = vpop.f32.mrb[81].mxu1  ;;  %v11042_v48 = vld [vmem:[%s14123_s1 + $0xc54] ss:$8 sps:$4 sm:$0xff]  }
 0x2cf   :  { %14131 = vst [vmem:[#allocation6_spill] sm:$0xff] %v13658_v42  ;;  %v13666_v55 = vpop.f32.mrb[81].mxu0  ;;  %v13669_v12 = vadd.f32 %v2576_v37, %v13456_v50  ;;  %v2578_v22 = vpop.f32.mrb[82].mxu1  ;;  %v9765_v50 = vld [vmem:[%s14124_s0 + $0xa3] sm:$0xff]  ;;  %v9184_v44 = vld [vmem:[%s14124_s0 + $0x31] sm:$0xff]  ;;  %v7660_v37 = vpack.c.bf16 %v13210_v4, %v13190_v25 }
 0x2d0   :  { %14132 = vst [vmem:[#allocation7_spill] sm:$0xff] %v13666_v55  ;;  %v6580_v54 = vpop.f32.mrb[82].mxu0  ;;  %v2580_v34 = vpop.f32.mrb[83].mxu1  ;;  %8130 = vmatpush1.bf16.msra.mxu0 %v11034_v41  ;;  %v7659_v21 = vpack.c.bf16 %v9766_v56, %v9765_v50  ;;  %v9183_v41 = vld [vmem:[%s14124_s0 + $0x21] sm:$0xff]  ;;  %v9186_v22 = vld [vmem:[%s14124_s0 + $0x51] sm:$0xff] }
 0x2d1   :  { %v6582_v0 = vpop.f32.mrb[83].mxu0  ;;  %8131 = vmatprep.subr.bf16.mxu0 %v11039_v19  ;;  %v11046_v19 = vld [vmem:[%s14123_s1 + $0xc70] ss:$8 sps:$4 sm:$0xff]   ;;  %v11062_v4 = vld [vmem:[%s14123_s1 + $0x614] ss:$8 sps:$4 sm:$0xff]   ;;  %v9771_v50 = vld [vmem:[%s14124_s0 + $0x143] sm:$0xff] }
 0x2d2   :  { %3594 = vmatmul.mubr.bf16.gmra.mrb[24].mxu1 %v3370_v33  ;;  %v11061_v33 = vld [vmem:[%s14123_s1 + $0x600] ss:$8 sps:$4 sm:$0xff]   ;;  %v9770_v25 = vld [vmem:[%s14124_s0 + $0x133] sm:$0xff] }
 0x2d3   :  { %7846 = vmatmul.mubr.bf16.gmra.mrb[8].mxu0 %v7658_v6  ;;  %3603 = vmatprep.mubr.bf16.mxu1 %v11076_v1  ;;  %v9185_v6 = vld [vmem:[%s14124_s0 + $0x41] sm:$0xff]  ;;  %v7661_v34 = vpack.c.bf16 %v9770_v25, %v13217_v28  ;;  %v11063_v0 = vld [vmem:[%s14123_s1 + $0x610] ss:$8 sps:$4 sm:$0xff]  }
 0x2d4   :  { %7855 = vmatprep.mubr.bf16.mxu0 %v11076_v1  ;;  %8132 = vmatpush1.bf16.msra.mxu0 %v11037_v26  ;;  %v3695_v54 = vpack.c.bf16 %v9186_v22, %v9185_v6  ;;  %v11064_v26 = vld [vmem:[%s14123_s1 + $0x624] ss:$8 sps:$4 sm:$0xff]   ;;  %v9188_v28 = vld [vmem:[%s14124_s0 + $0x71] sm:$0xff] }
 0x2d5   :  { %8133 = vmatprep.subr.bf16.mxu0 %v11042_v48  ;;  %v9187_v48 = vld [vmem:[%s14124_s0 + $0x61] sm:$0xff]  ;;  %v9772_v56 = vld [vmem:[%s14124_s0 + $0x153] sm:$0xff] }
 0x2d6   :  { %v11067_v25 = vld [vmem:[%s14123_s1 + $0x630] ss:$8 sps:$4 sm:$0xff]  }
 0x2d8   :  { %8134 = vmatpush1.bf16.msra.mxu0 %v11040_v46  ;;  %v11065_v46 = vld [vmem:[%s14123_s1 + $0x620] ss:$8 sps:$4 sm:$0xff]  }
 0x2d9   :  { %8135 = vmatprep.subr.bf16.mxu0 %v11045_v15 }
 0x2da   :  { %3604 = vmatmul.mubr.bf16.gmra.mrb[108].mxu1 %v13124_v51  ;;  %v3694_v51 = vpack.c.bf16 %v9184_v44, %v9183_v41  ;;  %v3696_v44 = vpack.c.bf16 %v9188_v28, %v9187_v48  ;;  %v11071_v48 = vld [vmem:[%s14123_s1 + $0x650] ss:$8 sps:$4 sm:$0xff]   ;;  %v11072_v28 = vld [vmem:[%s14123_s1 + $0x664] ss:$8 sps:$4 sm:$0xff]  }
 0x2db   :  { %7856 = vmatmul.mubr.bf16.gmra.mrb[108].mxu0 %v7659_v21  ;;  %3863 = vmatprep.mubr.bf16.mxu1 %v11076_v1  ;;  %v11066_v21 = vld [vmem:[%s14123_s1 + $0x634] ss:$8 sps:$4 sm:$0xff]  }
 0x2dc   :  { %7865 = vmatprep.mubr.bf16.mxu0 %v11076_v1  ;;  %8136 = vmatpush1.bf16.msra.mxu0 %v11043_v5 }
 0x2dd   :  { %8137 = vmatprep.subr.bf16.mxu0 %v11048_v32 }
 0x2e0   :  { %8138 = vmatpush1.bf16.msra.mxu0 %v11046_v19  ;;  %v7662_v19 = vpack.c.bf16 %v9772_v56, %v9771_v50  ;;  %v9191_v50 = vld [vmem:[%s14124_s0 + $0xe1] sm:$0xff]  ;;  %v9192_v56 = vld [vmem:[%s14124_s0 + $0xf1] sm:$0xff] }
 0x2e2   :  { %3864 = vmatmul.mubr.bf16.vlgmr.msra.gmra.mrb[0].mxu1 %v3694_v51 }
 0x2e3   :  { %7866 = vmatmul.mubr.bf16.gmra.mrb[20].mxu0 %v7660_v37  ;;  %9863 = vmatpush1.bf16.msra.mxu1 %v11061_v33 }
 0x2e4   :  { %3873 = vmatprep.mubr.bf16.mxu1 %v11076_v1  ;;  %7875 = vmatprep.mubr.bf16.mxu0 %v11076_v1 }
 0x2e5   :  { %9856 = vmatprep.subr.bf16.mxu1 %v11062_v4 }
 0x2e7   :  { %9864 = vmatpush1.bf16.msra.mxu1 %v11063_v0  ;;  %v11070_v0 = vld [vmem:[%s14123_s1 + $0x654] ss:$8 sps:$4 sm:$0xff]  }
 0x2e8   :  { %9857 = vmatprep.subr.bf16.mxu1 %v11064_v26 }
 0x2ea   :  { %3874 = vmatmul.mubr.bf16.gmra.mrb[4].mxu1 %v3695_v54  ;;  %v9774_v54 = vld [vmem:[%s14124_s0 + $0x173] sm:$0xff] }
 0x2eb   :  { %7876 = vmatmul.mubr.bf16.gmra.mrb[24].mxu0 %v7661_v34  ;;  %3883 = vmatprep.mubr.bf16.mxu1 %v11076_v1  ;;  %v11069_v34 = vld [vmem:[%s14123_s1 + $0x640] ss:$8 sps:$4 sm:$0xff]  }
 0x2ec   :  { %7885 = vmatprep.mubr.bf16.mxu0 %v11076_v1  ;;  %9865 = vmatpush1.bf16.msra.mxu1 %v11065_v46  ;;  %v9807_v46 = vld [vmem:[%s14124_s0 + $0x44] sm:$0xff] }
 0x2ed   :  { %v2614_v15 = vpop.f32.mrb[84].mxu1  ;;  %9858 = vmatprep.subr.bf16.mxu1 %v11066_v21  ;;  %v11074_v21 = vld [vmem:[%s14123_s1 + $0x674] ss:$8 sps:$4 sm:$0xff]  }
 0x2ee   :  { %v13755_v5 = vpop.f32.mrb[84].mxu0  ;;  %v13758_v32 = vadd.f32 %v2614_v15, %v13552_v31  ;;  %v2616_v41 = vpop.f32.mrb[85].mxu1  ;;  %v11068_v31 = vld [vmem:[%s14123_s1 + $0x644] ss:$8 sps:$4 sm:$0xff]   ;;  %v11073_v15 = vld [vmem:[%s14123_s1 + $0x660] ss:$8 sps:$4 sm:$0xff]  }
 0x2ef   :  { %v13760_v51 = vpop.f32.mrb[85].mxu0  ;;  %v13763_v37 = vadd.f32 %v2616_v41, %v13559_v16  ;;  %v2618_v33 = vpop.f32.mrb[86].mxu1  ;;  %v9773_v16 = vld [vmem:[%s14124_s0 + $0x163] sm:$0xff]  ;;  %v3698_v41 = vpack.c.bf16 %v9192_v56, %v9191_v50 }
 0x2f0   :  { %v6871_v6 = vpop.f32.mrb[86].mxu0  ;;  %v2620_v22 = vpop.f32.mrb[87].mxu1  ;;  %9866 = vmatpush1.bf16.msra.mxu1 %v11067_v25  ;;  %v7663_v26 = vpack.c.bf16 %v9774_v54, %v9773_v16  ;;  %v9193_v33 = vld [vmem:[%s14124_s0 + $0x101] sm:$0xff]  ;;  %v9810_v25 = vld [vmem:[%s14124_s0 + $0x74] sm:$0xff] }
 0x2f1   :  { %v6873_v4 = vpop.f32.mrb[87].mxu0  ;;  %9859 = vmatprep.subr.bf16.mxu1 %v11068_v31  ;;  %v9194_v6 = vld [vmem:[%s14124_s0 + $0x111] sm:$0xff]  ;;  %v9809_v22 = vld [vmem:[%s14124_s0 + $0x64] sm:$0xff] }
 0x2f2   :  { %3884 = vmatmul.mubr.bf16.gmra.mrb[8].mxu1 %v3696_v44  ;;  %v3699_v4 = vpack.c.bf16 %v9194_v6, %v9193_v33  ;;  %v7987_v31 = vpack.c.bf16 %v9810_v25, %v9809_v22  ;;  %v9195_v16 = vld [vmem:[%s14124_s0 + $0x121] sm:$0xff]  ;;  %v9196_v54 = vld [vmem:[%s14124_s0 + $0x131] sm:$0xff] }
 0x2f3   :  { %7886 = vmatmul.mubr.bf16.gmra.mrb[28].mxu0 %v7662_v19  ;;  %3893 = vmatprep.mubr.bf16.mxu1 %v11076_v1  ;;  %v11075_v19 = vld [vmem:[%s14123_s1 + $0x670] ss:$8 sps:$4 sm:$0xff]   ;;  %v3700_v56 = vpack.c.bf16 %v9196_v54, %v9195_v16  ;;  %v9239_v6 = vld [vmem:[%s14124_s0 + $0xe2] sm:$0xff] }
 0x2f4   :  { %7895 = vmatprep.mubr.bf16.mxu0 %v11076_v1  ;;  %9867 = vmatpush1.bf16.msra.mxu1 %v11069_v34  ;;  %v9811_v34 = vld [vmem:[%s14124_s0 + $0x84] sm:$0xff]  ;;  %v9814_v33 = vld [vmem:[%s14124_s0 + $0xb4] sm:$0xff] }
 0x2f5   :  { %9860 = vmatprep.subr.bf16.mxu1 %v11070_v0  ;;  %v9812_v0 = vld [vmem:[%s14124_s0 + $0x94] sm:$0xff] }
 0x2f6   :  { %v9240_v22 = vld [vmem:[%s14124_s0 + $0xf2] sm:$0xff] }
 0x2f7   :  { %v4028_v25 = vpack.c.bf16 %v9240_v22, %v9239_v6  ;;  %v9818_v16 = vld [vmem:[%s14124_s0 + $0x134] sm:$0xff] }
 0x2f8   :  { %9868 = vmatpush1.bf16.msra.mxu1 %v11071_v48  ;;  %v9822_v22 = vld [vmem:[%s14124_s0 + $0x174] sm:$0xff] }
 0x2f9   :  { %9861 = vmatprep.subr.bf16.mxu1 %v11072_v28 }
 0x2fa   :  { %3894 = vmatmul.mubr.bf16.gmra.mrb[112].mxu1 %v13238_v8  ;;  %v9808_v8 = vld [vmem:[%s14124_s0 + $0x54] sm:$0xff] }
 0x2fb   :  { %7896 = vmatmul.mubr.bf16.gmra.mrb[112].mxu0 %v7663_v26  ;;  %3903 = vmatprep.mubr.bf16.mxu1 %v11076_v1  ;;  %v7986_v44 = vpack.c.bf16 %v9808_v8, %v9807_v46  ;;  %v7988_v46 = vpack.c.bf16 %v9812_v0, %v9811_v34  ;;  %v9244_v34 = vld [vmem:[%s14124_s0 + $0x132] sm:$0xff]  ;;  %v9819_v0 = vld [vmem:[%s14124_s0 + $0x144] sm:$0xff] }
 0x2fc   :  { %8155 = vmatprep.mubr.bf16.mxu0 %v11076_v1  ;;  %9869 = vmatpush1.bf16.msra.mxu1 %v11073_v15 }
 0x2fd   :  { %9862 = vmatprep.subr.bf16.mxu1 %v11074_v21 }
 0x300   :  { %9870 = vmatpush1.bf16.msra.mxu1 %v11075_v19 }
 0x302   :  { %3904 = vmatmul.mubr.bf16.gmra.mrb[16].mxu1 %v3698_v41 }
 0x303   :  { %8156 = vmatmul.mubr.bf16.vlgmr.msra.gmra.mrb[0].mxu0 %v7986_v44  ;;  %3913 = vmatprep.mubr.bf16.mxu1 %v11076_v1 }
 0x304   :  { %8165 = vmatprep.mubr.bf16.mxu0 %v11076_v1 }
 0x30a   :  { %3914 = vmatmul.mubr.bf16.gmra.mrb[20].mxu1 %v3699_v4  ;;  %v7990_v4 = vpack.c.bf16 %v13425_v35, %v13401_v63  ;;  %v7991_v63 = vpack.c.bf16 %v9818_v16, %v13432_v52  ;;  %v9243_v35 = vld [vmem:[%s14124_s0 + $0x122] sm:$0xff]  ;;  %v9820_v52 = vld [vmem:[%s14124_s0 + $0x154] sm:$0xff] }
 0x30b   :  { %8166 = vmatmul.mubr.bf16.gmra.mrb[4].mxu0 %v7987_v31  ;;  %3923 = vmatprep.mubr.bf16.mxu1 %v11076_v1  ;;  %v9242_v31 = vld [vmem:[%s14124_s0 + $0x112] sm:$0xff] }
 0x30c   :  { %8175 = vmatprep.mubr.bf16.mxu0 %v11076_v1 }
 0x30d   :  { %v2904_v26 = vpop.f32.mrb[88].mxu1 }
 0x30e   :  { %v13843_v48 = vpop.f32.mrb[88].mxu0  ;;  %v13846_v28 = vadd.f32 %v2904_v26, %v13664_v38  ;;  %v2906_v50 = vpop.f32.mrb[89].mxu1  ;;  %v9813_v38 = vld [vmem:[%s14124_s0 + $0xa4] sm:$0xff] }
 0x30f   :  { %14133 = vst [vmem:[#allocation8_spill] sm:$0xff] %v13843_v48  ;;  %v13848_v8 = vpop.f32.mrb[89].mxu0  ;;  %v13851_v15 = vadd.f32 %v2906_v50, %v13669_v12  ;;  %v2908_v21 = vpop.f32.mrb[90].mxu1  ;;  %v7989_v12 = vpack.c.bf16 %v9814_v33, %v9813_v38 }
 0x310   :  { %14134 = vst [vmem:[#allocation9_spill] sm:$0xff] %v13848_v8  ;;  %v6911_v41 = vpop.f32.mrb[90].mxu0  ;;  %v2910_v44 = vpop.f32.mrb[91].mxu1  ;;  %v4030_v21 = vpack.c.bf16 %v9244_v34, %v9243_v35 }
 0x311   :  { %v6913_v19 = vpop.f32.mrb[91].mxu0  ;;  %v7992_v41 = vpack.c.bf16 %v9820_v52, %v9819_v0 }
 0x312   :  { %3924 = vmatmul.mubr.bf16.gmra.mrb[24].mxu1 %v3700_v56 }
 0x313   :  { %8176 = vmatmul.mubr.bf16.gmra.mrb[8].mxu0 %v7988_v46  ;;  %3933 = vmatprep.mubr.bf16.mxu1 %v11076_v1 }
 0x314   :  { %8185 = vmatprep.mubr.bf16.mxu0 %v11076_v1 }
 0x31a   :  { %3934 = vmatmul.mubr.bf16.gmra.mrb[116].mxu1 %v13331_v59  ;;  %v9241_v59 = vld [vmem:[%s14124_s0 + $0x102] sm:$0xff] }
 0x31b   :  { %8186 = vmatmul.mubr.bf16.gmra.mrb[116].mxu0 %v7989_v12  ;;  %4233 = vmatprep.mubr.bf16.mxu1 %v11076_v1  ;;  %v4029_v54 = vpack.c.bf16 %v9242_v31, %v9241_v59 }
 0x31c   :  { %8195 = vmatprep.mubr.bf16.mxu0 %v11076_v1 }
 0x322   :  { %4234 = vmatmul.mubr.bf16.vlgmr.msra.gmra.mrb[16].mxu1 %v4028_v25 }
 0x323   :  { %8196 = vmatmul.mubr.bf16.gmra.mrb[20].mxu0 %v7990_v4  ;;  %4243 = vmatprep.mubr.bf16.mxu1 %v11076_v1 }
 0x324   :  { %8205 = vmatprep.mubr.bf16.mxu0 %v11076_v1 }
 0x32a   :  { %4244 = vmatmul.mubr.bf16.gmra.mrb[20].mxu1 %v4029_v54 }
 0x32b   :  { %8206 = vmatmul.mubr.bf16.gmra.mrb[24].mxu0 %v7991_v63  ;;  %4253 = vmatprep.mubr.bf16.mxu1 %v11076_v1 }
 0x32c   :  { %8215 = vmatprep.mubr.bf16.mxu0 %v11076_v1 }
 0x32d   :  { %v2944_v26 = vpop.f32.mrb[92].mxu1 }
 0x32e   :  { %v13898_v50 = vpop.f32.mrb[92].mxu0  ;;  %v2981_v56 = vadd.f32 %v2944_v26, %v13758_v32  ;;  %v2946_v46 = vpop.f32.mrb[93].mxu1  ;;  %v9821_v32 = vld [vmem:[%s14124_s0 + $0x164] sm:$0xff] }
 0x32f   :  { %v13901_v44 = vpop.f32.mrb[93].mxu0  ;;  %v2982_v19 = vadd.f32 %v2946_v46, %v13763_v37  ;;  %v2948_v38 = vpop.f32.mrb[94].mxu1  ;;  %v7993_v25 = vpack.c.bf16 %v9822_v22, %v9821_v32 }
 0x330   :  { %v7201_v33 = vpop.f32.mrb[94].mxu0  ;;  %v2950_v12 = vpop.f32.mrb[95].mxu1 }
 0x331   :  { %v7203_v6 = vpop.f32.mrb[95].mxu0 }
 0x332   :  { %4254 = vmatmul.mubr.bf16.gmra.mrb[24].mxu1 %v4030_v21 }
 0x333   :  { %8216 = vmatmul.mubr.bf16.gmra.mrb[28].mxu0 %v7992_v41  ;;  %4263 = vmatprep.mubr.bf16.mxu1 %v11076_v1 }
 0x334   :  { %8225 = vmatprep.mubr.bf16.mxu0 %v11076_v1 }
 0x33a   :  { %4264 = vmatmul.mubr.bf16.gmra.mrb[120].mxu1 %v13554_v43 }
 0x33b   :  { %8226 = vmatmul.mubr.bf16.gmra.mrb[120].mxu0 %v7993_v25 }
 0x34d   :  { %v3234_v37 = vpop.f32.mrb[96].mxu1 }
 0x34e   :  { %v13913_v4 = vpop.f32.mrb[96].mxu0  ;;  %v3295_v59 = vadd.f32 %v3234_v37, %v13846_v28  ;;  %v3236_v31 = vpop.f32.mrb[97].mxu1 }
 0x34f   :  { %14135 = vst [vmem:[#allocation10_spill] sm:$0xff] %v13913_v4  ;;  %v13916_v16 = vpop.f32.mrb[97].mxu0  ;;  %v3296_v1 = vadd.f32 %v3236_v31, %v13851_v15  ;;  %v3238_v54 = vpop.f32.mrb[98].mxu1 }
 0x350   :  { %14136 = vst [vmem:[#allocation11_spill] sm:$0xff] %v13916_v16  ;;  %v7241_v63 = vpop.f32.mrb[98].mxu0  ;;  %v3240_v35 = vpop.f32.mrb[99].mxu1 }
 0x351   :  { %v7243_v34 = vpop.f32.mrb[99].mxu0 }
 0x36d   :  { %v3274_v0 = vpop.f32.mrb[100].mxu1 }
 0x36e   :  { %v13919_v52 = vpop.f32.mrb[100].mxu0  ;;  %v3311_v26 = vadd.f32 %v3274_v0, %v2981_v56  ;;  %v3276_v43 = vpop.f32.mrb[101].mxu1 }
 0x36f   :  { %v13921_v46 = vpop.f32.mrb[101].mxu0  ;;  %v3312_v21 = vadd.f32 %v3276_v43, %v2982_v19  ;;  %v3278_v41 = vpop.f32.mrb[102].mxu1 }
 0x370   :  { %v7531_v38 = vpop.f32.mrb[102].mxu0  ;;  %v3280_v28 = vpop.f32.mrb[103].mxu1 }
 0x371   :  { %v7533_v33 = vpop.f32.mrb[103].mxu0 }
 0x38d   :  { %v3565_v12 = vpop.f32.mrb[104].mxu1 }
 0x38e   :  { %v13923_v6 = vpop.f32.mrb[104].mxu0  ;;  %v3626_v15 = vadd.f32 %v3565_v12, %v3295_v59  ;;  %v3567_v32 = vpop.f32.mrb[105].mxu1 }
 0x38f   :  { %14137 = vst [vmem:[#allocation12_spill] sm:$0xff] %v13923_v6  ;;  %v13925_v22 = vpop.f32.mrb[105].mxu0  ;;  %v3627_v25 = vadd.f32 %v3567_v32, %v3296_v1  ;;  %v3569_v37 = vpop.f32.mrb[106].mxu1 }
 0x390   :  { %14138 = vst [vmem:[#allocation13_spill] sm:$0xff] %v13925_v22  ;;  %v7571_v31 = vpop.f32.mrb[106].mxu0  ;;  %v3571_v54 = vpop.f32.mrb[107].mxu1 }
 0x391   :  { %v7573_v56 = vpop.f32.mrb[107].mxu0 }
 0x3ad   :  { %v3605_v63 = vpop.f32.mrb[108].mxu1 }
 0x3ae   :  { %v13927_v35 = vpop.f32.mrb[108].mxu0  ;;  %v13929_v19 = vadd.f32 %v3605_v63, %v3311_v26  ;;  %v3607_v34 = vpop.f32.mrb[109].mxu1 }
 0x3af   :  { %v13931_v0 = vpop.f32.mrb[109].mxu0  ;;  %v13933_v43 = vadd.f32 %v3607_v34, %v3312_v21  ;;  %v3609_v41 = vpop.f32.mrb[110].mxu1 }
 0x3b0   :  { %v7861_v59 = vpop.f32.mrb[110].mxu0  ;;  %v3611_v38 = vpop.f32.mrb[111].mxu1  ;;  %v8330_v41 = vlaneseq }
 0x3b1   :  { %v7863_v28 = vpop.f32.mrb[111].mxu0 }
 0x3b2   :  { %v13951_v59 = vshrl.u32 %v8330_v41, 7  ;;  %v8328_v41 = vld [vmem:[%s14125_s2] sm:$0x3] }
 0x3b4   :  { %14139 = vst [vmem:[#allocation14_spill] sm:$0xff] %v13951_v59  ;;  %v8332_v3 = vsub.s32 0, %v13951_v59 }
 0x3b5   :  { %v3865_v33 = vpop.f32.mrb[0].mxu1 }
 0x3b6   :  { %v3867_v1 = vpop.f32.mrb[1].mxu1 }
 0x3b7   :  { %v3869_v12 = vpop.f32.mrb[2].mxu1 }
 0x3b8   :  { %v3871_v32 = vpop.f32.mrb[3].mxu1 }
 0x3bd   :  { %v13935_v37 = vpop.f32.mrb[4].mxu1 }
 0x3be   :  { %v13937_v31 = vpop.f32.mrb[5].mxu1 }
 0x3bf   :  { %v13939_v54 = vpop.f32.mrb[6].mxu1 }
 0x3c0   :  { %v13941_v26 = vpop.f32.mrb[7].mxu1 }
 0x3c5   :  { %v13943_v56 = vpop.f32.mrb[8].mxu1 }
 0x3c6   :  { %v13945_v21 = vpop.f32.mrb[9].mxu1 }
 0x3c7   :  { %v13947_v63 = vpop.f32.mrb[10].mxu1 }
 0x3c8   :  { %v13949_v34 = vpop.f32.mrb[11].mxu1 }
 0x3cd   :  { %v3895_v38 = vpop.f32.mrb[112].mxu1 }
 0x3ce   :  { %v13953_v28 = vpop.f32.mrb[112].mxu0  ;;  %v3956_v22 = vadd.f32 %v3895_v38, %v3626_v15  ;;  %v3897_v6 = vpop.f32.mrb[113].mxu1  ;;  %v8336_v15 = vsub.s32 1, %v13951_v59 }
 0x3cf   :  { %v13955_v16 = vpop.f32.mrb[113].mxu0  ;;  %v3957_v4 = vadd.f32 %v3897_v6, %v3627_v25  ;;  %v3899_v8 = vpop.f32.mrb[114].mxu1 }
 0x3d0   :  { %14140 = vst [vmem:[#allocation15_spill] sm:$0xff] %v13955_v16  ;;  %v7901_v48 = vpop.f32.mrb[114].mxu0  ;;  %v4286_v55 = vadd.f32 %v12088_v27, %v3956_v22  ;;  %v3901_v42 = vpop.f32.mrb[115].mxu1  ;;  %v13967_v8 = vrot.slane %v8328_v41, %v8332_v3 }
 0x3d1   :  { %v7903_v7 = vpop.f32.mrb[115].mxu0  ;;  %v4287_v2 = vadd.f32 %v12099_v36, %v3957_v4  ;;  %v13970_v42 = vrot.slane %v8328_v41, %v8336_v15 }
 0x3d2   :  { %v4616_v38 = vadd.f32 %v12189_v10, %v4286_v55 }
 0x3d3   :  { %v4617_v6 = vadd.f32 %v12197_v11, %v4287_v2 }
 0x3d4   :  { %v4946_v48 = vadd.f32 %v12405_v53, %v4616_v38 }
 0x3d5   :  { %v4947_v27 = vadd.f32 %v12414_v57, %v4617_v6 }
 0x3d6   :  { %v8157_v7 = vpop.f32.mrb[0].mxu0  ;;  %v5277_v36 = vadd.f32 %v12664_v24, %v4946_v48 }
 0x3d7   :  { %v9871_v4 = vadd.f32 %v8157_v7, %v3865_v33  ;;  %v8159_v22 = vpop.f32.mrb[1].mxu0  ;;  %v5278_v25 = vadd.f32 %v12673_v29, %v4947_v27 }
 0x3d8   :  { %v9872_v59 = vadd.f32 %v8159_v22, %v3867_v1  ;;  %v8161_v16 = vpop.f32.mrb[2].mxu0  ;;  %v5607_v10 = vadd.f32 %v12906_v17, %v5277_v36 }
 0x3d9   :  { %v8340_v11 = vadd.f32 %v9871_v4, %v13967_v8  ;;  %v9873_v53 = vadd.f32 %v8161_v16, %v3869_v12  ;;  %v8163_v2 = vpop.f32.mrb[3].mxu0  ;;  %v5608_v3 = vadd.f32 %v12913_v39, %v5278_v25 }
 0x3da   :  { %v8341_v57 = vadd.f32 %v9872_v59, %v13970_v42  ;;  %v9874_v55 = vadd.f32 %v8163_v2, %v3871_v32  ;;  %v5937_v41 = vadd.f32 %v13119_v23, %v5607_v10 }
 0x3db   :  { %v8368_v24 = vmax.f32 %v8340_v11, 0.0  ;;  %v8342_v33 = vadd.f32 %v9873_v53, %v13967_v8  ;;  %v5938_v29 = vadd.f32 %v13126_v40, %v5608_v3 }
 0x3dc   :  { %v8369_v1 = vmax.f32 %v8341_v57, 0.0  ;;  %v8343_v15 = vadd.f32 %v9874_v55, %v13970_v42  ;;  %v6267_v16 = vadd.f32 %v13326_v14, %v5937_v41 }
 0x3dd   :  { %v8424_v17 = vrot.slane %v8368_v24, 1  ;;  %v8508_v38 = vrot.slane %v8368_v24, 2  ;;  %v8370_v6 = vmax.f32 %v8342_v33, 0.0  ;;  %v6268_v32 = vadd.f32 %v13333_v60, %v5938_v29 }
 0x3de   :  { %v8425_v12 = vrot.slane %v8369_v1, 1  ;;  %v8509_v39 = vrot.slane %v8369_v1, 2  ;;  %v8371_v48 = vmax.f32 %v8343_v15, 0.0  ;;  %v8167_v59 = vpop.f32.mrb[4].mxu0 }
 0x3df   :  { %v8480_v23 = vmax.f32 %v8368_v24, %v8424_v17  ;;  %v8426_v27 = vrot.slane %v8370_v6, 1  ;;  %v8510_v7 = vrot.slane %v8370_v6, 2  ;;  %v9875_v36 = vadd.f32 %v8167_v59, %v13935_v37  ;;  %v8169_v40 = vpop.f32.mrb[5].mxu0 }
 0x3e0   :  { %v8481_v4 = vmax.f32 %v8369_v1, %v8425_v12  ;;  %v8427_v22 = vrot.slane %v8371_v48, 1  ;;  %v8511_v25 = vrot.slane %v8371_v48, 2  ;;  %v9876_v10 = vadd.f32 %v8169_v40, %v13937_v31  ;;  %v8171_v11 = vpop.f32.mrb[6].mxu0 }
 0x3e1   :  { %v8564_v53 = vmax.f32 %v8480_v23, %v8508_v38  ;;  %v8482_v14 = vmax.f32 %v8370_v6, %v8426_v27  ;;  %v8344_v2 = vadd.f32 %v9875_v36, %v13967_v8  ;;  %v9877_v3 = vadd.f32 %v8171_v11, %v13939_v54  ;;  %v8173_v57 = vpop.f32.mrb[7].mxu0 }
 0x3e2   :  { %v8565_v60 = vmax.f32 %v8481_v4, %v8509_v39  ;;  %v8483_v55 = vmax.f32 %v8371_v48, %v8427_v22  ;;  %v8345_v41 = vadd.f32 %v9876_v10, %v13970_v42  ;;  %v9878_v37 = vadd.f32 %v8173_v57, %v13941_v26 }
 0x3e3   :  { %v8566_v24 = vmax.f32 %v8482_v14, %v8510_v7  ;;  %v8372_v33 = vmax.f32 %v8344_v2, 0.0  ;;  %v8346_v29 = vadd.f32 %v9877_v3, %v13967_v8  ;;  %v13992_v31 = vadd.f32 %v13549_v30, %v6267_v16 }
 0x3e4   :  { %v8567_v1 = vmax.f32 %v8483_v55, %v8511_v25  ;;  %v8373_v15 = vmax.f32 %v8345_v41, 0.0  ;;  %v8347_v17 = vadd.f32 %v9878_v37, %v13970_v42  ;;  %v13996_v54 = vadd.f32 %v13556_v20, %v6268_v32 }
 0x3e5   :  { %v8592_v38 = vmax.f32 %v8564_v53, %v8566_v24  ;;  %v8428_v6 = vrot.slane %v8372_v33, 1  ;;  %v8512_v12 = vrot.slane %v8372_v33, 2  ;;  %v8374_v39 = vmax.f32 %v8346_v29, 0.0 }
 0x3e6   :  { %v8593_v48 = vmax.f32 %v8565_v60, %v8567_v1  ;;  %v8429_v26 = vrot.slane %v8373_v15, 1  ;;  %v8513_v59 = vrot.slane %v8373_v15, 2  ;;  %v8375_v23 = vmax.f32 %v8347_v17, 0.0  ;;  %v8177_v27 = vpop.f32.mrb[8].mxu0 }
 0x3e7   :  { %v8484_v7 = vmax.f32 %v8372_v33, %v8428_v6  ;;  %v8430_v36 = vrot.slane %v8374_v39, 1  ;;  %v8514_v30 = vrot.slane %v8374_v39, 2  ;;  %v9879_v16 = vadd.f32 %v8177_v27, %v13943_v56  ;;  %v8179_v40 = vpop.f32.mrb[9].mxu0 }
 0x3e8   :  { %v8485_v4 = vmax.f32 %v8373_v15, %v8429_v26  ;;  %v8431_v22 = vrot.slane %v8375_v23, 1  ;;  %v8515_v25 = vrot.slane %v8375_v23, 2  ;;  %v9880_v20 = vadd.f32 %v8179_v40, %v13945_v21  ;;  %v8181_v32 = vpop.f32.mrb[10].mxu0 }
 0x3e9   :  { %v8568_v10 = vmax.f32 %v8484_v7, %v8512_v12  ;;  %v8486_v11 = vmax.f32 %v8374_v39, %v8430_v36  ;;  %v8348_v53 = vadd.f32 %v9879_v16, %v13967_v8  ;;  %v9881_v14 = vadd.f32 %v8181_v32, %v13947_v63  ;;  %v8183_v2 = vpop.f32.mrb[11].mxu0 }
 0x3ea   :  { %v8569_v3 = vmax.f32 %v8485_v4, %v8513_v59  ;;  %v8487_v57 = vmax.f32 %v8375_v23, %v8431_v22  ;;  %v8349_v60 = vadd.f32 %v9880_v20, %v13970_v42  ;;  %v9882_v56 = vadd.f32 %v8183_v2, %v13949_v34 }
 0x3eb   :  { %v8604_v55 = vmax.f32 %v8592_v38, %v8568_v10  ;;  %v8570_v41 = vmax.f32 %v8486_v11, %v8514_v30  ;;  %v8376_v37 = vmax.f32 %v8348_v53, 0.0  ;;  %v8350_v24 = vadd.f32 %v9881_v14, %v13967_v8 }
 0x3ec   :  { %v8605_v21 = vmax.f32 %v8593_v48, %v8569_v3  ;;  %v8571_v33 = vmax.f32 %v8487_v57, %v8515_v25  ;;  %v8377_v29 = vmax.f32 %v8349_v60, 0.0  ;;  %v8351_v1 = vadd.f32 %v9882_v56, %v13970_v42 }
 0x3ed   :  { %v8620_v15 = vrot.slane %v8604_v55, 2  ;;  %v8632_v17 = vrot.slane %v8604_v55, 4  ;;  %v8594_v63 = vmax.f32 %v8568_v10, %v8570_v41  ;;  %v8432_v6 = vrot.slane %v8376_v37, 1  ;;  %v3935_v23 = vpop.f32.mrb[116].mxu1 }
 0x3ee   :  { %v8621_v12 = vrot.slane %v8605_v21, 2  ;;  %v8633_v39 = vrot.slane %v8605_v21, 4  ;;  %v8595_v26 = vmax.f32 %v8569_v3, %v8571_v33  ;;  %v8516_v59 = vrot.slane %v8376_v37, 2  ;;  %v8187_v34 = vpop.f32.mrb[116].mxu0  ;;  %v3937_v30 = vpop.f32.mrb[117].mxu1 }
 0x3ef   :  { %v8628_v38 = vadd.f32 %v8620_v15, %v8604_v55  ;;  %v8488_v27 = vmax.f32 %v8376_v37, %v8432_v6  ;;  %v8433_v7 = vrot.slane %v8377_v29, 1  ;;  %v8517_v36 = vrot.slane %v8377_v29, 2  ;;  %v8189_v48 = vpop.f32.mrb[117].mxu0  ;;  %v3939_v25 = vpop.f32.mrb[118].mxu1 }
 0x3f0   :  { %v8629_v16 = vadd.f32 %v8621_v12, %v8605_v21  ;;  %v8378_v40 = vmax.f32 %v8350_v24, 0.0  ;;  %v8379_v4 = vmax.f32 %v8351_v1, 0.0  ;;  %v14007_v22 = vadd.f32 %v3935_v23, %v13929_v19  ;;  %v8191_v20 = vpop.f32.mrb[118].mxu0  ;;  %v3941_v14 = vpop.f32.mrb[119].mxu1 }
 0x3f1   :  { %v14009_v32 = vmax.f32 %v8488_v27, %v8516_v59  ;;  %v8640_v10 = vadd.f32 %v8632_v17, %v8628_v38  ;;  %v8489_v11 = vmax.f32 %v8377_v29, %v8433_v7  ;;  %v6928_v53 = vadd.f32 %v13755_v5, %v13992_v31  ;;  %v8193_v2 = vpop.f32.mrb[119].mxu0 }
 0x3f2   :  { %v8641_v3 = vadd.f32 %v8633_v39, %v8629_v16  ;;  %v8434_v57 = vrot.slane %v8378_v40, 1  ;;  %v8518_v60 = vrot.slane %v8378_v40, 2  ;;  %v8435_v56 = vrot.slane %v8379_v4, 1 }
 0x3f3   :  { %v8606_v55 = vmax.f32 %v8594_v63, %v14009_v32  ;;  %v14014_v41 = vmax.f32 %v8489_v11, %v8517_v36  ;;  %v8519_v19 = vrot.slane %v8379_v4, 2  ;;  %v7258_v37 = vadd.f32 %v13898_v50, %v6928_v53 }
 0x3f4   :  { %v8490_v24 = vmax.f32 %v8378_v40, %v8434_v57  ;;  %v8491_v21 = vmax.f32 %v8379_v4, %v8435_v56  ;;  %v14018_v33 = vadd.f32 %v3937_v30, %v13933_v43  ;;  %v6929_v5 = vadd.f32 %v13760_v51, %v13996_v54 }
 0x3f5   :  { %v8644_v31 = vadd.f32 %v8640_v10, %v8606_v55  ;;  %v8652_v29 = vrot.slane %v8606_v55, 2  ;;  %v8664_v1 = vrot.slane %v8606_v55, 4  ;;  %v8607_v15 = vmax.f32 %v8595_v26, %v14014_v41  ;;  %v4235_v12 = vpop.f32.mrb[16].mxu1 }
 0x3f6   :  { %v14023_v17 = vmax.f32 %v8490_v24, %v8518_v60  ;;  %v14025_v63 = vmax.f32 %v8491_v21, %v8519_v19  ;;  %v7588_v6 = vadd.f32 %v13919_v52, %v7258_v37  ;;  %v7259_v50 = vadd.f32 %v13901_v44, %v6929_v5  ;;  %v8197_v39 = vpop.f32.mrb[20].mxu0  ;;  %v4237_v51 = vpop.f32.mrb[17].mxu1 }
 0x3f7   :  { %v8660_v43 = vadd.f32 %v8652_v29, %v8644_v31  ;;  %v8645_v59 = vadd.f32 %v8641_v3, %v8607_v15  ;;  %v8653_v23 = vrot.slane %v8607_v15, 2  ;;  %v8665_v38 = vrot.slane %v8607_v15, 4  ;;  %v8199_v54 = vpop.f32.mrb[21].mxu0  ;;  %v4239_v36 = vpop.f32.mrb[18].mxu1 }
 0x3f8   :  { %v8596_v27 = vmax.f32 %v14009_v32, %v14023_v17  ;;  %v8597_v26 = vmax.f32 %v14014_v41, %v14025_v63  ;;  %v7918_v7 = vadd.f32 %v13927_v35, %v7588_v6  ;;  %v7589_v52 = vadd.f32 %v13921_v46, %v7259_v50  ;;  %v8201_v44 = vpop.f32.mrb[22].mxu0  ;;  %v4241_v25 = vpop.f32.mrb[19].mxu1 }
 0x3f9   :  { %v8661_v30 = vadd.f32 %v8653_v23, %v8645_v59  ;;  %v14035_v16 = vadd.f32 %v8664_v1, %v8660_v43  ;;  %v9883_v40 = vadd.f32 %v8197_v39, %v4235_v12  ;;  %v9884_v4 = vadd.f32 %v8199_v54, %v4237_v51  ;;  %v8203_v20 = vpop.f32.mrb[23].mxu0 }
 0x3fa   :  { %v8248_v10 = vadd.f32 %v8187_v34, %v7918_v7  ;;  %v7919_v11 = vadd.f32 %v13931_v0, %v7589_v52  ;;  %v9885_v53 = vadd.f32 %v8201_v44, %v4239_v36  ;;  %v9886_v14 = vadd.f32 %v8203_v20, %v4241_v25 }
 0x3fb   :  { %v14038_v2 = vadd.f32 %v8665_v38, %v8661_v30  ;;  %v8354_v35 = vadd.f32 %v9883_v40, %v13967_v8  ;;  %v8355_v46 = vadd.f32 %v9884_v4, %v13970_v42 }
 0x3fc   :  { %v8352_v3 = vadd.f32 %v13967_v8, %v8248_v10  ;;  %v8249_v57 = vadd.f32 %v8189_v48, %v7919_v11  ;;  %v8356_v60 = vadd.f32 %v9885_v53, %v13967_v8  ;;  %v8357_v56 = vadd.f32 %v9886_v14, %v13970_v42 }
 0x3fd   :  { %v8382_v55 = vmax.f32 %v8354_v35, 0.0  ;;  %v8383_v19 = vmax.f32 %v8355_v46, 0.0  ;;  %v4245_v21 = vpop.f32.mrb[20].mxu1 }
 0x3fe   :  { %v8380_v34 = vmax.f32 %v8352_v3, 0.0  ;;  %v8353_v0 = vadd.f32 %v13970_v42, %v8249_v57  ;;  %v8384_v37 = vmax.f32 %v8356_v60, 0.0  ;;  %v8385_v24 = vmax.f32 %v8357_v56, 0.0  ;;  %v8207_v5 = vpop.f32.mrb[24].mxu0  ;;  %v4247_v6 = vpop.f32.mrb[21].mxu1 }
 0x3ff   :  { %v8438_v31 = vrot.slane %v8382_v55, 1  ;;  %v8522_v29 = vrot.slane %v8382_v55, 2  ;;  %v8439_v1 = vrot.slane %v8383_v19, 1  ;;  %v8523_v15 = vrot.slane %v8383_v19, 2  ;;  %v8209_v50 = vpop.f32.mrb[25].mxu0  ;;  %v4249_v59 = vpop.f32.mrb[22].mxu1 }
 0x400   :  { %v8436_v48 = vrot.slane %v8380_v34, 1  ;;  %v8520_v12 = vrot.slane %v8380_v34, 2  ;;  %v8381_v39 = vmax.f32 %v8353_v0, 0.0  ;;  %v8440_v43 = vrot.slane %v8384_v37, 1  ;;  %v8211_v23 = vpop.f32.mrb[26].mxu0  ;;  %v4251_v52 = vpop.f32.mrb[23].mxu1 }
 0x401   :  { %v8494_v38 = vmax.f32 %v8382_v55, %v8438_v31  ;;  %v8495_v51 = vmax.f32 %v8383_v19, %v8439_v1  ;;  %v8524_v54 = vrot.slane %v8384_v37, 2  ;;  %v8441_v7 = vrot.slane %v8385_v24, 1  ;;  %v8213_v36 = vpop.f32.mrb[27].mxu0 }
 0x402   :  { %v8492_v44 = vmax.f32 %v8380_v34, %v8436_v48  ;;  %v8437_v30 = vrot.slane %v8381_v39, 1  ;;  %v8521_v40 = vrot.slane %v8381_v39, 2  ;;  %v8496_v4 = vmax.f32 %v8384_v37, %v8440_v43 }
 0x403   :  { %v14046_v25 = vmax.f32 %v8494_v38, %v8522_v29  ;;  %v14048_v20 = vmax.f32 %v8495_v51, %v8523_v15  ;;  %v8497_v10 = vmax.f32 %v8385_v24, %v8441_v7  ;;  %v8525_v11 = vrot.slane %v8385_v24, 2 }
 0x404   :  { %v8576_v53 = vmax.f32 %v8492_v44, %v8520_v12  ;;  %v8493_v14 = vmax.f32 %v8381_v39, %v8437_v30  ;;  %v14050_v35 = vmax.f32 %v8496_v4, %v8524_v54  ;;  %v9887_v46 = vadd.f32 %v8207_v5, %v4245_v21 }
 0x405   :  { %v14052_v3 = vmax.f32 %v8497_v10, %v8525_v11  ;;  %v9888_v57 = vadd.f32 %v8209_v50, %v4247_v6  ;;  %v9889_v60 = vadd.f32 %v8211_v23, %v4249_v59  ;;  %v9890_v56 = vadd.f32 %v8213_v36, %v4251_v52  ;;  %v4255_v37 = vpop.f32.mrb[24].mxu1 }
 0x406   :  { %v8608_v55 = vmax.f32 %v8596_v27, %v8576_v53  ;;  %v8577_v19 = vmax.f32 %v8493_v14, %v8521_v40  ;;  %v8598_v34 = vmax.f32 %v14046_v25, %v14050_v35  ;;  %v8358_v0 = vadd.f32 %v9887_v46, %v13967_v8  ;;  %v8217_v24 = vpop.f32.mrb[28].mxu0  ;;  %v4257_v1 = vpop.f32.mrb[25].mxu1 }
 0x407   :  { %v8599_v21 = vmax.f32 %v14048_v20, %v14052_v3  ;;  %v8359_v5 = vadd.f32 %v9888_v57, %v13970_v42  ;;  %v8360_v31 = vadd.f32 %v9889_v60, %v13967_v8  ;;  %v8361_v29 = vadd.f32 %v9890_v56, %v13970_v42  ;;  %v8219_v32 = vpop.f32.mrb[29].mxu0  ;;  %v4259_v50 = vpop.f32.mrb[26].mxu1 }
 0x408   :  { %v8676_v17 = vadd.f32 %v14035_v16, %v8608_v55  ;;  %v8684_v27 = vrot.slane %v8608_v55, 2  ;;  %v8696_v15 = vrot.slane %v8608_v55, 4  ;;  %v8609_v6 = vmax.f32 %v8597_v26, %v8577_v19  ;;  %v8221_v48 = vpop.f32.mrb[30].mxu0  ;;  %v4261_v23 = vpop.f32.mrb[27].mxu1 }
 0x409   :  { %v8386_v12 = vmax.f32 %v8358_v0, 0.0  ;;  %v8387_v39 = vmax.f32 %v8359_v5, 0.0  ;;  %v8388_v43 = vmax.f32 %v8360_v31, 0.0  ;;  %v8389_v59 = vmax.f32 %v8361_v29, 0.0  ;;  %v8223_v38 = vpop.f32.mrb[31].mxu0 }
 0x40a   :  { %v8692_v51 = vadd.f32 %v8684_v27, %v8676_v17  ;;  %v8677_v54 = vadd.f32 %v14038_v2, %v8609_v6  ;;  %v8685_v7 = vrot.slane %v8609_v6, 2  ;;  %v8697_v52 = vrot.slane %v8609_v6, 4 }
 0x40b   :  { %v8442_v16 = vrot.slane %v8386_v12, 1  ;;  %v8526_v36 = vrot.slane %v8386_v12, 2  ;;  %v8443_v44 = vrot.slane %v8387_v39, 1  ;;  %v8527_v30 = vrot.slane %v8387_v39, 2 }
 0x40c   :  { %v8704_v40 = vadd.f32 %v8696_v15, %v8692_v51  ;;  %v8693_v41 = vadd.f32 %v8685_v7, %v8677_v54  ;;  %v8444_v63 = vrot.slane %v8388_v43, 1  ;;  %v8528_v26 = vrot.slane %v8388_v43, 2 }
 0x40d   :  { %v8498_v4 = vmax.f32 %v8386_v12, %v8442_v16  ;;  %v8499_v25 = vmax.f32 %v8387_v39, %v8443_v44  ;;  %v8445_v20 = vrot.slane %v8389_v59, 1  ;;  %v8529_v10 = vrot.slane %v8389_v59, 2  ;;  %v4265_v2 = vpop.f32.mrb[120].mxu1 }
 0x40e   :  { %v14070_v11 = vmul.f32 0.11111111, %v8704_v40  ;;  %v8705_v53 = vadd.f32 %v8697_v52, %v8693_v41  ;;  %v8500_v14 = vmax.f32 %v8388_v43, %v8444_v63  ;;  %v9891_v35 = vadd.f32 %v8217_v24, %v4255_v37  ;;  %v14072_v46 = vpop.f32.mrb[120].mxu0  ;;  %v4267_v55 = vpop.f32.mrb[121].mxu1 }
 0x40f   :  { %v8582_v3 = vmax.f32 %v8498_v4, %v8526_v36  ;;  %v8583_v57 = vmax.f32 %v8499_v25, %v8527_v30  ;;  %v8501_v60 = vmax.f32 %v8389_v59, %v8445_v20  ;;  %v9892_v56 = vadd.f32 %v8219_v32, %v4257_v1  ;;  %v14074_v19 = vpop.f32.mrb[121].mxu0  ;;  %v4269_v17 = vpop.f32.mrb[122].mxu1 }
 0x410   :  { %v14076_v0 = vmul.f32 0.11111111, %v8705_v53  ;;  %v8584_v5 = vmax.f32 %v8500_v14, %v8528_v26  ;;  %v8362_v31 = vadd.f32 %v9891_v35, %v13967_v8  ;;  %v9893_v29 = vadd.f32 %v8221_v48, %v4259_v50  ;;  %v8231_v27 = vpop.f32.mrb[122].mxu0  ;;  %v4271_v12 = vpop.f32.mrb[123].mxu1 }
 0x411   :  { %v8610_v15 = vmax.f32 %v8598_v34, %v8582_v3  ;;  %v8611_v37 = vmax.f32 %v8599_v21, %v8583_v57  ;;  %v8585_v24 = vmax.f32 %v8501_v60, %v8529_v10  ;;  %v8363_v6 = vadd.f32 %v9892_v56, %v13970_v42  ;;  %v8233_v39 = vpop.f32.mrb[123].mxu0 }
 0x412   :  { %v8716_v1 = vcombine.low %v14070_v11, %v14076_v0  ;;  %v8600_v32 = vmax.f32 %v8582_v3, %v8584_v5  ;;  %v8390_v43 = vmax.f32 %v8362_v31, 0.0  ;;  %v8364_v59 = vadd.f32 %v9893_v29, %v13967_v8 }
 0x413   :  { %v8622_v51 = vrot.slane %v8610_v15, 2  ;;  %v8623_v54 = vrot.slane %v8611_v37, 2  ;;  %v8634_v7 = vrot.slane %v8610_v15, 4  ;;  %v8601_v50 = vmax.f32 %v8583_v57, %v8585_v24 }
 0x414   :  { %v8446_v48 = vrot.slane %v8390_v43, 1  ;;  %v8530_v34 = vrot.slane %v8390_v43, 2  ;;  %v8391_v21 = vmax.f32 %v8363_v6, 0.0  ;;  %v8392_v16 = vmax.f32 %v8364_v59, 0.0 }
 0x415   :  { %v8630_v52 = vadd.f32 %v8622_v51, %v8610_v15  ;;  %v9894_v44 = vadd.f32 %v8223_v38, %v4261_v23  ;;  %v4302_v30 = vadd.f32 %v4265_v2, %v14007_v22  ;;  %v4303_v40 = vadd.f32 %v4267_v55, %v14018_v33 }
 0x416   :  { %v8502_v36 = vmax.f32 %v8390_v43, %v8446_v48  ;;  %v8631_v41 = vadd.f32 %v8623_v54, %v8611_v37  ;;  %v8447_v63 = vrot.slane %v8391_v21, 1  ;;  %v8448_v25 = vrot.slane %v8392_v16, 1  ;;  %v14141_v54 = vld [vmem:[#allocation3_spill] sm:$0xff] }
 0x417   :  { %v8642_v4 = vadd.f32 %v8634_v7, %v8630_v52  ;;  %v8365_v20 = vadd.f32 %v9894_v44, %v13970_v42  ;;  %v8531_v53 = vrot.slane %v8391_v21, 2  ;;  %v4632_v14 = vadd.f32 %v12291_v62, %v4302_v30  ;;  %v14142_v52 = vld [vmem:[#allocation4_spill] sm:$0xff]  ;;  %v14145_v44 = vld [vmem:[#allocation7_spill] sm:$0xff] }
 0x418   :  { %v14085_v26 = vmax.f32 %v8502_v36, %v8530_v34  ;;  %v8503_v10 = vmax.f32 %v8391_v21, %v8447_v63  ;;  %v4633_v35 = vadd.f32 %v12301_v58, %v4303_v40  ;;  %v8504_v38 = vmax.f32 %v8392_v16, %v8448_v25  ;;  %v14143_v34 = vld [vmem:[#allocation5_spill] sm:$0xff]  ;;  %v14146_v30 = vld [vmem:[#allocation8_spill] sm:$0xff]  ;;  %v14148_v63 = vld [vmem:[#allocation10_spill] sm:$0xff] }
 0x419   :  { %v8532_v22 = vrot.slane %v8392_v16, 2  ;;  %v8393_v2 = vmax.f32 %v8365_v20, 0.0  ;;  %v8635_v33 = vrot.slane %v8611_v37, 4  ;;  %v4962_v57 = vadd.f32 %v12534_v13, %v4632_v14  ;;  %v14144_v16 = vld [vmem:[#allocation6_spill] sm:$0xff]  ;;  %v14147_v40 = vld [vmem:[#allocation9_spill] sm:$0xff]  ;;  %v14150_v25 = vld [vmem:[#allocation12_spill] sm:$0xff] }
 0x41a   :  { %v8612_v23 = vmax.f32 %v8600_v32, %v14085_v26  ;;  %v8587_v3 = vmax.f32 %v8503_v10, %v8531_v53  ;;  %v4963_v60 = vadd.f32 %v12546_v61, %v4633_v35  ;;  %v14151_v10 = vld [vmem:[#allocation13_spill] sm:$0xff]  ;;  %v14152_v35 = vld [vmem:[#allocation15_spill] sm:$0xff] }
 0x41b   :  { %v8588_v5 = vmax.f32 %v8504_v38, %v8532_v22  ;;  %v8643_v29 = vadd.f32 %v8635_v33, %v8631_v41  ;;  %v8449_v17 = vrot.slane %v8393_v2, 1  ;;  %v5293_v62 = vadd.f32 %v12794_v9, %v4962_v57 }
 0x41c   :  { %v8646_v56 = vadd.f32 %v8642_v4, %v8612_v23  ;;  %v8654_v55 = vrot.slane %v8612_v23, 2  ;;  %v8613_v31 = vmax.f32 %v8601_v50, %v8587_v3  ;;  %v8666_v27 = vrot.slane %v8612_v23, 4  ;;  %v14149_v4 = vld [vmem:[#allocation11_spill] sm:$0xff] }
 0x41d   :  { %v8602_v15 = vmax.f32 %v14085_v26, %v8588_v5  ;;  %v5294_v24 = vadd.f32 %v12806_v18, %v4963_v60  ;;  %v8505_v12 = vmax.f32 %v8393_v2, %v8449_v17  ;;  %v8533_v13 = vrot.slane %v8393_v2, 2 }
 0x41e   :  { %v8662_v58 = vadd.f32 %v8654_v55, %v8646_v56  ;;  %v8647_v37 = vadd.f32 %v8643_v29, %v8613_v31  ;;  %v8655_v6 = vrot.slane %v8613_v31, 2  ;;  %v5623_v61 = vadd.f32 %v13015_v49, %v5293_v62 }
 0x41f   :  { %v5624_v39 = vadd.f32 %v13027_v47, %v5294_v24  ;;  %v8667_v59 = vrot.slane %v8613_v31, 4  ;;  %v8589_v51 = vmax.f32 %v8505_v12, %v8533_v13 }
 0x420   :  { %v8674_v32 = vadd.f32 %v8666_v27, %v8662_v58  ;;  %v8663_v43 = vadd.f32 %v8655_v6, %v8647_v37  ;;  %v5953_v9 = vadd.f32 %v13228_v45, %v5623_v61 }
 0x421   :  { %v5954_v7 = vadd.f32 %v14141_v54, %v5624_v39  ;;  %v8603_v50 = vmax.f32 %v8587_v3, %v8589_v51 }
 0x422   :  { %v8675_v48 = vadd.f32 %v8667_v59, %v8663_v43  ;;  %v6283_v18 = vadd.f32 %v14142_v52, %v5953_v9  ;;  %v14153_v9 = vld [vmem:[#allocation14_spill] sm:$0xff] }
 0x423   :  { %v6284_v21 = vadd.f32 %v14143_v34, %v5954_v7 }
 0x424   :  { %v6613_v36 = vadd.f32 %v14144_v16, %v6283_v18 }
 0x425   :  { %v6614_v49 = vadd.f32 %v14145_v44, %v6284_v21 }
 0x426   :  { %v6944_v47 = vadd.f32 %v14146_v30, %v6613_v36 }
 0x427   :  { %v6945_v41 = vadd.f32 %v14147_v40, %v6614_v49 }
 0x428   :  { %v7274_v26 = vadd.f32 %v14148_v63, %v6944_v47 }
 0x429   :  { %v7275_v45 = vadd.f32 %v14149_v4, %v6945_v41 }
 0x42a   :  { %v7604_v20 = vadd.f32 %v14150_v25, %v7274_v26 }
 0x42b   :  { %v7605_v53 = vadd.f32 %v14151_v10, %v7275_v45 }
 0x42c   :  { %v7934_v14 = vadd.f32 %v13953_v28, %v7604_v20 }
 0x42d   :  { %v7935_v23 = vadd.f32 %v14152_v35, %v7605_v53 }
 0x42e   :  { %v8264_v38 = vadd.f32 %v14072_v46, %v7934_v14 }
 0x42f   :  { %v8265_v22 = vadd.f32 %v14074_v19, %v7935_v23  ;;  %v11077_v19 = vmov 1983009808  }
 0x430   :  { %v8366_v2 = vadd.f32 %v13967_v8, %v8264_v38  ;;  %v8718_v37 = vunpack.c.l.s4 %v11077_v19 }
 0x431   :  { %v8367_v33 = vadd.f32 %v13970_v42, %v8265_v22 }
 0x432   :  { %v8394_v3 = vmax.f32 %v8366_v2, 0.0  ;;  %v8719_v39 = vunpack.c.0.s8 %v8718_v37 }
 0x433   :  { %v8395_v57 = vmax.f32 %v8367_v33, 0.0 }
 0x434   :  { %v8450_v60 = vrot.slane %v8394_v3, 1  ;;  %v8534_v5 = vrot.slane %v8394_v3, 2  ;;  %v8722_v54 = vsub.s32 %v8719_v39, %v14153_v9 }
 0x435   :  { %v8451_v56 = vrot.slane %v8395_v57, 1  ;;  %v8535_v29 = vrot.slane %v8395_v57, 2 }
 0x436   :  { %v8506_v55 = vmax.f32 %v8394_v3, %v8450_v60 }
 0x437   :  { %v8507_v31 = vmax.f32 %v8395_v57, %v8451_v56 }
 0x438   :  { %v8590_v17 = vmax.f32 %v8506_v55, %v8534_v5 }
 0x439   :  { %v8591_v28 = vmax.f32 %v8507_v31, %v8535_v29 }
 0x43a   :  { %v8614_v62 = vmax.f32 %v8602_v15, %v8590_v17 }
 0x43b   :  { %v8615_v58 = vmax.f32 %v8603_v50, %v8591_v28 }
 0x43c   :  { %v8678_v27 = vadd.f32 %v8674_v32, %v8614_v62  ;;  %v8686_v46 = vrot.slane %v8614_v62, 2  ;;  %v8698_v42 = vrot.slane %v8614_v62, 4  ;;  %v8723_v32 = vrot.slane %v8716_v1, %v8722_v54 }
 0x43d   :  { %v8679_v24 = vadd.f32 %v8675_v48, %v8615_v58  ;;  %v8687_v8 = vrot.slane %v8615_v58, 2  ;;  %v8699_v13 = vrot.slane %v8615_v58, 4 }
 0x43e   :  { %v8694_v6 = vadd.f32 %v8686_v46, %v8678_v27 }
 0x43f   :  { %v8695_v12 = vadd.f32 %v8687_v8, %v8679_v24 }
 0x440   :  { %v8706_v61 = vadd.f32 %v8698_v42, %v8694_v6 }
 0x441   :  { %v8707_v43 = vadd.f32 %v8699_v13, %v8695_v12 }
 0x442   :  { %v8710_v59 = vmul.f32 0.11111111, %v8706_v61 }
 0x443   :  { %v8711_v51 = vmul.f32 0.11111111, %v8707_v43 }
 0x445   :  { %v8724_v7 = vcombine.low %v8710_v59, %v8711_v51 }
 0x447   :  { %v8731_v15 = vrot.slane %v8724_v7, %v8722_v54 }
 0x449   :  { %v8736_v50 = vrot.slane %v8731_v15, 7 }
 0x44b   :  { %v8738_v48 = vsel %vm8737_vm0, %v8736_v50, %v8723_v32 }
 0x44c   :  { %v8740_v52 = vsel %vm8739_vm1, %v8736_v50, %v8738_v48 }
 0x44d   :  { %v8742_v18 = vsel %vm8741_vm2, %v8736_v50, %v8740_v52 }
 0x44e   :  { %v8744_v34 = vsel %vm8743_vm3, %v8736_v50, %v8742_v18 }
 0x44f   :  { %8746 = vst [vmem:[%s14126_s3] sm:$0xf] %v8744_v34 }

</bundles_post_ra>
